<compile_context>
chip_gen: v7x
topology: tpu7x:2x2x1
jax: 0.10.0
libtpu: 0.0.40
codegen_flags: <defaults>
</compile_context>

<pallas_src>
import functools

import jax
import jax.numpy as jnp
import numpy as np
from jax.experimental import pallas as pl
from jax.experimental.pallas import tpu as pltpu


def _conv_pool_stats_kernel(xc_ref, xl_ref, xr_ref, w_ref, b_ref,
                            act_ref, stats_ref, win_ref,
                            *, N, Cin, Cout, K, pool, TLP, L, Lp):
    """Pass A for one pooled-length tile.

    xc_ref:    (R, TL)  f32   current input columns [c0, c0+TL)
    xl_ref:    (R, 128) f32   previous 128 input columns (left halo)
    xr_ref:    (R, 128) f32   next 128 input columns (right halo)
    w_ref:     (K, N*Cout, N*Cin) bf16  block-diag-over-batch weights per tap
    b_ref:     (1, Cout, 1) f32         conv bias
    act_ref:   (N, Cout, TLP) bf16      pooled pre-BN activation (output)
    stats_ref: (1, 2, N, Cout) f32      [sum, sum-of-squares] (output)
    win_ref:   (R, TL+256) bf16         zero-padded conv window (scratch)
    """
    TL = TLP * pool
    pad = K // 2
    R = N * Cin
    i = pl.program_id(0)
    c0 = i * TL

    # --- assemble the zero-padded conv window in VMEM (aligned bf16 stores).
    # Window column m holds input column (c0 - 128 + m); zeros outside [0, L).
    xl = jnp.where(i > 0, xl_ref[...], 0.0)                  # left conv padding
    win_ref[:, 0:128] = xl.astype(jnp.bfloat16)
    col_c = jax.lax.broadcasted_iota(jnp.int32, (R, TL), 1) + c0
    xc = jnp.where(col_c < L, xc_ref[...], 0.0)              # ragged tail of x
    win_ref[:, 128:128 + TL] = xc.astype(jnp.bfloat16)
    col_r = jax.lax.broadcasted_iota(jnp.int32, (R, 128), 1) + (c0 + TL)
    xr = jnp.where(col_r < L, xr_ref[...], 0.0)              # right conv padding
    win_ref[:, 128 + TL:128 + TL + 128] = xr.astype(jnp.bfloat16)

    # --- conv as K accumulated MXU matmuls; block-diag weights cover all n,
    # so no in-kernel weight broadcast and no im2col buffer is built.
    acc = None
    for k in range(K):
        s = 128 - pad + k                                    # static lane offset
        tap = win_ref[:, s:s + TL]                           # (R, TL) bf16
        part = jnp.dot(w_ref[k], tap, preferred_element_type=jnp.float32)
        acc = part if acc is None else acc + part            # (N*Cout, TL) f32

    y = acc.reshape(N, Cout, TL) + b_ref[...]                # conv bias
    yp = jnp.max(y.reshape(N, Cout, TLP, pool), axis=-1)     # MaxPool1d, f32

    act_ref[...] = yp.astype(jnp.bfloat16)                   # pooled pre-BN act

    # Per-tile sums for training-mode BatchNorm stats (mask pooled cols >= Lp).
    q = jax.lax.broadcasted_iota(jnp.int32, (N, Cout, TLP), 2) + i * TLP
    ypm = jnp.where(q < Lp, yp, 0.0)
    stats_ref[0, 0] = jnp.sum(ypm, axis=-1)                  # (N, Cout)
    stats_ref[0, 1] = jnp.sum(ypm * ypm, axis=-1)


def _bn_leaky_kernel(a_ref, scale_ref, shift_ref, o_ref, *, slope):
    """Pass B: folded BatchNorm affine + LeakyReLU over the pooled activation."""
    z = a_ref[...].astype(jnp.float32) * scale_ref[...] + shift_ref[...]
    o_ref[...] = jnp.where(z >= 0, z, slope * z)


def dcgan_conv_1d_forward(x, weight, bias, gamma, beta,
                          *, pool_kernel=4, eps=1e-5, slope=0.2):
    """x: (N, Cin, L) f32 (PyTorch NCL); weight: (Cout, Cin, K);
    bias/gamma/beta: (Cout,).  Returns (N, Cout, Lp) f32, Lp = Lconv//pool."""
    N, Cin, L = x.shape
    Cout, _, K = weight.shape
    pad = K // 2
    pool = pool_kernel
    Lconv = L + 2 * pad - K + 1                 # PyTorch Conv1d output length
    Lp = Lconv // pool                          # MaxPool1d floor mode
    assert Lp >= 1

    # Pooled-length tile: as large as possible (HBM roofline / per-step
    # overhead), capped at 512 and kept so the grid has >= 2 steps whenever
    # possible (megacore sharding on v7x).
    TLP = max(128, min(512, ((pl.cdiv(Lp, 2) + 127) // 128) * 128))
    TL = TLP * pool                             # conv columns per tile
    nt = pl.cdiv(Lp, TLP)                       # grid over pooled length
    TLB = TL // 128                             # tile width in 128-col blocks
    nxb = pl.cdiv(L, 128)                       # x width in 128-col blocks
    R = N * Cin

    x2 = x.reshape(R, L)                        # free row-major view, f32
    b3 = bias.astype(jnp.float32).reshape(1, Cout, 1)
    # Block-diagonal-over-batch weights: wblk[k] = kron(I_N, weight[:, :, k]),
    # so one (N*Cout, N*Cin) x (N*Cin, TL) matmul per tap handles every n.
    eyeN = jnp.eye(N, dtype=jnp.float32)
    wblk = jnp.stack(
        [jnp.kron(eyeN, weight[:, :, k].astype(jnp.float32)) for k in range(K)],
        axis=0).astype(jnp.bfloat16)            # (K, N*Cout, N*Cin)

    x_cur_spec = pl.BlockSpec((R, TL), lambda i: (0, i))
    # Halo blocks clamped into range; out-of-range data is masked in-kernel.
    x_left_spec = pl.BlockSpec((R, 128),
                               lambda i: (0, jnp.maximum(i * TLB - 1, 0)))
    x_right_spec = pl.BlockSpec((R, 128),
                                lambda i: (0, jnp.minimum((i + 1) * TLB,
                                                          nxb - 1)))
    w_spec = pl.BlockSpec((K, N * Cout, N * Cin), lambda i: (0, 0, 0))
    cvec_spec = pl.BlockSpec((1, Cout, 1), lambda i: (0, 0, 0))
    act_spec = pl.BlockSpec((N, Cout, TLP), lambda i: (0, 0, i))

    cparams = pltpu.CompilerParams(
        dimension_semantics=("parallel",),       # megacore-shardable (v7x)
        vmem_limit_bytes=48 * 1024 * 1024)       # << actual use; v7x-safe cap

    # ---- Pass A: conv + bias + maxpool, pooled act (bf16) + BN partial sums.
    # TODO(synk): if profiling shows exposed input DMA at these tiny per-tile
    # compute times, add pipeline_mode=pl.Buffered(3) on x_cur_spec.
    act, stats = pl.pallas_call(
        functools.partial(_conv_pool_stats_kernel, N=N, Cin=Cin, Cout=Cout,
                          K=K, pool=pool, TLP=TLP, L=L, Lp=Lp),
        grid=(nt,),
        in_specs=[x_cur_spec, x_left_spec, x_right_spec, w_spec, cvec_spec],
        out_specs=[act_spec,
                   pl.BlockSpec((1, 2, N, Cout), lambda i: (i, 0, 0, 0))],
        out_shape=[jax.ShapeDtypeStruct((N, Cout, Lp), jnp.bfloat16),
                   jax.ShapeDtypeStruct((nt, 2, N, Cout), jnp.float32)],
        scratch_shapes=[pltpu.VMEM((R, TL + 256), jnp.bfloat16)],
        compiler_params=cparams,
    )(x2, x2, x2, wblk, b3)

    # Fold training-mode BatchNorm (biased batch variance) into per-channel
    # scale/shift (O(Cout) scalar work in f32).
    cnt = jnp.float32(N * Lp)
    s1 = jnp.sum(stats[:, 0], axis=(0, 1))       # (Cout,)
    s2 = jnp.sum(stats[:, 1], axis=(0, 1))
    mean = s1 / cnt
    # TODO(synk): single-pass E[x^2]-E[x]^2 can cancel for large-mean
    # activations; a shifted/Welford formulation would be more robust.
    var = jnp.maximum(s2 / cnt - mean * mean, 0.0)
    scale = gamma.astype(jnp.float32) * jax.lax.rsqrt(var + eps)
    shift = beta.astype(jnp.float32) - mean * scale
    scale3 = scale.reshape(1, Cout, 1)
    shift3 = shift.reshape(1, Cout, 1)
    # TODO(synk): BatchNorm1d running_mean/running_var buffer updates (a
    # training-time side effect) are not emitted.

    # ---- Pass B: elementwise BN affine + LeakyReLU over the pooled act.
    out = pl.pallas_call(
        functools.partial(_bn_leaky_kernel, slope=slope),
        grid=(nt,),
        in_specs=[act_spec, cvec_spec, cvec_spec],
        out_specs=act_spec,
        out_shape=jax.ShapeDtypeStruct((N, Cout, Lp), jnp.float32),
        compiler_params=cparams,
    )(act, scale3, shift3)
    return out


def _reference(x, weight, bias, gamma, beta, *, pool_kernel=4, eps=1e-5,
               slope=0.2, quantize=False):
    """Pure-JAX reference of the PyTorch module (training-mode BatchNorm).
    quantize=True mirrors the kernel's numerics (bf16 conv operands and a
    bf16 round-trip of the pooled pre-BN activation)."""
    if quantize:
        x = x.astype(jnp.bfloat16).astype(jnp.float32)
        weight = weight.astype(jnp.bfloat16).astype(jnp.float32)
    K = weight.shape[-1]
    pad = K // 2
    y = jax.lax.conv_general_dilated(
        x.astype(jnp.float32), weight.astype(jnp.float32),
        window_strides=(1,), padding=[(pad, pad)],
        dimension_numbers=('NCH', 'OIH', 'NCH'))
    y = y + bias.astype(jnp.float32)[None, :, None]
    n, co, lc = y.shape
    lp = lc // pool_kernel
    y = y[:, :, :lp * pool_kernel].reshape(n, co, lp, pool_kernel).max(axis=-1)
    mean = y.mean(axis=(0, 2), keepdims=True)
    var = ((y - mean) ** 2).mean(axis=(0, 2), keepdims=True)
    scale = gamma.astype(jnp.float32)[None, :, None] * jax.lax.rsqrt(var + eps)
    shift = beta.astype(jnp.float32)[None, :, None] - mean * scale
    if quantize:
        y = y.astype(jnp.bfloat16).astype(jnp.float32)
    z = y * scale + shift
    return jnp.where(z >= 0, z, slope * z)


if __name__ == "__main__":
    def run_case(N, Cin, Cout, L, K, POOL):
        key = jax.random.PRNGKey(0)
        kx, kw, kb, kg, kbe = jax.random.split(key, 5)
        x = jax.random.normal(kx, (N, Cin, L), dtype=jnp.float32)
        weight = 0.1 * jax.random.normal(kw, (Cout, Cin, K), dtype=jnp.float32)
        bias = 0.1 * jax.random.normal(kb, (Cout,), dtype=jnp.float32)
        gamma = 1.0 + 0.1 * jax.random.normal(kg, (Cout,), dtype=jnp.float32)
        beta = 0.1 * jax.random.normal(kbe, (Cout,), dtype=jnp.float32)

        out = jax.block_until_ready(
            dcgan_conv_1d_forward(x, weight, bias, gamma, beta,
                                  pool_kernel=POOL))
        Lp = (L + 2 * (K // 2) - K + 1) // POOL
        assert out.shape == (N, Cout, Lp), (out.shape, (N, Cout, Lp))

        # 1) Reference matching the kernel's quantization points.
        ref_q = jax.block_until_ready(
            _reference(x, weight, bias, gamma, beta, pool_kernel=POOL,
                       quantize=True))
        np.testing.assert_allclose(np.asarray(out), np.asarray(ref_q),
                                   rtol=1e-2, atol=4e-2)
        # 2) Semantics check vs the full-f32 PyTorch-style reference;
        #    tolerance covers the kernel's bf16 operand / activation rounding.
        ref = jax.block_until_ready(
            _reference(x, weight, bias, gamma, beta, pool_kernel=POOL,
                       quantize=False))
        np.testing.assert_allclose(np.asarray(out), np.asarray(ref),
                                   rtol=8e-2, atol=8e-2)

    # nin=4 -> nout=8, kernel_size=5, pool_kernel=4, batch=2 (module defaults).
    run_case(2, 4, 8, 1024, 5, 4)   # aligned pooled length (Lp=256, 2 tiles)
    run_case(2, 4, 8, 1000, 5, 4)   # ragged pooled length / ragged x tail
    run_case(2, 4, 8, 8192, 5, 4)   # exercises the 512-lane pooled tiles
    print("KERNEL_OK")
</pallas_src>

<mosaic_0001>
module attributes {stable_mosaic.version = 11 : i64} {
  func.func @_conv_pool_stats_kernel(%arg0: i32, %arg1: memref<8x512xf32, #tpu.memory_space<vmem>>, %arg2: memref<8x128xf32, #tpu.memory_space<vmem>>, %arg3: memref<8x128xf32, #tpu.memory_space<vmem>>, %arg4: memref<5x16x8xbf16, #tpu.memory_space<vmem>>, %arg5: memref<1x8x1xf32, #tpu.memory_space<vmem>>, %arg6: memref<2x8x128xbf16, #tpu.memory_space<vmem>>, %arg7: memref<1x2x2x8xf32, #tpu.memory_space<vmem>>, %arg8: memref<8x768xbf16, #tpu.memory_space<vmem>>) attributes {dimension_semantics = [#tpu.dimension_semantics<parallel>], iteration_bounds = array<i64: 2>, scalar_prefetch = 0 : i64, scratch_operands = 1 : i64, tpu.core_type = #tpu.core_type<tc>, window_params = [{transform_indices = @transform_0, window_bounds = array<i64: 8, 512>}, {transform_indices = @transform_1, window_bounds = array<i64: 8, 128>}, {transform_indices = @transform_2, window_bounds = array<i64: 8, 128>}, {pipeline_mode = #tpu.pipeline_mode<synchronous>, transform_indices = @transform_3, window_bounds = array<i64: 5, 16, 8>}, {pipeline_mode = #tpu.pipeline_mode<synchronous>, transform_indices = @transform_4, window_bounds = array<i64: 1, 8, 1>}, {transform_indices = @transform_5, window_bounds = array<i64: 2, 8, 128>}, {transform_indices = @transform_6, window_bounds = array<i64: 1, 2, 2, 8>}]} {
    %c512_i32 = arith.constant 512 : i32
    %0 = arith.muli %arg0, %c512_i32 : i32
    %c0_i32 = arith.constant 0 : i32
    %1 = arith.cmpi sgt, %arg0, %c0_i32 : i32
    %c0 = arith.constant 0 : index
    %c0_0 = arith.constant 0 : index
    %2 = vector.load %arg2[%c0, %c0_0] : memref<8x128xf32, #tpu.memory_space<vmem>>, vector<8x128xf32>
    %cst = arith.constant 0.000000e+00 : f32
    %3 = vector.broadcast %cst : f32 to vector<8x128xf32>
    %4 = arith.select %1, %2, %3 : vector<8x128xf32>
    %5 = arith.truncf %4 : vector<8x128xf32> to vector<8x128xbf16>
    %c0_1 = arith.constant 0 : index
    %c0_2 = arith.constant 0 : index
    %6 = vector.load %arg8[%c0_1, %c0_2] : memref<8x768xbf16, #tpu.memory_space<vmem>>, vector<8x128xbf16>
    tpu.vector_store %arg8[%c0_1, %c0_2], %5 {strides = array<i32>} : memref<8x768xbf16, #tpu.memory_space<vmem>>, vector<8x128xbf16>,
    %7 = tpu.iota {dimensions = array<i32: 1>} : vector<8x512xi32>
    %8 = vector.broadcast %0 : i32 to vector<8x512xi32>
    %9 = arith.addi %7, %8 : vector<8x512xi32>
    %c1024_i32 = arith.constant 1024 : i32
    %10 = vector.broadcast %c1024_i32 : i32 to vector<8x512xi32>
    %11 = arith.cmpi slt, %9, %10 : vector<8x512xi32>
    %c0_3 = arith.constant 0 : index
    %c0_4 = arith.constant 0 : index
    %12 = vector.load %arg1[%c0_3, %c0_4] : memref<8x512xf32, #tpu.memory_space<vmem>>, vector<8x512xf32>
    %cst_5 = arith.constant 0.000000e+00 : f32
    %13 = vector.broadcast %cst_5 : f32 to vector<8x512xf32>
    %14 = arith.select %11, %12, %13 : vector<8x512xi1>, vector<8x512xf32>
    %15 = arith.truncf %14 : vector<8x512xf32> to vector<8x512xbf16>
    %c0_6 = arith.constant 0 : index
    %c128 = arith.constant 128 : index
    %16 = vector.load %arg8[%c0_6, %c128] : memref<8x768xbf16, #tpu.memory_space<vmem>>, vector<8x512xbf16>
    tpu.vector_store %arg8[%c0_6, %c128], %15 {strides = array<i32>} : memref<8x768xbf16, #tpu.memory_space<vmem>>, vector<8x512xbf16>,
    %17 = tpu.iota {dimensions = array<i32: 1>} : vector<8x128xi32>
    %c512_i32_7 = arith.constant 512 : i32
    %18 = arith.addi %0, %c512_i32_7 : i32
    %19 = vector.broadcast %18 : i32 to vector<8x128xi32>
    %20 = arith.addi %17, %19 : vector<8x128xi32>
    %c1024_i32_8 = arith.constant 1024 : i32
    %21 = vector.broadcast %c1024_i32_8 : i32 to vector<8x128xi32>
    %22 = arith.cmpi slt, %20, %21 : vector<8x128xi32>
    %c0_9 = arith.constant 0 : index
    %c0_10 = arith.constant 0 : index
    %23 = vector.load %arg3[%c0_9, %c0_10] : memref<8x128xf32, #tpu.memory_space<vmem>>, vector<8x128xf32>
    %cst_11 = arith.constant 0.000000e+00 : f32
    %24 = vector.broadcast %cst_11 : f32 to vector<8x128xf32>
    %25 = arith.select %22, %23, %24 : vector<8x128xi1>, vector<8x128xf32>
    %26 = arith.truncf %25 : vector<8x128xf32> to vector<8x128xbf16>
    %c0_12 = arith.constant 0 : index
    %c640 = arith.constant 640 : index
    %27 = vector.load %arg8[%c0_12, %c640] : memref<8x768xbf16, #tpu.memory_space<vmem>>, vector<8x128xbf16>
    tpu.vector_store %arg8[%c0_12, %c640], %26 {strides = array<i32>} : memref<8x768xbf16, #tpu.memory_space<vmem>>, vector<8x128xbf16>,
    %c0_13 = arith.constant 0 : index
    %c126 = arith.constant 126 : index
    %28 = vector.load %arg8[%c0_13, %c126] : memref<8x768xbf16, #tpu.memory_space<vmem>>, vector<8x512xbf16>
    %c0_14 = arith.constant 0 : index
    %c0_15 = arith.constant 0 : index
    %c0_16 = arith.constant 0 : index
    %29 = vector.load %arg4[%c0_14, %c0_15, %c0_16] : memref<5x16x8xbf16, #tpu.memory_space<vmem>>, vector<1x16x8xbf16>
    %30 = vector.shape_cast %29 : vector<1x16x8xbf16> to vector<16x8xbf16>
    %cst_17 = arith.constant dense<0.000000e+00> : vector<16x512xf32>
    %31 = tpu.matmul %30, %28, %cst_17 {dimension_numbers = #tpu.dot_dimension_numbers<[1], [0], [0], [1], [0, 0, 1, 1], [], []>} : vector<16x8xbf16>, vector<8x512xbf16>, vector<16x512xf32> -> vector<16x512xf32>
    %c0_18 = arith.constant 0 : index
    %c127 = arith.constant 127 : index
    %32 = vector.load %arg8[%c0_18, %c127] : memref<8x768xbf16, #tpu.memory_space<vmem>>, vector<8x512xbf16>
    %c1 = arith.constant 1 : index
    %c0_19 = arith.constant 0 : index
    %c0_20 = arith.constant 0 : index
    %33 = vector.load %arg4[%c1, %c0_19, %c0_20] : memref<5x16x8xbf16, #tpu.memory_space<vmem>>, vector<1x16x8xbf16>
    %34 = vector.shape_cast %33 : vector<1x16x8xbf16> to vector<16x8xbf16>
    %cst_21 = arith.constant dense<0.000000e+00> : vector<16x512xf32>
    %35 = tpu.matmul %34, %32, %cst_21 {dimension_numbers = #tpu.dot_dimension_numbers<[1], [0], [0], [1], [0, 0, 1, 1], [], []>} : vector<16x8xbf16>, vector<8x512xbf16>, vector<16x512xf32> -> vector<16x512xf32>
    %36 = arith.addf %31, %35 : vector<16x512xf32>
    %c0_22 = arith.constant 0 : index
    %c128_23 = arith.constant 128 : index
    %37 = vector.load %arg8[%c0_22, %c128_23] : memref<8x768xbf16, #tpu.memory_space<vmem>>, vector<8x512xbf16>
    %c2 = arith.constant 2 : index
    %c0_24 = arith.constant 0 : index
    %c0_25 = arith.constant 0 : index
    %38 = vector.load %arg4[%c2, %c0_24, %c0_25] : memref<5x16x8xbf16, #tpu.memory_space<vmem>>, vector<1x16x8xbf16>
    %39 = vector.shape_cast %38 : vector<1x16x8xbf16> to vector<16x8xbf16>
    %cst_26 = arith.constant dense<0.000000e+00> : vector<16x512xf32>
    %40 = tpu.matmul %39, %37, %cst_26 {dimension_numbers = #tpu.dot_dimension_numbers<[1], [0], [0], [1], [0, 0, 1, 1], [], []>} : vector<16x8xbf16>, vector<8x512xbf16>, vector<16x512xf32> -> vector<16x512xf32>
    %41 = arith.addf %36, %40 : vector<16x512xf32>
    %c0_27 = arith.constant 0 : index
    %c129 = arith.constant 129 : index
    %42 = vector.load %arg8[%c0_27, %c129] : memref<8x768xbf16, #tpu.memory_space<vmem>>, vector<8x512xbf16>
    %c3 = arith.constant 3 : index
    %c0_28 = arith.constant 0 : index
    %c0_29 = arith.constant 0 : index
    %43 = vector.load %arg4[%c3, %c0_28, %c0_29] : memref<5x16x8xbf16, #tpu.memory_space<vmem>>, vector<1x16x8xbf16>
    %44 = vector.shape_cast %43 : vector<1x16x8xbf16> to vector<16x8xbf16>
    %cst_30 = arith.constant dense<0.000000e+00> : vector<16x512xf32>
    %45 = tpu.matmul %44, %42, %cst_30 {dimension_numbers = #tpu.dot_dimension_numbers<[1], [0], [0], [1], [0, 0, 1, 1], [], []>} : vector<16x8xbf16>, vector<8x512xbf16>, vector<16x512xf32> -> vector<16x512xf32>
    %46 = arith.addf %41, %45 : vector<16x512xf32>
    %c0_31 = arith.constant 0 : index
    %c130 = arith.constant 130 : index
    %47 = vector.load %arg8[%c0_31, %c130] : memref<8x768xbf16, #tpu.memory_space<vmem>>, vector<8x512xbf16>
    %c4 = arith.constant 4 : index
    %c0_32 = arith.constant 0 : index
    %c0_33 = arith.constant 0 : index
    %48 = vector.load %arg4[%c4, %c0_32, %c0_33] : memref<5x16x8xbf16, #tpu.memory_space<vmem>>, vector<1x16x8xbf16>
    %49 = vector.shape_cast %48 : vector<1x16x8xbf16> to vector<16x8xbf16>
    %cst_34 = arith.constant dense<0.000000e+00> : vector<16x512xf32>
    %50 = tpu.matmul %49, %47, %cst_34 {dimension_numbers = #tpu.dot_dimension_numbers<[1], [0], [0], [1], [0, 0, 1, 1], [], []>} : vector<16x8xbf16>, vector<8x512xbf16>, vector<16x512xf32> -> vector<16x512xf32>
    %51 = arith.addf %46, %50 : vector<16x512xf32>
    %52 = vector.shape_cast %51 : vector<16x512xf32> to vector<2x8x512xf32>
    %c0_35 = arith.constant 0 : index
    %c0_36 = arith.constant 0 : index
    %c0_37 = arith.constant 0 : index
    %53 = vector.load %arg5[%c0_35, %c0_36, %c0_37] : memref<1x8x1xf32, #tpu.memory_space<vmem>>, vector<1x8x1xf32>
    %54 = vector.broadcast %53 : vector<1x8x1xf32> to vector<2x8x512xf32>
    %55 = arith.addf %52, %54 : vector<2x8x512xf32>
    %56 = vector.shape_cast %55 : vector<2x8x512xf32> to vector<2x8x128x4xf32>
    %cst_38 = arith.constant dense<0xFF800000> : vector<2x8x128xf32>
    %57 = vector.multi_reduction <maximumf>, %56, %cst_38 [3] : vector<2x8x128x4xf32> to vector<2x8x128xf32>
    %58 = arith.truncf %57 : vector<2x8x128xf32> to vector<2x8x128xbf16>
    %c0_39 = arith.constant 0 : index
    %c0_40 = arith.constant 0 : index
    %c0_41 = arith.constant 0 : index
    %59 = vector.load %arg6[%c0_39, %c0_40, %c0_41] : memref<2x8x128xbf16, #tpu.memory_space<vmem>>, vector<2x8x128xbf16>
    tpu.vector_store %arg6[%c0_39, %c0_40, %c0_41], %58 {strides = array<i32>} : memref<2x8x128xbf16, #tpu.memory_space<vmem>>, vector<2x8x128xbf16>,
    %60 = tpu.iota {dimensions = array<i32: 2>} : vector<2x8x128xi32>
    %c128_i32 = arith.constant 128 : i32
    %61 = arith.muli %arg0, %c128_i32 : i32
    %62 = vector.broadcast %61 : i32 to vector<2x8x128xi32>
    %63 = arith.addi %60, %62 : vector<2x8x128xi32>
    %c256_i32 = arith.constant 256 : i32
    %64 = vector.broadcast %c256_i32 : i32 to vector<2x8x128xi32>
    %65 = arith.cmpi slt, %63, %64 : vector<2x8x128xi32>
    %cst_42 = arith.constant 0.000000e+00 : f32
    %66 = vector.broadcast %cst_42 : f32 to vector<2x8x128xf32>
    %67 = arith.select %65, %57, %66 : vector<2x8x128xi1>, vector<2x8x128xf32>
    %cst_43 = arith.constant dense<0.000000e+00> : vector<2x8xf32>
    %68 = vector.multi_reduction <add>, %67, %cst_43 [2] : vector<2x8x128xf32> to vector<2x8xf32>
    %c0_44 = arith.constant 0 : index
    %c0_45 = arith.constant 0 : index
    %c0_46 = arith.constant 0 : index
    %c0_47 = arith.constant 0 : index
    %69 = vector.load %arg7[%c0_44, %c0_45, %c0_46, %c0_47] : memref<1x2x2x8xf32, #tpu.memory_space<vmem>>, vector<1x1x2x8xf32>
    %70 = vector.shape_cast %69 : vector<1x1x2x8xf32> to vector<2x8xf32>
    %71 = vector.shape_cast %68 : vector<2x8xf32> to vector<1x1x2x8xf32>
    tpu.vector_store %arg7[%c0_44, %c0_45, %c0_46, %c0_47], %71 {strides = array<i32>} : memref<1x2x2x8xf32, #tpu.memory_space<vmem>>, vector<1x1x2x8xf32>,
    %72 = arith.mulf %67, %67 : vector<2x8x128xf32>
    %cst_48 = arith.constant dense<0.000000e+00> : vector<2x8xf32>
    %73 = vector.multi_reduction <add>, %72, %cst_48 [2] : vector<2x8x128xf32> to vector<2x8xf32>
    %c0_49 = arith.constant 0 : index
    %c1_50 = arith.constant 1 : index
    %c0_51 = arith.constant 0 : index
    %c0_52 = arith.constant 0 : index
    %74 = vector.load %arg7[%c0_49, %c1_50, %c0_51, %c0_52] : memref<1x2x2x8xf32, #tpu.memory_space<vmem>>, vector<1x1x2x8xf32>
    %75 = vector.shape_cast %74 : vector<1x1x2x8xf32> to vector<2x8xf32>
    %76 = vector.shape_cast %73 : vector<2x8xf32> to vector<1x1x2x8xf32>
    tpu.vector_store %arg7[%c0_49, %c1_50, %c0_51, %c0_52], %76 {strides = array<i32>} : memref<1x2x2x8xf32, #tpu.memory_space<vmem>>, vector<1x1x2x8xf32>,
    return
  }
  func.func @transform_0(%arg0: i32) -> (i32, i32) {
    %c0_i32 = arith.constant 0 : i32
    %c0_i32_0 = arith.constant 0 : i32
    return %c0_i32, %arg0 : i32, i32
  }
  func.func @transform_1(%arg0: i32) -> (i32, i32) {
    %c4_i32 = arith.constant 4 : i32
    %0 = arith.muli %arg0, %c4_i32 : i32
    %c1_i32 = arith.constant 1 : i32
    %1 = arith.subi %0, %c1_i32 : i32
    %c0_i32 = arith.constant 0 : i32
    %2 = arith.maxsi %1, %c0_i32 : i32
    %c0_i32_0 = arith.constant 0 : i32
    %c0_i32_1 = arith.constant 0 : i32
    return %c0_i32_0, %2 : i32, i32
  }
  func.func @transform_2(%arg0: i32) -> (i32, i32) {
    %c1_i32 = arith.constant 1 : i32
    %0 = arith.addi %arg0, %c1_i32 : i32
    %c4_i32 = arith.constant 4 : i32
    %1 = arith.muli %0, %c4_i32 : i32
    %c7_i32 = arith.constant 7 : i32
    %2 = arith.minsi %1, %c7_i32 : i32
    %c0_i32 = arith.constant 0 : i32
    %c0_i32_0 = arith.constant 0 : i32
    return %c0_i32, %2 : i32, i32
  }
  func.func @transform_3(%arg0: i32) -> (i32, i32, i32) {
    %c0_i32 = arith.constant 0 : i32
    %c0_i32_0 = arith.constant 0 : i32
    %c0_i32_1 = arith.constant 0 : i32
    %c0_i32_2 = arith.constant 0 : i32
    return %c0_i32, %c0_i32_0, %c0_i32_1 : i32, i32, i32
  }
  func.func @transform_4(%arg0: i32) -> (i32, i32, i32) {
    %c0_i32 = arith.constant 0 : i32
    %c0_i32_0 = arith.constant 0 : i32
    %c0_i32_1 = arith.constant 0 : i32
    %c0_i32_2 = arith.constant 0 : i32
    return %c0_i32, %c0_i32_0, %c0_i32_1 : i32, i32, i32
  }
  func.func @transform_5(%arg0: i32) -> (i32, i32, i32) {
    %c0_i32 = arith.constant 0 : i32
    %c0_i32_0 = arith.constant 0 : i32
    %c0_i32_1 = arith.constant 0 : i32
    return %c0_i32, %c0_i32_0, %arg0 : i32, i32, i32
  }
  func.func @transform_6(%arg0: i32) -> (i32, i32, i32, i32) {
    %c0_i32 = arith.constant 0 : i32
    %c0_i32_0 = arith.constant 0 : i32
    %c0_i32_1 = arith.constant 0 : i32
    %c0_i32_2 = arith.constant 0 : i32
    return %arg0, %c0_i32, %c0_i32_0, %c0_i32_1 : i32, i32, i32, i32
  }
}

</mosaic_0001>

<bundles_post_ra>
// kernel: tpu_custom_call.1
= control target key start
LH: loop header
LB: loop body
LE: loop exit
PB: predicated region body
PF: predicated region fallthrough
CT: control target
= control target key end

     0   :  { %s19661_s0 = inlined_call_operand.vmem [shape: f32[8,1024], index: 0, kind: input, shape index: {}]   ;;  %s19662_s1 = inlined_call_operand.hbm [shape: f32[8,1024], index: 1, kind: input, shape index: {}]   ;;  %s19663_s2 = inlined_call_operand.hbm [shape: f32[8,1024], index: 2, kind: input, shape index: {}]   ;;  %s19664_s3 = inlined_call_operand.vmem [shape: bf16[5,16,8], index: 3, kind: input, shape index: {}]   ;;  %s19665_s4 = inlined_call_operand.vmem [shape: f32[1,8,1], index: 4, kind: input, shape index: {}]   ;;  %s19666_s5 = inlined_call_operand.hbm [shape: bf16[2,8,256], index: 5, kind: output, shape index: {0}]   ;;  %s19667_s6 = inlined_call_operand.hbm [shape: f32[2,2,2,8], index: 6, kind: output, shape index: {1}]  }
   0x1   :  { %20250 = sst [smem:[#allocation370_spill]] %s19661_s0 }
   0x2   :  { %20251 = sst [smem:[#allocation371_spill]] %s19662_s1 }
   0x3   :  { %20252 = sst [smem:[#allocation372_spill]] %s19663_s2 }
   0x4   :  { %20253 = sst [smem:[#allocation373_spill]] %s19664_s3 }
   0x5   :  { %20254 = sst [smem:[#allocation374_spill]] %s19665_s4 }
   0x6   :  { %20255 = sst [smem:[#allocation375_spill]] %s19666_s5 }
   0x7   :  { %20256 = sst [smem:[#allocation376_spill]] %s19667_s6 }
   0x8   :  { %12 = vsyncpa [#allocation4], 0 }
   0x9   :  { %14 = vsyncpa [#allocation4 + $0x1], 0 }
   0xa   :  { %15 = vsyncpa [#allocation7], 0 }
   0xb   :  { %17 = vsyncpa [#allocation7 + $0x1], 0 }
   0xc   :  { %18 = vsyncpa [#allocation5], 0 }
   0xd   :  { %20 = vsyncpa [#allocation5 + $0x1], 0 }
   0xe   :  { %21 = vsyncpa [#allocation10], 0 }
   0xf   :  { %23 = vsyncpa [#allocation10 + $0x1], 0  ;;  %s12950_s21 = smov 0   ;;  %s12952_s22 = smov 0  }
  0x10   :  { %s12954_s23 = smov 0   ;;  %s12956_s24 = smov 0  }
  0x11   :  { %s12958_s25 = smov 0   ;;  %s12960_s26 = smov 0  }
  0x12   :  { %s12962_s27 = smov 0   ;;  %s12964_s28 = smov 0  }
  0x13   :  { %s12966_s29 = smov 0   ;;  %s12968_s30 = smov 0  }
  0x14 LB: > { %20257 = sst [smem:[#allocation15_spill]] %s12832_s21  ;;  %s12999_s7 = sadd.s32 4294967295, %s12868_s30   ;;  %s12868_s30 = sphi %s12968_s30, %s21524_s30   ;;  %s12864_s29 = sphi %s12966_s29, %s21533_s29   ;;  %s12860_s28 = sphi %s12964_s28, %s21532_s28   ;;  %s12856_s27 = sphi %s12962_s27, %s21531_s27   ;;  %s12852_s26 = sphi %s12960_s26, %s21530_s26   ;;  %s12848_s25 = sphi %s12958_s25, %s21529_s25   ;;  %s12844_s24 = sphi %s12956_s24, %s21528_s24   ;;  %s12840_s23 = sphi %s12954_s23, %s21527_s23   ;;  %s12836_s22 = sphi %s12952_s22, %s21526_s22   ;;  %s12832_s21 = sphi %s12950_s21, %s21525_s21  }
  0x15   : > { %20258 = sst [smem:[#allocation16_spill]] %s12836_s22  ;;  %s12367_s8 = sadd.s32 4294967294, %s12868_s30  }
  0x16   : > { %20259 = sst [smem:[#allocation17_spill]] %s12840_s23  ;;  %s13003_s9 = sadd.s32 1, %s12868_s30  }
  0x17   : > { %20260 = sst [smem:[#allocation18_spill]] %s12848_s25  ;;  %s12368_s10 = sshll.u32 %s12868_s30, 2 }
  0x18   : > { %20261 = sst [smem:[#allocation19_spill]] %s12852_s26  ;;  %s12369_s11 = sadd.s32 4294967295, %s12368_s10 }
  0x19   : > { %20262 = sst [smem:[#allocation20_spill]] %s12860_s28  ;;  %s13006_s12 = sadd.s32 4, %s12368_s10 }
  0x1a   : > { %20263 = sst [smem:[#allocation21_spill]] %s12864_s29  ;;  %p61_p0 = scmp.gt.s32.totalorder %s12369_s11, 0 }
  0x1b   : > { %20264 = sst [smem:[#allocation22_spill]] %s12868_s30  ;;  %s12371_s13 = sadd.s32 4294967295, %s13006_s12 }
  0x1c   : > { %20265 = sst [smem:[#allocation23_spill]] %s12999_s7  ;;  %p65_p1 = scmp.gt.s32.totalorder %s12371_s13, 0 }
  0x1d   : > { %20266 = sst [smem:[#allocation24_spill]] %s13003_s9  ;;  %s70_s14 = sadd.s32 1, %s12864_s29 }
  0x1e   : > { %s21535_s11 = smov (!%p61_p0, %s12369_s11), 0  ;;  %s21537_s13 = smov (!%p65_p1, %s12371_s13), 0 }
  0x1f   : > { %p77_p2 = scmp.ne.s32.totalorder %s12864_s29, %s12860_s28  ;;  %p19673_p3 = scmp.eq.s32.totalorder %s12868_s30, 0 }
  0x20   : > { %s67_s15 = ssub.s32 %s21535_s11, %s21537_s13  ;;  %p83_p4 = scmp.ne.s32.totalorder %s12860_s28, %s12856_s27 }
  0x21   : > { %p68_p5 = scmp.eq.s32.totalorder %s67_s15, 0  ;;  %p13016_p6 = por %p19673_p3, %p77_p2 }
  0x22   : > { %p19672_p7 = scmp.eq.s32.totalorder %s12999_s7, 0  ;;  %s169_s17 = ssub.s32 %s12868_s30, %s13003_s9 }
  0x23   : > { %s13024_s18 = scalar_select %p68_p5, %s12864_s29, %s70_s14  }
  0x24   : > { %p13028_p8 = por %p19672_p7, %p83_p4  ;;  %p170_p9 = scmp.eq.s32.totalorder %s169_s17, 0 }
  0x25   : > { %20268 = sst [smem:[#allocation25_spill]] %s13024_s18  ;;  %s172_s20 = sadd.s32 1, %s12840_s23 }
  0x26   : > { %s20269_s19 = scalar_select %p13028_p8, 1, 0 }
  0x27   : > { %p182_p10 = scmp.ne.s32.totalorder %s12840_s23, %s12836_s22  ;;  %p183_p11 = scmp.eq.s32.totalorder %s12999_s7, 1 }
  0x28   : > { %s13036_s27 = scalar_select %p170_p9, %s12840_s23, %s172_s20  }
  0x29   : > { %p188_p12 = scmp.ne.s32.totalorder %s12836_s22, %s12832_s21  ;;  %p189_p13 = scmp.eq.s32.totalorder %s12367_s8, 1 }
  0x2a   : > { %20270 = sst [smem:[#allocation26_spill]] %s13036_s27  ;;  %p13042_p1 = por %p183_p11, %p182_p10 }
  0x2b   : > { %p19671_p2 = scmp.lt.s32.totalorder %s12868_s30, 2  ;;  %p13047_p4 = por %p189_p13, %p188_p12 }
  0x2c   : > { %s20271_s10 = scalar_select %p13042_p1, 1, 0 }
  0x2d   : > { %s20273_s13 = scalar_select %p13047_p4, 1, 0 }
  0x2e   : > { %20272 = sst [smem:[#allocation27_spill]] %s20271_s10  ;;  %s250_s14 = sand.u32 1, %s12864_s29  }
  0x2f   : > { %20274 = sst [smem:[#allocation28_spill]] %s20273_s13  ;;  %s12376_s15 = sshll.u32 %s250_s14, 3 }
  0x30   : > { %s12379_s17 = sshll.u32 %s21535_s11, 7  ;;  %s20275_s1 = sld [smem:[#allocation371_spill]] }
  0x31   : > { %s254_s8 = scalar_lea.vmem [#allocation3], %s12376_s15  ;;  %p13063_p5 = pnand %p19671_p2, %p13016_p6 }
  0x32   : > { %s265_s23 = sshll.u32 %s254_s8, 4  ;;  %s251_s11 = scalar_lea.sflag [#allocation4], %s250_s14  ;;  %s13057_s23 = int_to_ptr.vmem [resolvable:$true] %s265_s23 }
  0x33   : > { %p12660_p12 = pneg %p13063_p5 }
  0x36   : > { %s13055_s27 = scalar_lea.hbm %s20275_s1, %s12379_s17  ;;  %s12663_s17 = scalar_lea.hbm %s20275_s1, 1024 }
  0x37   : > { %s12658_s18 = scalar_lea.hbm %s13055_s27, 128  ;;  %p12664_p6 = scmp.lt.u32.totalorder %s13055_s27, %s20275_s1 }
  0x38   : > { %p12659_p11 = scmp.ne.s32.totalorder %s13055_s27, %s12658_s18  ;;  %p12665_p2 = scmp.lt.u32.totalorder %s12663_s17, %s12658_s18 }
  0x39   : > { %p12667_p3 = scmp.lt.u32.totalorder %s12658_s18, %s13055_s27 }
  0x3a   : > { %p12661_p13 = pnand %p12660_p12, %p12659_p11  ;;  %p12666_p7 = por %p12665_p2, %p12664_p6 }
  0x3c   : > { %p12662_p0 = pneg %p12661_p13  ;;  %p12668_p9 = por %p12667_p3, %p12666_p7 }
  0x3e   : > { %p12669_p10 = pnand %p12668_p9, %p12662_p0 }
  0x40   : > { %12672 = shalt.err (!%p12669_p10)
}
  0x41   : > { %s12673_s14 = scalar_lea.vmem %s13057_s23, 128  ;;  %s12870_s15 = smov [#allocation3]  }
  0x42   : > { %p12674_p11 = scmp.ne.s32.totalorder %s13057_s23, %s12673_s14  ;;  %s12678_s16 = sshll.u32 %s12870_s15, 4  ;;  %s12679_s16 = int_to_ptr.vmem [resolvable:$false] %s12678_s16 }
  0x43   : > { %s12680_s20 = scalar_lea.vmem %s12679_s16, 256  ;;  %p12681_p1 = scmp.lt.s32.totalorder %s13057_s23, %s12679_s16 }
  0x44   : > { %p12676_p13 = pnand %p12674_p11, %p12660_p12  ;;  %p12682_p2 = scmp.lt.s32.totalorder %s12680_s20, %s12673_s14 }
  0x46   : > { %p12677_p4 = pneg %p12676_p13  ;;  %p12683_p6 = por %p12682_p2, %p12681_p1 }
  0x48   : > { %p12684_p3 = pnand %p12683_p6, %p12677_p4 }
  0x4a   : > { %12687 = shalt.err (!%p12684_p3)
}
  0x4b   : > { %12505 = dma.hbm_to_vmem [thread:$0]  (!%p13063_p5), %s13055_s27, 128, %s13057_s23, %s251_s11  }
  0x4c   : > { %p20277_p7 = scmp.lt.s32.totalorder %s12868_s30, 3  ;;  %p20278_p0 = scmp.ge.s32.totalorder %s12868_s30, 1 }
  0x4d   : > { %p95_p4 = scmp.lt.s32.totalorder %s13006_s12, 7  ;;  %s12454_s18 = sadd.s32 4, %s13006_s12 }
  0x4e   : > { %p13098_p1 = pnand %p20278_p0, %p20277_p7  ;;  %p99_p9 = scmp.lt.s32.totalorder %s12454_s18, 7 }
  0x4f   : > { %s104_s17 = sadd.s32 1, %s12852_s26  ;;  %s21539_s12 = smov (!%p95_p4, %s13006_s12), 7 }
  0x50   : > { %s21541_s18 = smov (!%p99_p9, %s12454_s18), 7  ;;  %p111_p10 = scmp.ne.s32.totalorder %s12852_s26, %s12848_s25 }
  0x51   : > { %p117_p12 = scmp.ne.s32.totalorder %s12848_s25, %s12844_s24  ;;  %s101_s8 = ssub.s32 %s21539_s12, %s21541_s18 }
  0x52   : > { %s272_s14 = sand.u32 1, %s12852_s26   ;;  %p102_p11 = scmp.eq.s32.totalorder %s101_s8, 0 }
  0x53   : > { %p20280_p13 = scmp.eq.s32.totalorder %s12868_s30, 0  ;;  %p20281_p2 = scmp.eq.s32.totalorder %s12999_s7, 0 }
  0x54   : > { %s13120_s27 = scalar_select %p102_p11, %s12852_s26, %s104_s17  }
  0x55   : > { %p113_p5 = por %p111_p10, %p20280_p13  ;;  %p13115_p6 = por %p117_p12, %p20281_p2 }
  0x56   : > { %20283 = sst [smem:[#allocation29_spill]] %s13120_s27  ;;  %s12380_s11 = sshll.u32 %s272_s14, 3 }
  0x57   : > { %s20282_s23 = scalar_select %p13115_p6, 1, 0 }
  0x58   : > { %s12382_s15 = sshll.u32 %s21539_s12, 7  ;;  %s20284_s2 = sld [smem:[#allocation372_spill]] }
  0x59   : > { %s276_s24 = scalar_lea.vmem [#allocation6], %s12380_s11  ;;  %p20285_p3 = scmp.lt.s32.totalorder %s12868_s30, 2 }
  0x5a   : > { %s287_s18 = sshll.u32 %s276_s24, 4  ;;  %s273_s12 = scalar_lea.sflag [#allocation7], %s272_s14  ;;  %s13133_s18 = int_to_ptr.vmem [resolvable:$true] %s287_s18 }
  0x5b   : > { %p13129_p7 = pnand %p20285_p3, %p113_p5 }
  0x5d   : > { %p12690_p4 = pneg %p13129_p7 }
  0x5e   : > { %s13125_s1 = scalar_lea.hbm %s20284_s2, %s12382_s15  ;;  %s12693_s16 = scalar_lea.hbm %s20284_s2, 1024 }
  0x5f   : > { %s12688_s17 = scalar_lea.hbm %s13125_s1, 128  ;;  %p12694_p12 = scmp.lt.u32.totalorder %s13125_s1, %s20284_s2 }
  0x60   : > { %p12689_p0 = scmp.ne.s32.totalorder %s13125_s1, %s12688_s17  ;;  %p12695_p11 = scmp.lt.u32.totalorder %s12693_s16, %s12688_s17 }
  0x61   : > { %p12697_p5 = scmp.lt.u32.totalorder %s12688_s17, %s13125_s1 }
  0x62   : > { %p12691_p9 = pnand %p12690_p4, %p12689_p0  ;;  %p12696_p13 = por %p12695_p11, %p12694_p12 }
  0x64   : > { %p12692_p10 = pneg %p12691_p9  ;;  %p12698_p2 = por %p12697_p5, %p12696_p13 }
  0x66   : > { %p12699_p3 = pnand %p12698_p2, %p12692_p10 }
  0x68   : > { %12702 = shalt.err (!%p12699_p3)
}
  0x69   : > { %s12703_s14 = scalar_lea.vmem %s13133_s18, 128  ;;  %s12871_s11 = smov [#allocation6]  }
  0x6a   : > { %p12704_p0 = scmp.ne.s32.totalorder %s13133_s18, %s12703_s14  ;;  %s12708_s15 = sshll.u32 %s12871_s11, 4  ;;  %s12709_s15 = int_to_ptr.vmem [resolvable:$false] %s12708_s15 }
  0x6b   : > { %s12710_s20 = scalar_lea.vmem %s12709_s15, 256  ;;  %p12711_p8 = scmp.lt.s32.totalorder %s13133_s18, %s12709_s15 }
  0x6c   : > { %p12706_p9 = pnand %p12704_p0, %p12690_p4  ;;  %p12712_p12 = scmp.lt.s32.totalorder %s12710_s20, %s12703_s14 }
  0x6e   : > { %p12707_p6 = pneg %p12706_p9  ;;  %p12713_p11 = por %p12712_p12, %p12711_p8 }
  0x70   : > { %p12714_p13 = pnand %p12713_p11, %p12707_p6 }
  0x72   : > { %12717 = shalt.err (!%p12714_p13)
}
  0x73   : > { %12508 = dma.hbm_to_vmem [thread:$0]  (!%p13129_p7), %s13125_s1, 128, %s13133_s18, %s273_s12  }
  0x74   : > { %296 = sbr.rel (%p13098_p1) target bundleno = 1974 (0x7b6), region = 40 }
  0x7b   : > { %s298_s17 = sand.u32 1, %s12860_s28   ;;  %p20287_p4 = scmp.ne.s32.totalorder %s20269_s19, 0 }
  0x7c   : > { %s13163_s16 = sshll.u32 %s298_s17, 3  ;;  %s299_s24 = scalar_lea.sflag [#allocation4], %s298_s17 }
  0x7d   : > { %s302_s11 = scalar_lea.vmem [#allocation3], %s13163_s16 }
  0x7e   : > { %12815 = dma.done.wait (%p20287_p4), %s299_s24, 128  }
  0x7f   : > { %12817 = vsyncadd (%p20287_p4), %s299_s24, 4294967168  ;;  %s307_s8 = sand.u32 1, %s12848_s25   ;;  %p20288_p8 = scmp.ne.s32.totalorder %s20282_s23, 0 }
  0x80   : > { %s13171_s1 = sshll.u32 %s307_s8, 3  ;;  %s308_s9 = scalar_lea.sflag [#allocation7], %s307_s8 }
  0x81   : > { %s311_s18 = scalar_lea.vmem [#allocation6], %s13171_s1 }
  0x82   : > { %12819 = dma.done.wait (%p20288_p8), %s308_s9, 128  }
  0x83   : > { %12821 = vsyncadd (%p20288_p8), %s308_s9, 4294967168  ;;  %s12388_s12 = sshll.u32 %s12999_s7, 2  ;;  %s12390_s19 = sshll.u32 %s12999_s7, 9  ;;  %v379_v0 = vlaneseq  ;;  %v423_v26 = vld [vmem:[%s311_s18] sm:$0xff]  ;;  %v12873_v30 = vmov 0   ;;  %vm463_vm5 = vcmask 7168  }
  0x84   : > { %p356_p1 = scmp.lt.s32.totalorder %s12388_s12, 7  ;;  %v384_v1 = vstv %s12390_s19  ;;  %p371_p6 = scmp.gt.s32.totalorder %s12999_s7, 0  ;;  %517 = vmatprep.mubr.bf16.mxu0 %v12873_v30  ;;  %560 = vmatprep.mubr.bf16.mxu1 %v12873_v30  ;;  %vm472_vm6 = vcmask 1043456   ;;  %vm468_vm7 = vcmask 64512   ;;  %vm586_vm8 = vcmask 15360  }
  0x85   : > { %v13183_v2 = vand.u32 127, %v379_v0  ;;  %s20290_s0 = sld [smem:[#allocation370_spill]]  ;;  %s419_s24 = sadd.s32 512, %s12390_s19  ;;  %12639 = vset.pattern.permute.xlu0 %v12873_v30  ;;  %vm855_vm9 = vcmask 1039360   ;;  %vm987_vm10 = vcmask 1031168   ;;  %vm20240_vm11 = vcmask 31744  }
  0x86   : > { %s21543_s12 = smov (!%p356_p1, %s12388_s12), 7  ;;  %v420_v23 = vstv %s419_s24  ;;  %s12872_s8 = smov 1   ;;  %vm9301_vm12 = vcmask 130112   ;;  %vm9308_vm13 = vcmask 195712   ;;  %vm9315_vm14 = vcmask 261312  }
  0x87   : > { %20289 = vst [vmem:[#allocation30_spill] sm:$0xff] %v13183_v2  ;;  %v381_v3 = vadd.s32 128, %v13183_v2  ;;  %v382_v4 = vadd.s32 256, %v13183_v2  ;;  %v383_v5 = vadd.s32 384, %v13183_v2  ;;  %v385_v6 = vadd.s32 %v384_v1, %v13183_v2  ;;  %s12389_s23 = sshll.u32 %s21543_s12, 3  ;;  %s19677_s16 = smov 2  }
  0x88   : > { %s12643_s17 = scalar_select %p371_p6, 255, 0  ;;  %v421_v25 = vadd.s32 %v420_v23, %v13183_v2  ;;  %vm9322_vm15 = vcmask 326912  }
  0x89   : > { %v386_v7 = vadd.s32 %v384_v1, %v381_v3  ;;  %v387_v8 = vadd.s32 %v384_v1, %v382_v4  ;;  %v388_v9 = vadd.s32 %v384_v1, %v383_v5  ;;  %vm389_vm0 = vcmp.lt.s32.totalorder %v385_v6, 1024  ;;  %s12876_s1 = smov 126   ;;  %s20291_s4 = sld [smem:[#allocation374_spill]] }
  0x8a   : > { %v12644_v20 = vld [vmem:[%s302_s11] sm:%s12643_s17]  ;;  %vm422_vm4 = vcmp.lt.s32.totalorder %v421_v25, 1024  ;;  %s12875_s11 = smov 127   ;;  %s20292_s3 = sld [smem:[#allocation373_spill]] }
  0x8b   : > { %s359_s20 = scalar_lea.vmem %s20290_s0, %s12389_s23  ;;  %vm390_vm1 = vcmp.lt.s32.totalorder %v386_v7, 1024  ;;  %vm391_vm2 = vcmp.lt.s32.totalorder %v387_v8, 1024  ;;  %vm392_vm3 = vcmp.lt.s32.totalorder %v388_v9, 1024  ;;  %v377_v21 = vpack.c.bf16 %v12644_v20, %v12644_v20  ;;  %s19745_s9 = smov 124  }
  0x8c   : > { %v393_v10 = vld [vmem:[%s359_s20] sm:$0xff]  ;;  %v394_v11 = vld [vmem:[%s359_s20 + $0x8] sm:$0xff]  ;;  %v395_v12 = vld [vmem:[%s359_s20 + $0x10] sm:$0xff]  ;;  %v424_v28 = vsel %vm422_vm4, %v423_v26, 0.0  ;;  %s19732_s18 = smov 116   ;;  %s19725_s12 = smov 112  }
  0x8d   : > { %v396_v13 = vld [vmem:[%s359_s20 + $0x18] sm:$0xff]  ;;  %v397_v14 = vsel %vm389_vm0, %v393_v10, 0.0  ;;  %v398_v15 = vsel %vm390_vm1, %v394_v11, 0.0  ;;  %v399_v16 = vsel %vm391_vm2, %v395_v12, 0.0  ;;  %378 = vst [vmem:[#allocation2] sm:$0xf] %v377_v21  ;;  %v425_v29 = vpack.c.bf16 %v424_v28, %v424_v28 }
  0x8e   : > { %v400_v17 = vsel %vm392_vm3, %v396_v13, 0.0  ;;  %v12457_v18 = vpack.c.bf16 %v398_v15, %v397_v14  ;;  %v12654_v35 = vpack.c.bf16 %v398_v15, %v398_v15  ;;  %v12656_v37 = vpack.c.bf16 %v397_v14, %v397_v14  ;;  %s19722_s19 = smov 108   ;;  %s19720_s23 = smov 104  }
  0x8f   : > { %v12458_v19 = vpack.c.bf16 %v400_v17, %v399_v16  ;;  %426 = vst [vmem:[#allocation2 + $0x14] sm:$0xf] %v425_v29  ;;  %v12655_v36 = vpack.c.bf16 %v400_v17, %v400_v17  ;;  %v13210_v38 = vpack.c.bf16 %v399_v16, %v399_v16  ;;  %v1101_v40 = vld [vmem:[%s20291_s4] sm:$0xff]  ;;  %s19716_s14 = smov 100   ;;  %s19718_s15 = smov 96   ;;  %vm20229_vm0 = vcmask 392512  }
  0x90   : > { %417 = vst [vmem:[#allocation2 + $0x4] sm:$0xff] %v12457_v18  ;;  %v12649_v50 = vld [vmem:[%s20292_s3 + $0x8] sm:$0xff]   ;;  %v12650_v4 = vld [vmem:[%s20292_s3] sm:$0xff]   ;;  %v716_v5 = vsel %vm472_vm6, %v12656_v37, 0  ;;  %v12651_v15 = vld [vmem:[%s20292_s3 + $0x10] sm:$0xff]   ;;  %s19678_s20 = smov 92  }
  0x91   : > { %418 = vst [vmem:[#allocation2 + $0xc] sm:$0xff] %v12458_v19  ;;  %v722_v9 = vsel %vm472_vm6, %v13210_v38, 0  ;;  %v12652_v25 = vld [vmem:[%s20292_s3 + $0x18] sm:$0xff]   ;;  %v12653_v29 = vld [vmem:[%s20292_s3 + $0x20] sm:$0xff]   ;;  %s19680_s17 = smov 88   ;;  %s19682_s24 = smov 84  }
  0x92   : > { %s20370_s0 = smov 36   ;;  %s20376_s2 = smov 32   ;;  %vm9336_vm1 = vcmask 458112   ;;  %vm9343_vm2 = vcmask 523712   ;;  %vm9350_vm3 = vcmask 589312   ;;  %vm9357_vm4 = vcmask 654912  }
  0x93   : > { %s20380_s3 = smov 28   ;;  %s20384_s4 = smov 24  }
  0x94   : > { %s20386_s29 = smov 20   ;;  %s20390_s28 = smov 16  }
  0x95   : > { %s20392_s27 = smov 12   ;;  %s20396_s26 = smov 124  }
  0x96   : > { %v12648_v39 = vld [vmem:[#allocation2 + $0x14] ss:$0 sps:$4 sm:$0xff]   ;;  %s20400_s25 = smov 120   ;;  %s20407_s30 = smov 116  }
  0x97   : > { %v427_v31 = vld [vmem:[#allocation2] sm:$0xff]  ;;  %s20411_s13 = smov 112   ;;  %s20416_s21 = smov 108  }
  0x98   : > { %v428_v22 = vld [vmem:[#allocation2 + $0x8] sm:$0xff]  ;;  %v12396_v32 = vcombine.low %v427_v31, %v427_v31  ;;  %v12397_v33 = vcombine.high %v427_v31, %v427_v31  ;;  %v12647_v34 = vld [vmem:[#allocation2 + $0x10] ss:$0 sps:$4 sm:$0xff]   ;;  %s20420_s6 = smov 104   ;;  %s20422_s5 = smov 100  }
  0x99   : > { %v12398_v24 = vcombine.low %v428_v22, %v428_v22  ;;  %v12399_v27 = vcombine.high %v428_v22, %v428_v22  ;;  %s20426_s10 = smov 96   ;;  %s20489_s7 = smov 8  }
  0x9a   : > { %453 = vrot.lane.b32.xlu0 %v12396_v32, %s12872_s8  ;;  %s20491_s22 = smov 4  }
  0x9b   : > { %457 = vrot.lane.b32.xlu1 %v12398_v24, %s12872_s8 }
  0x9e   : > { %455 = vrot.lane.b32.xlu0 %v12397_v33, %s12872_s8 }
  0x9f   : > { %459 = vrot.lane.b32.xlu1 %v12399_v27, %s12872_s8 }
  0xa2   : > { %461 = vrot.lane.b32.xlu0 %v12647_v34, %s12872_s8  ;;  %s19684_s8 = smov 80  }
  0xa3   : > { %576 = vrot.lane.b32.xlu1 %v12396_v32, %s19677_s16 }
  0xa6   : > { %578 = vrot.lane.b32.xlu0 %v12397_v33, %s19677_s16 }
  0xa7   : > { %580 = vrot.lane.b32.xlu1 %v12398_v24, %s19677_s16 }
  0xaa   : > { %582 = vrot.lane.b32.xlu0 %v12399_v27, %s19677_s16 }
  0xab   : > { %584 = vrot.lane.b32.xlu1 %v12647_v34, %s19677_s16  ;;  %s19688_s16 = smov 72  }
  0xae   : > { %845 = vrot.lane.b32.xlu0 %v12656_v37, %s12875_s11 }
  0xaf   : > { %847 = vrot.lane.b32.xlu1 %v12654_v35, %s12875_s11 }
  0xb2   : > { %849 = vrot.lane.b32.xlu0 %v13210_v38, %s12875_s11 }
  0xb3   : > { %851 = vrot.lane.b32.xlu1 %v12655_v36, %s12875_s11 }
  0xb6   : > { %853 = vrot.lane.b32.xlu0 %v12648_v39, %s12875_s11  ;;  %s19686_s11 = smov 76  }
  0xb7   : > { %977 = vrot.lane.b32.xlu1 %v12656_v37, %s12876_s1 }
  0xba   : > { %979 = vrot.lane.b32.xlu0 %v12654_v35, %s12876_s1 }
  0xbb   : > { %981 = vrot.lane.b32.xlu1 %v13210_v38, %s12876_s1 }
  0xbe   : > { %983 = vrot.lane.b32.xlu0 %v12655_v36, %s12876_s1 }
  0xbf   : > { %985 = vrot.lane.b32.xlu1 %v12648_v39, %s12876_s1  ;;  %s19741_s1 = smov 120  }
  0xc2   : > { %1104 = vperm.xlu0 %12639, %v1101_v40  }
 0x10c   : > { %v454_v43 = vpop.permute.xlu0 %453 }
 0x10d   : > { %v458_v41 = vpop.permute.xlu1 %457 }
 0x110   : > { %v456_v45 = vpop.permute.xlu0 %455 }
 0x111   : > { %v460_v42 = vpop.permute.xlu1 %459  ;;  %v465_v47 = vsel %vm463_vm5, %v456_v45, %v458_v41  ;;  %v464_v48 = vsel %vm463_vm5, %v454_v43, %v456_v45 }
 0x112   : > { %12401 = vmatprep.subr.msk.bf16.mxu0 %vm472_vm6, %v465_v47  ;;  %v474_v49 = vsel %vm472_vm6, %v464_v48, 0  ;;  %v466_v51 = vsel %vm463_vm5, %v458_v41, %v460_v42  ;;  %v12906_v41 = vmov 1983009808  }
 0x113   : > { %486 = vmatpush1.bf16.msra.mxu0 %v474_v49  ;;  %v480_v55 = vsel %vm472_vm6, %v466_v51, 0 }
 0x114   : > { %v462_v52 = vpop.permute.xlu0 %461 }
 0x115   : > { %v577_v44 = vpop.permute.xlu1 %576  ;;  %v467_v54 = vsel %vm463_vm5, %v460_v42, %v462_v52  ;;  %v1870_v42 = vunpack.c.l.s4 %v12906_v41  ;;  %vm9364_vm5 = vcmask 720512  }
 0x116   : > { %12402 = vmatmul.mubr.msk.bf16.vlgmr.msra.gmra.mrb[0].mxu0 %vm468_vm7, %v12649_v50  ;;  %12403 = vmatprep.subr.msk.bf16.mxu1 %vm472_vm6, %v467_v54 }
 0x117   : > { %529 = vmatpush1.bf16.msra.mxu1 %v480_v55  ;;  %638 = vmatprep.mubr.bf16.mxu0 %v12873_v30  ;;  %v1871_v43 = vunpack.c.0.s8 %v1870_v42 }
 0x118   : > { %v579_v56 = vpop.permute.xlu0 %578 }
 0x119   : > { %v581_v46 = vpop.permute.xlu1 %580  ;;  %v587_v58 = vsel %vm586_vm8, %v577_v44, %v579_v56  ;;  %v13420_v44 = vshrl.u32 %v379_v0, 7 }
 0x11a   : > { %v588_v59 = vsel %vm586_vm8, %v579_v56, %v581_v46  ;;  %12404 = vmatmul.mubr.msk.bf16.vlgmr.msra.gmra.mrb[0].mxu1 %vm468_vm7, %v12649_v50  ;;  %v595_v60 = vsel %vm472_vm6, %v587_v58, 0 }
 0x11b   : > { %12406 = vmatprep.subr.msk.bf16.mxu0 %vm472_vm6, %v588_v59  ;;  %681 = vmatprep.mubr.bf16.mxu1 %v12873_v30  ;;  %v13427_v47 = vsub.s32 %v1871_v43, %v13420_v44 }
 0x11c   : > { %607 = vmatpush1.bf16.msra.mxu0 %v595_v60  ;;  %v583_v61 = vpop.permute.xlu0 %582 }
 0x11d   : > { %v585_v53 = vpop.permute.xlu1 %584  ;;  %12417 = vmatprep.subr.msk.bf16.mxu0 %vm472_vm6, %v12654_v35  ;;  %v589_v63 = vsel %vm586_vm8, %v581_v46, %v583_v61  ;;  %20294 = vst [vmem:[#allocation32_spill] sm:$0xff] %v13427_v47 }
 0x11e   : > { %v590_v1 = vsel %vm586_vm8, %v583_v61, %v585_v53  ;;  %v601_v3 = vsel %vm472_vm6, %v589_v63, 0  ;;  %vm9385_vm8 = vcmask 917312  }
 0x11f   : > { %12408 = vmatprep.subr.msk.bf16.mxu1 %vm472_vm6, %v590_v1 }
 0x120   : > { %650 = vmatpush1.bf16.msra.mxu1 %v601_v3  ;;  %v846_v6 = vpop.permute.xlu0 %845 }
 0x121   : > { %v848_v57 = vpop.permute.xlu1 %847  ;;  %12419 = vmatprep.subr.msk.bf16.mxu1 %vm472_vm6, %v12655_v36 }
 0x122   : > { %12407 = vmatmul.mubr.msk.bf16.vlgmr.msra.gmra.mrb[0].mxu0 %vm468_vm7, %v12650_v4  ;;  %v856_v13 = vsel %vm855_vm9, %v846_v6, %v848_v57 }
 0x123   : > { %728 = vmatpush1.bf16.msra.mxu0 %v716_v5  ;;  %759 = vmatprep.mubr.bf16.mxu0 %v12873_v30  ;;  %v864_v16 = vsel %vm472_vm6, %v856_v13, 0  ;;  %v12909_v5 = vmov 1934713408  }
 0x124   : > { %v850_v8 = vpop.permute.xlu0 %849  ;;  %v1934_v6 = vunpack.c.l.s4 %v12909_v5 }
 0x125   : > { %v852_v62 = vpop.permute.xlu1 %851  ;;  %v857_v10 = vsel %vm855_vm9, %v848_v57, %v850_v8 }
 0x126   : > { %12409 = vmatmul.mubr.msk.bf16.vlgmr.msra.gmra.mrb[0].mxu1 %vm468_vm7, %v12650_v4  ;;  %12429 = vmatprep.subr.msk.bf16.mxu0 %vm472_vm6, %v857_v10  ;;  %v858_v18 = vsel %vm855_vm9, %v850_v8, %v852_v62 }
 0x127   : > { %771 = vmatpush1.bf16.msra.mxu1 %v722_v9  ;;  %802 = vmatprep.mubr.bf16.mxu1 %v12873_v30  ;;  %v870_v21 = vsel %vm472_vm6, %v858_v18, 0 }
 0x128   : > { %v854_v11 = vpop.permute.xlu0 %853 }
 0x129   : > { %v978_v7 = vpop.permute.xlu1 %977  ;;  %v859_v14 = vsel %vm855_vm9, %v852_v62, %v854_v11  ;;  %vm9392_vm9 = vcmask 982912  }
 0x12a   : > { %12431 = vmatprep.subr.msk.bf16.mxu1 %vm472_vm6, %v859_v14 }
 0x12c   : > { %v980_v17 = vpop.permute.xlu0 %979 }
 0x12d   : > { %v982_v12 = vpop.permute.xlu1 %981  ;;  %v988_v24 = vsel %vm987_vm10, %v978_v7, %v980_v17 }
 0x12e   : > { %v989_v19 = vsel %vm987_vm10, %v980_v17, %v982_v12  ;;  %12418 = vmatmul.mubr.msk.bf16.vlgmr.msra.gmra.mrb[0].mxu0 %vm468_vm7, %v12651_v15  ;;  %v996_v26 = vsel %vm472_vm6, %v988_v24, 0 }
 0x12f   : > { %876 = vmatpush1.bf16.msra.mxu0 %v864_v16  ;;  %907 = vmatprep.mubr.bf16.mxu0 %v12873_v30 }
 0x130   : > { %12436 = vmatprep.subr.msk.bf16.mxu0 %vm472_vm6, %v989_v19  ;;  %v984_v22 = vpop.permute.xlu0 %983 }
 0x131   : > { %v986_v20 = vpop.permute.xlu1 %985  ;;  %v990_v27 = vsel %vm987_vm10, %v982_v12, %v984_v22  ;;  %v1935_v12 = vunpack.c.0.s8 %v1934_v6 }
 0x132   : > { %v991_v23 = vsel %vm987_vm10, %v984_v22, %v986_v20  ;;  %12420 = vmatmul.mubr.msk.bf16.vlgmr.msra.gmra.mrb[0].mxu1 %vm468_vm7, %v12651_v15  ;;  %v1002_v28 = vsel %vm472_vm6, %v990_v27, 0  ;;  %vm20249_vm10 = vcmask 1048512  }
 0x133   : > { %919 = vmatpush1.bf16.msra.mxu1 %v870_v21  ;;  %950 = vmatprep.mubr.bf16.mxu1 %v12873_v30  ;;  %v13488_v19 = vsub.s32 %v1935_v12, %v13420_v44 }
 0x134   : > { %12438 = vmatprep.subr.msk.bf16.mxu1 %vm472_vm6, %v991_v23  ;;  %vm9371_vm6 = vcmask 786112  }
 0x135   : > { %20305 = vst [vmem:[#allocation43_spill] sm:$0xff] %v13488_v19 }
 0x13a   : > { %12430 = vmatmul.mubr.msk.bf16.vlgmr.msra.gmra.mrb[0].mxu0 %vm468_vm7, %v12652_v25 }
 0x13b   : > { %1008 = vmatpush1.bf16.msra.mxu0 %v996_v26  ;;  %1039 = vmatprep.mubr.bf16.mxu0 %v12873_v30 }
 0x13e   : > { %12432 = vmatmul.mubr.msk.bf16.vlgmr.msra.gmra.mrb[0].mxu1 %vm468_vm7, %v12652_v25 }
 0x13f   : > { %1051 = vmatpush1.bf16.msra.mxu1 %v1002_v28  ;;  %1082 = vmatprep.mubr.bf16.mxu1 %v12873_v30 }
 0x141   : > { %v13283_v31 = vpop.permute.xlu0 %1104 }
 0x146   : > { %12437 = vmatmul.mubr.msk.bf16.vlgmr.msra.gmra.mrb[0].mxu0 %vm468_vm7, %v12653_v29 }
 0x14a   : > { %12439 = vmatmul.mubr.msk.bf16.vlgmr.msra.gmra.mrb[0].mxu1 %vm468_vm7, %v12653_v29  ;;  %vm9378_vm7 = vcmask 851712  }
 0x219   : > { %v1041_v32 = vpop.f32.mrb[0].mxu0 }
 0x21a   : > { %v13286_v33 = vadd.f32 %v13283_v31, %v1041_v32  ;;  %v13288_v34 = vpop.f32.mrb[1].mxu0 }
 0x21b   : > { %v1045_v35 = vpop.f32.mrb[2].mxu0 }
 0x21c   : > { %v13290_v36 = vpop.f32.mrb[3].mxu0  ;;  %1123 = vrot.lane.b32.xlu0 %v13286_v33, %s19741_s1  ;;  %1117 = vrot.lane.b32.xlu1 %v13286_v33, %s19745_s9  ;;  %v13299_v37 = vadd.f32 %v13283_v31, %v1045_v35 }
 0x21d   : > { %v13296_v30 = vpop.f32.mrb[0].mxu1 }
 0x21e   : > { %20293 = vst [vmem:[#allocation31_spill] sm:$0xff] %v13299_v37  ;;  %v13301_v38 = vpop.f32.mrb[1].mxu1  ;;  %v13433_v0 = vadd.f32 %v13283_v31, %v13296_v30 }
 0x21f   : > { %v13303_v39 = vpop.f32.mrb[2].mxu1 }
 0x220   : > { %v13305_v40 = vpop.f32.mrb[3].mxu1  ;;  %1129 = vrot.lane.b32.xlu0 %v13286_v33, %s19732_s18  ;;  %1119 = vrot.lane.b32.xlu1 %v13299_v37, %s19745_s9  ;;  %v13461_v63 = vadd.f32 %v13283_v31, %v13303_v39 }
 0x222   : > { %20299 = vst [vmem:[#allocation37_spill] sm:$0xff] %v13461_v63 }
 0x224   : > { %1135 = vrot.lane.b32.xlu0 %v13286_v33, %s19725_s12  ;;  %1125 = vrot.lane.b32.xlu1 %v13299_v37, %s19741_s1 }
 0x228   : > { %1141 = vrot.lane.b32.xlu0 %v13286_v33, %s19722_s19  ;;  %1131 = vrot.lane.b32.xlu1 %v13299_v37, %s19732_s18 }
 0x22c   : > { %1147 = vrot.lane.b32.xlu0 %v13286_v33, %s19720_s23  ;;  %1137 = vrot.lane.b32.xlu1 %v13299_v37, %s19725_s12 }
 0x230   : > { %1153 = vrot.lane.b32.xlu0 %v13286_v33, %s19716_s14  ;;  %1143 = vrot.lane.b32.xlu1 %v13299_v37, %s19722_s19 }
 0x234   : > { %1159 = vrot.lane.b32.xlu0 %v13286_v33, %s19718_s15  ;;  %1149 = vrot.lane.b32.xlu1 %v13299_v37, %s19720_s23 }
 0x238   : > { %1165 = vrot.lane.b32.xlu0 %v13286_v33, %s19678_s20  ;;  %1155 = vrot.lane.b32.xlu1 %v13299_v37, %s19716_s14 }
 0x23c   : > { %1171 = vrot.lane.b32.xlu0 %v13286_v33, %s19680_s17  ;;  %1161 = vrot.lane.b32.xlu1 %v13299_v37, %s19718_s15 }
 0x240   : > { %1177 = vrot.lane.b32.xlu0 %v13286_v33, %s19682_s24  ;;  %1167 = vrot.lane.b32.xlu1 %v13299_v37, %s19678_s20  ;;  %s19690_s20 = smov 68  }
 0x244   : > { %1183 = vrot.lane.b32.xlu0 %v13286_v33, %s19684_s8  ;;  %1173 = vrot.lane.b32.xlu1 %v13299_v37, %s19680_s17  ;;  %s19692_s17 = smov 64  }
 0x248   : > { %1189 = vrot.lane.b32.xlu0 %v13286_v33, %s19686_s11  ;;  %1179 = vrot.lane.b32.xlu1 %v13299_v37, %s19682_s24  ;;  %s19694_s24 = smov 60  }
 0x24c   : > { %1195 = vrot.lane.b32.xlu0 %v13286_v33, %s19688_s16  ;;  %1185 = vrot.lane.b32.xlu1 %v13299_v37, %s19684_s8  ;;  %s19696_s8 = smov 56  }
 0x250   : > { %1201 = vrot.lane.b32.xlu0 %v13286_v33, %s19690_s20  ;;  %1191 = vrot.lane.b32.xlu1 %v13299_v37, %s19686_s11  ;;  %s19698_s11 = smov 52  }
 0x254   : > { %1207 = vrot.lane.b32.xlu0 %v13286_v33, %s19692_s17  ;;  %1197 = vrot.lane.b32.xlu1 %v13299_v37, %s19688_s16  ;;  %s19700_s16 = smov 48  }
 0x258   : > { %1213 = vrot.lane.b32.xlu0 %v13286_v33, %s19694_s24  ;;  %1203 = vrot.lane.b32.xlu1 %v13299_v37, %s19690_s20  ;;  %s19702_s20 = smov 44  }
 0x25c   : > { %1219 = vrot.lane.b32.xlu0 %v13286_v33, %s19696_s8  ;;  %1209 = vrot.lane.b32.xlu1 %v13299_v37, %s19692_s17  ;;  %s19704_s17 = smov 40  }
 0x260   : > { %1225 = vrot.lane.b32.xlu0 %v13286_v33, %s19698_s11  ;;  %1215 = vrot.lane.b32.xlu1 %v13299_v37, %s19694_s24  ;;  %s19706_s24 = smov 36  }
 0x264   : > { %1231 = vrot.lane.b32.xlu0 %v13286_v33, %s19700_s16  ;;  %1221 = vrot.lane.b32.xlu1 %v13299_v37, %s19696_s8  ;;  %s19708_s8 = smov 32  }
 0x268   : > { %1237 = vrot.lane.b32.xlu0 %v13286_v33, %s19702_s20  ;;  %1227 = vrot.lane.b32.xlu1 %v13299_v37, %s19698_s11  ;;  %s19769_s11 = smov 28  }
 0x26c   : > { %1243 = vrot.lane.b32.xlu0 %v13286_v33, %s19704_s17  ;;  %1233 = vrot.lane.b32.xlu1 %v13299_v37, %s19700_s16  ;;  %s19710_s16 = smov 24  }
 0x270   : > { %1249 = vrot.lane.b32.xlu0 %v13286_v33, %s19706_s24  ;;  %1239 = vrot.lane.b32.xlu1 %v13299_v37, %s19702_s20  ;;  %s19763_s20 = smov 20  }
 0x274   : > { %1255 = vrot.lane.b32.xlu0 %v13286_v33, %s19708_s8  ;;  %1245 = vrot.lane.b32.xlu1 %v13299_v37, %s19704_s17  ;;  %s19756_s17 = smov 16  }
 0x278   : > { %1261 = vrot.lane.b32.xlu0 %v13286_v33, %s19769_s11  ;;  %1251 = vrot.lane.b32.xlu1 %v13299_v37, %s19706_s24  ;;  %s19747_s24 = smov 12  }
 0x27c   : > { %1267 = vrot.lane.b32.xlu0 %v13286_v33, %s19710_s16  ;;  %1257 = vrot.lane.b32.xlu1 %v13299_v37, %s19708_s8  ;;  %s19714_s8 = smov 8  }
 0x280   : > { %1273 = vrot.lane.b32.xlu0 %v13286_v33, %s19763_s20  ;;  %1263 = vrot.lane.b32.xlu1 %v13299_v37, %s19769_s11  ;;  %s20366_s11 = smov 40  }
 0x284   : > { %1279 = vrot.lane.b32.xlu0 %v13286_v33, %s19756_s17  ;;  %1269 = vrot.lane.b32.xlu1 %v13299_v37, %s19710_s16  ;;  %s19712_s16 = smov 4  }
 0x288   : > { %1285 = vrot.lane.b32.xlu0 %v13286_v33, %s19747_s24  ;;  %1275 = vrot.lane.b32.xlu1 %v13299_v37, %s19763_s20  ;;  %s20362_s20 = smov 44  }
 0x28c   : > { %1291 = vrot.lane.b32.xlu0 %v13286_v33, %s19714_s8  ;;  %1281 = vrot.lane.b32.xlu1 %v13299_v37, %s19756_s17  ;;  %s20360_s17 = smov 48  }
 0x28e   : > { %v1124_v45 = vpop.permute.xlu0 %1123  ;;  %v1118_v46 = vpop.permute.xlu1 %1117 }
 0x28f   : > { %v1867_v48 = vcombine.low %v13286_v33, %v1124_v45  ;;  %v1868_v49 = vcombine.high %v13286_v33, %v1124_v45 }
 0x290   : > { %1297 = vrot.lane.b32.xlu0 %v13286_v33, %s19712_s16  ;;  %1287 = vrot.lane.b32.xlu1 %v13299_v37, %s19747_s24  ;;  %s20356_s24 = smov 52  }
 0x291   : > { %v1875_v54 = vrot.slane %v1867_v48, %v13427_v47  ;;  %v13443_v55 = vrot.slane %v1868_v49, %v13427_v47 }
 0x292   : > { %v1130_v50 = vpop.permute.xlu0 %1129  ;;  %v13435_v51 = vpop.permute.xlu1 %1119 }
 0x293   : > { %20295 = vst [vmem:[#allocation33_spill] sm:$0xff] %v13435_v51  ;;  %v1883_v52 = vcombine.low %v1118_v46, %v1130_v50  ;;  %v1884_v53 = vcombine.high %v1118_v46, %v1130_v50  ;;  %20296 = vst [vmem:[#allocation34_spill] sm:$0xff] %v13443_v55 }
 0x294   : > { %1493 = vrot.lane.b32.xlu0 %v13433_v0, %s19745_s9  ;;  %1293 = vrot.lane.b32.xlu1 %v13299_v37, %s19714_s8  ;;  %s20324_s8 = smov 88  }
 0x295   : > { %v1891_v56 = vrot.slane %v1883_v52, %v13427_v47  ;;  %v13447_v57 = vrot.slane %v1884_v53, %v13427_v47 }
 0x296   : > { %v1136_v58 = vpop.permute.xlu0 %1135  ;;  %v13449_v59 = vpop.permute.xlu1 %1125 }
 0x297   : > { %20297 = vst [vmem:[#allocation35_spill] sm:$0xff] %v13447_v57  ;;  %20298 = vst [vmem:[#allocation36_spill] sm:$0xff] %v13449_v59  ;;  %v1932_v60 = vcombine.high %v1875_v54, %v1891_v56  ;;  %v1948_v61 = vcombine.high %v13443_v55, %v13447_v57  ;;  %v4043_v62 = vcombine.low %v13299_v37, %v13449_v59 }
 0x298   : > { %1499 = vrot.lane.b32.xlu0 %v13433_v0, %s19741_s1  ;;  %1299 = vrot.lane.b32.xlu1 %v13299_v37, %s19712_s16  ;;  %v1931_v20 = vcombine.low %v1875_v54, %v1891_v56  ;;  %s20320_s16 = smov 92  }
 0x299   : > { %v13472_v7 = vrot.slane %v4043_v62, %v13427_v47  ;;  %v13524_v42 = vrot.slane %v1932_v60, %v13488_v19  ;;  %v13550_v56 = vrot.slane %v1948_v61, %v13488_v19 }
 0x29a   : > { %v1142_v1 = vpop.permute.xlu0 %1141  ;;  %v13463_v3 = vpop.permute.xlu1 %1131  ;;  %v13513_v33 = vrot.slane %v1931_v20, %v13488_v19 }
 0x29b   : > { %20300 = vst [vmem:[#allocation38_spill] sm:$0xff] %v13463_v3  ;;  %v4059_v4 = vcombine.low %v13435_v51, %v13463_v3  ;;  %20301 = vst [vmem:[#allocation39_spill] sm:$0xff] %v13472_v7 }
 0x29c   : > { %1505 = vrot.lane.b32.xlu0 %v13433_v0, %s19732_s18  ;;  %1495 = vrot.lane.b32.xlu1 %v13461_v63, %s19745_s9  ;;  %20311 = vst [vmem:[#allocation49_spill] sm:$0xff] %v13524_v42  ;;  %20316 = vst [vmem:[#allocation54_spill] sm:$0xff] %v13550_v56  ;;  %s20354_s9 = smov 56  }
 0x29d   : > { %v13475_v8 = vrot.slane %v4059_v4, %v13427_v47 }
 0x29e   : > { %v1148_v9 = vpop.permute.xlu0 %1147  ;;  %v13477_v10 = vpop.permute.xlu1 %1137 }
 0x29f   : > { %20302 = vst [vmem:[#allocation40_spill] sm:$0xff] %v13475_v8  ;;  %20303 = vst [vmem:[#allocation41_spill] sm:$0xff] %v13477_v10  ;;  %v4108_v11 = vcombine.high %v13472_v7, %v13475_v8  ;;  %v1899_v13 = vcombine.low %v1136_v58, %v1148_v9  ;;  %v1900_v14 = vcombine.high %v1136_v58, %v1148_v9 }
 0x2a0   : > { %1511 = vrot.lane.b32.xlu0 %v13433_v0, %s19725_s12  ;;  %1501 = vrot.lane.b32.xlu1 %v13461_v63, %s19741_s1  ;;  %s20350_s1 = smov 60  }
 0x2a1   : > { %v1907_v21 = vrot.slane %v1899_v13, %v13427_v47  ;;  %v13496_v22 = vrot.slane %v1900_v14, %v13427_v47  ;;  %v13568_v9 = vrot.slane %v4108_v11, %v13488_v19 }
 0x2a2   : > { %v1154_v15 = vpop.permute.xlu0 %1153  ;;  %v13485_v16 = vpop.permute.xlu1 %1143 }
 0x2a3   : > { %20304 = vst [vmem:[#allocation42_spill] sm:$0xff] %v13485_v16  ;;  %v1915_v17 = vcombine.low %v1142_v1, %v1154_v15  ;;  %v1916_v18 = vcombine.high %v1142_v1, %v1154_v15  ;;  %20306 = vst [vmem:[#allocation44_spill] sm:$0xff] %v13496_v22 }
 0x2a4   : > { %1517 = vrot.lane.b32.xlu0 %v13433_v0, %s19722_s19  ;;  %1507 = vrot.lane.b32.xlu1 %v13461_v63, %s19732_s18  ;;  %20319 = vst [vmem:[#allocation57_spill] sm:$0xff] %v13568_v9  ;;  %s20346_s18 = smov 64  }
 0x2a5   : > { %v1923_v23 = vrot.slane %v1915_v17, %v13427_v47  ;;  %v13500_v24 = vrot.slane %v1916_v18, %v13427_v47 }
 0x2a6   : > { %v1160_v25 = vpop.permute.xlu0 %1159  ;;  %v13502_v26 = vpop.permute.xlu1 %1149 }
 0x2a7   : > { %20307 = vst [vmem:[#allocation45_spill] sm:$0xff] %v13500_v24  ;;  %20308 = vst [vmem:[#allocation46_spill] sm:$0xff] %v13502_v26  ;;  %v1963_v27 = vcombine.low %v1907_v21, %v1923_v23  ;;  %v1964_v28 = vcombine.high %v1907_v21, %v1923_v23  ;;  %v1980_v29 = vcombine.high %v13496_v22, %v13500_v24 }
 0x2a8   : > { %1523 = vrot.lane.b32.xlu0 %v13433_v0, %s19720_s23  ;;  %1513 = vrot.lane.b32.xlu1 %v13461_v63, %s19725_s12  ;;  %v4075_v32 = vcombine.low %v13477_v10, %v13502_v26  ;;  %s20340_s12 = smov 68  }
 0x2a9   : > { %v13516_v35 = vrot.slane %v1963_v27, %v13488_v19  ;;  %v13519_v30 = vrot.slane %v1964_v28, %v13488_v19  ;;  %v13539_v49 = vrot.slane %v1980_v29, %v13488_v19 }
 0x2aa   : > { %v1166_v39 = vpop.permute.xlu0 %1165  ;;  %v13521_v41 = vpop.permute.xlu1 %1155  ;;  %v13542_v50 = vrot.slane %v4075_v32, %v13427_v47 }
 0x2ab   : > { %20309 = vst [vmem:[#allocation47_spill] sm:$0xff] %v13519_v30  ;;  %20310 = vst [vmem:[#allocation48_spill] sm:$0xff] %v13521_v41  ;;  %v4091_v43 = vcombine.low %v13485_v16, %v13521_v41 }
 0x2ac   : > { %1529 = vrot.lane.b32.xlu0 %v13433_v0, %s19716_s14  ;;  %1519 = vrot.lane.b32.xlu1 %v13461_v63, %s19722_s19  ;;  %20312 = vst [vmem:[#allocation50_spill] sm:$0xff] %v13539_v49  ;;  %20313 = vst [vmem:[#allocation51_spill] sm:$0xff] %v13542_v50  ;;  %s20336_s19 = smov 72  }
 0x2ad   : > { %v13545_v52 = vrot.slane %v4091_v43, %v13427_v47 }
 0x2ae   : > { %v1172_v53 = vpop.permute.xlu0 %1171  ;;  %v13547_v54 = vpop.permute.xlu1 %1161 }
 0x2af   : > { %20314 = vst [vmem:[#allocation52_spill] sm:$0xff] %v13545_v52  ;;  %20315 = vst [vmem:[#allocation53_spill] sm:$0xff] %v13547_v54  ;;  %v4140_v58 = vcombine.high %v13542_v50, %v13545_v52  ;;  %v2003_v62 = vcombine.low %v1160_v25, %v1172_v53  ;;  %v2004_v1 = vcombine.high %v1160_v25, %v1172_v53 }
 0x2b0   : > { %1535 = vrot.lane.b32.xlu0 %v13433_v0, %s19718_s15  ;;  %1525 = vrot.lane.b32.xlu1 %v13461_v63, %s19720_s23  ;;  %s20332_s23 = smov 76  }
 0x2b1   : > { %v13563_v61 = vrot.slane %v4140_v58, %v13488_v19  ;;  %v2011_v17 = vrot.slane %v2003_v62, %v13427_v47  ;;  %v13580_v18 = vrot.slane %v2004_v1, %v13427_v47 }
 0x2b2   : > { %v1178_v5 = vpop.permute.xlu0 %1177  ;;  %v13565_v6 = vpop.permute.xlu1 %1167 }
 0x2b3   : > { %20317 = vst [vmem:[#allocation55_spill] sm:$0xff] %v13563_v61  ;;  %20318 = vst [vmem:[#allocation56_spill] sm:$0xff] %v13565_v6  ;;  %v2019_v12 = vcombine.low %v1166_v39, %v1178_v5  ;;  %v2020_v13 = vcombine.high %v1166_v39, %v1178_v5 }
 0x2b4   : > { %1541 = vrot.lane.b32.xlu0 %v13433_v0, %s20320_s16  ;;  %1531 = vrot.lane.b32.xlu1 %v13461_v63, %s19716_s14  ;;  %20321 = vst [vmem:[#allocation58_spill] sm:$0xff] %v13580_v18  ;;  %s20326_s14 = smov 84  }
 0x2b5   : > { %v2027_v11 = vrot.slane %v2019_v12, %v13427_v47  ;;  %v13584_v20 = vrot.slane %v2020_v13, %v13427_v47 }
 0x2b6   : > { %v1184_v21 = vpop.permute.xlu0 %1183  ;;  %v13586_v23 = vpop.permute.xlu1 %1173 }
 0x2b7   : > { %20322 = vst [vmem:[#allocation59_spill] sm:$0xff] %v13584_v20  ;;  %20323 = vst [vmem:[#allocation60_spill] sm:$0xff] %v13586_v23  ;;  %v2068_v25 = vcombine.high %v2011_v17, %v2027_v11  ;;  %v2084_v27 = vcombine.high %v13580_v18, %v13584_v20  ;;  %v4179_v28 = vcombine.low %v13547_v54, %v13586_v23 }
 0x2b8   : > { %1547 = vrot.lane.b32.xlu0 %v13433_v0, %s20324_s8  ;;  %1537 = vrot.lane.b32.xlu1 %v13461_v63, %s19718_s15  ;;  %s20330_s15 = smov 80   ;;  %v2067_v14 = vcombine.low %v2011_v17, %v2027_v11 }
 0x2b9   : > { %v13605_v43 = vrot.slane %v4179_v28, %v13427_v47  ;;  %v13680_v9 = vrot.slane %v2084_v27, %v13488_v19 }
 0x2ba   : > { %v1190_v29 = vpop.permute.xlu0 %1189  ;;  %v13596_v32 = vpop.permute.xlu1 %1179 }
 0x2bb   : > { %20325 = vst [vmem:[#allocation61_spill] sm:$0xff] %v13596_v32  ;;  %v4195_v39 = vcombine.low %v13565_v6, %v13596_v32  ;;  %20327 = vst [vmem:[#allocation62_spill] sm:$0xff] %v13605_v43 }
 0x2bc   : > { %1553 = vrot.lane.b32.xlu0 %v13433_v0, %s20326_s14  ;;  %1543 = vrot.lane.b32.xlu1 %v13461_v63, %s20320_s16  ;;  %20345 = vst [vmem:[#allocation76_spill] sm:$0xff] %v13680_v9 }
 0x2bd   : > { %v13608_v53 = vrot.slane %v4195_v39, %v13427_v47 }
 0x2be   : > { %v1196_v58 = vpop.permute.xlu0 %1195  ;;  %v13610_v62 = vpop.permute.xlu1 %1185 }
 0x2bf   : > { %20328 = vst [vmem:[#allocation63_spill] sm:$0xff] %v13608_v53  ;;  %20329 = vst [vmem:[#allocation64_spill] sm:$0xff] %v13610_v62  ;;  %v4244_v1 = vcombine.high %v13605_v43, %v13608_v53  ;;  %v2035_v5 = vcombine.low %v1184_v21, %v1196_v58  ;;  %v2036_v12 = vcombine.high %v1184_v21, %v1196_v58 }
 0x2c0   : > { %1559 = vrot.lane.b32.xlu0 %v13433_v0, %s20330_s15  ;;  %1549 = vrot.lane.b32.xlu1 %v13461_v63, %s20324_s8 }
 0x2c1   : > { %v2043_v4 = vrot.slane %v2035_v5, %v13427_v47  ;;  %v13626_v60 = vrot.slane %v2036_v12, %v13427_v47  ;;  %v13643_v5 = vrot.slane %v2067_v14, %v13488_v19 }
 0x2c2   : > { %v1202_v13 = vpop.permute.xlu0 %1201  ;;  %v13618_v28 = vpop.permute.xlu1 %1191 }
 0x2c3   : > { %20331 = vst [vmem:[#allocation65_spill] sm:$0xff] %v13618_v28  ;;  %v2051_v15 = vcombine.low %v1190_v29, %v1202_v13  ;;  %v2052_v39 = vcombine.high %v1190_v29, %v1202_v13  ;;  %20333 = vst [vmem:[#allocation66_spill] sm:$0xff] %v13626_v60 }
 0x2c4   : > { %1565 = vrot.lane.b32.xlu0 %v13433_v0, %s20332_s23  ;;  %1555 = vrot.lane.b32.xlu1 %v13461_v63, %s20326_s14 }
 0x2c5   : > { %v2059_v48 = vrot.slane %v2051_v15, %v13427_v47  ;;  %v13630_v21 = vrot.slane %v2052_v39, %v13427_v47  ;;  %v13654_v39 = vrot.slane %v2068_v25, %v13488_v19 }
 0x2c6   : > { %v1208_v58 = vpop.permute.xlu0 %1207  ;;  %v13632_v46 = vpop.permute.xlu1 %1197 }
 0x2c7   : > { %20334 = vst [vmem:[#allocation67_spill] sm:$0xff] %v13630_v21  ;;  %20335 = vst [vmem:[#allocation68_spill] sm:$0xff] %v13632_v46  ;;  %v2099_v17 = vcombine.low %v2043_v4, %v2059_v48  ;;  %v2100_v11 = vcombine.high %v2043_v4, %v2059_v48  ;;  %v2116_v29 = vcombine.high %v13626_v60, %v13630_v21 }
 0x2c8   : > { %1571 = vrot.lane.b32.xlu0 %v13433_v0, %s20336_s19  ;;  %1561 = vrot.lane.b32.xlu1 %v13461_v63, %s20330_s15  ;;  %v4211_v15 = vcombine.low %v13610_v62, %v13632_v46  ;;  %20339 = vst [vmem:[#allocation71_spill] sm:$0xff] %v13654_v39 }
 0x2c9   : > { %v13646_v12 = vrot.slane %v2099_v17, %v13488_v19  ;;  %v13649_v48 = vrot.slane %v2100_v11, %v13488_v19  ;;  %v13669_v25 = vrot.slane %v2116_v29, %v13488_v19 }
 0x2ca   : > { %v1214_v4 = vpop.permute.xlu0 %1213  ;;  %v13651_v13 = vpop.permute.xlu1 %1203  ;;  %v13672_v11 = vrot.slane %v4211_v15, %v13427_v47 }
 0x2cb   : > { %20337 = vst [vmem:[#allocation69_spill] sm:$0xff] %v13649_v48  ;;  %20338 = vst [vmem:[#allocation70_spill] sm:$0xff] %v13651_v13  ;;  %v4227_v45 = vcombine.low %v13618_v28, %v13651_v13 }
 0x2cc   : > { %1577 = vrot.lane.b32.xlu0 %v13433_v0, %s20340_s12  ;;  %1567 = vrot.lane.b32.xlu1 %v13461_v63, %s20332_s23  ;;  %20341 = vst [vmem:[#allocation72_spill] sm:$0xff] %v13669_v25  ;;  %20342 = vst [vmem:[#allocation73_spill] sm:$0xff] %v13672_v11 }
 0x2cd   : > { %v13675_v43 = vrot.slane %v4227_v45, %v13427_v47 }
 0x2ce   : > { %v1220_v53 = vpop.permute.xlu0 %1219  ;;  %v13677_v61 = vpop.permute.xlu1 %1209 }
 0x2cf   : > { %20343 = vst [vmem:[#allocation74_spill] sm:$0xff] %v13675_v43  ;;  %20344 = vst [vmem:[#allocation75_spill] sm:$0xff] %v13677_v61  ;;  %v4276_v14 = vcombine.high %v13672_v11, %v13675_v43  ;;  %v2139_v45 = vcombine.low %v1208_v58, %v1220_v53  ;;  %v2140_v15 = vcombine.high %v1208_v58, %v1220_v53 }
 0x2d0   : > { %1583 = vrot.lane.b32.xlu0 %v13433_v0, %s20346_s18  ;;  %1573 = vrot.lane.b32.xlu1 %v13461_v63, %s20336_s19  ;;  %v13698_v11 = vrot.slane %v4244_v1, %v13488_v19 }
 0x2d1   : > { %v13693_v27 = vrot.slane %v4276_v14, %v13488_v19  ;;  %v2147_v58 = vrot.slane %v2139_v45, %v13427_v47  ;;  %v13708_v14 = vrot.slane %v2140_v15, %v13427_v47 }
 0x2d2   : > { %v1226_v48 = vpop.permute.xlu0 %1225  ;;  %v13695_v39 = vpop.permute.xlu1 %1215  ;;  %20349 = vst [vmem:[#allocation79_spill] sm:$0xff] %v13698_v11 }
 0x2d3   : > { %20347 = vst [vmem:[#allocation77_spill] sm:$0xff] %v13693_v27  ;;  %20348 = vst [vmem:[#allocation78_spill] sm:$0xff] %v13695_v39  ;;  %v2155_v43 = vcombine.low %v1214_v4, %v1226_v48  ;;  %v2156_v62 = vcombine.high %v1214_v4, %v1226_v48 }
 0x2d4   : > { %1589 = vrot.lane.b32.xlu0 %v13433_v0, %s20350_s1  ;;  %1579 = vrot.lane.b32.xlu1 %v13461_v63, %s20340_s12  ;;  %20351 = vst [vmem:[#allocation80_spill] sm:$0xff] %v13708_v14 }
 0x2d5   : > { %v2163_v17 = vrot.slane %v2155_v43, %v13427_v47  ;;  %v13712_v1 = vrot.slane %v2156_v62, %v13427_v47 }
 0x2d6   : > { %v1232_v48 = vpop.permute.xlu0 %1231  ;;  %v13714_v4 = vpop.permute.xlu1 %1221 }
 0x2d7   : > { %20352 = vst [vmem:[#allocation81_spill] sm:$0xff] %v13712_v1  ;;  %20353 = vst [vmem:[#allocation82_spill] sm:$0xff] %v13714_v4  ;;  %v2204_v25 = vcombine.high %v2147_v58, %v2163_v17  ;;  %v2220_v53 = vcombine.high %v13708_v14, %v13712_v1  ;;  %v4315_v43 = vcombine.low %v13677_v61, %v13714_v4 }
 0x2d8   : > { %1595 = vrot.lane.b32.xlu0 %v13433_v0, %s20354_s9  ;;  %1585 = vrot.lane.b32.xlu1 %v13461_v63, %s20346_s18 }
 0x2d9   : > { %v13735_v29 = vrot.slane %v4315_v43, %v13427_v47 }
 0x2da   : > { %v1238_v62 = vpop.permute.xlu0 %1237  ;;  %v13726_v45 = vpop.permute.xlu1 %1227 }
 0x2db   : > { %20355 = vst [vmem:[#allocation83_spill] sm:$0xff] %v13726_v45  ;;  %v4331_v15 = vcombine.low %v13695_v39, %v13726_v45  ;;  %20357 = vst [vmem:[#allocation84_spill] sm:$0xff] %v13735_v29  ;;  %v2203_v45 = vcombine.low %v2147_v58, %v2163_v17 }
 0x2dc   : > { %1601 = vrot.lane.b32.xlu0 %v13433_v0, %s20356_s24  ;;  %1591 = vrot.lane.b32.xlu1 %v13461_v63, %s20350_s1 }
 0x2dd   : > { %v13738_v27 = vrot.slane %v4331_v15, %v13427_v47 }
 0x2de   : > { %v1244_v11 = vpop.permute.xlu0 %1243  ;;  %v13740_v9 = vpop.permute.xlu1 %1233 }
 0x2df   : > { %20358 = vst [vmem:[#allocation85_spill] sm:$0xff] %v13738_v27  ;;  %20359 = vst [vmem:[#allocation86_spill] sm:$0xff] %v13740_v9  ;;  %v4380_v14 = vcombine.high %v13735_v29, %v13738_v27  ;;  %v2171_v1 = vcombine.low %v1232_v48, %v1244_v11  ;;  %v2172_v61 = vcombine.high %v1232_v48, %v1244_v11 }
 0x2e0   : > { %1607 = vrot.lane.b32.xlu0 %v13433_v0, %s20360_s17  ;;  %1597 = vrot.lane.b32.xlu1 %v13461_v63, %s20354_s9 }
 0x2e1   : > { %v2179_v29 = vrot.slane %v2171_v1, %v13427_v47  ;;  %v13756_v27 = vrot.slane %v2172_v61, %v13427_v47 }
 0x2e2   : > { %v1250_v4 = vpop.permute.xlu0 %1249  ;;  %v13748_v43 = vpop.permute.xlu1 %1239 }
 0x2e3   : > { %20361 = vst [vmem:[#allocation87_spill] sm:$0xff] %v13748_v43  ;;  %v2187_v39 = vcombine.low %v1238_v62, %v1250_v4  ;;  %v2188_v15 = vcombine.high %v1238_v62, %v1250_v4  ;;  %20363 = vst [vmem:[#allocation88_spill] sm:$0xff] %v13756_v27 }
 0x2e4   : > { %1613 = vrot.lane.b32.xlu0 %v13433_v0, %s20362_s20  ;;  %1603 = vrot.lane.b32.xlu1 %v13461_v63, %s20356_s24 }
 0x2e5   : > { %v2195_v46 = vrot.slane %v2187_v39, %v13427_v47  ;;  %v13760_v11 = vrot.slane %v2188_v15, %v13427_v47  ;;  %v13773_v39 = vrot.slane %v2203_v45, %v13488_v19  ;;  %v13784_v15 = vrot.slane %v2204_v25, %v13488_v19 }
 0x2e6   : > { %v1256_v48 = vpop.permute.xlu0 %1255  ;;  %v13762_v60 = vpop.permute.xlu1 %1245 }
 0x2e7   : > { %20364 = vst [vmem:[#allocation89_spill] sm:$0xff] %v13760_v11  ;;  %20365 = vst [vmem:[#allocation90_spill] sm:$0xff] %v13762_v60  ;;  %v2235_v17 = vcombine.low %v2179_v29, %v2195_v46  ;;  %v2236_v58 = vcombine.high %v2179_v29, %v2195_v46  ;;  %v2252_v4 = vcombine.high %v13756_v27, %v13760_v11 }
 0x2e8   : > { %1619 = vrot.lane.b32.xlu0 %v13433_v0, %s20366_s11  ;;  %1609 = vrot.lane.b32.xlu1 %v13461_v63, %s20360_s17  ;;  %v4347_v61 = vcombine.low %v13740_v9, %v13762_v60  ;;  %20369 = vst [vmem:[#allocation93_spill] sm:$0xff] %v13784_v15 }
 0x2e9   : > { %v13776_v1 = vrot.slane %v2235_v17, %v13488_v19  ;;  %v13779_v46 = vrot.slane %v2236_v58, %v13488_v19  ;;  %v13799_v25 = vrot.slane %v2252_v4, %v13488_v19 }
 0x2ea   : > { %v1262_v29 = vpop.permute.xlu0 %1261  ;;  %v13781_v62 = vpop.permute.xlu1 %1251  ;;  %v13802_v58 = vrot.slane %v4347_v61, %v13427_v47 }
 0x2eb   : > { %20367 = vst [vmem:[#allocation91_spill] sm:$0xff] %v13779_v46  ;;  %20368 = vst [vmem:[#allocation92_spill] sm:$0xff] %v13781_v62  ;;  %v4363_v27 = vcombine.low %v13748_v43, %v13781_v62  ;;  %v13810_v43 = vrot.slane %v2220_v53, %v13488_v19 }
 0x2ec   : > { %1625 = vrot.lane.b32.xlu0 %v13433_v0, %s20370_s0  ;;  %1615 = vrot.lane.b32.xlu1 %v13461_v63, %s20362_s20  ;;  %20371 = vst [vmem:[#allocation94_spill] sm:$0xff] %v13799_v25  ;;  %20372 = vst [vmem:[#allocation95_spill] sm:$0xff] %v13802_v58 }
 0x2ed   : > { %v13805_v9 = vrot.slane %v4363_v27, %v13427_v47  ;;  %20375 = vst [vmem:[#allocation98_spill] sm:$0xff] %v13810_v43 }
 0x2ee   : > { %v1268_v60 = vpop.permute.xlu0 %1267  ;;  %v13807_v11 = vpop.permute.xlu1 %1257 }
 0x2ef   : > { %20373 = vst [vmem:[#allocation96_spill] sm:$0xff] %v13805_v9  ;;  %20374 = vst [vmem:[#allocation97_spill] sm:$0xff] %v13807_v11  ;;  %v4412_v45 = vcombine.high %v13802_v58, %v13805_v9  ;;  %v2275_v27 = vcombine.low %v1256_v48, %v1268_v60  ;;  %v2276_v61 = vcombine.high %v1256_v48, %v1268_v60 }
 0x2f0   : > { %1631 = vrot.lane.b32.xlu0 %v13433_v0, %s20376_s2  ;;  %1621 = vrot.lane.b32.xlu1 %v13461_v63, %s20366_s11  ;;  %v13828_v58 = vrot.slane %v4380_v14, %v13488_v19 }
 0x2f1   : > { %v13823_v53 = vrot.slane %v4412_v45, %v13488_v19  ;;  %v2283_v45 = vrot.slane %v2275_v27, %v13427_v47  ;;  %v13840_v17 = vrot.slane %v2276_v61, %v13427_v47 }
 0x2f2   : > { %v1274_v62 = vpop.permute.xlu0 %1273  ;;  %v13825_v46 = vpop.permute.xlu1 %1263  ;;  %20379 = vst [vmem:[#allocation101_spill] sm:$0xff] %v13828_v58 }
 0x2f3   : > { %20377 = vst [vmem:[#allocation99_spill] sm:$0xff] %v13823_v53  ;;  %20378 = vst [vmem:[#allocation100_spill] sm:$0xff] %v13825_v46  ;;  %v2291_v9 = vcombine.low %v1262_v29, %v1274_v62  ;;  %v2292_v15 = vcombine.high %v1262_v29, %v1274_v62 }
 0x2f4   : > { %1637 = vrot.lane.b32.xlu0 %v13433_v0, %s20380_s3  ;;  %1627 = vrot.lane.b32.xlu1 %v13461_v63, %s20370_s0  ;;  %20381 = vst [vmem:[#allocation102_spill] sm:$0xff] %v13840_v17 }
 0x2f5   : > { %v2299_v14 = vrot.slane %v2291_v9, %v13427_v47  ;;  %v13844_v29 = vrot.slane %v2292_v15, %v13427_v47 }
 0x2f6   : > { %v1280_v62 = vpop.permute.xlu0 %1279  ;;  %v13846_v4 = vpop.permute.xlu1 %1269 }
 0x2f7   : > { %20382 = vst [vmem:[#allocation103_spill] sm:$0xff] %v13844_v29  ;;  %20383 = vst [vmem:[#allocation104_spill] sm:$0xff] %v13846_v4  ;;  %v2340_v25 = vcombine.high %v2283_v45, %v2299_v14  ;;  %v2356_v60 = vcombine.high %v13840_v17, %v13844_v29  ;;  %v4451_v27 = vcombine.low %v13807_v11, %v13846_v4 }
 0x2f8   : > { %1643 = vrot.lane.b32.xlu0 %v13433_v0, %s20384_s4  ;;  %1633 = vrot.lane.b32.xlu1 %v13461_v63, %s20376_s2 }
 0x2f9   : > { %v13865_v48 = vrot.slane %v4451_v27, %v13427_v47 }
 0x2fa   : > { %v1286_v9 = vpop.permute.xlu0 %1285  ;;  %v13856_v61 = vpop.permute.xlu1 %1275 }
 0x2fb   : > { %20385 = vst [vmem:[#allocation105_spill] sm:$0xff] %v13856_v61  ;;  %v4467_v15 = vcombine.low %v13825_v46, %v13856_v61  ;;  %20387 = vst [vmem:[#allocation106_spill] sm:$0xff] %v13865_v48 }
 0x2fc   : > { %1649 = vrot.lane.b32.xlu0 %v13433_v0, %s20386_s29  ;;  %1639 = vrot.lane.b32.xlu1 %v13461_v63, %s20380_s3 }
 0x2fd   : > { %v13868_v53 = vrot.slane %v4467_v15, %v13427_v47 }
 0x2fe   : > { %v1292_v58 = vpop.permute.xlu0 %1291  ;;  %v13870_v17 = vpop.permute.xlu1 %1281 }
 0x2ff   : > { %20388 = vst [vmem:[#allocation107_spill] sm:$0xff] %v13868_v53  ;;  %20389 = vst [vmem:[#allocation108_spill] sm:$0xff] %v13870_v17  ;;  %v2307_v43 = vcombine.low %v1280_v62, %v1292_v58  ;;  %v2308_v11 = vcombine.high %v1280_v62, %v1292_v58  ;;  %v13894_v62 = vadd.f32 %v13283_v31, %v13288_v34 }
 0x300   : > { %1655 = vrot.lane.b32.xlu0 %v13433_v0, %s20390_s28  ;;  %1645 = vrot.lane.b32.xlu1 %v13461_v63, %s20384_s4 }
 0x301   : > { %v2315_v29 = vrot.slane %v2307_v43, %v13427_v47  ;;  %v13886_v61 = vrot.slane %v2308_v11, %v13427_v47 }
 0x302   : > { %v1298_v4 = vpop.permute.xlu0 %1297  ;;  %v13878_v27 = vpop.permute.xlu1 %1287 }
 0x303   : > { %20391 = vst [vmem:[#allocation109_spill] sm:$0xff] %v13878_v27  ;;  %v2323_v46 = vcombine.low %v1286_v9, %v1298_v4  ;;  %v2324_v15 = vcombine.high %v1286_v9, %v1298_v4  ;;  %20393 = vst [vmem:[#allocation110_spill] sm:$0xff] %v13886_v61  ;;  %v2339_v4 = vcombine.low %v2283_v45, %v2299_v14 }
 0x304   : > { %1661 = vrot.lane.b32.xlu0 %v13433_v0, %s20392_s27  ;;  %1651 = vrot.lane.b32.xlu1 %v13461_v63, %s20386_s29 }
 0x305   : > { %v2331_v21 = vrot.slane %v2323_v46, %v13427_v47  ;;  %v13890_v58 = vrot.slane %v2324_v15, %v13427_v47  ;;  %v13915_v14 = vrot.slane %v2339_v4, %v13488_v19 }
 0x306   : > { %v1494_v9 = vpop.permute.xlu0 %1493  ;;  %v13896_v28 = vpop.permute.xlu1 %1293 }
 0x307   : > { %20394 = vst [vmem:[#allocation111_spill] sm:$0xff] %v13890_v58  ;;  %20395 = vst [vmem:[#allocation112_spill] sm:$0xff] %v13896_v28  ;;  %v2371_v13 = vcombine.low %v2315_v29, %v2331_v21  ;;  %v2372_v54 = vcombine.high %v2315_v29, %v2331_v21  ;;  %v2388_v43 = vcombine.high %v13886_v61, %v13890_v58 }
 0x308   : > { %1305 = vrot.lane.b32.xlu0 %v13894_v62, %s20396_s26  ;;  %1657 = vrot.lane.b32.xlu1 %v13461_v63, %s20390_s28  ;;  %v4483_v11 = vcombine.low %v13870_v17, %v13896_v28  ;;  %v13918_v29 = vrot.slane %v2340_v25, %v13488_v19  ;;  %v13941_v28 = vadd.f32 %v13283_v31, %v13290_v36 }
 0x309   : > { %v13907_v34 = vrot.slane %v2371_v13, %v13488_v19  ;;  %v13910_v46 = vrot.slane %v2372_v54, %v13488_v19  ;;  %v13937_v17 = vrot.slane %v2388_v43, %v13488_v19  ;;  %v13952_v43 = vrot.slane %v2356_v60, %v13488_v19 }
 0x30a   : > { %v1500_v45 = vpop.permute.xlu0 %1499  ;;  %v13912_v21 = vpop.permute.xlu1 %1299  ;;  %20399 = vst [vmem:[#allocation115_spill] sm:$0xff] %v13918_v29  ;;  %v13931_v4 = vrot.slane %v4483_v11, %v13427_v47  ;;  %20404 = vst [vmem:[#allocation119_spill] sm:$0xff] %v13941_v28 }
 0x30b   : > { %20397 = vst [vmem:[#allocation113_spill] sm:$0xff] %v13910_v46  ;;  %20398 = vst [vmem:[#allocation114_spill] sm:$0xff] %v13912_v21  ;;  %v4499_v15 = vcombine.low %v13878_v27, %v13912_v21  ;;  %v2955_v61 = vcombine.low %v13433_v0, %v1500_v45  ;;  %v2956_v54 = vcombine.high %v13433_v0, %v1500_v45 }
 0x30c   : > { %1311 = vrot.lane.b32.xlu0 %v13894_v62, %s20400_s25  ;;  %1663 = vrot.lane.b32.xlu1 %v13461_v63, %s20392_s27  ;;  %20401 = vst [vmem:[#allocation116_spill] sm:$0xff] %v13931_v4  ;;  %20403 = vst [vmem:[#allocation118_spill] sm:$0xff] %v13937_v17  ;;  %v20414_v17 = vcombine.high %v13865_v48, %v13868_v53 }
 0x30d   : > { %v13934_v25 = vrot.slane %v4499_v15, %v13427_v47  ;;  %20406 = vst [vmem:[#allocation121_spill] sm:$0xff] %v13952_v43  ;;  %v13963_v11 = vrot.slane %v2955_v61, %v13427_v47  ;;  %v13966_v60 = vrot.slane %v2956_v54, %v13427_v47 }
 0x30e   : > { %v1506_v58 = vpop.permute.xlu0 %1505  ;;  %v13945_v27 = vpop.permute.xlu1 %1495  ;;  %v13995_v43 = vrot.slane %v20414_v17, %v13488_v19 }
 0x30f   : > { %20402 = vst [vmem:[#allocation117_spill] sm:$0xff] %v13934_v25  ;;  %20405 = vst [vmem:[#allocation120_spill] sm:$0xff] %v13945_v27  ;;  %v4548_v15 = vcombine.high %v13931_v4, %v13934_v25  ;;  %v2971_v13 = vcombine.low %v1494_v9, %v1506_v58  ;;  %v2972_v21 = vcombine.high %v1494_v9, %v1506_v58 }
 0x310   : > { %1317 = vrot.lane.b32.xlu0 %v13894_v62, %s20407_s30  ;;  %1307 = vrot.lane.b32.xlu1 %v13941_v28, %s20396_s26  ;;  %20408 = vst [vmem:[#allocation122_spill] sm:$0xff] %v13966_v60  ;;  %20415 = vst [vmem:[#allocation127_spill] sm:$0xff] %v13995_v43 }
 0x311   : > { %v13969_v58 = vrot.slane %v2971_v13, %v13427_v47  ;;  %v13972_v9 = vrot.slane %v2972_v21, %v13427_v47  ;;  %v13983_v61 = vrot.slane %v4548_v15, %v13488_v19 }
 0x312   : > { %v1512_v46 = vpop.permute.xlu0 %1511  ;;  %v13974_v29 = vpop.permute.xlu1 %1501 }
 0x313   : > { %20409 = vst [vmem:[#allocation123_spill] sm:$0xff] %v13972_v9  ;;  %20410 = vst [vmem:[#allocation124_spill] sm:$0xff] %v13974_v29  ;;  %v3020_v36 = vcombine.high %v13963_v11, %v13969_v58  ;;  %v3036_v45 = vcombine.high %v13966_v60, %v13972_v9  ;;  %v5131_v54 = vcombine.low %v13461_v63, %v13974_v29 }
 0x314   : > { %1323 = vrot.lane.b32.xlu0 %v13894_v62, %s20411_s13  ;;  %20412 = vst [vmem:[#allocation125_spill] sm:$0xff] %v13983_v61  ;;  %1313 = vrot.lane.b32.xlu1 %v13941_v28, %s20400_s25 }
 0x315   : > { %v14006_v29 = vrot.slane %v5131_v54, %v13427_v47  ;;  %v14057_v53 = vrot.slane %v3020_v36, %v13488_v19 }
 0x316   : > { %v1518_v21 = vpop.permute.xlu0 %1517  ;;  %v13989_v13 = vpop.permute.xlu1 %1507 }
 0x317   : > { %20413 = vst [vmem:[#allocation126_spill] sm:$0xff] %v13989_v13  ;;  %v5147_v60 = vcombine.low %v13945_v27, %v13989_v13  ;;  %20417 = vst [vmem:[#allocation128_spill] sm:$0xff] %v14006_v29 }
 0x318   : > { %1329 = vrot.lane.b32.xlu0 %v13894_v62, %s20416_s21  ;;  %1319 = vrot.lane.b32.xlu1 %v13941_v28, %s20407_s30  ;;  %20429 = vst [vmem:[#allocation137_spill] sm:$0xff] %v14057_v53 }
 0x319   : > { %v14009_v4 = vrot.slane %v5147_v60, %v13427_v47 }
 0x31a   : > { %v1524_v17 = vpop.permute.xlu0 %1523  ;;  %v14013_v27 = vpop.permute.xlu1 %1513 }
 0x31b   : > { %20418 = vst [vmem:[#allocation129_spill] sm:$0xff] %v14009_v4  ;;  %20419 = vst [vmem:[#allocation130_spill] sm:$0xff] %v14013_v27  ;;  %v5196_v13 = vcombine.high %v14006_v29, %v14009_v4  ;;  %v2987_v15 = vcombine.low %v1512_v46, %v1524_v17  ;;  %v2988_v9 = vcombine.high %v1512_v46, %v1524_v17 }
 0x31c   : > { %1335 = vrot.lane.b32.xlu0 %v13894_v62, %s20420_s6  ;;  %1325 = vrot.lane.b32.xlu1 %v13941_v28, %s20411_s13 }
 0x31d   : > { %v14026_v25 = vrot.slane %v2987_v15, %v13427_v47  ;;  %v14029_v29 = vrot.slane %v2988_v9, %v13427_v47 }
 0x31e   : > { %v1530_v54 = vpop.permute.xlu0 %1529  ;;  %v14021_v60 = vpop.permute.xlu1 %1519 }
 0x31f   : > { %20421 = vst [vmem:[#allocation131_spill] sm:$0xff] %v14021_v60  ;;  %v3003_v61 = vcombine.low %v1518_v21, %v1530_v54  ;;  %v3004_v43 = vcombine.high %v1518_v21, %v1530_v54  ;;  %20423 = vst [vmem:[#allocation132_spill] sm:$0xff] %v14029_v29 }
 0x320   : > { %1341 = vrot.lane.b32.xlu0 %v13894_v62, %s20422_s5  ;;  %1331 = vrot.lane.b32.xlu1 %v13941_v28, %s20416_s21 }
 0x321   : > { %v14032_v4 = vrot.slane %v3003_v61, %v13427_v47  ;;  %v14035_v46 = vrot.slane %v3004_v43, %v13427_v47 }
 0x322   : > { %v1536_v17 = vpop.permute.xlu0 %1535  ;;  %v14039_v21 = vpop.permute.xlu1 %1525 }
 0x323   : > { %20424 = vst [vmem:[#allocation133_spill] sm:$0xff] %v14035_v46  ;;  %20425 = vst [vmem:[#allocation134_spill] sm:$0xff] %v14039_v21  ;;  %v3052_v54 = vcombine.high %v14026_v25, %v14032_v4  ;;  %v3068_v15 = vcombine.high %v14029_v29, %v14035_v46  ;;  %v5163_v9 = vcombine.low %v14013_v27, %v14039_v21 }
 0x324   : > { %1347 = vrot.lane.b32.xlu0 %v13894_v62, %s20426_s10  ;;  %1337 = vrot.lane.b32.xlu1 %v13941_v28, %s20420_s6  ;;  %v14081_v27 = vrot.slane %v3036_v45, %v13488_v19 }
 0x325   : > { %v14052_v43 = vrot.slane %v3052_v54, %v13488_v19  ;;  %v14068_v54 = vrot.slane %v3068_v15, %v13488_v19  ;;  %v14071_v46 = vrot.slane %v5163_v9, %v13427_v47 }
 0x326   : > { %v1542_v61 = vpop.permute.xlu0 %1541  ;;  %v14054_v48 = vpop.permute.xlu1 %1531  ;;  %20434 = vst [vmem:[#allocation142_spill] sm:$0xff] %v14081_v27 }
 0x327   : > { %20427 = vst [vmem:[#allocation135_spill] sm:$0xff] %v14052_v43  ;;  %20428 = vst [vmem:[#allocation136_spill] sm:$0xff] %v14054_v48  ;;  %v5179_v29 = vcombine.low %v14021_v60, %v14054_v48 }
 0x328   : > { %1353 = vrot.lane.b32.xlu0 %v13894_v62, %s20320_s16  ;;  %20430 = vst [vmem:[#allocation138_spill] sm:$0xff] %v14068_v54  ;;  %20431 = vst [vmem:[#allocation139_spill] sm:$0xff] %v14071_v46  ;;  %1343 = vrot.lane.b32.xlu1 %v13941_v28, %s20422_s5 }
 0x329   : > { %v14074_v36 = vrot.slane %v5179_v29, %v13427_v47 }
 0x32a   : > { %v1548_v60 = vpop.permute.xlu0 %1547  ;;  %v14078_v48 = vpop.permute.xlu1 %1537 }
 0x32b   : > { %20432 = vst [vmem:[#allocation140_spill] sm:$0xff] %v14074_v36  ;;  %20433 = vst [vmem:[#allocation141_spill] sm:$0xff] %v14078_v48  ;;  %v5228_v21 = vcombine.high %v14071_v46, %v14074_v36  ;;  %v3091_v9 = vcombine.low %v1536_v17, %v1548_v60  ;;  %v3092_v43 = vcombine.high %v1536_v17, %v1548_v60 }
 0x32c   : > { %1359 = vrot.lane.b32.xlu0 %v13894_v62, %s20324_s8  ;;  %1349 = vrot.lane.b32.xlu1 %v13941_v28, %s20426_s10  ;;  %v14099_v46 = vrot.slane %v5196_v13, %v13488_v19 }
 0x32d   : > { %v14094_v45 = vrot.slane %v5228_v21, %v13488_v19  ;;  %v3099_v21 = vrot.slane %v3091_v9, %v13427_v47  ;;  %v14109_v29 = vrot.slane %v3092_v43, %v13427_v47 }
 0x32e   : > { %v1554_v53 = vpop.permute.xlu0 %1553  ;;  %v14096_v23 = vpop.permute.xlu1 %1543  ;;  %20437 = vst [vmem:[#allocation145_spill] sm:$0xff] %v14099_v46 }
 0x32f   : > { %20435 = vst [vmem:[#allocation143_spill] sm:$0xff] %v14094_v45  ;;  %20436 = vst [vmem:[#allocation144_spill] sm:$0xff] %v14096_v23  ;;  %v3107_v36 = vcombine.low %v1542_v61, %v1554_v53  ;;  %v3108_v6 = vcombine.high %v1542_v61, %v1554_v53 }
 0x330   : > { %1365 = vrot.lane.b32.xlu0 %v13894_v62, %s20326_s14  ;;  %20438 = vst [vmem:[#allocation146_spill] sm:$0xff] %v14109_v29  ;;  %1355 = vrot.lane.b32.xlu1 %v13941_v28, %s20320_s16 }
 0x331   : > { %v3115_v15 = vrot.slane %v3107_v36, %v13427_v47  ;;  %v14113_v13 = vrot.slane %v3108_v6, %v13427_v47 }
 0x332   : > { %v1560_v53 = vpop.permute.xlu0 %1559  ;;  %v14117_v61 = vpop.permute.xlu1 %1549 }
 0x333   : > { %20439 = vst [vmem:[#allocation147_spill] sm:$0xff] %v14113_v13  ;;  %20440 = vst [vmem:[#allocation148_spill] sm:$0xff] %v14117_v61  ;;  %v3156_v60 = vcombine.high %v3099_v21, %v3115_v15  ;;  %v3172_v17 = vcombine.high %v14109_v29, %v14113_v13  ;;  %v5267_v43 = vcombine.low %v14078_v48, %v14117_v61 }
 0x334   : > { %1371 = vrot.lane.b32.xlu0 %v13894_v62, %s20330_s15  ;;  %1361 = vrot.lane.b32.xlu1 %v13941_v28, %s20324_s8 }
 0x335   : > { %v14134_v45 = vrot.slane %v5267_v43, %v13427_v47 }
 0x336   : > { %v1566_v6 = vpop.permute.xlu0 %1565  ;;  %v14127_v36 = vpop.permute.xlu1 %1555 }
 0x337   : > { %20441 = vst [vmem:[#allocation149_spill] sm:$0xff] %v14127_v36  ;;  %v5283_v9 = vcombine.low %v14096_v23, %v14127_v36  ;;  %20442 = vst [vmem:[#allocation150_spill] sm:$0xff] %v14134_v45  ;;  %v3155_v36 = vcombine.low %v3099_v21, %v3115_v15 }
 0x338   : > { %1377 = vrot.lane.b32.xlu0 %v13894_v62, %s20332_s23  ;;  %1367 = vrot.lane.b32.xlu1 %v13941_v28, %s20326_s14 }
 0x339   : > { %v14137_v46 = vrot.slane %v5283_v9, %v13427_v47 }
 0x33a   : > { %v1572_v54 = vpop.permute.xlu0 %1571  ;;  %v14141_v27 = vpop.permute.xlu1 %1561 }
 0x33b   : > { %20443 = vst [vmem:[#allocation151_spill] sm:$0xff] %v14137_v46  ;;  %20444 = vst [vmem:[#allocation152_spill] sm:$0xff] %v14141_v27  ;;  %v5332_v29 = vcombine.high %v14134_v45, %v14137_v46  ;;  %v3123_v13 = vcombine.low %v1560_v53, %v1572_v54  ;;  %v3124_v48 = vcombine.high %v1560_v53, %v1572_v54 }
 0x33c   : > { %1383 = vrot.lane.b32.xlu0 %v13894_v62, %s20336_s19  ;;  %1373 = vrot.lane.b32.xlu1 %v13941_v28, %s20330_s15 }
 0x33d   : > { %v3131_v32 = vrot.slane %v3123_v13, %v13427_v47  ;;  %v14155_v45 = vrot.slane %v3124_v48, %v13427_v47 }
 0x33e   : > { %v1578_v43 = vpop.permute.xlu0 %1577  ;;  %v14149_v9 = vpop.permute.xlu1 %1567 }
 0x33f   : > { %20445 = vst [vmem:[#allocation153_spill] sm:$0xff] %v14149_v9  ;;  %v3139_v61 = vcombine.low %v1566_v6, %v1578_v43  ;;  %v3140_v23 = vcombine.high %v1566_v6, %v1578_v43  ;;  %20446 = vst [vmem:[#allocation154_spill] sm:$0xff] %v14155_v45  ;;  %v14185_v43 = vrot.slane %v3156_v60, %v13488_v19 }
 0x340   : > { %1389 = vrot.lane.b32.xlu0 %v13894_v62, %s20340_s12  ;;  %1379 = vrot.lane.b32.xlu1 %v13941_v28, %s20332_s23 }
 0x341   : > { %v3147_v46 = vrot.slane %v3139_v61, %v13427_v47  ;;  %v14159_v54 = vrot.slane %v3140_v23, %v13427_v47  ;;  %v14174_v23 = vrot.slane %v3155_v36, %v13488_v19  ;;  %20451 = vst [vmem:[#allocation159_spill] sm:$0xff] %v14185_v43  ;;  %v14211_v36 = vrot.slane %v3172_v17, %v13488_v19 }
 0x342   : > { %v1584_v53 = vpop.permute.xlu0 %1583  ;;  %v14163_v18 = vpop.permute.xlu1 %1573 }
 0x343   : > { %20447 = vst [vmem:[#allocation155_spill] sm:$0xff] %v14159_v54  ;;  %20448 = vst [vmem:[#allocation156_spill] sm:$0xff] %v14163_v18  ;;  %v3187_v15 = vcombine.low %v3131_v32, %v3147_v46  ;;  %v3188_v21 = vcombine.high %v3131_v32, %v3147_v46  ;;  %v3204_v6 = vcombine.high %v14155_v45, %v14159_v54 }
 0x344   : > { %1395 = vrot.lane.b32.xlu0 %v13894_v62, %s20346_s18  ;;  %v5299_v48 = vcombine.low %v14141_v27, %v14163_v18  ;;  %1385 = vrot.lane.b32.xlu1 %v13941_v28, %s20336_s19  ;;  %20456 = vst [vmem:[#allocation164_spill] sm:$0xff] %v14211_v36 }
 0x345   : > { %v14177_v13 = vrot.slane %v3187_v15, %v13488_v19  ;;  %v14180_v32 = vrot.slane %v3188_v21, %v13488_v19  ;;  %v14198_v21 = vrot.slane %v3204_v6, %v13488_v19 }
 0x346   : > { %v1590_v46 = vpop.permute.xlu0 %1589  ;;  %v14182_v61 = vpop.permute.xlu1 %1579  ;;  %v14201_v60 = vrot.slane %v5299_v48, %v13427_v47 }
 0x347   : > { %20449 = vst [vmem:[#allocation157_spill] sm:$0xff] %v14180_v32  ;;  %20450 = vst [vmem:[#allocation158_spill] sm:$0xff] %v14182_v61  ;;  %v5315_v27 = vcombine.low %v14149_v9, %v14182_v61 }
 0x348   : > { %1401 = vrot.lane.b32.xlu0 %v13894_v62, %s20350_s1  ;;  %20452 = vst [vmem:[#allocation160_spill] sm:$0xff] %v14198_v21  ;;  %20453 = vst [vmem:[#allocation161_spill] sm:$0xff] %v14201_v60  ;;  %1391 = vrot.lane.b32.xlu1 %v13941_v28, %s20340_s12 }
 0x349   : > { %v14204_v45 = vrot.slane %v5315_v27, %v13427_v47 }
 0x34a   : > { %v1596_v18 = vpop.permute.xlu0 %1595  ;;  %v14208_v54 = vpop.permute.xlu1 %1585 }
 0x34b   : > { %20454 = vst [vmem:[#allocation162_spill] sm:$0xff] %v14204_v45  ;;  %20455 = vst [vmem:[#allocation163_spill] sm:$0xff] %v14208_v54  ;;  %v5364_v15 = vcombine.high %v14201_v60, %v14204_v45  ;;  %v3227_v48 = vcombine.low %v1584_v53, %v1596_v18  ;;  %v3228_v32 = vcombine.high %v1584_v53, %v1596_v18 }
 0x34c   : > { %1407 = vrot.lane.b32.xlu0 %v13894_v62, %s20354_s9  ;;  %1397 = vrot.lane.b32.xlu1 %v13941_v28, %s20346_s18  ;;  %v14229_v60 = vrot.slane %v5332_v29, %v13488_v19 }
 0x34d   : > { %v14224_v17 = vrot.slane %v5364_v15, %v13488_v19  ;;  %v14238_v15 = vrot.slane %v3227_v48, %v13427_v47  ;;  %v14241_v27 = vrot.slane %v3228_v32, %v13427_v47 }
 0x34e   : > { %v1602_v43 = vpop.permute.xlu0 %1601  ;;  %v14226_v9 = vpop.permute.xlu1 %1591  ;;  %20459 = vst [vmem:[#allocation167_spill] sm:$0xff] %v14229_v60 }
 0x34f   : > { %20457 = vst [vmem:[#allocation165_spill] sm:$0xff] %v14224_v17  ;;  %20458 = vst [vmem:[#allocation166_spill] sm:$0xff] %v14226_v9  ;;  %v3243_v45 = vcombine.low %v1590_v46, %v1602_v43  ;;  %v3244_v61 = vcombine.high %v1590_v46, %v1602_v43 }
 0x350   : > { %1413 = vrot.lane.b32.xlu0 %v13894_v62, %s20356_s24  ;;  %20460 = vst [vmem:[#allocation168_spill] sm:$0xff] %v14241_v27  ;;  %1403 = vrot.lane.b32.xlu1 %v13941_v28, %s20350_s1 }
 0x351   : > { %v14244_v29 = vrot.slane %v3243_v45, %v13427_v47  ;;  %v14247_v46 = vrot.slane %v3244_v61, %v13427_v47 }
 0x352   : > { %v1608_v43 = vpop.permute.xlu0 %1607  ;;  %v14251_v18 = vpop.permute.xlu1 %1597 }
 0x353   : > { %20461 = vst [vmem:[#allocation169_spill] sm:$0xff] %v14247_v46  ;;  %20462 = vst [vmem:[#allocation170_spill] sm:$0xff] %v14251_v18  ;;  %v3292_v53 = vcombine.high %v14238_v15, %v14244_v29  ;;  %v3308_v48 = vcombine.high %v14241_v27, %v14247_v46  ;;  %v5403_v45 = vcombine.low %v14208_v54, %v14251_v18 }
 0x354   : > { %1419 = vrot.lane.b32.xlu0 %v13894_v62, %s20360_s17  ;;  %1409 = vrot.lane.b32.xlu1 %v13941_v28, %s20354_s9 }
 0x355   : > { %v14270_v17 = vrot.slane %v5403_v45, %v13427_v47  ;;  %v14321_v49 = vrot.slane %v3292_v53, %v13488_v19 }
 0x356   : > { %v1614_v32 = vpop.permute.xlu0 %1613  ;;  %v14263_v61 = vpop.permute.xlu1 %1603 }
 0x357   : > { %20463 = vst [vmem:[#allocation171_spill] sm:$0xff] %v14263_v61  ;;  %v5419_v6 = vcombine.low %v14226_v9, %v14263_v61  ;;  %20464 = vst [vmem:[#allocation172_spill] sm:$0xff] %v14270_v17 }
 0x358   : > { %1425 = vrot.lane.b32.xlu0 %v13894_v62, %s20362_s20  ;;  %1415 = vrot.lane.b32.xlu1 %v13941_v28, %s20356_s24  ;;  %20473 = vst [vmem:[#allocation181_spill] sm:$0xff] %v14321_v49 }
 0x359   : > { %v14273_v60 = vrot.slane %v5419_v6, %v13427_v47 }
 0x35a   : > { %v1620_v54 = vpop.permute.xlu0 %1619  ;;  %v14277_v18 = vpop.permute.xlu1 %1609 }
 0x35b   : > { %20465 = vst [vmem:[#allocation173_spill] sm:$0xff] %v14273_v60  ;;  %20466 = vst [vmem:[#allocation174_spill] sm:$0xff] %v14277_v18  ;;  %v5468_v27 = vcombine.high %v14270_v17, %v14273_v60  ;;  %v3259_v46 = vcombine.low %v1608_v43, %v1620_v54  ;;  %v3260_v9 = vcombine.high %v1608_v43, %v1620_v54 }
 0x35c   : > { %1431 = vrot.lane.b32.xlu0 %v13894_v62, %s20366_s11  ;;  %1421 = vrot.lane.b32.xlu1 %v13941_v28, %s20360_s17 }
 0x35d   : > { %v14290_v36 = vrot.slane %v3259_v46, %v13427_v47  ;;  %v14293_v17 = vrot.slane %v3260_v9, %v13427_v47 }
 0x35e   : > { %v1626_v45 = vpop.permute.xlu0 %1625  ;;  %v14285_v6 = vpop.permute.xlu1 %1615 }
 0x35f   : > { %20467 = vst [vmem:[#allocation175_spill] sm:$0xff] %v14285_v6  ;;  %v3275_v61 = vcombine.low %v1614_v32, %v1626_v45  ;;  %v3276_v21 = vcombine.high %v1614_v32, %v1626_v45  ;;  %20468 = vst [vmem:[#allocation176_spill] sm:$0xff] %v14293_v17 }
 0x360   : > { %1437 = vrot.lane.b32.xlu0 %v13894_v62, %s20370_s0  ;;  %1427 = vrot.lane.b32.xlu1 %v13941_v28, %s20362_s20 }
 0x361   : > { %v14296_v60 = vrot.slane %v3275_v61, %v13427_v47  ;;  %v14299_v54 = vrot.slane %v3276_v21, %v13427_v47 }
 0x362   : > { %v1632_v43 = vpop.permute.xlu0 %1631  ;;  %v14303_v32 = vpop.permute.xlu1 %1621 }
 0x363   : > { %20469 = vst [vmem:[#allocation177_spill] sm:$0xff] %v14299_v54  ;;  %20470 = vst [vmem:[#allocation178_spill] sm:$0xff] %v14303_v32  ;;  %v3324_v45 = vcombine.high %v14290_v36, %v14296_v60  ;;  %v3340_v46 = vcombine.high %v14293_v17, %v14299_v54  ;;  %v5435_v9 = vcombine.low %v14277_v18, %v14303_v32 }
 0x364   : > { %1443 = vrot.lane.b32.xlu0 %v13894_v62, %s20376_s2  ;;  %1433 = vrot.lane.b32.xlu1 %v13941_v28, %s20366_s11  ;;  %v14345_v18 = vrot.slane %v3308_v48, %v13488_v19 }
 0x365   : > { %v14316_v21 = vrot.slane %v3324_v45, %v13488_v19  ;;  %v14332_v45 = vrot.slane %v3340_v46, %v13488_v19  ;;  %v14335_v54 = vrot.slane %v5435_v9, %v13427_v47 }
 0x366   : > { %v1638_v61 = vpop.permute.xlu0 %1637  ;;  %v14318_v20 = vpop.permute.xlu1 %1627  ;;  %20478 = vst [vmem:[#allocation186_spill] sm:$0xff] %v14345_v18 }
 0x367   : > { %20471 = vst [vmem:[#allocation179_spill] sm:$0xff] %v14316_v21  ;;  %20472 = vst [vmem:[#allocation180_spill] sm:$0xff] %v14318_v20  ;;  %v5451_v17 = vcombine.low %v14285_v6, %v14318_v20 }
 0x368   : > { %1449 = vrot.lane.b32.xlu0 %v13894_v62, %s20380_s3  ;;  %20474 = vst [vmem:[#allocation182_spill] sm:$0xff] %v14332_v45  ;;  %20475 = vst [vmem:[#allocation183_spill] sm:$0xff] %v14335_v54  ;;  %1439 = vrot.lane.b32.xlu1 %v13941_v28, %s20370_s0 }
 0x369   : > { %v14338_v53 = vrot.slane %v5451_v17, %v13427_v47 }
 0x36a   : > { %v1644_v6 = vpop.permute.xlu0 %1643  ;;  %v14342_v20 = vpop.permute.xlu1 %1633 }
 0x36b   : > { %20476 = vst [vmem:[#allocation184_spill] sm:$0xff] %v14338_v53  ;;  %20477 = vst [vmem:[#allocation185_spill] sm:$0xff] %v14342_v20  ;;  %v5500_v32 = vcombine.high %v14335_v54, %v14338_v53  ;;  %v3363_v9 = vcombine.low %v1632_v43, %v1644_v6  ;;  %v3364_v21 = vcombine.high %v1632_v43, %v1644_v6 }
 0x36c   : > { %1455 = vrot.lane.b32.xlu0 %v13894_v62, %s20384_s4  ;;  %1445 = vrot.lane.b32.xlu1 %v13941_v28, %s20376_s2  ;;  %v14363_v54 = vrot.slane %v5468_v27, %v13488_v19 }
 0x36d   : > { %v14358_v48 = vrot.slane %v5500_v32, %v13488_v19  ;;  %v14372_v32 = vrot.slane %v3363_v9, %v13427_v47  ;;  %v14375_v17 = vrot.slane %v3364_v21, %v13427_v47 }
 0x36e   : > { %v1650_v49 = vpop.permute.xlu0 %1649  ;;  %v14360_v56 = vpop.permute.xlu1 %1639  ;;  %20481 = vst [vmem:[#allocation189_spill] sm:$0xff] %v14363_v54 }
 0x36f   : > { %20479 = vst [vmem:[#allocation187_spill] sm:$0xff] %v14358_v48  ;;  %20480 = vst [vmem:[#allocation188_spill] sm:$0xff] %v14360_v56  ;;  %v3379_v53 = vcombine.low %v1638_v61, %v1650_v49  ;;  %v3380_v30 = vcombine.high %v1638_v61, %v1650_v49 }
 0x370   : > { %1461 = vrot.lane.b32.xlu0 %v13894_v62, %s20386_s29  ;;  %20482 = vst [vmem:[#allocation190_spill] sm:$0xff] %v14375_v17  ;;  %1451 = vrot.lane.b32.xlu1 %v13941_v28, %s20380_s3 }
 0x371   : > { %v14378_v27 = vrot.slane %v3379_v53, %v13427_v47  ;;  %v14381_v49 = vrot.slane %v3380_v30, %v13427_v47 }
 0x372   : > { %v14385_v61 = vpop.permute.xlu0 %1655  ;;  %v14387_v6 = vpop.permute.xlu1 %1645 }
 0x373   : > { %20483 = vst [vmem:[#allocation191_spill] sm:$0xff] %v14381_v49  ;;  %20484 = vst [vmem:[#allocation192_spill] sm:$0xff] %v14387_v6  ;;  %v5539_v30 = vcombine.low %v14342_v20, %v14387_v6 }
 0x374   : > { %1467 = vrot.lane.b32.xlu0 %v13894_v62, %s20390_s28  ;;  %1457 = vrot.lane.b32.xlu1 %v13941_v28, %s20384_s4 }
 0x375   : > { %v14408_v21 = vrot.slane %v5539_v30, %v13427_v47 }
 0x376   : > { %v14399_v53 = vpop.permute.xlu0 %1661  ;;  %v14401_v43 = vpop.permute.xlu1 %1651 }
 0x377   : > { %20485 = vst [vmem:[#allocation193_spill] sm:$0xff] %v14401_v43  ;;  %v5555_v46 = vcombine.low %v14360_v56, %v14401_v43  ;;  %20486 = vst [vmem:[#allocation194_spill] sm:$0xff] %v14408_v21 }
 0x378   : > { %1473 = vrot.lane.b32.xlu0 %v13894_v62, %s20392_s27  ;;  %1463 = vrot.lane.b32.xlu1 %v13941_v28, %s20386_s29 }
 0x379   : > { %v14411_v9 = vrot.slane %v5555_v46, %v13427_v47 }
 0x37a   : > { %v1306_v48 = vpop.permute.xlu0 %1305  ;;  %v14415_v54 = vpop.permute.xlu1 %1657 }
 0x37b   : > { %20487 = vst [vmem:[#allocation195_spill] sm:$0xff] %v14411_v9  ;;  %20488 = vst [vmem:[#allocation196_spill] sm:$0xff] %v14415_v54 }
 0x37c   : > { %1479 = vrot.lane.b32.xlu0 %v13894_v62, %s20489_s7  ;;  %1469 = vrot.lane.b32.xlu1 %v13941_v28, %s20390_s28 }
 0x37e   : > { %v1312_v30 = vpop.permute.xlu0 %1311  ;;  %v14423_v18 = vpop.permute.xlu1 %1663 }
 0x37f   : > { %20490 = vst [vmem:[#allocation197_spill] sm:$0xff] %v14423_v18  ;;  %v2411_v46 = vcombine.low %v13894_v62, %v1312_v30  ;;  %v2412_v20 = vcombine.high %v13894_v62, %v1312_v30 }
 0x380   : > { %1485 = vrot.lane.b32.xlu0 %v13894_v62, %s20491_s22  ;;  %1475 = vrot.lane.b32.xlu1 %v13941_v28, %s20392_s27 }
 0x381   : > { %v14436_v42 = vrot.slane %v2411_v46, %v13427_v47  ;;  %v14439_v7 = vrot.slane %v2412_v20, %v13427_v47 }
 0x382   : > { %v1318_v45 = vpop.permute.xlu0 %1317  ;;  %v14431_v6 = vpop.permute.xlu1 %1307 }
 0x383   : > { %20492 = vst [vmem:[#allocation198_spill] sm:$0xff] %v14431_v6  ;;  %v2427_v56 = vcombine.low %v1306_v48, %v1318_v45  ;;  %v2428_v43 = vcombine.high %v1306_v48, %v1318_v45  ;;  %20493 = vst [vmem:[#allocation199_spill] sm:$0xff] %v14439_v7 }
 0x384   : > { %1667 = vrot.lane.b32.xlu0 %v13433_v0, %s20489_s7  ;;  %1481 = vrot.lane.b32.xlu1 %v13941_v28, %s20489_s7 }
 0x385   : > { %v14442_v8 = vrot.slane %v2427_v56, %v13427_v47  ;;  %v14445_v62 = vrot.slane %v2428_v43, %v13427_v47  ;;  %v14461_v56 = vadd.f32 %v13283_v31, %v13301_v38 }
 0x386   : > { %v1324_v30 = vpop.permute.xlu0 %1323  ;;  %v14453_v46 = vpop.permute.xlu1 %1313 }
 0x387   : > { %20494 = vst [vmem:[#allocation200_spill] sm:$0xff] %v14445_v62  ;;  %v2476_v45 = vcombine.high %v14436_v42, %v14442_v8  ;;  %v2492_v48 = vcombine.high %v14439_v7, %v14445_v62  ;;  %20495 = vst [vmem:[#allocation201_spill] sm:$0xff] %v14453_v46  ;;  %v4587_v20 = vcombine.low %v13941_v28, %v14453_v46 }
 0x388   : > { %1673 = vrot.lane.b32.xlu0 %v13433_v0, %s20491_s22  ;;  %1487 = vrot.lane.b32.xlu1 %v13941_v28, %s20491_s22 }
 0x389   : > { %v14474_v0 = vrot.slane %v4587_v20, %v13427_v47  ;;  %v14489_v20 = vadd.f32 %v13283_v31, %v13305_v40 }
 0x38a   : > { %v1330_v43 = vpop.permute.xlu0 %1329  ;;  %v14465_v50 = vpop.permute.xlu1 %1319 }
 0x38b   : > { %20496 = vst [vmem:[#allocation202_spill] sm:$0xff] %v14465_v50  ;;  %v4603_v7 = vcombine.low %v14431_v6, %v14465_v50  ;;  %20497 = vst [vmem:[#allocation203_spill] sm:$0xff] %v14474_v0 }
 0x38c   : > { %1681 = vrot.lane.b32.xlu0 %v14461_v56, %s20396_s26  ;;  %1669 = vrot.lane.b32.xlu1 %v13461_v63, %s20489_s7  ;;  %20500 = vst [vmem:[#allocation206_spill] sm:$0xff] %v14489_v20 }
 0x38d   : > { %v14477_v38 = vrot.slane %v4603_v7, %v13427_v47 }
 0x38e   : > { %v1336_v62 = vpop.permute.xlu0 %1335  ;;  %v14479_v28 = vpop.permute.xlu1 %1325 }
 0x38f   : > { %20498 = vst [vmem:[#allocation204_spill] sm:$0xff] %v14477_v38  ;;  %20499 = vst [vmem:[#allocation205_spill] sm:$0xff] %v14479_v28  ;;  %v4652_v46 = vcombine.high %v14474_v0, %v14477_v38  ;;  %v2443_v6 = vcombine.low %v1324_v30, %v1336_v62  ;;  %v2444_v50 = vcombine.high %v1324_v30, %v1336_v62 }
 0x390   : > { %1687 = vrot.lane.b32.xlu0 %v14461_v56, %s20400_s25  ;;  %1675 = vrot.lane.b32.xlu1 %v13461_v63, %s20491_s22 }
 0x391   : > { %v14496_v0 = vrot.slane %v2443_v6, %v13427_v47  ;;  %v14499_v62 = vrot.slane %v2444_v50, %v13427_v47 }
 0x392   : > { %v1342_v52 = vpop.permute.xlu0 %1341  ;;  %v14491_v26 = vpop.permute.xlu1 %1331 }
 0x393   : > { %v2459_v7 = vcombine.low %v1330_v43, %v1342_v52  ;;  %v2460_v10 = vcombine.high %v1330_v43, %v1342_v52  ;;  %20501 = vst [vmem:[#allocation207_spill] sm:$0xff] %v14491_v26  ;;  %20502 = vst [vmem:[#allocation208_spill] sm:$0xff] %v14499_v62 }
 0x394   : > { %1693 = vrot.lane.b32.xlu0 %v14461_v56, %s20407_s30  ;;  %1683 = vrot.lane.b32.xlu1 %v14489_v20, %s20396_s26 }
 0x395   : > { %v14502_v30 = vrot.slane %v2459_v7, %v13427_v47  ;;  %v14505_v38 = vrot.slane %v2460_v10, %v13427_v47  ;;  %v14520_v10 = vrot.slane %v2476_v45, %v13488_v19 }
 0x396   : > { %v1348_v31 = vpop.permute.xlu0 %1347  ;;  %v14513_v6 = vpop.permute.xlu1 %1337 }
 0x397   : > { %20503 = vst [vmem:[#allocation209_spill] sm:$0xff] %v14505_v38  ;;  %v2508_v40 = vcombine.high %v14496_v0, %v14502_v30  ;;  %v2524_v52 = vcombine.high %v14499_v62, %v14505_v38  ;;  %20504 = vst [vmem:[#allocation210_spill] sm:$0xff] %v14513_v6  ;;  %v4619_v43 = vcombine.low %v14479_v28, %v14513_v6 }
 0x398   : > { %1699 = vrot.lane.b32.xlu0 %v14461_v56, %s20411_s13  ;;  %1689 = vrot.lane.b32.xlu1 %v14489_v20, %s20400_s25  ;;  %20505 = vst [vmem:[#allocation211_spill] sm:$0xff] %v14520_v10  ;;  %s21509_s25 = sld [smem:[#allocation27_spill]] }
 0x399   : > { %v14523_v50 = vrot.slane %v2508_v40, %v13488_v19  ;;  %v14534_v55 = vrot.slane %v2524_v52, %v13488_v19  ;;  %v14543_v40 = vrot.slane %v2492_v48, %v13488_v19  ;;  %v14546_v62 = vrot.slane %v4619_v43, %v13427_v47 }
 0x39a   : > { %v1354_v7 = vpop.permute.xlu0 %1353  ;;  %v14527_v63 = vpop.permute.xlu1 %1343 }
 0x39b   : > { %20506 = vst [vmem:[#allocation212_spill] sm:$0xff] %v14523_v50  ;;  %20507 = vst [vmem:[#allocation213_spill] sm:$0xff] %v14527_v63  ;;  %v4635_v45 = vcombine.low %v14491_v26, %v14527_v63  ;;  %v14564_v50 = vrot.slane %v4652_v46, %v13488_v19 }
 0x39c   : > { %20508 = vst [vmem:[#allocation214_spill] sm:$0xff] %v14534_v55  ;;  %1705 = vrot.lane.b32.xlu0 %v14461_v56, %s20416_s21  ;;  %1695 = vrot.lane.b32.xlu1 %v14489_v20, %s20407_s30  ;;  %20509 = vst [vmem:[#allocation215_spill] sm:$0xff] %v14543_v40  ;;  %s21512_s30 = sld [smem:[#allocation375_spill]] }
 0x39d   : > { %20510 = vst [vmem:[#allocation216_spill] sm:$0xff] %v14546_v62  ;;  %v14549_v38 = vrot.slane %v4635_v45, %v13427_v47  ;;  %20513 = vst [vmem:[#allocation219_spill] sm:$0xff] %v14564_v50 }
 0x39e   : > { %v1360_v52 = vpop.permute.xlu0 %1359  ;;  %v14551_v28 = vpop.permute.xlu1 %1349  ;;  %p21514_p10 = scmp.ne.s32.totalorder %s21509_s25, 0 }
 0x39f   : > { %20511 = vst [vmem:[#allocation217_spill] sm:$0xff] %v14549_v38  ;;  %20512 = vst [vmem:[#allocation218_spill] sm:$0xff] %v14551_v28  ;;  %v4684_v63 = vcombine.high %v14546_v62, %v14549_v38  ;;  %v2547_v48 = vcombine.low %v1348_v31, %v1360_v52  ;;  %v2548_v43 = vcombine.high %v1348_v31, %v1360_v52 }
 0x3a0   : > { %1711 = vrot.lane.b32.xlu0 %v14461_v56, %s20420_s6  ;;  %1701 = vrot.lane.b32.xlu1 %v14489_v20, %s20411_s13 }
 0x3a1   : > { %v14567_v6 = vrot.slane %v4684_v63, %v13488_v19  ;;  %v2555_v40 = vrot.slane %v2547_v48, %v13427_v47  ;;  %v14577_v52 = vrot.slane %v2548_v43, %v13427_v47 }
 0x3a2   : > { %v1366_v45 = vpop.permute.xlu0 %1365  ;;  %v14569_v55 = vpop.permute.xlu1 %1355 }
 0x3a3   : > { %20514 = vst [vmem:[#allocation220_spill] sm:$0xff] %v14567_v6  ;;  %v2563_v10 = vcombine.low %v1354_v7, %v1366_v45  ;;  %v2564_v26 = vcombine.high %v1354_v7, %v1366_v45  ;;  %20515 = vst [vmem:[#allocation221_spill] sm:$0xff] %v14569_v55 }
 0x3a4   : > { %1717 = vrot.lane.b32.xlu0 %v14461_v56, %s20422_s5  ;;  %20516 = vst [vmem:[#allocation222_spill] sm:$0xff] %v14577_v52  ;;  %1707 = vrot.lane.b32.xlu1 %v14489_v20, %s20416_s21 }
 0x3a5   : > { %v2571_v46 = vrot.slane %v2563_v10, %v13427_v47  ;;  %v14581_v63 = vrot.slane %v2564_v26, %v13427_v47 }
 0x3a6   : > { %v1372_v48 = vpop.permute.xlu0 %1371  ;;  %v14589_v31 = vpop.permute.xlu1 %1361 }
 0x3a7   : > { %20517 = vst [vmem:[#allocation223_spill] sm:$0xff] %v14581_v63  ;;  %v2612_v45 = vcombine.high %v2555_v40, %v2571_v46  ;;  %v2628_v62 = vcombine.high %v14577_v52, %v14581_v63  ;;  %20518 = vst [vmem:[#allocation224_spill] sm:$0xff] %v14589_v31  ;;  %v4723_v26 = vcombine.low %v14551_v28, %v14589_v31 }
 0x3a8   : > { %1723 = vrot.lane.b32.xlu0 %v14461_v56, %s20426_s10  ;;  %1713 = vrot.lane.b32.xlu1 %v14489_v20, %s20420_s6  ;;  %s21454_s6 = sld [smem:[#allocation23_spill]] }
 0x3a9   : > { %v14606_v6 = vrot.slane %v4723_v26, %v13427_v47 }
 0x3aa   : > { %v1378_v10 = vpop.permute.xlu0 %1377  ;;  %v14597_v43 = vpop.permute.xlu1 %1367 }
 0x3ab   : > { %20519 = vst [vmem:[#allocation225_spill] sm:$0xff] %v14597_v43  ;;  %v4739_v7 = vcombine.low %v14569_v55, %v14597_v43  ;;  %20520 = vst [vmem:[#allocation226_spill] sm:$0xff] %v14606_v6 }
 0x3ac   : > { %1729 = vrot.lane.b32.xlu0 %v14461_v56, %s20320_s16  ;;  %1719 = vrot.lane.b32.xlu1 %v14489_v20, %s20422_s5 }
 0x3ad   : > { %v14609_v50 = vrot.slane %v4739_v7, %v13427_v47  ;;  %v2611_v7 = vcombine.low %v2555_v40, %v2571_v46 }
 0x3ae   : > { %v1384_v52 = vpop.permute.xlu0 %1383  ;;  %v14611_v63 = vpop.permute.xlu1 %1373  ;;  %s12440_s21 = sshll.u32 %s21454_s6, 7  ;;  %s12444_s26 = sshll.u32 %s21454_s6, 6 }
 0x3af   : > { %20521 = vst [vmem:[#allocation227_spill] sm:$0xff] %v14609_v50  ;;  %20522 = vst [vmem:[#allocation228_spill] sm:$0xff] %v14611_v63  ;;  %v4788_v28 = vcombine.high %v14606_v6, %v14609_v50  ;;  %v2579_v31 = vcombine.low %v1372_v48, %v1384_v52  ;;  %v2580_v55 = vcombine.high %v1372_v48, %v1384_v52 }
 0x3b0   : > { %1735 = vrot.lane.b32.xlu0 %v14461_v56, %s20324_s8  ;;  %1725 = vrot.lane.b32.xlu1 %v14489_v20, %s20426_s10  ;;  %s19551_s10 = scalar_lea.hbm %s21512_s30, %s12444_s26 }
 0x3b1   : > { %v2587_v16 = vrot.slane %v2579_v31, %v13427_v47  ;;  %v14625_v6 = vrot.slane %v2580_v55, %v13427_v47  ;;  %v14642_v55 = vrot.slane %v2611_v7, %v13488_v19  ;;  %v14648_v31 = vrot.slane %v2612_v45, %v13488_v19 }
 0x3b2   : > { %v1390_v43 = vpop.permute.xlu0 %1389  ;;  %v14619_v57 = vpop.permute.xlu1 %1379 }
 0x3b3   : > { %v2595_v26 = vcombine.low %v1378_v10, %v1390_v43  ;;  %v2596_v38 = vcombine.high %v1378_v10, %v1390_v43  ;;  %20523 = vst [vmem:[#allocation229_spill] sm:$0xff] %v14619_v57  ;;  %20524 = vst [vmem:[#allocation230_spill] sm:$0xff] %v14625_v6 }
 0x3b4   : > { %1741 = vrot.lane.b32.xlu0 %v14461_v56, %s20326_s14  ;;  %1731 = vrot.lane.b32.xlu1 %v14489_v20, %s20320_s16  ;;  %20527 = vst [vmem:[#allocation233_spill] sm:$0xff] %v14648_v31 }
 0x3b5   : > { %v2603_v50 = vrot.slane %v2595_v26, %v13427_v47  ;;  %v14629_v52 = vrot.slane %v2596_v38, %v13427_v47 }
 0x3b6   : > { %v1396_v48 = vpop.permute.xlu0 %1395  ;;  %v14635_v46 = vpop.permute.xlu1 %1385 }
 0x3b7   : > { %20525 = vst [vmem:[#allocation231_spill] sm:$0xff] %v14629_v52  ;;  %v2643_v10 = vcombine.low %v2587_v16, %v2603_v50  ;;  %v2644_v43 = vcombine.high %v2587_v16, %v2603_v50  ;;  %v2660_v40 = vcombine.high %v14625_v6, %v14629_v52  ;;  %20526 = vst [vmem:[#allocation232_spill] sm:$0xff] %v14635_v46 }
 0x3b8   : > { %1747 = vrot.lane.b32.xlu0 %v14461_v56, %s20330_s15  ;;  %1737 = vrot.lane.b32.xlu1 %v14489_v20, %s20324_s8  ;;  %v4755_v50 = vcombine.low %v14611_v63, %v14635_v46  ;;  %v14673_v52 = vrot.slane %v2628_v62, %v13488_v19 }
 0x3b9   : > { %v14645_v38 = vrot.slane %v2643_v10, %v13488_v19  ;;  %v14651_v16 = vrot.slane %v2644_v43, %v13488_v19  ;;  %v14664_v45 = vrot.slane %v2660_v40, %v13488_v19 }
 0x3ba   : > { %v1402_v26 = vpop.permute.xlu0 %1401  ;;  %v14655_v6 = vpop.permute.xlu1 %1391  ;;  %20531 = vst [vmem:[#allocation237_spill] sm:$0xff] %v14673_v52  ;;  %v14676_v7 = vrot.slane %v4755_v50, %v13427_v47 }
 0x3bb   : > { %20528 = vst [vmem:[#allocation234_spill] sm:$0xff] %v14651_v16  ;;  %20529 = vst [vmem:[#allocation235_spill] sm:$0xff] %v14655_v6  ;;  %v4771_v43 = vcombine.low %v14619_v57, %v14655_v6  ;;  %v14694_v16 = vrot.slane %v4788_v28, %v13488_v19 }
 0x3bc   : > { %20530 = vst [vmem:[#allocation236_spill] sm:$0xff] %v14664_v45  ;;  %1753 = vrot.lane.b32.xlu0 %v14461_v56, %s20332_s23  ;;  %1743 = vrot.lane.b32.xlu1 %v14489_v20, %s20326_s14  ;;  %20532 = vst [vmem:[#allocation238_spill] sm:$0xff] %v14676_v7 }
 0x3bd   : > { %v14679_v10 = vrot.slane %v4771_v43, %v13427_v47  ;;  %20535 = vst [vmem:[#allocation241_spill] sm:$0xff] %v14694_v16 }
 0x3be   : > { %v1408_v40 = vpop.permute.xlu0 %1407  ;;  %v14681_v63 = vpop.permute.xlu1 %1397 }
 0x3bf   : > { %20533 = vst [vmem:[#allocation239_spill] sm:$0xff] %v14679_v10  ;;  %20534 = vst [vmem:[#allocation240_spill] sm:$0xff] %v14681_v63  ;;  %v4820_v6 = vcombine.high %v14676_v7, %v14679_v10  ;;  %v2683_v62 = vcombine.low %v1396_v48, %v1408_v40  ;;  %v2684_v50 = vcombine.high %v1396_v48, %v1408_v40 }
 0x3c0   : > { %1759 = vrot.lane.b32.xlu0 %v14461_v56, %s20336_s19  ;;  %1749 = vrot.lane.b32.xlu1 %v14489_v20, %s20330_s15 }
 0x3c1   : > { %v14697_v46 = vrot.slane %v4820_v6, %v13488_v19  ;;  %v14708_v52 = vrot.slane %v2683_v62, %v13427_v47  ;;  %v14711_v28 = vrot.slane %v2684_v50, %v13427_v47 }
 0x3c2   : > { %v1414_v43 = vpop.permute.xlu0 %1413  ;;  %v14699_v45 = vpop.permute.xlu1 %1403 }
 0x3c3   : > { %20536 = vst [vmem:[#allocation242_spill] sm:$0xff] %v14697_v46  ;;  %v2699_v31 = vcombine.low %v1402_v26, %v1414_v43  ;;  %v2700_v57 = vcombine.high %v1402_v26, %v1414_v43  ;;  %20537 = vst [vmem:[#allocation243_spill] sm:$0xff] %v14699_v45 }
 0x3c4   : > { %1765 = vrot.lane.b32.xlu0 %v14461_v56, %s20340_s12  ;;  %20538 = vst [vmem:[#allocation244_spill] sm:$0xff] %v14711_v28  ;;  %1755 = vrot.lane.b32.xlu1 %v14489_v20, %s20332_s23 }
 0x3c5   : > { %v14714_v6 = vrot.slane %v2699_v31, %v13427_v47  ;;  %v14717_v26 = vrot.slane %v2700_v57, %v13427_v47 }
 0x3c6   : > { %v1420_v43 = vpop.permute.xlu0 %1419  ;;  %v14725_v40 = vpop.permute.xlu1 %1409 }
 0x3c7   : > { %20539 = vst [vmem:[#allocation245_spill] sm:$0xff] %v14717_v26  ;;  %v2748_v48 = vcombine.high %v14708_v52, %v14714_v6  ;;  %v2764_v62 = vcombine.high %v14711_v28, %v14717_v26  ;;  %20540 = vst [vmem:[#allocation246_spill] sm:$0xff] %v14725_v40  ;;  %v4859_v57 = vcombine.low %v14681_v63, %v14725_v40 }
 0x3c8   : > { %1771 = vrot.lane.b32.xlu0 %v14461_v56, %s20346_s18  ;;  %1761 = vrot.lane.b32.xlu1 %v14489_v20, %s20336_s19 }
 0x3c9   : > { %v14742_v16 = vrot.slane %v4859_v57, %v13427_v47 }
 0x3ca   : > { %v1426_v31 = vpop.permute.xlu0 %1425  ;;  %v14733_v50 = vpop.permute.xlu1 %1415 }
 0x3cb   : > { %20541 = vst [vmem:[#allocation247_spill] sm:$0xff] %v14733_v50  ;;  %v4875_v46 = vcombine.low %v14699_v45, %v14733_v50  ;;  %20542 = vst [vmem:[#allocation248_spill] sm:$0xff] %v14742_v16 }
 0x3cc   : > { %1777 = vrot.lane.b32.xlu0 %v14461_v56, %s20350_s1  ;;  %1767 = vrot.lane.b32.xlu1 %v14489_v20, %s20340_s12 }
 0x3cd   : > { %v14745_v7 = vrot.slane %v4875_v46, %v13427_v47 }
 0x3ce   : > { %v1432_v10 = vpop.permute.xlu0 %1431  ;;  %v14747_v63 = vpop.permute.xlu1 %1421 }
 0x3cf   : > { %20543 = vst [vmem:[#allocation249_spill] sm:$0xff] %v14745_v7  ;;  %20544 = vst [vmem:[#allocation250_spill] sm:$0xff] %v14747_v63  ;;  %v4924_v40 = vcombine.high %v14742_v16, %v14745_v7  ;;  %v2715_v45 = vcombine.low %v1420_v43, %v1432_v10  ;;  %v2716_v50 = vcombine.high %v1420_v43, %v1432_v10 }
 0x3d0   : > { %1783 = vrot.lane.b32.xlu0 %v14461_v56, %s20354_s9  ;;  %1773 = vrot.lane.b32.xlu1 %v14489_v20, %s20346_s18 }
 0x3d1   : > { %v14760_v46 = vrot.slane %v2715_v45, %v13427_v47  ;;  %v14763_v16 = vrot.slane %v2716_v50, %v13427_v47 }
 0x3d2   : > { %v1438_v28 = vpop.permute.xlu0 %1437  ;;  %v14755_v41 = vpop.permute.xlu1 %1427 }
 0x3d3   : > { %v2731_v57 = vcombine.low %v1426_v31, %v1438_v28  ;;  %v2732_v26 = vcombine.high %v1426_v31, %v1438_v28  ;;  %20545 = vst [vmem:[#allocation251_spill] sm:$0xff] %v14755_v41  ;;  %20546 = vst [vmem:[#allocation252_spill] sm:$0xff] %v14763_v16 }
 0x3d4   : > { %1789 = vrot.lane.b32.xlu0 %v14461_v56, %s20356_s24  ;;  %1779 = vrot.lane.b32.xlu1 %v14489_v20, %s20350_s1  ;;  %s12912_s1 = smov [#allocation8]  }
 0x3d5   : > { %v14766_v7 = vrot.slane %v2731_v57, %v13427_v47  ;;  %v14769_v10 = vrot.slane %v2732_v26, %v13427_v47  ;;  %v14784_v26 = vrot.slane %v2748_v48, %v13488_v19 }
 0x3d6   : > { %v1444_v28 = vpop.permute.xlu0 %1443  ;;  %v14777_v31 = vpop.permute.xlu1 %1433 }
 0x3d7   : > { %20547 = vst [vmem:[#allocation253_spill] sm:$0xff] %v14769_v10  ;;  %v2780_v43 = vcombine.high %v14760_v46, %v14766_v7  ;;  %v2796_v45 = vcombine.high %v14763_v16, %v14769_v10  ;;  %20548 = vst [vmem:[#allocation254_spill] sm:$0xff] %v14777_v31  ;;  %v4891_v57 = vcombine.low %v14747_v63, %v14777_v31 }
 0x3d8   : > { %1795 = vrot.lane.b32.xlu0 %v14461_v56, %s20360_s17  ;;  %1785 = vrot.lane.b32.xlu1 %v14489_v20, %s20354_s9  ;;  %20549 = vst [vmem:[#allocation255_spill] sm:$0xff] %v14784_v26  ;;  %s12722_s9 = sshll.u32 %s12912_s1, 4  ;;  %s12723_s9 = int_to_ptr.vmem [resolvable:$false] %s12722_s9 }
 0x3d9   : > { %v14787_v50 = vrot.slane %v2780_v43, %v13488_v19  ;;  %v14798_v51 = vrot.slane %v2796_v45, %v13488_v19  ;;  %v14807_v43 = vrot.slane %v2764_v62, %v13488_v19  ;;  %v14810_v16 = vrot.slane %v4891_v57, %v13427_v47  ;;  %s12724_s12 = scalar_lea.vmem %s12723_s9, 256 }
 0x3da   : > { %v1450_v22 = vpop.permute.xlu0 %1449  ;;  %v14791_v24 = vpop.permute.xlu1 %1439 }
 0x3db   : > { %20550 = vst [vmem:[#allocation256_spill] sm:$0xff] %v14787_v50  ;;  %20551 = vst [vmem:[#allocation257_spill] sm:$0xff] %v14791_v24  ;;  %v4907_v48 = vcombine.low %v14755_v41, %v14791_v24  ;;  %v14828_v50 = vrot.slane %v4924_v40, %v13488_v19 }
 0x3dc   : > { %20552 = vst [vmem:[#allocation258_spill] sm:$0xff] %v14798_v51  ;;  %1801 = vrot.lane.b32.xlu0 %v14461_v56, %s20362_s20  ;;  %1791 = vrot.lane.b32.xlu1 %v14489_v20, %s20356_s24  ;;  %20553 = vst [vmem:[#allocation259_spill] sm:$0xff] %v14807_v43 }
 0x3dd   : > { %20554 = vst [vmem:[#allocation260_spill] sm:$0xff] %v14810_v16  ;;  %v14813_v10 = vrot.slane %v4907_v48, %v13427_v47  ;;  %20557 = vst [vmem:[#allocation263_spill] sm:$0xff] %v14828_v50 }
 0x3de   : > { %v1456_v45 = vpop.permute.xlu0 %1455  ;;  %v14815_v63 = vpop.permute.xlu1 %1445 }
 0x3df   : > { %20555 = vst [vmem:[#allocation261_spill] sm:$0xff] %v14813_v10  ;;  %20556 = vst [vmem:[#allocation262_spill] sm:$0xff] %v14815_v63  ;;  %v4956_v31 = vcombine.high %v14810_v16, %v14813_v10  ;;  %v2819_v62 = vcombine.low %v1444_v28, %v1456_v45  ;;  %v2820_v57 = vcombine.high %v1444_v28, %v1456_v45 }
 0x3e0   : > { %1807 = vrot.lane.b32.xlu0 %v14461_v56, %s20366_s11  ;;  %1797 = vrot.lane.b32.xlu1 %v14489_v20, %s20360_s17 }
 0x3e1   : > { %v14831_v41 = vrot.slane %v4956_v31, %v13488_v19  ;;  %v2827_v43 = vrot.slane %v2819_v62, %v13427_v47  ;;  %v14843_v40 = vrot.slane %v2820_v57, %v13427_v47 }
 0x3e2   : > { %v1462_v48 = vpop.permute.xlu0 %1461  ;;  %v14833_v51 = vpop.permute.xlu1 %1451 }
 0x3e3   : > { %20558 = vst [vmem:[#allocation264_spill] sm:$0xff] %v14831_v41  ;;  %v2835_v26 = vcombine.low %v1450_v22, %v1462_v48  ;;  %v2836_v24 = vcombine.high %v1450_v22, %v1462_v48  ;;  %20559 = vst [vmem:[#allocation265_spill] sm:$0xff] %v14833_v51 }
 0x3e4   : > { %1813 = vrot.lane.b32.xlu0 %v14461_v56, %s20370_s0  ;;  %20560 = vst [vmem:[#allocation266_spill] sm:$0xff] %v14843_v40  ;;  %1803 = vrot.lane.b32.xlu1 %v14489_v20, %s20362_s20 }
 0x3e5   : > { %v2843_v31 = vrot.slane %v2835_v26, %v13427_v47  ;;  %v14847_v22 = vrot.slane %v2836_v24, %v13427_v47 }
 0x3e6   : > { %v1468_v48 = vpop.permute.xlu0 %1467  ;;  %v14853_v10 = vpop.permute.xlu1 %1457 }
 0x3e7   : > { %20561 = vst [vmem:[#allocation267_spill] sm:$0xff] %v14847_v22  ;;  %v2884_v16 = vcombine.high %v2827_v43, %v2843_v31  ;;  %20562 = vst [vmem:[#allocation268_spill] sm:$0xff] %v14853_v10  ;;  %v4995_v24 = vcombine.low %v14815_v63, %v14853_v10 }
 0x3e8   : > { %1819 = vrot.lane.b32.xlu0 %v14461_v56, %s20376_s2  ;;  %1809 = vrot.lane.b32.xlu1 %v14489_v20, %s20366_s11 }
 0x3e9   : > { %v14870_v45 = vrot.slane %v4995_v24, %v13427_v47 }
 0x3ea   : > { %v1474_v26 = vpop.permute.xlu0 %1473  ;;  %v14861_v62 = vpop.permute.xlu1 %1463 }
 0x3eb   : > { %20563 = vst [vmem:[#allocation269_spill] sm:$0xff] %v14861_v62  ;;  %v5011_v57 = vcombine.low %v14833_v51, %v14861_v62  ;;  %20564 = vst [vmem:[#allocation270_spill] sm:$0xff] %v14870_v45 }
 0x3ec   : > { %1825 = vrot.lane.b32.xlu0 %v14461_v56, %s20380_s3  ;;  %1815 = vrot.lane.b32.xlu1 %v14489_v20, %s20370_s0  ;;  %s21388_s0 = sld [smem:[#allocation16_spill]] }
 0x3ed   : > { %v14873_v28 = vrot.slane %v5011_v57, %v13427_v47  ;;  %v2883_v57 = vcombine.low %v2827_v43, %v2843_v31 }
 0x3ee   : > { %v1480_v41 = vpop.permute.xlu0 %1479  ;;  %v14875_v63 = vpop.permute.xlu1 %1469 }
 0x3ef   : > { %20565 = vst [vmem:[#allocation271_spill] sm:$0xff] %v14873_v28  ;;  %20566 = vst [vmem:[#allocation272_spill] sm:$0xff] %v14875_v63  ;;  %v2851_v51 = vcombine.low %v1468_v48, %v1480_v41  ;;  %v2852_v62 = vcombine.high %v1468_v48, %v1480_v41 }
 0x3f0   : > { %1831 = vrot.lane.b32.xlu0 %v14461_v56, %s20384_s4  ;;  %1821 = vrot.lane.b32.xlu1 %v14489_v20, %s20376_s2 }
 0x3f1   : > { %v2859_v59 = vrot.slane %v2851_v51, %v13427_v47  ;;  %v14889_v10 = vrot.slane %v2852_v62, %v13427_v47  ;;  %v14904_v51 = vrot.slane %v2883_v57, %v13488_v19  ;;  %v14919_v57 = vrot.slane %v2884_v16, %v13488_v19 }
 0x3f2   : > { %v1486_v50 = vpop.permute.xlu0 %1485  ;;  %v14883_v37 = vpop.permute.xlu1 %1475 }
 0x3f3   : > { %v2867_v24 = vcombine.low %v1474_v26, %v1486_v50  ;;  %v2868_v3 = vcombine.high %v1474_v26, %v1486_v50  ;;  %20567 = vst [vmem:[#allocation273_spill] sm:$0xff] %v14883_v37  ;;  %20568 = vst [vmem:[#allocation274_spill] sm:$0xff] %v14889_v10 }
 0x3f4   : > { %1837 = vrot.lane.b32.xlu0 %v14461_v56, %s20386_s29  ;;  %1827 = vrot.lane.b32.xlu1 %v14489_v20, %s20380_s3  ;;  %20572 = vst [vmem:[#allocation278_spill] sm:$0xff] %v14919_v57  ;;  %s18281_s3 = sand.u32 1, %s21388_s0  }
 0x3f5   : > { %v2875_v2 = vrot.slane %v2867_v24, %v13427_v47  ;;  %v14893_v41 = vrot.slane %v2868_v3, %v13427_v47 }
 0x3f6   : > { %v1668_v50 = vpop.permute.xlu0 %1667  ;;  %v14899_v31 = vpop.permute.xlu1 %1481 }
 0x3f7   : > { %20569 = vst [vmem:[#allocation275_spill] sm:$0xff] %v14893_v41  ;;  %v2915_v48 = vcombine.low %v2859_v59, %v2875_v2  ;;  %v2916_v26 = vcombine.high %v2859_v59, %v2875_v2  ;;  %v2932_v43 = vcombine.high %v14889_v10, %v14893_v41  ;;  %20570 = vst [vmem:[#allocation276_spill] sm:$0xff] %v14899_v31 }
 0x3f8   : > { %1843 = vrot.lane.b32.xlu0 %v14461_v56, %s20390_s28  ;;  %v3395_v3 = vcombine.low %v14385_v61, %v1668_v50  ;;  %v3396_v62 = vcombine.high %v14385_v61, %v1668_v50  ;;  %1833 = vrot.lane.b32.xlu1 %v14489_v20, %s20384_s4  ;;  %v5027_v24 = vcombine.low %v14875_v63, %v14899_v31  ;;  %s12386_s4 = sshll.u32 %s18281_s3, 3 }
 0x3f9   : > { %v14911_v2 = vrot.slane %v2915_v48, %v13488_v19  ;;  %v14914_v59 = vrot.slane %v2916_v26, %v13488_v19  ;;  %s18338_s5 = scalar_lea.vmem [#allocation8], %s12386_s4 }
 0x3fa   : > { %v1674_v10 = vpop.permute.xlu0 %1673  ;;  %v14923_v50 = vpop.permute.xlu1 %1487  ;;  %v3403_v31 = vrot.slane %v3395_v3, %v13427_v47  ;;  %v14948_v63 = vrot.slane %v5027_v24, %v13427_v47  ;;  %v20580_v24 = vcombine.high %v14843_v40, %v14847_v22  ;;  %s12211_s13 = sshll.u32 %s18338_s5, 4  ;;  %s19554_s13 = int_to_ptr.vmem [resolvable:$true] %s12211_s13 }
 0x3fb   : > { %20571 = vst [vmem:[#allocation277_spill] sm:$0xff] %v14914_v59  ;;  %v3411_v41 = vcombine.low %v14399_v53, %v1674_v10  ;;  %v3412_v61 = vcombine.high %v14399_v53, %v1674_v10  ;;  %20573 = vst [vmem:[#allocation279_spill] sm:$0xff] %v14923_v50  ;;  %v5043_v26 = vcombine.low %v14883_v37, %v14923_v50  ;;  %s12718_s16 = scalar_lea.vmem %s19554_s13, 128  ;;  %p12725_p3 = scmp.lt.s32.totalorder %s19554_s13, %s12723_s9 }
 0x3fc   : > { %1849 = vrot.lane.b32.xlu0 %v14461_v56, %s20392_s27  ;;  %v14937_v53 = vrot.slane %v3396_v62, %v13427_v47  ;;  %1839 = vrot.lane.b32.xlu1 %v14489_v20, %s20386_s29  ;;  %v3427_v37 = vcombine.low %v14372_v32, %v14378_v27  ;;  %20576 = vst [vmem:[#allocation282_spill] sm:$0xff] %v14948_v63  ;;  %p12719_p7 = scmp.ne.s32.totalorder %s19554_s13, %s12718_s16  ;;  %p12726_p0 = scmp.lt.s32.totalorder %s12724_s12, %s12718_s16 }
 0x3fd   : > { %v3419_v10 = vrot.slane %v3411_v41, %v13427_v47  ;;  %v14941_v48 = vrot.slane %v3412_v61, %v13427_v47  ;;  %v14951_v16 = vrot.slane %v5043_v26, %v13427_v47  ;;  %v14954_v62 = vrot.slane %v2932_v43, %v13488_v19 }
 0x3fe   : > { %20574 = vst [vmem:[#allocation280_spill] sm:$0xff] %v14937_v53  ;;  %v1682_v3 = vpop.permute.xlu0 %1681  ;;  %v14958_v59 = vpop.permute.xlu1 %1669  ;;  %v14968_v26 = vrot.slane %v20580_v24, %v13488_v19  ;;  %p12720_p5 = pnand %p12719_p7, %p21514_p10  ;;  %p12727_p9 = por %p12726_p0, %p12725_p3 }
 0x3ff   : > { %20575 = vst [vmem:[#allocation281_spill] sm:$0xff] %v14941_v48  ;;  %20577 = vst [vmem:[#allocation283_spill] sm:$0xff] %v14951_v16  ;;  %v3459_v41 = vcombine.low %v3403_v31, %v3419_v10  ;;  %v3460_v50 = vcombine.high %v3403_v31, %v3419_v10  ;;  %v3476_v61 = vcombine.high %v14937_v53, %v14941_v48 }
 0x400   : > { %20578 = vst [vmem:[#allocation284_spill] sm:$0xff] %v14954_v62  ;;  %20579 = vst [vmem:[#allocation285_spill] sm:$0xff] %v14958_v59  ;;  %v5092_v57 = vcombine.high %v14948_v63, %v14951_v16  ;;  %1855 = vrot.lane.b32.xlu0 %v14461_v56, %s20489_s7  ;;  %1845 = vrot.lane.b32.xlu1 %v14489_v20, %s20390_s28  ;;  %v5571_v10 = vcombine.low %v14415_v54, %v14958_v59  ;;  %p12721_p2 = pneg %p12720_p5 }
 0x401   : > { %20581 = vst [vmem:[#allocation286_spill] sm:$0xff] %v14968_v26  ;;  %v14973_v43 = vrot.slane %v3459_v41, %v13488_v19  ;;  %v14976_v31 = vrot.slane %v3460_v50, %v13488_v19  ;;  %v14981_v16 = vrot.slane %v3427_v37, %v13488_v19  ;;  %v20584_v41 = vcombine.high %v14372_v32, %v14378_v27 }
 0x402   : > { %v1688_v63 = vpop.permute.xlu0 %1687  ;;  %v14985_v53 = vpop.permute.xlu1 %1675  ;;  %p12728_p12 = pnand %p12727_p9, %p12721_p2 }
 0x403   : > { %20582 = vst [vmem:[#allocation287_spill] sm:$0xff] %v14976_v31  ;;  %20583 = vst [vmem:[#allocation288_spill] sm:$0xff] %v14985_v53  ;;  %v14991_v48 = vrot.slane %v20584_v41, %v13488_v19  ;;  %v5587_v50 = vcombine.low %v14423_v18, %v14985_v53  ;;  %v3499_v54 = vcombine.low %v14461_v56, %v1688_v63 }
 0x404   : > { %1861 = vrot.lane.b32.xlu0 %v14461_v56, %s20491_s22  ;;  %v3500_v24 = vcombine.high %v14461_v56, %v1688_v63  ;;  %1851 = vrot.lane.b32.xlu1 %v14489_v20, %s20392_s27  ;;  %v15008_v41 = vrot.slane %v5571_v10, %v13427_v47  ;;  %s12194_s27 = scalar_lea.sflag [#allocation5], %s18281_s3 }
 0x405   : > { %20585 = vst [vmem:[#allocation289_spill] sm:$0xff] %v14991_v48  ;;  %v15011_v18 = vrot.slane %v5587_v50, %v13427_v47  ;;  %v15018_v63 = vrot.slane %v3499_v54, %v13427_v47 }
 0x406   : > { %20586 = vst [vmem:[#allocation290_spill] sm:$0xff] %v15008_v41  ;;  %v1694_v37 = vpop.permute.xlu0 %1693  ;;  %v15013_v40 = vpop.permute.xlu1 %1683  ;;  %v15021_v32 = vrot.slane %v3500_v24, %v13427_v47 }
 0x407   : > { %20587 = vst [vmem:[#allocation291_spill] sm:$0xff] %v15011_v18  ;;  %v3515_v53 = vcombine.low %v1682_v3, %v1694_v37  ;;  %v3516_v59 = vcombine.high %v1682_v3, %v1694_v37  ;;  %20588 = vst [vmem:[#allocation292_spill] sm:$0xff] %v15013_v40  ;;  %v5636_v56 = vcombine.high %v15008_v41, %v15011_v18 }
 0x408   : > { %20589 = vst [vmem:[#allocation293_spill] sm:$0xff] %v15021_v32  ;;  %1857 = vrot.lane.b32.xlu1 %v14489_v20, %s20489_s7  ;;  %v15032_v37 = vrot.slane %v3476_v61, %v13488_v19  ;;  %s21513_s7 = smov %s21512_s30 }
 0x409   : > { %v15024_v10 = vrot.slane %v3515_v53, %v13427_v47  ;;  %v15027_v50 = vrot.slane %v3516_v59, %v13427_v47  ;;  %v20593_v59 = vcombine.high %v14375_v17, %v14381_v49  ;;  %v2403_v49 = vcombine.low %v13915_v14, %v13907_v34 }
 0x40a   : > { %v1700_v3 = vpop.permute.xlu0 %1699  ;;  %20591 = vst [vmem:[#allocation295_spill] sm:$0xff] %v15032_v37  ;;  %v15038_v27 = vpop.permute.xlu1 %1689 }
 0x40b   : > { %20590 = vst [vmem:[#allocation294_spill] sm:$0xff] %v15027_v50  ;;  %v3564_v54 = vcombine.high %v15018_v63, %v15024_v10  ;;  %v3580_v24 = vcombine.high %v15021_v32, %v15027_v50  ;;  %20592 = vst [vmem:[#allocation296_spill] sm:$0xff] %v15038_v27  ;;  %v15044_v53 = vrot.slane %v20593_v59, %v13488_v19 }
 0x40c   : > { %1863 = vrot.lane.b32.xlu1 %v14489_v20, %s20491_s22  ;;  %v5675_v61 = vcombine.low %v14489_v20, %v15038_v27  ;;  %v15059_v59 = vrot.slane %v5092_v57, %v13488_v19  ;;  %v20597_v20 = vcombine.high %v14870_v45, %v14873_v28 }
 0x40d   : > { %20594 = vst [vmem:[#allocation297_spill] sm:$0xff] %v15044_v53 }
 0x40e   : > { %v1706_v41 = vpop.permute.xlu0 %1705  ;;  %v15054_v32 = vpop.permute.xlu1 %1695  ;;  %20596 = vst [vmem:[#allocation299_spill] sm:$0xff] %v15059_v59  ;;  %v15067_v27 = vrot.slane %v20597_v20, %v13488_v19  ;;  %v15070_v18 = vrot.slane %v5675_v61, %v13427_v47  ;;  %v20602_v20 = vcombine.high %v14408_v21, %v14411_v9 }
 0x40f   : > { %20595 = vst [vmem:[#allocation298_spill] sm:$0xff] %v15054_v32  ;;  %v5691_v17 = vcombine.low %v15013_v40, %v15054_v32 }
 0x410   : > { %20598 = vst [vmem:[#allocation300_spill] sm:$0xff] %v15067_v27  ;;  %20599 = vst [vmem:[#allocation301_spill] sm:$0xff] %v15070_v18  ;;  %v15085_v61 = vrot.slane %v20602_v20, %v13488_v19 }
 0x411   : > { %v15073_v22 = vrot.slane %v5691_v17, %v13427_v47  ;;  %v15088_v17 = vrot.slane %v5636_v56, %v13488_v19 }
 0x412   : > { %v1712_v62 = vpop.permute.xlu0 %1711  ;;  %v15077_v50 = vpop.permute.xlu1 %1701  ;;  %20603 = vst [vmem:[#allocation304_spill] sm:$0xff] %v15085_v61 }
 0x413   : > { %20600 = vst [vmem:[#allocation302_spill] sm:$0xff] %v15073_v22  ;;  %20601 = vst [vmem:[#allocation303_spill] sm:$0xff] %v15077_v50  ;;  %v5740_v40 = vcombine.high %v15070_v18, %v15073_v22  ;;  %v3531_v32 = vcombine.low %v1700_v3, %v1712_v62  ;;  %v3532_v37 = vcombine.high %v1700_v3, %v1712_v62 }
 0x414   : > { %20604 = vst [vmem:[#allocation305_spill] sm:$0xff] %v15088_v17  ;;  %v1995_v17 = vcombine.low %v13513_v33, %v13516_v35 }
 0x415   : > { %v15099_v18 = vrot.slane %v3531_v32, %v13427_v47  ;;  %v15102_v20 = vrot.slane %v3532_v37, %v13427_v47  ;;  %v15117_v32 = vrot.slane %v3564_v54, %v13488_v19  ;;  %v2267_v54 = vcombine.low %v13773_v39, %v13776_v1 }
 0x416   : > { %v1718_v45 = vpop.permute.xlu0 %1717  ;;  %v15090_v57 = vpop.permute.xlu1 %1707  ;;  %v6220_v59 = vsel %vm20240_vm11, %v1995_v17, -inf }
 0x417   : > { %v3547_v28 = vcombine.low %v1706_v41, %v1718_v45  ;;  %v3548_v53 = vcombine.high %v1706_v41, %v1718_v45  ;;  %20605 = vst [vmem:[#allocation306_spill] sm:$0xff] %v15090_v57  ;;  %20606 = vst [vmem:[#allocation307_spill] sm:$0xff] %v15102_v20  ;;  %v6226_v17 = vsel %vm20240_vm11, %v2267_v54, -inf  ;;  %v2747_v54 = vcombine.low %v14708_v52, %v14714_v6 }
 0x419   : > { %v15105_v56 = vrot.slane %v3547_v28, %v13427_v47  ;;  %v15108_v45 = vrot.slane %v3548_v53, %v13427_v47 }
 0x41a   : > { %v1724_v41 = vpop.permute.xlu0 %1723  ;;  %v15114_v3 = vpop.permute.xlu1 %1713 }
 0x41b   : > { %20607 = vst [vmem:[#allocation308_spill] sm:$0xff] %v15108_v45  ;;  %v3596_v26 = vcombine.high %v15099_v18, %v15105_v56  ;;  %v3612_v62 = vcombine.high %v15102_v20, %v15108_v45  ;;  %20608 = vst [vmem:[#allocation309_spill] sm:$0xff] %v15114_v3  ;;  %v5707_v28 = vcombine.low %v15077_v50, %v15114_v3 }
 0x41c   : > { %v15138_v50 = vrot.slane %v3580_v24, %v13488_v19  ;;  %v15161_v20 = vrot.slane %v5740_v40, %v13488_v19 }
 0x41d   : > { %v15120_v37 = vrot.slane %v3596_v26, %v13488_v19  ;;  %v15133_v27 = vrot.slane %v3612_v62, %v13488_v19  ;;  %v15141_v3 = vrot.slane %v5707_v28, %v13427_v47 }
 0x41e   : > { %v1730_v53 = vpop.permute.xlu0 %1729  ;;  %v15126_v61 = vpop.permute.xlu1 %1719  ;;  %20611 = vst [vmem:[#allocation312_spill] sm:$0xff] %v15138_v50  ;;  %20615 = vst [vmem:[#allocation316_spill] sm:$0xff] %v15161_v20 }
 0x41f   : > { %20609 = vst [vmem:[#allocation310_spill] sm:$0xff] %v15126_v61  ;;  %20610 = vst [vmem:[#allocation311_spill] sm:$0xff] %v15133_v27  ;;  %v5723_v26 = vcombine.low %v15090_v57, %v15126_v61 }
 0x420   : > { %20612 = vst [vmem:[#allocation313_spill] sm:$0xff] %v15141_v3 }
 0x421   : > { %v15144_v22 = vrot.slane %v5723_v26, %v13427_v47 }
 0x422   : > { %v1736_v21 = vpop.permute.xlu0 %1735  ;;  %v15149_v62 = vpop.permute.xlu1 %1725 }
 0x423   : > { %20613 = vst [vmem:[#allocation314_spill] sm:$0xff] %v15144_v22  ;;  %20614 = vst [vmem:[#allocation315_spill] sm:$0xff] %v15149_v62  ;;  %6221 = vmax.xlane.f32.xlu0 %v6220_v59  ;;  %v5772_v28 = vcombine.high %v15141_v3, %v15144_v22  ;;  %v3635_v26 = vcombine.low %v1724_v41, %v1736_v21  ;;  %v3636_v61 = vcombine.high %v1724_v41, %v1736_v21 }
 0x424   : > { %v2475_v21 = vcombine.low %v14436_v42, %v14442_v8  ;;  %v2507_v41 = vcombine.low %v14496_v0, %v14502_v30  ;;  %v6229_v0 = vsel %vm20240_vm11, %v2403_v49, -inf  ;;  %v2675_v30 = vcombine.low %v14642_v55, %v14645_v38 }
 0x425   : > { %v15164_v59 = vrot.slane %v5772_v28, %v13488_v19  ;;  %v15177_v28 = vrot.slane %v3635_v26, %v13427_v47 }
 0x426   : > { %v1742_v9 = vpop.permute.xlu0 %1741  ;;  %v15166_v24 = vpop.permute.xlu1 %1731  ;;  %v15202_v49 = vrot.slane %v2507_v41, %v13488_v19  ;;  %v15205_v40 = vrot.slane %v2475_v21, %v13488_v19 }
 0x427   : > { %20616 = vst [vmem:[#allocation317_spill] sm:$0xff] %v15164_v59  ;;  %v3651_v57 = vcombine.low %v1730_v53, %v1742_v9  ;;  %v3652_v45 = vcombine.high %v1730_v53, %v1742_v9  ;;  %20617 = vst [vmem:[#allocation318_spill] sm:$0xff] %v15166_v24  ;;  %6227 = vmax.xlane.f32.xlu0 %v6226_v17  ;;  %v15180_v9 = vrot.slane %v3636_v61, %v13427_v47 }
 0x428   : > { %v2539_v6 = vcombine.low %v15205_v40, %v15202_v49 }
 0x429   : > { %20618 = vst [vmem:[#allocation319_spill] sm:$0xff] %v15180_v9  ;;  %v15183_v53 = vrot.slane %v3651_v57, %v13427_v47  ;;  %v15186_v8 = vrot.slane %v3652_v45, %v13427_v47  ;;  %v2779_v57 = vcombine.low %v14760_v46, %v14766_v7  ;;  %v2131_v45 = vcombine.low %v13643_v5, %v13646_v12 }
 0x42a   : > { %v1748_v42 = vpop.permute.xlu0 %1747  ;;  %v15195_v61 = vpop.permute.xlu1 %1737  ;;  %v2947_v7 = vcombine.low %v14904_v51, %v14911_v2  ;;  %v3051_v46 = vcombine.low %v14026_v25, %v14032_v4  ;;  %v3219_v4 = vcombine.low %v14174_v23, %v14177_v13 }
 0x42b   : > { %20619 = vst [vmem:[#allocation320_spill] sm:$0xff] %v15186_v8  ;;  %20620 = vst [vmem:[#allocation321_spill] sm:$0xff] %v15195_v61  ;;  %6230 = vmax.xlane.f32.xlu0 %v6229_v0  ;;  %v5811_v26 = vcombine.low %v15149_v62, %v15195_v61  ;;  %v6235_v0 = vsel %vm20240_vm11, %v2675_v30, -inf  ;;  %v6223_v52 = vsel %vm20240_vm11, %v2131_v45, -inf  ;;  %v15224_v62 = vrot.slane %v2779_v57, %v13488_v19 }
 0x42c   : > { %v3019_v30 = vcombine.low %v13963_v11, %v13969_v58  ;;  %v3323_v57 = vcombine.low %v14290_v36, %v14296_v60  ;;  %v15245_v58 = vrot.slane %v3051_v46, %v13488_v19 }
 0x42d   : > { %v15231_v25 = vrot.slane %v5811_v26, %v13427_v47  ;;  %v3291_v26 = vcombine.low %v14238_v15, %v14244_v29  ;;  %v3491_v15 = vcombine.low %v14981_v16, %v14973_v43 }
 0x42e   : > { %v1754_v17 = vpop.permute.xlu0 %1753  ;;  %v15216_v41 = vpop.permute.xlu1 %1743  ;;  %v15255_v36 = vrot.slane %v3019_v30, %v13488_v19  ;;  %v3595_v30 = vcombine.low %v15099_v18, %v15105_v56  ;;  %v3563_v18 = vcombine.low %v15018_v63, %v15024_v10 }
 0x42f   : > { %20621 = vst [vmem:[#allocation322_spill] sm:$0xff] %v15216_v41  ;;  %6236 = vmax.xlane.f32.xlu0 %v6235_v0  ;;  %v5827_v21 = vcombine.low %v15166_v24, %v15216_v41  ;;  %20622 = vst [vmem:[#allocation323_spill] sm:$0xff] %v15231_v25  ;;  %v6241_v24 = vsel %vm20240_vm11, %v2947_v7, -inf  ;;  %v15238_v41 = vrot.slane %v2747_v54, %v13488_v19  ;;  %v6232_v7 = vsel %vm20240_vm11, %v2539_v6, -inf }
 0x430   : > { %6224 = vmax.xlane.f32.xlu1 %v6223_v52  ;;  %v3083_v6 = vcombine.low %v15255_v36, %v15245_v58 }
 0x431   : > { %v15234_v0 = vrot.slane %v5827_v21, %v13427_v47  ;;  %v2811_v54 = vcombine.low %v15238_v41, %v15224_v62 }
 0x432   : > { %v1760_v45 = vpop.permute.xlu0 %1759  ;;  %v15242_v11 = vpop.permute.xlu1 %1749 }
 0x433   : > { %20623 = vst [vmem:[#allocation324_spill] sm:$0xff] %v15234_v0  ;;  %20624 = vst [vmem:[#allocation325_spill] sm:$0xff] %v15242_v11  ;;  %6242 = vmax.xlane.f32.xlu0 %v6241_v24  ;;  %v3667_v52 = vcombine.low %v1748_v42, %v1760_v45  ;;  %v3668_v61 = vcombine.high %v1748_v42, %v1760_v45  ;;  %v6247_v24 = vsel %vm20240_vm11, %v3219_v4, -inf  ;;  %v6238_v45 = vsel %vm20240_vm11, %v2811_v54, -inf }
 0x434   : > { %6233 = vmax.xlane.f32.xlu1 %v6232_v7  ;;  %v15265_v42 = vrot.slane %v3323_v57, %v13488_v19  ;;  %v3699_v4 = vcombine.low %v15177_v28, %v15183_v53  ;;  %v15273_v7 = vrot.slane %v3291_v26, %v13488_v19  ;;  %v6253_v54 = vsel %vm20240_vm11, %v3491_v15, -inf }
 0x436   : > { %v1766_v60 = vpop.permute.xlu0 %1765  ;;  %v15260_v21 = vpop.permute.xlu1 %1755  ;;  %v15297_v63 = vrot.slane %v3699_v4, %v13488_v19 }
 0x437   : > { %v3683_v29 = vcombine.low %v1754_v17, %v1766_v60  ;;  %v3684_v46 = vcombine.high %v1754_v17, %v1766_v60  ;;  %20625 = vst [vmem:[#allocation326_spill] sm:$0xff] %v15260_v21  ;;  %6248 = vmax.xlane.f32.xlu0 %v6247_v24  ;;  %v3675_v17 = vrot.slane %v3667_v52, %v13427_v47 }
 0x438   : > { %v15277_v60 = vrot.slane %v3668_v61, %v13427_v47  ;;  %6239 = vmax.xlane.f32.xlu1 %v6238_v45  ;;  %v3355_v61 = vcombine.low %v15273_v7, %v15265_v42 }
 0x439   : > { %v3691_v24 = vrot.slane %v3683_v29, %v13427_v47  ;;  %v15281_v57 = vrot.slane %v3684_v46, %v13427_v47  ;;  %v6244_v29 = vsel %vm20240_vm11, %v3083_v6, -inf  ;;  %v15294_v46 = vrot.slane %v3595_v30, %v13488_v19 }
 0x43a   : > { %20626 = vst [vmem:[#allocation327_spill] sm:$0xff] %v15277_v60  ;;  %v1772_v56 = vpop.permute.xlu0 %1771  ;;  %v15288_v20 = vpop.permute.xlu1 %1761  ;;  %v20630_v6 = vcombine.high %v15177_v28, %v15183_v53 }
 0x43b   : > { %20627 = vst [vmem:[#allocation328_spill] sm:$0xff] %v15281_v57  ;;  %v3731_v59 = vcombine.low %v3675_v17, %v3691_v24  ;;  %v3732_v26 = vcombine.high %v3675_v17, %v3691_v24  ;;  %v3748_v52 = vcombine.high %v15277_v60, %v15281_v57  ;;  %20628 = vst [vmem:[#allocation329_spill] sm:$0xff] %v15288_v20  ;;  %6254 = vmax.xlane.f32.xlu0 %v6253_v54 }
 0x43c   : > { %6245 = vmax.xlane.f32.xlu1 %v6244_v29  ;;  %v5843_v45 = vcombine.low %v15242_v11, %v15288_v20  ;;  %v15308_v24 = vrot.slane %v3563_v18, %v13488_v19  ;;  %v15314_v30 = vrot.slane %v20630_v6, %v13488_v19 }
 0x43d   : > { %v15300_v10 = vrot.slane %v3731_v59, %v13488_v19  ;;  %v15303_v15 = vrot.slane %v3732_v26, %v13488_v19  ;;  %v6250_v59 = vsel %vm20240_vm11, %v3355_v61, -inf }
 0x43e   : > { %v1778_v17 = vpop.permute.xlu0 %1777  ;;  %20631 = vst [vmem:[#allocation331_spill] sm:$0xff] %v15314_v30  ;;  %v15316_v4 = vpop.permute.xlu1 %1767  ;;  %v3627_v29 = vcombine.low %v15308_v24, %v15294_v46  ;;  %v15333_v6 = vrot.slane %v5843_v45, %v13427_v47  ;;  %v20637_v45 = vcombine.high %v15180_v9, %v15186_v8  ;;  %v12911_v9 = vmov 1985246804  }
 0x43f   : > { %20629 = vst [vmem:[#allocation330_spill] sm:$0xff] %v15303_v15  ;;  %20632 = vst [vmem:[#allocation332_spill] sm:$0xff] %v15316_v4  ;;  %v3763_v54 = vcombine.low %v15297_v63, %v15300_v10  ;;  %v5859_v18 = vcombine.low %v15260_v21, %v15316_v4  ;;  %v15339_v21 = vrot.slane %v3748_v52, %v13488_v19 }
 0x440   : > { %6251 = vmax.xlane.f32.xlu1 %v6250_v59  ;;  %20633 = vst [vmem:[#allocation333_spill] sm:$0xff] %v15333_v6  ;;  %v6256_v59 = vsel %vm20240_vm11, %v3627_v29, -inf  ;;  %v20640_v29 = vcombine.high %v15231_v25, %v15234_v0 }
 0x441   : > { %v6259_v61 = vsel %vm20240_vm11, %v3763_v54, -inf  ;;  %v15336_v26 = vrot.slane %v5859_v18, %v13427_v47  ;;  %20635 = vst [vmem:[#allocation335_spill] sm:$0xff] %v15339_v21  ;;  %v15350_v54 = vrot.slane %v20637_v45, %v13488_v19 }
 0x442   : > { %v1784_v11 = vpop.permute.xlu0 %1783  ;;  %6260 = vmax.xlane.f32.xlu0 %v6259_v61  ;;  %v15341_v4 = vpop.permute.xlu1 %1773  ;;  %v15362_v22 = vrot.slane %v20640_v29, %v13488_v19 }
 0x443   : > { %20634 = vst [vmem:[#allocation334_spill] sm:$0xff] %v15336_v26  ;;  %20636 = vst [vmem:[#allocation336_spill] sm:$0xff] %v15341_v4  ;;  %v5908_v28 = vcombine.high %v15333_v6, %v15336_v26  ;;  %v3771_v53 = vcombine.low %v1772_v56, %v1784_v11  ;;  %v3772_v18 = vcombine.high %v1772_v56, %v1784_v11 }
 0x444   : > { %20638 = vst [vmem:[#allocation337_spill] sm:$0xff] %v15350_v54  ;;  %6257 = vmax.xlane.f32.xlu1 %v6256_v59  ;;  %20641 = vst [vmem:[#allocation339_spill] sm:$0xff] %v15362_v22 }
 0x445   : > { %v15365_v11 = vrot.slane %v5908_v28, %v13488_v19  ;;  %v3779_v56 = vrot.slane %v3771_v53, %v13427_v47  ;;  %v15369_v59 = vrot.slane %v3772_v18, %v13427_v47 }
 0x446   : > { %v1790_v61 = vpop.permute.xlu0 %1789  ;;  %v15356_v26 = vpop.permute.xlu1 %1779 }
 0x447   : > { %v3787_v3 = vcombine.low %v1778_v17, %v1790_v61  ;;  %v3788_v6 = vcombine.high %v1778_v17, %v1790_v61  ;;  %20639 = vst [vmem:[#allocation338_spill] sm:$0xff] %v15356_v26  ;;  %20642 = vst [vmem:[#allocation340_spill] sm:$0xff] %v15365_v11  ;;  %v12910_v61 = vmov 839922192  }
 0x448   : > { %20643 = vst [vmem:[#allocation341_spill] sm:$0xff] %v15369_v59  ;;  %v7245_v0 = vunpack.c.l.s4 %v12910_v61 }
 0x449   : > { %v3795_v45 = vrot.slane %v3787_v3, %v13427_v47  ;;  %v15373_v17 = vrot.slane %v3788_v6, %v13427_v47 }
 0x44a   : > { %v1796_v20 = vpop.permute.xlu0 %1795  ;;  %v15381_v53 = vpop.permute.xlu1 %1785  ;;  %v7246_v27 = vunpack.c.0.s8 %v7245_v0 }
 0x44b   : > { %20644 = vst [vmem:[#allocation342_spill] sm:$0xff] %v15373_v17  ;;  %v3836_v52 = vcombine.high %v3779_v56, %v3795_v45  ;;  %v3852_v28 = vcombine.high %v15369_v59, %v15373_v17  ;;  %20645 = vst [vmem:[#allocation343_spill] sm:$0xff] %v15381_v53  ;;  %v5947_v18 = vcombine.low %v15341_v4, %v15381_v53 }
 0x44d   : > { %v15390_v21 = vrot.slane %v5947_v18, %v13427_v47  ;;  %v3835_v18 = vcombine.low %v3779_v56, %v3795_v45 }
 0x44e   : > { %v1802_v3 = vpop.permute.xlu0 %1801  ;;  %v15385_v25 = vpop.permute.xlu1 %1791 }
 0x44f   : > { %20646 = vst [vmem:[#allocation344_spill] sm:$0xff] %v15385_v25  ;;  %v5963_v6 = vcombine.low %v15356_v26, %v15385_v25  ;;  %20647 = vst [vmem:[#allocation345_spill] sm:$0xff] %v15390_v21  ;;  %v7252_v26 = vunpack.c.l.s4 %v12911_v9 }
 0x451   : > { %v15393_v29 = vrot.slane %v5963_v6, %v13427_v47  ;;  %v7253_v9 = vunpack.c.0.s8 %v7252_v26  ;;  %v15432_v26 = vrot.slane %v3836_v52, %v13488_v19 }
 0x452   : > { %v1808_v11 = vpop.permute.xlu0 %1807  ;;  %v15395_v22 = vpop.permute.xlu1 %1797 }
 0x453   : > { %20648 = vst [vmem:[#allocation346_spill] sm:$0xff] %v15393_v29  ;;  %20649 = vst [vmem:[#allocation347_spill] sm:$0xff] %v15395_v22  ;;  %v3803_v53 = vcombine.low %v1796_v20, %v1808_v11  ;;  %v3804_v54 = vcombine.high %v1796_v20, %v1808_v11  ;;  %v15410_v20 = vsub.s32 %v7246_v27, %v13420_v44 }
 0x454   : > { %v15454_v15 = vsub.s32 %v7253_v9, %v13420_v44 }
 0x455   : > { %v3811_v6 = vrot.slane %v3803_v53, %v13427_v47  ;;  %v15403_v60 = vrot.slane %v3804_v54, %v13427_v47  ;;  %20653 = vst [vmem:[#allocation351_spill] sm:$0xff] %v15410_v20  ;;  %v20655_v54 = vld [vmem:[#allocation30_spill] sm:$0xff] }
 0x456   : > { %v1814_v50 = vpop.permute.xlu0 %1813  ;;  %v15399_v8 = vpop.permute.xlu1 %1803  ;;  %v15420_v53 = vsub.s32 %v20655_v54, %v13420_v44  ;;  %v9310_v27 = vadd.s32 4294967272, %v20655_v54  ;;  %v9317_v20 = vadd.s32 4294967264, %v20655_v54  ;;  %v9331_v59 = vadd.s32 4294967248, %v20655_v54  ;;  %20659 = vst [vmem:[#allocation356_spill] sm:$0xff] %v15454_v15 }
 0x457   : > { %v3819_v25 = vcombine.low %v1802_v3, %v1814_v50  ;;  %v3820_v61 = vcombine.high %v1802_v3, %v1814_v50  ;;  %20650 = vst [vmem:[#allocation348_spill] sm:$0xff] %v15399_v8  ;;  %20651 = vst [vmem:[#allocation349_spill] sm:$0xff] %v15403_v60  ;;  %v9303_v3 = vadd.s32 4294967280, %v20655_v54 }
 0x458   : > { %20656 = vst [vmem:[#allocation353_spill] sm:$0xff] %v15420_v53  ;;  %v9324_v53 = vadd.s32 4294967256, %v20655_v54  ;;  %v15471_v9 = vsub.s32 %v9310_v27, %v13420_v44  ;;  %v15474_v15 = vsub.s32 %v9317_v20, %v13420_v44 }
 0x459   : > { %v3827_v57 = vrot.slane %v3819_v25, %v13427_v47  ;;  %v15407_v4 = vrot.slane %v3820_v61, %v13427_v47  ;;  %v9296_v25 = vadd.s32 4294967288, %v20655_v54  ;;  %v15426_v61 = vrot.slane %v3835_v18, %v13488_v19 }
 0x45a   : > { %v15412_v0 = vpop.permute.xlu0 %1819  ;;  %v15416_v45 = vpop.permute.xlu1 %1809  ;;  %v15464_v52 = vsub.s32 %v9303_v3, %v13420_v44  ;;  %20662 = vst [vmem:[#allocation359_spill] sm:$0xff] %v15471_v9  ;;  %20663 = vst [vmem:[#allocation360_spill] sm:$0xff] %v15474_v15  ;;  %v15483_v3 = vsub.s32 %v9324_v53, %v13420_v44 }
 0x45b   : > { %20652 = vst [vmem:[#allocation350_spill] sm:$0xff] %v15407_v4  ;;  %v3867_v50 = vcombine.low %v3811_v6, %v3827_v57  ;;  %v3868_v11 = vcombine.high %v3811_v6, %v3827_v57  ;;  %v3884_v56 = vcombine.high %v15403_v60, %v15407_v4  ;;  %20654 = vst [vmem:[#allocation352_spill] sm:$0xff] %v15416_v45 }
 0x45c   : > { %v5979_v17 = vcombine.low %v15395_v22, %v15416_v45  ;;  %v9338_v22 = vadd.s32 4294967240, %v20655_v54  ;;  %v9345_v45 = vadd.s32 4294967232, %v20655_v54  ;;  %v15461_v31 = vsub.s32 %v9296_v25, %v13420_v44  ;;  %20660 = vst [vmem:[#allocation357_spill] sm:$0xff] %v15464_v52  ;;  %20666 = vst [vmem:[#allocation363_spill] sm:$0xff] %v15483_v3  ;;  %v20680_v3 = vld [vmem:[#allocation44_spill] sm:$0xff] }
 0x45d   : > { %v15429_v57 = vrot.slane %v3867_v50, %v13488_v19  ;;  %v15435_v6 = vrot.slane %v3868_v11, %v13488_v19  ;;  %v15451_v4 = vrot.slane %v3884_v56, %v13488_v19  ;;  %v15468_v56 = vrot.slane %v3852_v28, %v13488_v19 }
 0x45e   : > { %v1826_v18 = vpop.permute.xlu0 %1825  ;;  %v15442_v60 = vpop.permute.xlu1 %1815  ;;  %v15477_v48 = vrot.slane %v5979_v17, %v13427_v47  ;;  %v15486_v28 = vsub.s32 %v9331_v59, %v13420_v44  ;;  %v15495_v27 = vsub.s32 %v9338_v22, %v13420_v44  ;;  %v20671_v17 = vcombine.high %v13513_v33, %v13516_v35  ;;  %v20678_v33 = vld [vmem:[#allocation33_spill] sm:$0xff] }
 0x45f   : > { %20657 = vst [vmem:[#allocation354_spill] sm:$0xff] %v15442_v60  ;;  %v3899_v50 = vcombine.low %v15426_v61, %v15429_v57  ;;  %20658 = vst [vmem:[#allocation355_spill] sm:$0xff] %v15451_v4  ;;  %v5995_v30 = vcombine.low %v15399_v8, %v15442_v60  ;;  %v9359_v60 = vadd.s32 4294967216, %v20655_v54  ;;  %v9366_v4 = vadd.s32 4294967208, %v20655_v54 }
 0x460   : > { %20661 = vst [vmem:[#allocation358_spill] sm:$0xff] %v15468_v56  ;;  %20664 = vst [vmem:[#allocation361_spill] sm:$0xff] %v15477_v48  ;;  %v6268_v22 = vsel %vm20240_vm11, %v20671_v17, -inf  ;;  %v20673_v56 = vld [vmem:[#allocation31_spill] sm:$0xff]  ;;  %v20679_v17 = vld [vmem:[#allocation45_spill] sm:$0xff] }
 0x461   : > { %v6262_v11 = vsel %vm20240_vm11, %v3899_v50, -inf  ;;  %v15480_v25 = vrot.slane %v5995_v30, %v13427_v47  ;;  %20667 = vst [vmem:[#allocation364_spill] sm:$0xff] %v15486_v28  ;;  %20669 = vst [vmem:[#allocation366_spill] sm:$0xff] %v15495_v27  ;;  %v15498_v30 = vsub.s32 %v9345_v45, %v13420_v44  ;;  %v20672_v45 = vld [vmem:[#allocation36_spill] sm:$0xff]  ;;  %v1979_v28 = vcombine.low %v20680_v3, %v20679_v17 }
 0x462   : > { %v1832_v8 = vpop.permute.xlu0 %1831  ;;  %6263 = vmax.xlane.f32.xlu1 %v6262_v11  ;;  %v15488_v50 = vpop.permute.xlu1 %1821  ;;  %v9352_v11 = vadd.s32 4294967224, %v20655_v54  ;;  %v4044_v27 = vcombine.high %v20673_v56, %v20672_v45 }
 0x463   : > { %20665 = vst [vmem:[#allocation362_spill] sm:$0xff] %v15480_v25  ;;  %20668 = vst [vmem:[#allocation365_spill] sm:$0xff] %v15488_v50  ;;  %v6044_v53 = vcombine.high %v15477_v48, %v15480_v25  ;;  %v3907_v59 = vcombine.low %v15412_v0, %v1832_v8  ;;  %v3908_v20 = vcombine.high %v15412_v0, %v1832_v8  ;;  %v20677_v0 = vld [vmem:[#allocation38_spill] sm:$0xff] }
 0x464   : > { %20670 = vst [vmem:[#allocation367_spill] sm:$0xff] %v15498_v30  ;;  %v20674_v48 = vcombine.high %v15390_v21, %v15393_v29  ;;  %v4060_v35 = vcombine.high %v20678_v33, %v20677_v0  ;;  %v20685_v33 = vld [vmem:[#allocation42_spill] sm:$0xff]  ;;  %v15567_v21 = vsub.s32 %v9352_v11, %v13420_v44  ;;  %v1987_v29 = vrot.slane %v1979_v28, %v13488_v19 }
 0x465   : > { %v15520_v8 = vrot.slane %v6044_v53, %v13488_v19  ;;  %v2540_v53 = vcombine.high %v15205_v40, %v15202_v49  ;;  %v15540_v3 = vrot.slane %v3908_v20, %v13427_v47  ;;  %v9387_v40 = vadd.s32 4294967184, %v20655_v54  ;;  %v20684_v49 = vld [vmem:[#allocation48_spill] sm:$0xff] }
 0x466   : > { %v1838_v30 = vpop.permute.xlu0 %1837  ;;  %6269 = vmax.xlane.f32.xlu1 %v6268_v22  ;;  %v15517_v25 = vrot.slane %v20674_v48, %v13488_v19  ;;  %v15526_v56 = vpop.permute.xlu1 %1827  ;;  %v15529_v22 = vrot.slane %v3907_v59, %v13427_v47  ;;  %v20682_v48 = vcombine.high %v13773_v39, %v13776_v1  ;;  %v9373_v1 = vadd.s32 4294967200, %v20655_v54  ;;  %20689 = vst [vmem:[#allocation44_spill] sm:$0xff] %v15567_v21  ;;  %v20694_v21 = vld [vmem:[#allocation52_spill] sm:$0xff] }
 0x467   : > { %20676 = vst [vmem:[#allocation31_spill] sm:$0xff] %v15520_v8  ;;  %v3923_v15 = vcombine.low %v1826_v18, %v1838_v30  ;;  %v3924_v9 = vcombine.high %v1826_v18, %v1838_v30  ;;  %20681 = vst [vmem:[#allocation38_spill] sm:$0xff] %v15526_v56  ;;  %v9380_v59 = vadd.s32 4294967192, %v20655_v54  ;;  %v4092_v17 = vcombine.high %v20685_v33, %v20684_v49  ;;  %v20691_v33 = vld [vmem:[#allocation46_spill] sm:$0xff] }
 0x468   : > { %20675 = vst [vmem:[#allocation36_spill] sm:$0xff] %v15517_v25  ;;  %v6274_v45 = vsel %vm20240_vm11, %v20682_v48, -inf  ;;  %20683 = vst [vmem:[#allocation33_spill] sm:$0xff] %v15540_v3  ;;  %v20687_v48 = vld [vmem:[#allocation34_spill] sm:$0xff]  ;;  %v15570_v49 = vsub.s32 %v9359_v60, %v13420_v44  ;;  %v6280_v39 = vsel %vm20240_vm11, %v2540_v53, -inf  ;;  %v2812_v8 = vcombine.high %v15238_v41, %v15224_v62  ;;  %v20697_v53 = vld [vmem:[#allocation40_spill] sm:$0xff] }
 0x469   : > { %v15543_v18 = vrot.slane %v3923_v15, %v13427_v47  ;;  %v15546_v30 = vrot.slane %v3924_v9, %v13427_v47  ;;  %v20686_v15 = vld [vmem:[#allocation35_spill] sm:$0xff]  ;;  %v4074_v9 = vrot.slane %v4060_v35, %v13427_v47  ;;  %v4058_v35 = vrot.slane %v4044_v27, %v13427_v47 }
 0x46a   : > { %v15555_v20 = vpop.permute.xlu0 %1843  ;;  %6275 = vmax.xlane.f32.xlu1 %v6274_v45  ;;  %v1947_v0 = vcombine.low %v20687_v48, %v20686_v15  ;;  %v15564_v25 = vpop.permute.xlu1 %1833  ;;  %20690 = vst [vmem:[#allocation48_spill] sm:$0xff] %v15570_v49  ;;  %v9394_v45 = vadd.s32 4294967176, %v20655_v54  ;;  %v20692_v15 = vld [vmem:[#allocation41_spill] sm:$0xff]  ;;  %v15581_v11 = vsub.s32 %v9366_v4, %v13420_v44  ;;  %v4106_v60 = vrot.slane %v4092_v17, %v13427_v47  ;;  %v20695_v49 = vld [vmem:[#allocation51_spill] sm:$0xff] }
 0x46b   : > { %20688 = vst [vmem:[#allocation45_spill] sm:$0xff] %v15564_v25  ;;  %v4076_v48 = vcombine.high %v20692_v15, %v20691_v33  ;;  %v4139_v54 = vcombine.low %v20695_v49, %v20694_v21  ;;  %v6083_v33 = vcombine.low %v15488_v50, %v15564_v25  ;;  %v15589_v27 = vsub.s32 %v9373_v1, %v13420_v44  ;;  %v20698_v62 = vld [vmem:[#allocation39_spill] sm:$0xff] }
 0x46c   : > { %20693 = vst [vmem:[#allocation42_spill] sm:$0xff] %v15581_v11  ;;  %v4107_v41 = vcombine.low %v20698_v62, %v20697_v53  ;;  %v4124_v28 = vcombine.high %v4058_v35, %v4074_v9  ;;  %v1955_v4 = vrot.slane %v1947_v0, %v13488_v19  ;;  %v15597_v17 = vsub.s32 %v9380_v59, %v13420_v44  ;;  %v20734_v11 = vld [vmem:[#allocation64_spill] sm:$0xff] }
 0x46d   : > { %20696 = vst [vmem:[#allocation35_spill] sm:$0xff] %v15589_v27  ;;  %v4123_v21 = vcombine.low %v4058_v35, %v4074_v9  ;;  %v4090_v49 = vrot.slane %v4076_v48, %v13427_v47  ;;  %v15603_v1 = vsub.s32 %v9387_v40, %v13420_v44  ;;  %v6286_v50 = vsel %vm20240_vm11, %v2812_v8, -inf }
 0x46e   : > { %v1850_v15 = vpop.permute.xlu0 %1849  ;;  %6281 = vmax.xlane.f32.xlu1 %v6280_v39  ;;  %v15593_v52 = vpop.permute.xlu1 %1839  ;;  %20700 = vst [vmem:[#allocation46_spill] sm:$0xff] %v15597_v17  ;;  %v3084_v53 = vcombine.high %v15255_v36, %v15245_v58  ;;  %v1999_v62 = vcombine.low %v1955_v4, %v1987_v29  ;;  %v15609_v0 = vrot.slane %v6083_v33, %v13427_v47 }
 0x46f   : > { %20699 = vst [vmem:[#allocation34_spill] sm:$0xff] %v15593_v52  ;;  %v6099_v39 = vcombine.low %v15526_v56, %v15593_v52  ;;  %20701 = vst [vmem:[#allocation41_spill] sm:$0xff] %v15603_v1  ;;  %v4156_v25 = vcombine.high %v4090_v49, %v4106_v60  ;;  %v4147_v48 = vrot.slane %v4139_v54, %v13488_v19  ;;  %v20707_v56 = vld [vmem:[#allocation47_spill] sm:$0xff] }
 0x470   : > { %20702 = vst [vmem:[#allocation52_spill] sm:$0xff] %v15609_v0  ;;  %v15616_v40 = vsub.s32 %v9394_v45, %v13420_v44  ;;  %v2000_v8 = vcombine.high %v1955_v4, %v1987_v29  ;;  %v4115_v58 = vrot.slane %v4107_v41, %v13488_v19  ;;  %v15622_v36 = vrot.slane %v4124_v28, %v13488_v19 }
 0x471   : > { %v15612_v59 = vrot.slane %v6099_v39, %v13427_v47  ;;  %v3356_v39 = vcombine.high %v15273_v7, %v15265_v42  ;;  %v15635_v45 = vrot.slane %v4123_v21, %v13488_v19  ;;  %v6292_v28 = vsel %vm20240_vm11, %v3084_v53, -inf }
 0x472   : > { %v1856_v9 = vpop.permute.xlu0 %1855  ;;  %6287 = vmax.xlane.f32.xlu1 %v6286_v50  ;;  %20704 = vst [vmem:[#allocation40_spill] sm:$0xff] %v15616_v40  ;;  %v15618_v35 = vpop.permute.xlu1 %1845  ;;  %v20706_v50 = vld [vmem:[#allocation49_spill] sm:$0xff]  ;;  %v4155_v7 = vcombine.low %v4090_v49, %v4106_v60  ;;  %v4171_v21 = vcombine.low %v4115_v58, %v4147_v48  ;;  %v15650_v52 = vrot.slane %v4156_v25, %v13488_v19  ;;  %v15655_v53 = vsel %vm20240_vm11, %v2000_v8, -inf }
 0x473   : > { %20703 = vst [vmem:[#allocation51_spill] sm:$0xff] %v15612_v59  ;;  %20705 = vst [vmem:[#allocation39_spill] sm:$0xff] %v15618_v35  ;;  %v20708_v54 = vcombine.low %v20706_v50, %v20707_v56  ;;  %v3939_v29 = vcombine.low %v15555_v20, %v1856_v9  ;;  %v3940_v41 = vcombine.high %v15555_v20, %v1856_v9  ;;  %v6298_v49 = vsel %vm20240_vm11, %v3356_v39, -inf }
 0x474   : > { %v20709_v4 = vcombine.high %v20706_v50, %v20707_v56  ;;  %v4172_v56 = vcombine.high %v4115_v58, %v4147_v48  ;;  %v3971_v60 = vcombine.low %v15529_v22, %v15543_v18  ;;  %v20711_v50 = vld [vmem:[#allocation54_spill] sm:$0xff]  ;;  %v4177_v39 = vcombine.low %v15622_v36, %v15650_v52 }
 0x475   : > { %v15632_v44 = vsel %vm20240_vm11, %v20708_v54, -inf  ;;  %v15647_v54 = vsel %vm20240_vm11, %v1999_v62, -inf  ;;  %v3628_v62 = vcombine.high %v15308_v24, %v15294_v46  ;;  %v15670_v8 = vrot.slane %v3940_v41, %v13427_v47 }
 0x476   : > { %v15644_v42 = vsel %vm20240_vm11, %v20709_v4, -inf  ;;  %v1862_v33 = vpop.permute.xlu0 %1861  ;;  %6293 = vmax.xlane.f32.xlu1 %v6292_v28  ;;  %v15652_v9 = vpop.permute.xlu1 %1851  ;;  %v20712_v28 = vld [vmem:[#allocation50_spill] sm:$0xff] }
 0x477   : > { %v3955_v40 = vcombine.low %v1850_v15, %v1862_v33  ;;  %v3956_v20 = vcombine.high %v1850_v15, %v1862_v33  ;;  %20710 = vst [vmem:[#allocation49_spill] sm:$0xff] %v15652_v9  ;;  %v20713_v25 = vcombine.low %v20711_v50, %v20712_v28  ;;  %v3947_v15 = vrot.slane %v3939_v29, %v13427_v47 }
 0x478   : > { %v20715_v46 = vcombine.high %v20711_v50, %v20712_v28  ;;  %v15683_v33 = vsel %vm20240_vm11, %v4171_v21, -inf  ;;  %v15688_v29 = vrot.slane %v4155_v7, %v13488_v19  ;;  %v15695_v50 = vsel %vm20240_vm11, %v4172_v56, -inf  ;;  %v20720_v28 = vld [vmem:[#allocation59_spill] sm:$0xff] }
 0x479   : > { %v15666_v4 = vsel %vm20240_vm11, %v20713_v25, -inf  ;;  %v3963_v48 = vrot.slane %v3955_v40, %v13427_v47  ;;  %v15674_v58 = vrot.slane %v3956_v20, %v13427_v47  ;;  %20717 = vst [vmem:[#allocation50_spill] sm:$0xff] %v15683_v33  ;;  %20719 = vst [vmem:[#allocation369_spill] sm:$0xff] %v15695_v50  ;;  %v20721_v25 = vld [vmem:[#allocation58_spill] sm:$0xff]  ;;  %v20723_v33 = vld [vmem:[#allocation56_spill] sm:$0xff]  ;;  %v6304_v17 = vsel %vm20240_vm11, %v3628_v62, -inf }
 0x47a   : > { %20714 = vst [vmem:[#allocation47_spill] sm:$0xff] %v15666_v4  ;;  %6299 = vmax.xlane.f32.xlu1 %v6298_v49  ;;  %v15680_v24 = vsel %vm20240_vm11, %v20715_v46, -inf  ;;  %v15692_v49 = vpop.permute.xlu1 %1857  ;;  %v2083_v21 = vcombine.low %v20721_v25, %v20720_v28  ;;  %v20722_v46 = vld [vmem:[#allocation61_spill] sm:$0xff]  ;;  %v3900_v7 = vcombine.high %v15426_v61, %v15429_v57  ;;  %v20724_v56 = vcombine.high %v15529_v22, %v15543_v18  ;;  %v20746_v4 = vld [vmem:[#allocation62_spill] sm:$0xff] }
 0x47b   : > { %20716 = vst [vmem:[#allocation54_spill] sm:$0xff] %v15680_v24  ;;  %v4003_v40 = vcombine.low %v3947_v15, %v3963_v48  ;;  %v4004_v41 = vcombine.high %v3947_v15, %v3963_v48  ;;  %v4020_v20 = vcombine.high %v15670_v8, %v15674_v58  ;;  %20718 = vst [vmem:[#allocation368_spill] sm:$0xff] %v15692_v49  ;;  %v20726_v62 = vld [vmem:[#allocation53_spill] sm:$0xff] }
 0x47c   : > { %v4196_v24 = vcombine.high %v20723_v33, %v20722_v46  ;;  %v15705_v15 = vrot.slane %v3971_v60, %v13488_v19  ;;  %v15714_v50 = vrot.slane %v20724_v56, %v13488_v19  ;;  %v20725_v33 = vld [vmem:[#allocation60_spill] sm:$0xff]  ;;  %v20727_v46 = vld [vmem:[#allocation70_spill] sm:$0xff]  ;;  %v20728_v61 = vld [vmem:[#allocation65_spill] sm:$0xff]  ;;  %v6115_v60 = vcombine.low %v15618_v35, %v15692_v49 }
 0x47d   : > { %v15708_v48 = vrot.slane %v4003_v40, %v13488_v19  ;;  %v15717_v28 = vrot.slane %v4004_v41, %v13488_v19  ;;  %v4180_v25 = vcombine.high %v20726_v62, %v20725_v33  ;;  %v4228_v57 = vcombine.high %v20728_v61, %v20727_v46  ;;  %v20732_v62 = vld [vmem:[#allocation66_spill] sm:$0xff]  ;;  %v20733_v49 = vld [vmem:[#allocation68_spill] sm:$0xff] }
 0x47e   : > { %6305 = vmax.xlane.f32.xlu1 %v6304_v17  ;;  %v4175_v40 = vcombine.low %v15635_v45, %v15688_v29  ;;  %v15727_v1 = vpop.permute.xlu1 %1863  ;;  %v15736_v56 = vrot.slane %v4020_v20, %v13488_v19  ;;  %v4210_v33 = vrot.slane %v4196_v24, %v13427_v47  ;;  %v20731_v17 = vld [vmem:[#allocation67_spill] sm:$0xff]  ;;  %v2091_v35 = vrot.slane %v2083_v21, %v13488_v19 }
 0x47f   : > { %20729 = vst [vmem:[#allocation59_spill] sm:$0xff] %v15727_v1  ;;  %v4035_v22 = vcombine.low %v15705_v15, %v15708_v48  ;;  %v2115_v46 = vcombine.low %v20732_v62, %v20731_v17  ;;  %v6131_v61 = vcombine.low %v15652_v9, %v15727_v1  ;;  %v4212_v27 = vcombine.high %v20734_v11, %v20733_v49  ;;  %v20739_v11 = vld [vmem:[#allocation57_spill] sm:$0xff]  ;;  %v20740_v49 = vld [vmem:[#allocation55_spill] sm:$0xff] }
 0x480   : > { %20730 = vst [vmem:[#allocation58_spill] sm:$0xff] %v15736_v56  ;;  %v6310_v41 = vsel %vm20240_vm11, %v3900_v7, -inf  ;;  %v20735_v20 = vcombine.high %v15540_v3, %v15546_v30  ;;  %v4194_v17 = vrot.slane %v4180_v25, %v13427_v47  ;;  %v15756_v62 = vrot.slane %v6115_v60, %v13427_v47 }
 0x481   : > { %v6265_v18 = vsel %vm20240_vm11, %v4035_v22, -inf  ;;  %v15759_v21 = vrot.slane %v6131_v61, %v13427_v47  ;;  %v20741_v22 = vcombine.low %v20739_v11, %v20740_v49  ;;  %v4242_v9 = vrot.slane %v4228_v57, %v13427_v47  ;;  %v20743_v61 = vld [vmem:[#allocation74_spill] sm:$0xff] }
 0x482   : > { %v15752_v24 = vrot.slane %v20735_v20, %v13488_v19  ;;  %20737 = vst [vmem:[#allocation56_spill] sm:$0xff] %v15756_v62  ;;  %6266 = vmax.xlane.f32.xlu0 %v6265_v18  ;;  %6311 = vmax.xlane.f32.xlu1 %v6310_v41  ;;  %v4178_v60 = vcombine.high %v15622_v36, %v15650_v52  ;;  %v20744_v18 = vld [vmem:[#allocation73_spill] sm:$0xff] }
 0x483   : > { %20738 = vst [vmem:[#allocation60_spill] sm:$0xff] %v15759_v21  ;;  %v15765_v7 = vsel %vm20240_vm11, %v20741_v22, -inf  ;;  %v4275_v41 = vcombine.low %v20744_v18, %v20743_v61  ;;  %v6180_v1 = vcombine.high %v15756_v62, %v15759_v21  ;;  %v2123_v22 = vrot.slane %v2115_v46, %v13488_v19  ;;  %v20794_v21 = vld [vmem:[#allocation85_spill] sm:$0xff] }
 0x484   : > { %20736 = vst [vmem:[#allocation61_spill] sm:$0xff] %v15752_v24  ;;  %20742 = vst [vmem:[#allocation53_spill] sm:$0xff] %v15765_v7  ;;  %v4176_v57 = vcombine.high %v15635_v45, %v15688_v29  ;;  %v20745_v7 = vld [vmem:[#allocation63_spill] sm:$0xff]  ;;  %v4259_v3 = vcombine.low %v4194_v17, %v4210_v33  ;;  %v4226_v25 = vrot.slane %v4212_v27, %v13427_v47  ;;  %v15805_v29 = vsel %vm20240_vm11, %v4177_v39, -inf  ;;  %v20757_v39 = vld [vmem:[#allocation93_spill] sm:$0xff] }
 0x485   : > { %v4243_v20 = vcombine.low %v20746_v4, %v20745_v7  ;;  %v20747_v52 = vcombine.high %v13643_v5, %v13646_v12  ;;  %v4260_v61 = vcombine.high %v4194_v17, %v4210_v33  ;;  %v20748_v46 = vcombine.high %v20739_v11, %v20740_v49  ;;  %20753 = vst [vmem:[#allocation66_spill] sm:$0xff] %v15805_v29  ;;  %v20765_v7 = vld [vmem:[#allocation78_spill] sm:$0xff] }
 0x486   : > { %6317 = vmax.xlane.f32.xlu1 %v15632_v44  ;;  %v20750_v4 = vcombine.high %v15609_v0, %v15612_v59  ;;  %v15802_v5 = vrot.slane %v6180_v1, %v13488_v19  ;;  %v4291_v12 = vcombine.low %v4226_v25, %v4242_v9  ;;  %v15808_v44 = vsel %vm20240_vm11, %v4175_v40, -inf  ;;  %v20780_v0 = vld [vmem:[#allocation86_spill] sm:$0xff] }
 0x487   : > { %v6271_v36 = vsel %vm20240_vm11, %v20747_v52, -inf  ;;  %v15793_v45 = vsel %vm20240_vm11, %v20748_v46, -inf  ;;  %20754 = vst [vmem:[#allocation68_spill] sm:$0xff] %v15808_v44  ;;  %v15811_v33 = vsel %vm20240_vm11, %v4178_v60, -inf  ;;  %v2135_v17 = vcombine.low %v2091_v35, %v2123_v22  ;;  %v20758_v52 = vld [vmem:[#allocation91_spill] sm:$0xff]  ;;  %v20777_v44 = vld [vmem:[#allocation81_spill] sm:$0xff] }
 0x488   : > { %6272 = vmax.xlane.f32.xlu0 %v6271_v36  ;;  %20749 = vst [vmem:[#allocation70_spill] sm:$0xff] %v15793_v45  ;;  %v15799_v27 = vrot.slane %v20750_v4, %v13488_v19  ;;  %20752 = vst [vmem:[#allocation67_spill] sm:$0xff] %v15802_v5  ;;  %v2136_v11 = vcombine.high %v2091_v35, %v2123_v22  ;;  %v4283_v49 = vrot.slane %v4275_v41, %v13488_v19  ;;  %v20761_v41 = vld [vmem:[#allocation71_spill] sm:$0xff]  ;;  %v20762_v22 = vld [vmem:[#allocation69_spill] sm:$0xff] }
 0x489   : > { %20755 = vst [vmem:[#allocation64_spill] sm:$0xff] %v15811_v33  ;;  %v20756_v1 = vcombine.high %v13915_v14, %v13907_v34  ;;  %v20759_v36 = vcombine.low %v20757_v39, %v20758_v52  ;;  %v15825_v60 = vsel %vm20240_vm11, %v4176_v57, -inf  ;;  %v20763_v46 = vcombine.low %v20761_v41, %v20762_v22  ;;  %v20764_v57 = vld [vmem:[#allocation83_spill] sm:$0xff]  ;;  %v20779_v45 = vld [vmem:[#allocation90_spill] sm:$0xff] }
 0x48a   : > { %20751 = vst [vmem:[#allocation65_spill] sm:$0xff] %v15799_v27  ;;  %20760 = vst [vmem:[#allocation57_spill] sm:$0xff] %v15825_v60  ;;  %v4251_v14 = vrot.slane %v4243_v20, %v13488_v19  ;;  %v4267_v4 = vrot.slane %v4259_v3, %v13488_v19  ;;  %v4332_v60 = vcombine.high %v20765_v7, %v20764_v57  ;;  %v20768_v5 = vld [vmem:[#allocation87_spill] sm:$0xff]  ;;  %v15850_v20 = vsel %vm20240_vm11, %v2135_v17, -inf  ;;  %v20771_v57 = vld [vmem:[#allocation89_spill] sm:$0xff] }
 0x48b   : > { %v6277_v18 = vsel %vm20240_vm11, %v20756_v1, -inf  ;;  %v6322_v40 = vsel %vm20240_vm11, %v20759_v36, -inf  ;;  %v15833_v34 = vsel %vm20240_vm11, %v20763_v46, -inf  ;;  %v4274_v1 = vrot.slane %v4260_v61, %v13488_v19  ;;  %v20767_v46 = vld [vmem:[#allocation92_spill] sm:$0xff]  ;;  %v20770_v61 = vld [vmem:[#allocation75_spill] sm:$0xff] }
 0x48c   : > { %6278 = vmax.xlane.f32.xlu0 %v6277_v18  ;;  %6323 = vmax.xlane.f32.xlu1 %v6322_v40  ;;  %v4292_v36 = vcombine.high %v4226_v25, %v4242_v9  ;;  %v20766_v18 = vcombine.high %v20761_v41, %v20762_v22  ;;  %v4299_v35 = vrot.slane %v4291_v12, %v13488_v19  ;;  %v15853_v3 = vsel %vm20240_vm11, %v2136_v11, -inf  ;;  %v20769_v25 = vld [vmem:[#allocation82_spill] sm:$0xff]  ;;  %v20772_v41 = vld [vmem:[#allocation88_spill] sm:$0xff]  ;;  %v20774_v33 = vld [vmem:[#allocation211_spill] sm:$0xff] }
 0x48d   : > { %v4364_v27 = vcombine.high %v20768_v5, %v20767_v46  ;;  %v4307_v9 = vcombine.low %v4251_v14, %v4283_v49  ;;  %v4316_v7 = vcombine.high %v20770_v61, %v20769_v25  ;;  %v2251_v22 = vcombine.low %v20772_v41, %v20771_v57  ;;  %v20775_v5 = vld [vmem:[#allocation212_spill] sm:$0xff] }
 0x48e   : > { %v15844_v40 = vsel %vm20240_vm11, %v20766_v18, -inf  ;;  %v20773_v18 = vcombine.high %v14642_v55, %v14645_v38  ;;  %v20776_v46 = vcombine.low %v20774_v33, %v20775_v5  ;;  %v20778_v11 = vld [vmem:[#allocation80_spill] sm:$0xff]  ;;  %v4348_v59 = vcombine.high %v20780_v0, %v20779_v45 }
 0x48f   : > { %v2219_v29 = vcombine.low %v20778_v11, %v20777_v44  ;;  %v20781_v25 = vld [vmem:[#allocation76_spill] sm:$0xff]  ;;  %v4308_v38 = vcombine.high %v4251_v14, %v4283_v49  ;;  %v4346_v41 = vrot.slane %v4332_v60, %v13427_v47  ;;  %v4311_v44 = vcombine.low %v4267_v4, %v4299_v35 }
 0x490   : > { %v6283_v12 = vsel %vm20240_vm11, %v20773_v18, -inf  ;;  %v6328_v17 = vsel %vm20240_vm11, %v20776_v46, -inf  ;;  %v20782_v61 = vld [vmem:[#allocation72_spill] sm:$0xff]  ;;  %v4306_v0 = vrot.slane %v4292_v36, %v13488_v19  ;;  %v4378_v45 = vrot.slane %v4364_v27, %v13427_v47 }
 0x491   : > { %6284 = vmax.xlane.f32.xlu0 %v6283_v12  ;;  %6329 = vmax.xlane.f32.xlu1 %v6328_v17  ;;  %v20783_v57 = vcombine.low %v20781_v25, %v20782_v61  ;;  %v20785_v18 = vcombine.high %v20781_v25, %v20782_v61  ;;  %v20787_v12 = vld [vmem:[#allocation96_spill] sm:$0xff]  ;;  %v20788_v17 = vld [vmem:[#allocation95_spill] sm:$0xff]  ;;  %v4312_v49 = vcombine.high %v4267_v4, %v4299_v35 }
 0x492   : > { %v4411_v11 = vcombine.low %v20788_v17, %v20787_v12  ;;  %v4330_v60 = vrot.slane %v4316_v7, %v13427_v47  ;;  %v20790_v14 = vcombine.high %v14904_v51, %v14911_v2  ;;  %v20791_v61 = vld [vmem:[#allocation255_spill] sm:$0xff]  ;;  %v2259_v27 = vrot.slane %v2251_v22, %v13488_v19  ;;  %v20795_v12 = vld [vmem:[#allocation84_spill] sm:$0xff] }
 0x493   : > { %v15875_v55 = vsel %vm20240_vm11, %v20783_v57, -inf  ;;  %v15882_v46 = vsel %vm20240_vm11, %v20785_v18, -inf  ;;  %v15889_v57 = vsel %vm20240_vm11, %v4307_v9, -inf  ;;  %v20792_v18 = vld [vmem:[#allocation256_spill] sm:$0xff]  ;;  %v4379_v17 = vcombine.low %v20795_v12, %v20794_v21  ;;  %v20797_v22 = vld [vmem:[#allocation79_spill] sm:$0xff] }
 0x494   : > { %20784 = vst [vmem:[#allocation55_spill] sm:$0xff] %v15875_v55  ;;  %20786 = vst [vmem:[#allocation74_spill] sm:$0xff] %v15882_v46  ;;  %v6289_v25 = vsel %vm20240_vm11, %v20790_v14, -inf  ;;  %v20793_v62 = vcombine.low %v20791_v61, %v20792_v18  ;;  %v4362_v9 = vrot.slane %v4348_v59, %v13427_v47  ;;  %v2227_v35 = vrot.slane %v2219_v29, %v13488_v19  ;;  %v20798_v46 = vld [vmem:[#allocation77_spill] sm:$0xff]  ;;  %v20969_v55 = vld [vmem:[#allocation199_spill] sm:$0xff] }
 0x495   : > { %20789 = vst [vmem:[#allocation73_spill] sm:$0xff] %v15889_v57  ;;  %6290 = vmax.xlane.f32.xlu0 %v6289_v25  ;;  %v15906_v51 = vsel %vm20240_vm11, %v4308_v38, -inf  ;;  %v4395_v2 = vcombine.low %v4330_v60, %v4346_v41  ;;  %v4396_v4 = vcombine.high %v4330_v60, %v4346_v41  ;;  %v4313_v7 = vcombine.low %v4274_v1, %v4306_v0  ;;  %v20803_v41 = vld [vmem:[#allocation137_spill] sm:$0xff]  ;;  %v20804_v60 = vld [vmem:[#allocation135_spill] sm:$0xff] }
 0x496   : > { %v6334_v36 = vsel %vm20240_vm11, %v20793_v62, -inf  ;;  %20796 = vst [vmem:[#allocation63_spill] sm:$0xff] %v15906_v51  ;;  %v4314_v14 = vcombine.high %v4274_v1, %v4306_v0  ;;  %v4427_v57 = vcombine.low %v4362_v9, %v4378_v45  ;;  %v4419_v62 = vrot.slane %v4411_v11, %v13488_v19 }
 0x497   : > { %6335 = vmax.xlane.f32.xlu1 %v6334_v36  ;;  %v20799_v56 = vcombine.low %v20797_v22, %v20798_v46  ;;  %v15916_v59 = vsel %vm20240_vm11, %v4311_v44, -inf  ;;  %v20802_v29 = vcombine.high %v14174_v23, %v14177_v13  ;;  %v20805_v1 = vcombine.low %v20803_v41, %v20804_v60 }
 0x498   : > { %20801 = vst [vmem:[#allocation93_spill] sm:$0xff] %v15916_v59  ;;  %v2271_v11 = vcombine.low %v2227_v35, %v2259_v27  ;;  %v15927_v25 = vsel %vm20240_vm11, %v4312_v49, -inf  ;;  %v4428_v36 = vcombine.high %v4362_v9, %v4378_v45  ;;  %v4387_v44 = vrot.slane %v4379_v17, %v13488_v19  ;;  %v20811_v49 = vld [vmem:[#allocation105_spill] sm:$0xff] }
 0x499   : > { %v15913_v21 = vsel %vm20240_vm11, %v20799_v56, -inf  ;;  %v6295_v38 = vsel %vm20240_vm11, %v20802_v29, -inf  ;;  %v6340_v0 = vsel %vm20240_vm11, %v20805_v1, -inf  ;;  %20806 = vst [vmem:[#allocation91_spill] sm:$0xff] %v15927_v25  ;;  %v2272_v56 = vcombine.high %v2227_v35, %v2259_v27  ;;  %v20812_v27 = vld [vmem:[#allocation100_spill] sm:$0xff]  ;;  %v20826_v25 = vld [vmem:[#allocation98_spill] sm:$0xff] }
 0x49a   : > { %20800 = vst [vmem:[#allocation62_spill] sm:$0xff] %v15913_v21  ;;  %6296 = vmax.xlane.f32.xlu0 %v6295_v38  ;;  %v20807_v23 = vcombine.high %v20797_v22, %v20798_v46  ;;  %v4403_v12 = vrot.slane %v4395_v2, %v13488_v19  ;;  %v4410_v29 = vrot.slane %v4396_v4, %v13488_v19  ;;  %v15939_v1 = vsel %vm20240_vm11, %v4313_v7, -inf  ;;  %v20814_v22 = vld [vmem:[#allocation114_spill] sm:$0xff]  ;;  %v20815_v4 = vld [vmem:[#allocation109_spill] sm:$0xff] }
 0x49b   : > { %6341 = vmax.xlane.f32.xlu1 %v6340_v0  ;;  %20809 = vst [vmem:[#allocation69_spill] sm:$0xff] %v15939_v1  ;;  %v15942_v45 = vsel %vm20240_vm11, %v4314_v14, -inf  ;;  %v4468_v9 = vcombine.high %v20812_v27, %v20811_v49  ;;  %v20813_v17 = vcombine.high %v20757_v39, %v20758_v52  ;;  %v4443_v35 = vcombine.low %v4387_v44, %v4419_v62  ;;  %v20817_v0 = vld [vmem:[#allocation181_spill] sm:$0xff]  ;;  %v20820_v52 = vld [vmem:[#allocation104_spill] sm:$0xff] }
 0x49c   : > { %v15934_v13 = vsel %vm20240_vm11, %v20807_v23, -inf  ;;  %20810 = vst [vmem:[#allocation83_spill] sm:$0xff] %v15942_v45  ;;  %v4435_v2 = vrot.slane %v4427_v57, %v13488_v19  ;;  %v4500_v38 = vcombine.high %v20815_v4, %v20814_v22  ;;  %v20816_v7 = vcombine.high %v14981_v16, %v14973_v43  ;;  %v20818_v23 = vld [vmem:[#allocation179_spill] sm:$0xff]  ;;  %v20823_v4 = vld [vmem:[#allocation110_spill] sm:$0xff]  ;;  %v20824_v1 = vld [vmem:[#allocation112_spill] sm:$0xff] }
 0x49d   : > { %20808 = vst [vmem:[#allocation71_spill] sm:$0xff] %v15934_v13  ;;  %v15950_v46 = vsel %vm20240_vm11, %v20813_v17, -inf  ;;  %v20819_v49 = vcombine.low %v20817_v0, %v20818_v23  ;;  %v15964_v39 = vsel %vm20240_vm11, %v2271_v11, -inf  ;;  %v20821_v17 = vld [vmem:[#allocation97_spill] sm:$0xff]  ;;  %v15969_v57 = vsel %vm20240_vm11, %v2272_v56, -inf  ;;  %v20822_v43 = vld [vmem:[#allocation111_spill] sm:$0xff] }
 0x49e   : > { %v6301_v14 = vsel %vm20240_vm11, %v20816_v7, -inf  ;;  %v4452_v45 = vcombine.high %v20821_v17, %v20820_v52  ;;  %v4444_v22 = vcombine.high %v4387_v44, %v4419_v62  ;;  %v4442_v16 = vrot.slane %v4428_v36, %v13488_v19  ;;  %v20825_v13 = vld [vmem:[#allocation108_spill] sm:$0xff]  ;;  %v20827_v11 = vld [vmem:[#allocation94_spill] sm:$0xff]  ;;  %v20831_v62 = vld [vmem:[#allocation103_spill] sm:$0xff] }
 0x49f   : > { %v6346_v27 = vsel %vm20240_vm11, %v20819_v49, -inf  ;;  %6302 = vmax.xlane.f32.xlu0 %v6301_v14  ;;  %v2387_v7 = vcombine.low %v20823_v4, %v20822_v43  ;;  %v4484_v49 = vcombine.high %v20825_v13, %v20824_v1  ;;  %v20828_v59 = vcombine.low %v20826_v25, %v20827_v11  ;;  %v20832_v36 = vld [vmem:[#allocation102_spill] sm:$0xff] }
 0x4a0   : > { %6347 = vmax.xlane.f32.xlu1 %v6346_v27  ;;  %v20829_v14 = vcombine.high %v20826_v25, %v20827_v11  ;;  %v2355_v44 = vcombine.low %v20832_v36, %v20831_v62  ;;  %v4482_v27 = vrot.slane %v4468_v9, %v13427_v47  ;;  %v15992_v52 = vsel %vm20240_vm11, %v4443_v35, -inf  ;;  %v20838_v11 = vld [vmem:[#allocation99_spill] sm:$0xff] }
 0x4a1   : > { %v15980_v21 = vsel %vm20240_vm11, %v20828_v59, -inf  ;;  %20833 = vst [vmem:[#allocation92_spill] sm:$0xff] %v15992_v52  ;;  %v4447_v13 = vcombine.low %v4403_v12, %v4435_v2  ;;  %v4514_v1 = vrot.slane %v4500_v38, %v13427_v47  ;;  %v20834_v59 = vcombine.high %v15297_v63, %v15300_v10  ;;  %v20837_v38 = vld [vmem:[#allocation101_spill] sm:$0xff] }
 0x4a2   : > { %v15986_v56 = vsel %vm20240_vm11, %v20829_v14, -inf  ;;  %v20835_v25 = vcombine.low %v15117_v32, %v15120_v37  ;;  %v4036_v4 = vcombine.high %v15705_v15, %v15708_v48  ;;  %v4466_v9 = vrot.slane %v4452_v45, %v13427_v47  ;;  %v20841_v48 = vld [vmem:[#allocation107_spill] sm:$0xff]  ;;  %v20842_v45 = vld [vmem:[#allocation106_spill] sm:$0xff] }
 0x4a3   : > { %20830 = vst [vmem:[#allocation78_spill] sm:$0xff] %v15986_v56  ;;  %v6307_v17 = vsel %vm20240_vm11, %v20834_v59, -inf  ;;  %v16007_v35 = vsel %vm20240_vm11, %v4444_v22, -inf  ;;  %v20839_v63 = vcombine.low %v20837_v38, %v20838_v11  ;;  %v4450_v14 = vcombine.high %v4410_v29, %v4442_v16 }
 0x4a4   : > { %v6352_v43 = vsel %vm20240_vm11, %v20835_v25, -inf  ;;  %6308 = vmax.xlane.f32.xlu0 %v6307_v17  ;;  %20836 = vst [vmem:[#allocation87_spill] sm:$0xff] %v16007_v35  ;;  %v4498_v62 = vrot.slane %v4484_v49, %v13427_v47  ;;  %v2395_v36 = vrot.slane %v2387_v7, %v13488_v19  ;;  %v4448_v59 = vcombine.high %v4403_v12, %v4435_v2  ;;  %v20843_v25 = vld [vmem:[#allocation117_spill] sm:$0xff] }
 0x4a5   : > { %6353 = vmax.xlane.f32.xlu1 %v6352_v43  ;;  %v16013_v10 = vsel %vm20240_vm11, %v20839_v63, -inf  ;;  %v4449_v15 = vcombine.low %v4410_v29, %v4442_v16  ;;  %v4515_v17 = vcombine.low %v20842_v45, %v20841_v48  ;;  %v20844_v43 = vld [vmem:[#allocation116_spill] sm:$0xff]  ;;  %v2363_v51 = vrot.slane %v2355_v44, %v13488_v19  ;;  %v20848_v16 = vld [vmem:[#allocation126_spill] sm:$0xff] }
 0x4a6   : > { %20840 = vst [vmem:[#allocation82_spill] sm:$0xff] %v16013_v10  ;;  %v4547_v22 = vcombine.low %v20844_v43, %v20843_v25  ;;  %v20845_v35 = vcombine.high %v20837_v38, %v20838_v11  ;;  %v4531_v10 = vcombine.low %v4466_v9, %v4482_v27  ;;  %v4563_v49 = vcombine.low %v4498_v62, %v4514_v1  ;;  %v20849_v48 = vld [vmem:[#allocation120_spill] sm:$0xff]  ;;  %v20855_v43 = vld [vmem:[#allocation37_spill] sm:$0xff] }
 0x4a7   : > { %v6313_v7 = vsel %vm20240_vm11, %v4036_v4, -inf  ;;  %v20847_v12 = vcombine.low %v15432_v26, %v15435_v6  ;;  %v4532_v2 = vcombine.high %v4466_v9, %v4482_v27  ;;  %v5148_v45 = vcombine.high %v20849_v48, %v20848_v16  ;;  %v20854_v9 = vld [vmem:[#allocation124_spill] sm:$0xff]  ;;  %v20857_v16 = vld [vmem:[#allocation122_spill] sm:$0xff] }
 0x4a8   : > { %v16026_v63 = vsel %vm20240_vm11, %v20845_v35, -inf  ;;  %6314 = vmax.xlane.f32.xlu0 %v6313_v7  ;;  %v16036_v44 = vsel %vm20240_vm11, %v4447_v13, -inf  ;;  %v16039_v35 = vsel %vm20240_vm11, %v4450_v14, -inf  ;;  %v2407_v38 = vcombine.low %v2363_v51, %v2395_v36  ;;  %v20858_v48 = vld [vmem:[#allocation136_spill] sm:$0xff] }
 0x4a9   : > { %20846 = vst [vmem:[#allocation75_spill] sm:$0xff] %v16026_v63  ;;  %v6358_v29 = vsel %vm20240_vm11, %v20847_v12, -inf  ;;  %20850 = vst [vmem:[#allocation89_spill] sm:$0xff] %v16036_v44  ;;  %v2408_v11 = vcombine.high %v2363_v51, %v2395_v36  ;;  %v16042_v4 = vsel %vm20240_vm11, %v4448_v59, -inf  ;;  %v16045_v25 = vsel %vm20240_vm11, %v4449_v15, -inf }
 0x4aa   : > { %6359 = vmax.xlane.f32.xlu1 %v6358_v29  ;;  %20851 = vst [vmem:[#allocation88_spill] sm:$0xff] %v16039_v35  ;;  %20852 = vst [vmem:[#allocation211_spill] sm:$0xff] %v16042_v4  ;;  %v4564_v27 = vcombine.high %v4498_v62, %v4514_v1  ;;  %v5132_v12 = vcombine.high %v20855_v43, %v20854_v9  ;;  %v4523_v7 = vrot.slane %v4515_v17, %v13488_v19  ;;  %v20856_v29 = vld [vmem:[#allocation123_spill] sm:$0xff]  ;;  %v20861_v62 = vld [vmem:[#allocation113_spill] sm:$0xff] }
 0x4ab   : > { %20853 = vst [vmem:[#allocation212_spill] sm:$0xff] %v16045_v25  ;;  %v4555_v13 = vrot.slane %v4547_v22, %v13488_v19  ;;  %v3035_v14 = vcombine.low %v20857_v16, %v20856_v29  ;;  %v20859_v35 = vld [vmem:[#allocation131_spill] sm:$0xff]  ;;  %v4539_v36 = vrot.slane %v4531_v10, %v13488_v19  ;;  %v4571_v59 = vrot.slane %v4563_v49, %v13488_v19  ;;  %v20864_v49 = vld [vmem:[#allocation133_spill] sm:$0xff]  ;;  %v20865_v43 = vld [vmem:[#allocation132_spill] sm:$0xff] }
 0x4ac   : > { %v5180_v51 = vcombine.high %v20859_v35, %v20858_v48  ;;  %v5162_v15 = vrot.slane %v5148_v45, %v13427_v47  ;;  %6320 = vmax.xlane.f32.xlu0 %v15833_v34  ;;  %v20860_v1 = vld [vmem:[#allocation115_spill] sm:$0xff]  ;;  %v4546_v10 = vrot.slane %v4532_v2, %v13488_v19  ;;  %v3067_v45 = vcombine.low %v20865_v43, %v20864_v49  ;;  %v20866_v29 = vld [vmem:[#allocation134_spill] sm:$0xff]  ;;  %v20868_v49 = vld [vmem:[#allocation121_spill] sm:$0xff] }
 0x4ad   : > { %v20862_v17 = vcombine.low %v20860_v1, %v20861_v62  ;;  %v20863_v9 = vcombine.high %v20860_v1, %v20861_v62  ;;  %v20867_v34 = vld [vmem:[#allocation130_spill] sm:$0xff]  ;;  %v16079_v48 = vsel %vm20240_vm11, %v2408_v11, -inf  ;;  %v4579_v1 = vcombine.low %v4523_v7, %v4555_v13  ;;  %v20873_v11 = vld [vmem:[#allocation128_spill] sm:$0xff] }
 0x4ae   : > { %6365 = vmax.xlane.f32.xlu1 %v15644_v42  ;;  %v5164_v16 = vcombine.high %v20867_v34, %v20866_v29  ;;  %v16076_v42 = vsel %vm20240_vm11, %v2407_v38, -inf  ;;  %v4580_v62 = vcombine.high %v4523_v7, %v4555_v13  ;;  %v5194_v2 = vrot.slane %v5180_v51, %v13427_v47  ;;  %v20869_v43 = vld [vmem:[#allocation118_spill] sm:$0xff]  ;;  %v20872_v34 = vld [vmem:[#allocation129_spill] sm:$0xff]  ;;  %v20877_v51 = vld [vmem:[#allocation139_spill] sm:$0xff] }
 0x4af   : > { %v6325_v22 = vsel %vm20240_vm11, %v20862_v17, -inf  ;;  %v16068_v35 = vsel %vm20240_vm11, %v20863_v9, -inf  ;;  %v5146_v17 = vrot.slane %v5132_v12, %v13427_v47  ;;  %v4578_v9 = vrot.slane %v4564_v27, %v13488_v19 }
 0x4b0   : > { %v3043_v25 = vrot.slane %v3035_v14, %v13488_v19  ;;  %v20870_v4 = vcombine.low %v20868_v49, %v20869_v43  ;;  %v4583_v38 = vcombine.low %v4539_v36, %v4571_v59  ;;  %v5195_v44 = vcombine.low %v20873_v11, %v20872_v34  ;;  %6326 = vmax.xlane.f32.xlu0 %v6325_v22  ;;  %v20880_v22 = vld [vmem:[#allocation127_spill] sm:$0xff] }
 0x4b1   : > { %v5211_v63 = vcombine.low %v5146_v17, %v5162_v15  ;;  %v20874_v27 = vcombine.high %v20868_v49, %v20869_v43  ;;  %v4584_v7 = vcombine.high %v4539_v36, %v4571_v59  ;;  %v5212_v13 = vcombine.high %v5146_v17, %v5162_v15  ;;  %v20881_v49 = vld [vmem:[#allocation125_spill] sm:$0xff] }
 0x4b2   : > { %v16089_v29 = vsel %vm20240_vm11, %v20870_v4, -inf  ;;  %6371 = vmax.xlane.f32.xlu1 %v15950_v46  ;;  %v5178_v14 = vrot.slane %v5164_v16, %v13427_v47  ;;  %v20876_v4 = vld [vmem:[#allocation140_spill] sm:$0xff]  ;;  %v3075_v24 = vrot.slane %v3067_v45, %v13488_v19  ;;  %v16105_v34 = vsel %vm20240_vm11, %v4579_v1, -inf  ;;  %v20884_v15 = vld [vmem:[#allocation233_spill] sm:$0xff]  ;;  %v20885_v16 = vld [vmem:[#allocation234_spill] sm:$0xff] }
 0x4b3   : > { %20871 = vst [vmem:[#allocation81_spill] sm:$0xff] %v16089_v29  ;;  %v16098_v12 = vsel %vm20240_vm11, %v20874_v27, -inf  ;;  %v5227_v52 = vcombine.low %v20877_v51, %v20876_v4  ;;  %20878 = vst [vmem:[#allocation90_spill] sm:$0xff] %v16105_v34  ;;  %v16108_v46 = vsel %vm20240_vm11, %v4580_v62, -inf  ;;  %v20882_v43 = vcombine.low %v20880_v22, %v20881_v49  ;;  %v20920_v34 = vld [vmem:[#allocation161_spill] sm:$0xff] }
 0x4b4   : > { %20875 = vst [vmem:[#allocation80_spill] sm:$0xff] %v16098_v12  ;;  %20879 = vst [vmem:[#allocation86_spill] sm:$0xff] %v16108_v46  ;;  %v4585_v36 = vcombine.low %v4546_v10, %v4578_v9  ;;  %v5243_v59 = vcombine.low %v5178_v14, %v5194_v2  ;;  %v20886_v17 = vcombine.low %v20884_v15, %v20885_v16  ;;  %v20919_v46 = vld [vmem:[#allocation162_spill] sm:$0xff] }
 0x4b5   : > { %v16114_v11 = vsel %vm20240_vm11, %v20882_v43, -inf  ;;  %v20887_v45 = vcombine.high %v20774_v33, %v20775_v5  ;;  %v20888_v62 = vcombine.high %v20880_v22, %v20881_v49  ;;  %v5203_v51 = vrot.slane %v5195_v44, %v13488_v19 }
 0x4b6   : > { %20883 = vst [vmem:[#allocation76_spill] sm:$0xff] %v16114_v11  ;;  %v6331_v27 = vsel %vm20240_vm11, %v20886_v17, -inf  ;;  %v16132_v43 = vsel %vm20240_vm11, %v4583_v38, -inf  ;;  %v16135_v17 = vsel %vm20240_vm11, %v4584_v7, -inf  ;;  %v4586_v11 = vcombine.high %v4546_v10, %v4578_v9  ;;  %v20895_v38 = vld [vmem:[#allocation149_spill] sm:$0xff] }
 0x4b7   : > { %v6376_v1 = vsel %vm20240_vm11, %v20887_v45, -inf  ;;  %v16128_v4 = vsel %vm20240_vm11, %v20888_v62, -inf  ;;  %6332 = vmax.xlane.f32.xlu0 %v6331_v27  ;;  %20890 = vst [vmem:[#allocation96_spill] sm:$0xff] %v16132_v43  ;;  %20891 = vst [vmem:[#allocation95_spill] sm:$0xff] %v16135_v17  ;;  %v3087_v33 = vcombine.low %v3043_v25, %v3075_v24  ;;  %v5235_v5 = vrot.slane %v5227_v52, %v13488_v19  ;;  %v20892_v62 = vld [vmem:[#allocation158_spill] sm:$0xff]  ;;  %v20893_v27 = vld [vmem:[#allocation153_spill] sm:$0xff] }
 0x4b8   : > { %20889 = vst [vmem:[#allocation72_spill] sm:$0xff] %v16128_v4  ;;  %6377 = vmax.xlane.f32.xlu1 %v6376_v1  ;;  %v5219_v45 = vrot.slane %v5211_v63, %v13488_v19  ;;  %v5226_v22 = vrot.slane %v5212_v13, %v13488_v19  ;;  %v5244_v49 = vcombine.high %v5178_v14, %v5194_v2  ;;  %v16143_v44 = vsel %vm20240_vm11, %v4585_v36, -inf  ;;  %v20896_v43 = vld [vmem:[#allocation144_spill] sm:$0xff]  ;;  %v20897_v17 = vld [vmem:[#allocation278_spill] sm:$0xff]  ;;  %v20898_v10 = vld [vmem:[#allocation277_spill] sm:$0xff] }
 0x4b9   : > { %v5316_v1 = vcombine.high %v20893_v27, %v20892_v62  ;;  %v3088_v4 = vcombine.high %v3043_v25, %v3075_v24  ;;  %20894 = vst [vmem:[#allocation255_spill] sm:$0xff] %v16143_v44  ;;  %v5284_v7 = vcombine.high %v20896_v43, %v20895_v38  ;;  %v20899_v9 = vcombine.low %v20897_v17, %v20898_v10  ;;  %v20901_v14 = vld [vmem:[#allocation155_spill] sm:$0xff]  ;;  %v20902_v24 = vld [vmem:[#allocation154_spill] sm:$0xff]  ;;  %v20903_v36 = vld [vmem:[#allocation156_spill] sm:$0xff] }
 0x4ba   : > { %v20900_v63 = vcombine.high %v20791_v61, %v20792_v18  ;;  %v5251_v13 = vrot.slane %v5243_v59, %v13488_v19  ;;  %v3203_v25 = vcombine.low %v20902_v24, %v20901_v14  ;;  %v20904_v62 = vld [vmem:[#allocation152_spill] sm:$0xff]  ;;  %v20905_v43 = vcombine.high %v20803_v41, %v20804_v60  ;;  %v20908_v18 = vld [vmem:[#allocation141_spill] sm:$0xff]  ;;  %v20909_v44 = vld [vmem:[#allocation147_spill] sm:$0xff] }
 0x4bb   : > { %v6337_v52 = vsel %vm20240_vm11, %v20899_v9, -inf  ;;  %v5300_v27 = vcombine.high %v20904_v62, %v20903_v36  ;;  %v16165_v9 = vsel %vm20240_vm11, %v4586_v11, -inf  ;;  %v20907_v61 = vld [vmem:[#allocation148_spill] sm:$0xff]  ;;  %v16170_v59 = vsel %vm20240_vm11, %v3087_v33, -inf  ;;  %v20910_v36 = vld [vmem:[#allocation146_spill] sm:$0xff]  ;;  %v20911_v62 = vld [vmem:[#allocation159_spill] sm:$0xff] }
 0x4bc   : > { %v6382_v2 = vsel %vm20240_vm11, %v20900_v63, -inf  ;;  %6338 = vmax.xlane.f32.xlu0 %v6337_v52  ;;  %v6388_v38 = vsel %vm20240_vm11, %v20905_v43, -inf  ;;  %20906 = vst [vmem:[#allocation256_spill] sm:$0xff] %v16165_v9  ;;  %v5268_v63 = vcombine.high %v20908_v18, %v20907_v61  ;;  %v5259_v14 = vcombine.low %v5203_v51, %v5235_v5  ;;  %v20912_v43 = vld [vmem:[#allocation157_spill] sm:$0xff]  ;;  %v20914_v18 = vld [vmem:[#allocation142_spill] sm:$0xff] }
 0x4bd   : > { %6383 = vmax.xlane.f32.xlu1 %v6382_v2  ;;  %v5260_v24 = vcombine.high %v5203_v51, %v5235_v5  ;;  %v3171_v52 = vcombine.low %v20910_v36, %v20909_v44  ;;  %v5330_v2 = vrot.slane %v5316_v1, %v13427_v47  ;;  %v16176_v41 = vsel %vm20240_vm11, %v3088_v4, -inf  ;;  %v20915_v9 = vld [vmem:[#allocation138_spill] sm:$0xff] }
 0x4be   : > { %v5258_v60 = vrot.slane %v5244_v49, %v13488_v19  ;;  %v5298_v11 = vrot.slane %v5284_v7, %v13427_v47  ;;  %v20913_v61 = vcombine.low %v20911_v62, %v20912_v43  ;;  %v20916_v51 = vcombine.low %v20914_v18, %v20915_v9 }
 0x4bf   : > { %v5263_v44 = vcombine.low %v5219_v45, %v5251_v13  ;;  %v5314_v1 = vrot.slane %v5300_v27, %v13427_v47  ;;  %v3211_v4 = vrot.slane %v3203_v25, %v13488_v19  ;;  %v20917_v49 = vcombine.high %v20914_v18, %v20915_v9  ;;  %v20923_v18 = vld [vmem:[#allocation151_spill] sm:$0xff] }
 0x4c0   : > { %v6343_v33 = vsel %vm20240_vm11, %v20913_v61, -inf  ;;  %v16188_v5 = vsel %vm20240_vm11, %v20916_v51, -inf  ;;  %v5264_v36 = vcombine.high %v5219_v45, %v5251_v13  ;;  %v5282_v61 = vrot.slane %v5268_v63, %v13427_v47  ;;  %v20925_v13 = vld [vmem:[#allocation289_spill] sm:$0xff]  ;;  %v20926_v63 = vld [vmem:[#allocation287_spill] sm:$0xff] }
 0x4c1   : > { %6344 = vmax.xlane.f32.xlu0 %v6343_v33  ;;  %6389 = vmax.xlane.f32.xlu1 %v6388_v38  ;;  %v16196_v7 = vsel %vm20240_vm11, %v20917_v49, -inf  ;;  %v5363_v51 = vcombine.low %v20920_v34, %v20919_v46  ;;  %v16202_v12 = vsel %vm20240_vm11, %v5259_v14, -inf  ;;  %v16205_v27 = vsel %vm20240_vm11, %v5260_v24, -inf  ;;  %v20924_v49 = vld [vmem:[#allocation150_spill] sm:$0xff] }
 0x4c2   : > { %20918 = vst [vmem:[#allocation85_spill] sm:$0xff] %v16196_v7  ;;  %20921 = vst [vmem:[#allocation84_spill] sm:$0xff] %v16202_v12  ;;  %v5379_v38 = vcombine.low %v5314_v1, %v5330_v2  ;;  %v3179_v25 = vrot.slane %v3171_v52, %v13488_v19  ;;  %v5265_v33 = vcombine.low %v5226_v22, %v5258_v60 }
 0x4c3   : > { %20922 = vst [vmem:[#allocation79_spill] sm:$0xff] %v16205_v27  ;;  %v5266_v9 = vcombine.high %v5226_v22, %v5258_v60  ;;  %v5331_v7 = vcombine.low %v20924_v49, %v20923_v18  ;;  %v5347_v45 = vcombine.low %v5282_v61, %v5298_v11  ;;  %v20927_v56 = vcombine.low %v20925_v13, %v20926_v63  ;;  %v20929_v22 = vld [vmem:[#allocation145_spill] sm:$0xff]  ;;  %v20930_v60 = vld [vmem:[#allocation143_spill] sm:$0xff] }
 0x4c4   : > { %v20928_v46 = vcombine.high %v20817_v0, %v20818_v23  ;;  %v5348_v24 = vcombine.high %v5282_v61, %v5298_v11  ;;  %v5380_v27 = vcombine.high %v5314_v1, %v5330_v2  ;;  %v3223_v52 = vcombine.low %v3179_v25, %v3211_v4  ;;  %v20940_v61 = vld [vmem:[#allocation330_spill] sm:$0xff] }
 0x4c5   : > { %v6349_v34 = vsel %vm20240_vm11, %v20927_v56, -inf  ;;  %v20931_v12 = vcombine.low %v20929_v22, %v20930_v60  ;;  %v3224_v49 = vcombine.high %v3179_v25, %v3211_v4  ;;  %v5371_v29 = vrot.slane %v5363_v51, %v13488_v19  ;;  %v20939_v4 = vld [vmem:[#allocation331_spill] sm:$0xff] }
 0x4c6   : > { %v6394_v14 = vsel %vm20240_vm11, %v20928_v46, -inf  ;;  %6350 = vmax.xlane.f32.xlu0 %v6349_v34  ;;  %v20933_v56 = vcombine.high %v20929_v22, %v20930_v60  ;;  %v16232_v23 = vsel %vm20240_vm11, %v5263_v44, -inf  ;;  %v16235_v2 = vsel %vm20240_vm11, %v5264_v36, -inf  ;;  %v20945_v22 = vld [vmem:[#allocation175_spill] sm:$0xff]  ;;  %v20946_v60 = vld [vmem:[#allocation164_spill] sm:$0xff] }
 0x4c7   : > { %6395 = vmax.xlane.f32.xlu1 %v6394_v14  ;;  %v16222_v18 = vsel %vm20240_vm11, %v20931_v12, -inf  ;;  %20935 = vst [vmem:[#allocation135_spill] sm:$0xff] %v16232_v23  ;;  %20936 = vst [vmem:[#allocation105_spill] sm:$0xff] %v16235_v2  ;;  %v16238_v11 = vsel %vm20240_vm11, %v5265_v33, -inf  ;;  %v16241_v12 = vsel %vm20240_vm11, %v5266_v9, -inf  ;;  %v16244_v1 = vrot.slane %v5379_v38, %v13488_v19  ;;  %v20957_v2 = vld [vmem:[#allocation208_spill] sm:$0xff] }
 0x4c8   : > { %20932 = vst [vmem:[#allocation77_spill] sm:$0xff] %v16222_v18  ;;  %v16229_v0 = vsel %vm20240_vm11, %v20933_v56, -inf  ;;  %20937 = vst [vmem:[#allocation100_spill] sm:$0xff] %v16238_v11  ;;  %v20941_v51 = vcombine.low %v20939_v4, %v20940_v61  ;;  %v20942_v44 = vcombine.high %v15117_v32, %v15120_v37  ;;  %v5339_v34 = vrot.slane %v5331_v7, %v13488_v19  ;;  %v20944_v37 = vld [vmem:[#allocation180_spill] sm:$0xff]  ;;  %v20956_v11 = vld [vmem:[#allocation209_spill] sm:$0xff] }
 0x4c9   : > { %20934 = vst [vmem:[#allocation137_spill] sm:$0xff] %v16229_v0  ;;  %20938 = vst [vmem:[#allocation114_spill] sm:$0xff] %v16241_v12  ;;  %v5355_v33 = vrot.slane %v5347_v45, %v13488_v19  ;;  %v20943_v38 = vcombine.high %v20911_v62, %v20912_v43  ;;  %v16263_v46 = vsel %vm20240_vm11, %v3223_v52, -inf  ;;  %v5362_v14 = vrot.slane %v5348_v24, %v13488_v19  ;;  %v20947_v56 = vld [vmem:[#allocation160_spill] sm:$0xff]  ;;  %v20951_v52 = vld [vmem:[#allocation166_spill] sm:$0xff] }
 0x4ca   : > { %v6355_v25 = vsel %vm20240_vm11, %v20941_v51, -inf  ;;  %v6400_v36 = vsel %vm20240_vm11, %v20942_v44, -inf  ;;  %v5394_v32 = vrot.slane %v5380_v27, %v13488_v19  ;;  %v5452_v7 = vcombine.high %v20945_v22, %v20944_v37  ;;  %v20953_v24 = vld [vmem:[#allocation176_spill] sm:$0xff]  ;;  %v20954_v37 = vld [vmem:[#allocation178_spill] sm:$0xff]  ;;  %v20963_v18 = vld [vmem:[#allocation163_spill] sm:$0xff] }
 0x4cb   : > { %6356 = vmax.xlane.f32.xlu0 %v6355_v25  ;;  %6401 = vmax.xlane.f32.xlu1 %v6400_v36  ;;  %v16260_v9 = vsel %vm20240_vm11, %v20943_v38, -inf  ;;  %v16270_v45 = vsel %vm20240_vm11, %v3224_v49, -inf  ;;  %v20948_v51 = vcombine.low %v20946_v60, %v20947_v56  ;;  %v5395_v43 = vcombine.low %v5339_v34, %v5371_v29  ;;  %v20950_v25 = vld [vmem:[#allocation171_spill] sm:$0xff]  ;;  %v20952_v36 = vld [vmem:[#allocation177_spill] sm:$0xff]  ;;  %v20955_v22 = vld [vmem:[#allocation174_spill] sm:$0xff] }
 0x4cc   : > { %v5420_v44 = vcombine.high %v20951_v52, %v20950_v25  ;;  %v3339_v38 = vcombine.low %v20953_v24, %v20952_v36  ;;  %v5396_v27 = vcombine.high %v5339_v34, %v5371_v29  ;;  %v5399_v12 = vcombine.low %v5355_v33, %v16244_v1  ;;  %v20960_v36 = vld [vmem:[#allocation169_spill] sm:$0xff]  ;;  %v20961_v29 = vld [vmem:[#allocation168_spill] sm:$0xff]  ;;  %v20962_v24 = vld [vmem:[#allocation170_spill] sm:$0xff] }
 0x4cd   : > { %v16276_v62 = vsel %vm20240_vm11, %v20948_v51, -inf  ;;  %v5436_v49 = vcombine.high %v20955_v22, %v20954_v37  ;;  %v2523_v23 = vcombine.low %v20957_v2, %v20956_v11  ;;  %v20958_v51 = vcombine.low %v15714_v50, %v15717_v28 }
 0x4ce   : > { %20949 = vst [vmem:[#allocation109_spill] sm:$0xff] %v16276_v62  ;;  %v20959_v25 = vcombine.high %v15432_v26, %v15435_v6  ;;  %v3307_v34 = vcombine.low %v20961_v29, %v20960_v36  ;;  %v5404_v62 = vcombine.high %v20963_v18, %v20962_v24  ;;  %v20964_v2 = vcombine.high %v20946_v60, %v20947_v56  ;;  %v20966_v26 = vld [vmem:[#allocation184_spill] sm:$0xff]  ;;  %v20967_v6 = vld [vmem:[#allocation183_spill] sm:$0xff] }
 0x4cf   : > { %v6361_v0 = vsel %vm20240_vm11, %v20958_v51, -inf  ;;  %v5402_v37 = vcombine.high %v5362_v14, %v5394_v32  ;;  %v5466_v22 = vrot.slane %v5452_v7, %v13427_v47  ;;  %v5499_v51 = vcombine.low %v20967_v6, %v20966_v26  ;;  %v20975_v26 = vld [vmem:[#allocation252_spill] sm:$0xff] }
 0x4d0   : > { %v6406_v52 = vsel %vm20240_vm11, %v20959_v25, -inf  ;;  %6362 = vmax.xlane.f32.xlu0 %v6361_v0  ;;  %v16303_v11 = vsel %vm20240_vm11, %v20964_v2, -inf  ;;  %v20968_v25 = vld [vmem:[#allocation200_spill] sm:$0xff]  ;;  %v16311_v29 = vsel %vm20240_vm11, %v5395_v43, -inf  ;;  %v5434_v18 = vrot.slane %v5420_v44, %v13427_v47  ;;  %v20971_v0 = vld [vmem:[#allocation173_spill] sm:$0xff] }
 0x4d1   : > { %6407 = vmax.xlane.f32.xlu1 %v6406_v52  ;;  %20965 = vst [vmem:[#allocation181_spill] sm:$0xff] %v16303_v11  ;;  %v2491_v36 = vcombine.low %v20969_v55, %v20968_v25  ;;  %20970 = vst [vmem:[#allocation179_spill] sm:$0xff] %v16311_v29  ;;  %v20972_v52 = vld [vmem:[#allocation172_spill] sm:$0xff]  ;;  %v16317_v56 = vsel %vm20240_vm11, %v5396_v27, -inf  ;;  %v5400_v24 = vcombine.high %v5355_v33, %v16244_v1  ;;  %v20974_v2 = vld [vmem:[#allocation253_spill] sm:$0xff] }
 0x4d2   : > { %v5467_v60 = vcombine.low %v20972_v52, %v20971_v0  ;;  %20973 = vst [vmem:[#allocation104_spill] sm:$0xff] %v16317_v56  ;;  %v5450_v7 = vrot.slane %v5436_v49, %v13427_v47  ;;  %v2795_v6 = vcombine.low %v20975_v26, %v20974_v2  ;;  %v16324_v55 = vrot.slane %v2523_v23, %v13488_v19  ;;  %v20976_v25 = vld [vmem:[#allocation167_spill] sm:$0xff]  ;;  %v20977_v1 = vld [vmem:[#allocation165_spill] sm:$0xff]  ;;  %v20981_v2 = vld [vmem:[#allocation244_spill] sm:$0xff] }
 0x4d3   : > { %v3347_v43 = vrot.slane %v3339_v38, %v13488_v19  ;;  %v5418_v44 = vrot.slane %v5404_v62, %v13427_v47  ;;  %v3315_v27 = vrot.slane %v3307_v34, %v13488_v19  ;;  %v20978_v33 = vcombine.low %v20976_v25, %v20977_v1  ;;  %v20980_v23 = vld [vmem:[#allocation245_spill] sm:$0xff]  ;;  %v21070_v11 = vld [vmem:[#allocation274_spill] sm:$0xff] }
 0x4d4   : > { %6368 = vmax.xlane.f32.xlu0 %v15844_v40  ;;  %v5401_v0 = vcombine.low %v5362_v14, %v5394_v32  ;;  %v5515_v52 = vcombine.low %v5450_v7, %v5466_v22  ;;  %v2763_v26 = vcombine.low %v20981_v2, %v20980_v23  ;;  %v16340_v38 = vrot.slane %v2491_v36, %v13488_v19 }
 0x4d5   : > { %6413 = vmax.xlane.f32.xlu1 %v15647_v54  ;;  %v16335_v49 = vsel %vm20240_vm11, %v20978_v33, -inf  ;;  %v5507_v40 = vrot.slane %v5499_v51, %v13488_v19  ;;  %v5483_v62 = vcombine.low %v5418_v44, %v5434_v18  ;;  %v5484_v54 = vcombine.high %v5418_v44, %v5434_v18 }
 0x4d6   : > { %20979 = vst [vmem:[#allocation97_spill] sm:$0xff] %v16335_v49  ;;  %v20982_v34 = vcombine.high %v20976_v25, %v20977_v1  ;;  %v16350_v33 = vsel %vm20240_vm11, %v5399_v12, -inf  ;;  %v2543_v14 = vcombine.low %v16340_v38, %v16324_v55  ;;  %v16355_v32 = vrot.slane %v2795_v6, %v13488_v19  ;;  %v21014_v49 = vld [vmem:[#allocation210_spill] sm:$0xff] }
 0x4d7   : > { %20984 = vst [vmem:[#allocation110_spill] sm:$0xff] %v16350_v33  ;;  %v3359_v36 = vcombine.low %v3315_v27, %v3347_v43  ;;  %v5475_v51 = vrot.slane %v5467_v60, %v13488_v19  ;;  %v5516_v23 = vcombine.high %v5450_v7, %v5466_v22  ;;  %v3360_v18 = vcombine.high %v3315_v27, %v3347_v43  ;;  %v20988_v22 = vld [vmem:[#allocation193_spill] sm:$0xff] }
 0x4d8   : > { %v16347_v56 = vsel %vm20240_vm11, %v20982_v34, -inf  ;;  %6374 = vmax.xlane.f32.xlu0 %v16068_v35  ;;  %v16361_v44 = vsel %vm20240_vm11, %v5402_v37, -inf  ;;  %v16364_v12 = vsel %vm20240_vm11, %v5400_v24, -inf  ;;  %v16367_v25 = vrot.slane %v2763_v26, %v13488_v19  ;;  %v20989_v35 = vld [vmem:[#allocation188_spill] sm:$0xff]  ;;  %v16379_v24 = vpop.xlane.xlu1 %6224  ;;  %v20992_v34 = vld [vmem:[#allocation185_spill] sm:$0xff] }
 0x4d9   : > { %20983 = vst [vmem:[#allocation111_spill] sm:$0xff] %v16347_v56  ;;  %6419 = vmax.xlane.f32.xlu1 %v15964_v39  ;;  %20985 = vst [vmem:[#allocation112_spill] sm:$0xff] %v16361_v44  ;;  %v5531_v6 = vcombine.low %v5475_v51, %v5507_v40  ;;  %v5523_v1 = vrot.slane %v5515_v52, %v13488_v19  ;;  %v16371_v60 = vsel %vm20240_vm11, %v5401_v0, -inf  ;;  %v6424_v52 = vsel %vm20240_vm11, %v2543_v14, -inf }
 0x4da   : > { %20986 = vst [vmem:[#allocation108_spill] sm:$0xff] %v16364_v12  ;;  %20987 = vst [vmem:[#allocation98_spill] sm:$0xff] %v16371_v60  ;;  %v5556_v7 = vcombine.high %v20989_v35, %v20988_v22  ;;  %v5532_v39 = vcombine.high %v5475_v51, %v5507_v40  ;;  %v5491_v43 = vrot.slane %v5483_v62, %v13488_v19  ;;  %v6442_v26 = vsel %vm20240_vm11, %v3359_v36, -inf  ;;  %v20991_v40 = vld [vmem:[#allocation192_spill] sm:$0xff]  ;;  %v20993_v51 = vld [vmem:[#allocation186_spill] sm:$0xff] }
 0x4db   : > { %v16377_v37 = vrot.slane %v5484_v54, %v13488_v19  ;;  %v20990_v27 = vcombine.high %v20884_v15, %v20885_v16  ;;  %v2815_v0 = vcombine.low %v16367_v25, %v16355_v32  ;;  %v5540_v62 = vcombine.high %v20992_v34, %v20991_v40  ;;  %v20994_v22 = vld [vmem:[#allocation182_spill] sm:$0xff]  ;;  %v21002_v60 = vld [vmem:[#allocation213_spill] sm:$0xff]  ;;  %v21003_v12 = vld [vmem:[#allocation207_spill] sm:$0xff] }
 0x4dc   : > { %v16392_v54 = vsel %vm20240_vm11, %v3360_v18, -inf  ;;  %v20995_v15 = vcombine.low %v20993_v51, %v20994_v22  ;;  %v16401_v14 = vrot.slane %v5516_v23, %v13488_v19  ;;  %v20997_v36 = vcombine.high %v20993_v51, %v20994_v22  ;;  %v21000_v40 = vld [vmem:[#allocation202_spill] sm:$0xff]  ;;  %v21005_v51 = vld [vmem:[#allocation308_spill] sm:$0xff]  ;;  %v21006_v22 = vld [vmem:[#allocation307_spill] sm:$0xff]  ;;  %v16448_v29 = vpop.xlane.xlu1 %6233 }
 0x4dd   : > { %v6379_v2 = vsel %vm20240_vm11, %v20990_v27, -inf  ;;  %6425 = vmax.xlane.f32.xlu1 %v6424_v52  ;;  %v16410_v27 = vsel %vm20240_vm11, %v5531_v6, -inf  ;;  %v5535_v18 = vcombine.low %v5491_v43, %v5523_v1  ;;  %v5570_v52 = vrot.slane %v5556_v7, %v13427_v47  ;;  %v21001_v34 = vld [vmem:[#allocation198_spill] sm:$0xff]  ;;  %v21008_v7 = vld [vmem:[#allocation189_spill] sm:$0xff] }
 0x4de   : > { %6380 = vmax.xlane.f32.xlu0 %v6379_v2  ;;  %v16398_v16 = vsel %vm20240_vm11, %v20995_v15, -inf  ;;  %v16407_v35 = vsel %vm20240_vm11, %v20997_v36, -inf  ;;  %20999 = vst [vmem:[#allocation102_spill] sm:$0xff] %v16410_v27  ;;  %v5536_v2 = vcombine.high %v5491_v43, %v5523_v1  ;;  %v4604_v15 = vcombine.high %v21001_v34, %v21000_v40  ;;  %v21009_v43 = vld [vmem:[#allocation187_spill] sm:$0xff] }
 0x4df   : > { %20996 = vst [vmem:[#allocation94_spill] sm:$0xff] %v16398_v16  ;;  %20998 = vst [vmem:[#allocation103_spill] sm:$0xff] %v16407_v35  ;;  %v4636_v23 = vcombine.high %v21003_v12, %v21002_v60  ;;  %v16418_v44 = vsel %vm20240_vm11, %v5532_v39, -inf  ;;  %v3611_v36 = vcombine.low %v21006_v22, %v21005_v51  ;;  %v21007_v6 = vcombine.high %v20897_v17, %v20898_v10  ;;  %v21012_v60 = vld [vmem:[#allocation201_spill] sm:$0xff]  ;;  %v21013_v39 = vld [vmem:[#allocation119_spill] sm:$0xff] }
 0x4e0   : > { %21004 = vst [vmem:[#allocation101_spill] sm:$0xff] %v16418_v44  ;;  %v6430_v1 = vsel %vm20240_vm11, %v2815_v0, -inf  ;;  %v21010_v56 = vcombine.low %v21008_v7, %v21009_v43  ;;  %v5554_v12 = vrot.slane %v5540_v62, %v13427_v47  ;;  %v4588_v34 = vcombine.high %v21013_v39, %v21012_v60  ;;  %v21015_v51 = vld [vmem:[#allocation205_spill] sm:$0xff]  ;;  %v21018_v0 = vld [vmem:[#allocation191_spill] sm:$0xff]  ;;  %v21135_v16 = vld [vmem:[#allocation44_spill] sm:$0xff] }
 0x4e1   : > { %v6385_v33 = vsel %vm20240_vm11, %v21007_v6, -inf  ;;  %v4620_v22 = vcombine.high %v21015_v51, %v21014_v49  ;;  %6431 = vmax.xlane.f32.xlu1 %v6430_v1  ;;  %v21016_v17 = vcombine.high %v21008_v7, %v21009_v43  ;;  %v21019_v6 = vld [vmem:[#allocation190_spill] sm:$0xff]  ;;  %v21021_v44 = vld [vmem:[#allocation293_spill] sm:$0xff]  ;;  %v16451_v60 = vsel %vm20240_vm11, %v5535_v18, -inf  ;;  %v21028_v27 = vld [vmem:[#allocation203_spill] sm:$0xff] }
 0x4e2   : > { %v16431_v40 = vsel %vm20240_vm11, %v21010_v56, -inf  ;;  %6386 = vmax.xlane.f32.xlu0 %v6385_v33  ;;  %v3443_v56 = vcombine.low %v21019_v6, %v21018_v0  ;;  %21022 = vst [vmem:[#allocation106_spill] sm:$0xff] %v16451_v60  ;;  %v5538_v49 = vcombine.high %v16377_v37, %v16401_v14  ;;  %v21023_v33 = vld [vmem:[#allocation195_spill] sm:$0xff]  ;;  %v21024_v1 = vld [vmem:[#allocation194_spill] sm:$0xff]  ;;  %v5619_v43 = vcombine.low %v5554_v12, %v5570_v52  ;;  %v21026_v6 = vld [vmem:[#allocation349_spill] sm:$0xff] }
 0x4e3   : > { %21011 = vst [vmem:[#allocation99_spill] sm:$0xff] %v16431_v40  ;;  %v16442_v10 = vsel %vm20240_vm11, %v21016_v17, -inf  ;;  %v21020_v40 = vld [vmem:[#allocation294_spill] sm:$0xff]  ;;  %v5603_v7 = vcombine.low %v21024_v1, %v21023_v33  ;;  %v4618_v39 = vrot.slane %v4604_v15, %v13427_v47  ;;  %v4650_v51 = vrot.slane %v4636_v23, %v13427_v47  ;;  %v21030_v15 = vld [vmem:[#allocation217_spill] sm:$0xff]  ;;  %v21031_v23 = vld [vmem:[#allocation216_spill] sm:$0xff] }
 0x4e4   : > { %21017 = vst [vmem:[#allocation107_spill] sm:$0xff] %v16442_v10  ;;  %v3579_v62 = vcombine.low %v21021_v44, %v21020_v40  ;;  %v5620_v17 = vcombine.high %v5554_v12, %v5570_v52  ;;  %v21025_v0 = vld [vmem:[#allocation350_spill] sm:$0xff]  ;;  %v16462_v40 = vrot.slane %v3611_v36, %v13488_v19  ;;  %v5537_v18 = vcombine.low %v16377_v37, %v16401_v14  ;;  %v21027_v10 = vld [vmem:[#allocation204_spill] sm:$0xff] }
 0x4e5   : > { %v3883_v44 = vcombine.low %v21026_v6, %v21025_v0  ;;  %v4602_v60 = vrot.slane %v4588_v34, %v13427_v47  ;;  %v4651_v33 = vcombine.low %v21028_v27, %v21027_v10  ;;  %v4634_v1 = vrot.slane %v4620_v22, %v13427_v47  ;;  %6437 = vmax.xlane.f32.xlu1 %v16170_v59  ;;  %v21032_v12 = vld [vmem:[#allocation342_spill] sm:$0xff]  ;;  %v21033_v0 = vld [vmem:[#allocation341_spill] sm:$0xff] }
 0x4e6   : > { %6392 = vmax.xlane.f32.xlu0 %v16260_v9  ;;  %v16473_v52 = vsel %vm20240_vm11, %v5536_v2, -inf  ;;  %v4683_v36 = vcombine.low %v21031_v23, %v21030_v15  ;;  %v3851_v37 = vcombine.low %v21033_v0, %v21032_v12  ;;  %v16480_v14 = vrot.slane %v3579_v62, %v13488_v19  ;;  %v16491_v2 = vpop.xlane.xlu1 %6239  ;;  %v21038_v23 = vld [vmem:[#allocation235_spill] sm:$0xff] }
 0x4e7   : > { %21029 = vst [vmem:[#allocation117_spill] sm:$0xff] %v16473_v52  ;;  %v16483_v27 = vrot.slane %v3443_v56, %v13488_v19  ;;  %v4667_v34 = vcombine.low %v4602_v60, %v4618_v39  ;;  %v4699_v22 = vcombine.low %v4634_v1, %v4650_v51  ;;  %v16486_v9 = vrot.slane %v5603_v7, %v13488_v19 }
 0x4e8   : > { %v16489_v59 = vrot.slane %v5619_v43, %v13488_v19  ;;  %v21036_v10 = vcombine.high %v20925_v13, %v20926_v63  ;;  %v3631_v62 = vcombine.low %v16480_v14, %v16462_v40  ;;  %v16500_v56 = vrot.slane %v3883_v44, %v13488_v19  ;;  %v21039_v43 = vld [vmem:[#allocation229_spill] sm:$0xff] }
 0x4e9   : > { %21034 = vst [vmem:[#allocation116_spill] sm:$0xff] %v16486_v9  ;;  %v16503_v15 = vrot.slane %v5620_v17, %v13488_v19  ;;  %v4668_v7 = vcombine.high %v4602_v60, %v4618_v39  ;;  %v4772_v12 = vcombine.high %v21039_v43, %v21038_v23  ;;  %6443 = vmax.xlane.f32.xlu1 %v6442_v26  ;;  %v16509_v13 = vsel %vm20240_vm11, %v5538_v49, -inf  ;;  %v21041_v60 = vld [vmem:[#allocation225_spill] sm:$0xff]  ;;  %v21043_v23 = vld [vmem:[#allocation232_spill] sm:$0xff] }
 0x4ea   : > { %21035 = vst [vmem:[#allocation126_spill] sm:$0xff] %v16489_v59  ;;  %v6397_v6 = vsel %vm20240_vm11, %v21036_v10, -inf  ;;  %v4659_v0 = vrot.slane %v4651_v33, %v13488_v19  ;;  %21040 = vst [vmem:[#allocation124_spill] sm:$0xff] %v16509_v13  ;;  %v4700_v63 = vcombine.high %v4634_v1, %v4650_v51  ;;  %v16512_v10 = vrot.slane %v3851_v37, %v13488_v19  ;;  %v21042_v39 = vld [vmem:[#allocation221_spill] sm:$0xff]  ;;  %v21045_v51 = vld [vmem:[#allocation224_spill] sm:$0xff] }
 0x4eb   : > { %21037 = vst [vmem:[#allocation120_spill] sm:$0xff] %v16503_v15  ;;  %6398 = vmax.xlane.f32.xlu0 %v6397_v6  ;;  %v2544_v44 = vcombine.high %v16340_v38, %v16324_v55  ;;  %v4691_v17 = vrot.slane %v4683_v36, %v13488_v19  ;;  %v4740_v52 = vcombine.high %v21042_v39, %v21041_v60  ;;  %v21044_v6 = vld [vmem:[#allocation228_spill] sm:$0xff]  ;;  %v21046_v1 = vld [vmem:[#allocation218_spill] sm:$0xff]  ;;  %v6448_v38 = vsel %vm20240_vm11, %v3631_v62, -inf  ;;  %v21048_v60 = vld [vmem:[#allocation231_spill] sm:$0xff] }
 0x4ec   : > { %v4756_v26 = vcombine.high %v21044_v6, %v21043_v23  ;;  %v16522_v33 = vrot.slane %v4667_v34, %v13488_v19  ;;  %v4707_v49 = vrot.slane %v4699_v22, %v13488_v19  ;;  %v4724_v37 = vcombine.high %v21046_v1, %v21045_v51  ;;  %v21049_v39 = vld [vmem:[#allocation230_spill] sm:$0xff]  ;;  %v21065_v15 = vld [vmem:[#allocation219_spill] sm:$0xff]  ;;  %v21066_v59 = vld [vmem:[#allocation220_spill] sm:$0xff] }
 0x4ed   : > { %v21047_v43 = vcombine.high %v20939_v4, %v20940_v61  ;;  %v3903_v36 = vcombine.low %v16512_v10, %v16500_v56  ;;  %v2659_v23 = vcombine.low %v21049_v39, %v21048_v60  ;;  %v16537_v34 = vrot.slane %v4772_v12, %v13427_v47  ;;  %6449 = vmax.xlane.f32.xlu1 %v6448_v38  ;;  %v16543_v4 = vpop.xlane.xlu1 %6245  ;;  %v21052_v60 = vld [vmem:[#allocation222_spill] sm:$0xff] }
 0x4ee   : > { %v4682_v22 = vrot.slane %v4668_v7, %v13488_v19  ;;  %v16541_v6 = vsel %vm20240_vm11, %v5537_v18, -inf  ;;  %v16546_v61 = vsel %vm20240_vm11, %v2544_v44, -inf  ;;  %v4715_v62 = vcombine.low %v4659_v0, %v4691_v17  ;;  %v21053_v7 = vld [vmem:[#allocation239_spill] sm:$0xff]  ;;  %v21054_v39 = vld [vmem:[#allocation238_spill] sm:$0xff] }
 0x4ef   : > { %v6403_v55 = vsel %vm20240_vm11, %v21047_v43, -inf  ;;  %21050 = vst [vmem:[#allocation37_spill] sm:$0xff] %v16541_v6  ;;  %v4716_v51 = vcombine.high %v4659_v0, %v4691_v17  ;;  %v4714_v1 = vrot.slane %v4700_v63, %v13488_v19  ;;  %v21051_v43 = vld [vmem:[#allocation223_spill] sm:$0xff]  ;;  %v4770_v38 = vrot.slane %v4756_v26, %v13427_v47 }
 0x4f0   : > { %6404 = vmax.xlane.f32.xlu0 %v6403_v55  ;;  %v2627_v12 = vcombine.low %v21052_v60, %v21051_v43  ;;  %v4754_v55 = vrot.slane %v4740_v52, %v13427_v47  ;;  %v4819_v18 = vcombine.low %v21054_v39, %v21053_v7  ;;  %v4738_v6 = vrot.slane %v4724_v37, %v13427_v47  ;;  %v21056_v17 = vld [vmem:[#allocation227_spill] sm:$0xff]  ;;  %v21057_v43 = vld [vmem:[#allocation226_spill] sm:$0xff] }
 0x4f1   : > { %v21055_v44 = vcombine.high %v15714_v50, %v15717_v28  ;;  %v6454_v0 = vsel %vm20240_vm11, %v3903_v36, -inf  ;;  %v4720_v63 = vcombine.high %v16522_v33, %v4707_v49  ;;  %v4787_v60 = vcombine.low %v21057_v43, %v21056_v17  ;;  %v21058_v7 = vld [vmem:[#allocation215_spill] sm:$0xff]  ;;  %v21059_v37 = vld [vmem:[#allocation214_spill] sm:$0xff]  ;;  %v16572_v28 = vpop.xlane.xlu0 %6221 }
 0x4f2   : > { %v4835_v52 = vcombine.low %v4770_v38, %v16537_v34  ;;  %6455 = vmax.xlane.f32.xlu1 %v6454_v0  ;;  %v2667_v26 = vrot.slane %v2659_v23, %v13488_v19  ;;  %v21060_v39 = vcombine.low %v21058_v7, %v21059_v37  ;;  %v21061_v36 = vcombine.high %v21058_v7, %v21059_v37 }
 0x4f3   : > { %v6409_v13 = vsel %vm20240_vm11, %v21055_v44, -inf  ;;  %v16581_v17 = vsel %vm20240_vm11, %v4715_v62, -inf  ;;  %v4721_v23 = vcombine.low %v4682_v22, %v4714_v1  ;;  %v4803_v0 = vcombine.low %v4738_v6, %v4754_v55 }
 0x4f4   : > { %6410 = vmax.xlane.f32.xlu0 %v6409_v13  ;;  %v16570_v50 = vsel %vm20240_vm11, %v21060_v39, -inf  ;;  %v16578_v44 = vsel %vm20240_vm11, %v21061_v36, -inf  ;;  %21063 = vst [vmem:[#allocation122_spill] sm:$0xff] %v16581_v17  ;;  %v16584_v13 = vsel %vm20240_vm11, %v4716_v51, -inf  ;;  %v2635_v43 = vrot.slane %v2627_v12, %v13488_v19  ;;  %v21069_v36 = vld [vmem:[#allocation275_spill] sm:$0xff]  ;;  %v16596_v17 = vpop.xlane.xlu1 %6251 }
 0x4f5   : > { %21062 = vst [vmem:[#allocation123_spill] sm:$0xff] %v16578_v44  ;;  %21064 = vst [vmem:[#allocation136_spill] sm:$0xff] %v16584_v13  ;;  %v4827_v39 = vrot.slane %v4819_v18, %v13488_v19  ;;  %v21067_v9 = vcombine.low %v21065_v15, %v21066_v59  ;;  %v4804_v37 = vcombine.high %v4738_v6, %v4754_v55  ;;  %v16603_v35 = vsel %vm20240_vm11, %v4720_v63, -inf  ;;  %v21073_v55 = vld [vmem:[#allocation243_spill] sm:$0xff] }
 0x4f6   : > { %v2931_v62 = vcombine.low %v21070_v11, %v21069_v36  ;;  %v4719_v51 = vcombine.low %v16522_v33, %v4707_v49  ;;  %v4722_v13 = vcombine.high %v4682_v22, %v4714_v1  ;;  %6461 = vmax.xlane.f32.xlu1 %v15655_v53  ;;  %v2679_v12 = vcombine.low %v2635_v43, %v2667_v26  ;;  %v21072_v11 = vld [vmem:[#allocation247_spill] sm:$0xff]  ;;  %v21075_v33 = vld [vmem:[#allocation266_spill] sm:$0xff] }
 0x4f7   : > { %v16592_v7 = vsel %vm20240_vm11, %v21067_v9, -inf  ;;  %v4795_v18 = vrot.slane %v4787_v60, %v13488_v19  ;;  %21071 = vst [vmem:[#allocation115_spill] sm:$0xff] %v16603_v35  ;;  %v4843_v9 = vrot.slane %v4835_v52, %v13488_v19  ;;  %v4836_v6 = vcombine.high %v4770_v38, %v16537_v34  ;;  %v21079_v34 = vld [vmem:[#allocation246_spill] sm:$0xff]  ;;  %v21080_v38 = vld [vmem:[#allocation240_spill] sm:$0xff] }
 0x4f8   : > { %21068 = vst [vmem:[#allocation131_spill] sm:$0xff] %v16592_v7  ;;  %6416 = vmax.xlane.f32.xlu0 %v15850_v20  ;;  %v4876_v36 = vcombine.high %v21073_v55, %v21072_v11  ;;  %v21074_v7 = vld [vmem:[#allocation267_spill] sm:$0xff]  ;;  %v2680_v22 = vcombine.high %v2635_v43, %v2667_v26  ;;  %v21076_v53 = vcombine.high %v21065_v15, %v21066_v59  ;;  %v16618_v63 = vsel %vm20240_vm11, %v4721_v23, -inf  ;;  %v16623_v11 = vpop.xlane.xlu0 %6227 }
 0x4f9   : > { %v2899_v49 = vcombine.low %v21075_v33, %v21074_v7  ;;  %v4851_v20 = vcombine.low %v4795_v18, %v4827_v39  ;;  %21078 = vst [vmem:[#allocation133_spill] sm:$0xff] %v16618_v63  ;;  %v4811_v60 = vrot.slane %v4803_v0, %v13488_v19  ;;  %v4860_v52 = vcombine.high %v21080_v38, %v21079_v34  ;;  %v21083_v33 = vld [vmem:[#allocation237_spill] sm:$0xff]  ;;  %v21102_v63 = vld [vmem:[#allocation254_spill] sm:$0xff] }
 0x4fa   : > { %v16615_v1 = vsel %vm20240_vm11, %v21076_v53, -inf  ;;  %v16626_v7 = vrot.slane %v2931_v62, %v13488_v19  ;;  %v16629_v26 = vsel %vm20240_vm11, %v4719_v51, -inf  ;;  %v16632_v59 = vsel %vm20240_vm11, %v4722_v13, -inf  ;;  %6467 = vmax.xlane.f32.xlu1 %v15969_v57  ;;  %v16639_v62 = vpop.xlane.xlu1 %6257  ;;  %v21084_v57 = vld [vmem:[#allocation236_spill] sm:$0xff] }
 0x4fb   : > { %21077 = vst [vmem:[#allocation113_spill] sm:$0xff] %v16615_v1  ;;  %21081 = vst [vmem:[#allocation132_spill] sm:$0xff] %v16629_v26  ;;  %v6427_v15 = vsel %vm20240_vm11, %v2679_v12, -inf  ;;  %v4852_v23 = vcombine.high %v4795_v18, %v4827_v39  ;;  %v4855_v0 = vcombine.low %v4811_v60, %v4843_v9  ;;  %v4818_v43 = vrot.slane %v4804_v37, %v13488_v19  ;;  %v21103_v1 = vld [vmem:[#allocation250_spill] sm:$0xff] }
 0x4fc   : > { %21082 = vst [vmem:[#allocation134_spill] sm:$0xff] %v16632_v59  ;;  %6422 = vmax.xlane.f32.xlu0 %v16076_v42  ;;  %v4890_v55 = vrot.slane %v4876_v36, %v13427_v47  ;;  %v16642_v51 = vrot.slane %v2899_v49, %v13488_v19  ;;  %v16645_v13 = vsel %vm20240_vm11, %v2680_v22, -inf  ;;  %v4850_v42 = vrot.slane %v4836_v6, %v13488_v19  ;;  %v21090_v22 = vld [vmem:[#allocation281_spill] sm:$0xff]  ;;  %v21091_v6 = vld [vmem:[#allocation280_spill] sm:$0xff] }
 0x4fd   : > { %v21085_v53 = vcombine.low %v21083_v33, %v21084_v57  ;;  %v21087_v37 = vcombine.high %v21083_v33, %v21084_v57  ;;  %v16661_v18 = vsel %vm20240_vm11, %v4851_v20, -inf  ;;  %v4856_v36 = vcombine.high %v4811_v60, %v4843_v9  ;;  %v21093_v20 = vld [vmem:[#allocation241_spill] sm:$0xff]  ;;  %v21094_v57 = vld [vmem:[#allocation242_spill] sm:$0xff] }
 0x4fe   : > { %21089 = vst [vmem:[#allocation118_spill] sm:$0xff] %v16661_v18  ;;  %v4874_v49 = vrot.slane %v4860_v52, %v13427_v47  ;;  %v3475_v34 = vcombine.low %v21091_v6, %v21090_v22  ;;  %v2951_v38 = vcombine.low %v16642_v51, %v16626_v7  ;;  %6473 = vmax.xlane.f32.xlu1 %v16546_v61  ;;  %v16672_v33 = vsel %vm20240_vm11, %v4852_v23, -inf  ;;  %v21101_v61 = vld [vmem:[#allocation248_spill] sm:$0xff]  ;;  %v6231_v22 = vpop.xlane.xlu0 %6230  ;;  %v16691_v6 = vpop.xlane.xlu1 %6263 }
 0x4ff   : > { %v16652_v39 = vsel %vm20240_vm11, %v21085_v53, -inf  ;;  %v16658_v12 = vsel %vm20240_vm11, %v21087_v37, -inf  ;;  %v2816_v53 = vcombine.high %v16367_v25, %v16355_v32  ;;  %21092 = vst [vmem:[#allocation129_spill] sm:$0xff] %v16672_v33  ;;  %v21095_v9 = vcombine.low %v21093_v20, %v21094_v57  ;;  %v21100_v25 = vld [vmem:[#allocation249_spill] sm:$0xff] }
 0x500   : > { %21086 = vst [vmem:[#allocation130_spill] sm:$0xff] %v16652_v39  ;;  %21088 = vst [vmem:[#allocation121_spill] sm:$0xff] %v16658_v12  ;;  %6428 = vmax.xlane.f32.xlu0 %v6427_v15  ;;  %v21097_v52 = vcombine.high %v21093_v20, %v21094_v57  ;;  %v16687_v32 = vsel %vm20240_vm11, %v4855_v0, -inf  ;;  %v4923_v15 = vcombine.low %v21101_v61, %v21100_v25  ;;  %v21104_v20 = vld [vmem:[#allocation328_spill] sm:$0xff]  ;;  %v21105_v57 = vld [vmem:[#allocation327_spill] sm:$0xff] }
 0x501   : > { %v16678_v60 = vsel %vm20240_vm11, %v21095_v9, -inf  ;;  %21099 = vst [vmem:[#allocation139_spill] sm:$0xff] %v16687_v32  ;;  %v4939_v23 = vcombine.low %v4874_v49, %v4890_v55  ;;  %v4857_v59 = vcombine.low %v4818_v43, %v4850_v42  ;;  %v4858_v26 = vcombine.high %v4818_v43, %v4850_v42  ;;  %v21107_v43 = vld [vmem:[#allocation251_spill] sm:$0xff]  ;;  %v21108_v42 = vld [vmem:[#allocation320_spill] sm:$0xff] }
 0x502   : > { %21096 = vst [vmem:[#allocation128_spill] sm:$0xff] %v16678_v60  ;;  %v16684_v37 = vsel %vm20240_vm11, %v21097_v52, -inf  ;;  %v4940_v9 = vcombine.high %v4874_v49, %v4890_v55  ;;  %v4892_v35 = vcombine.high %v21103_v1, %v21102_v63  ;;  %v3747_v52 = vcombine.low %v21105_v57, %v21104_v20  ;;  %v21109_v49 = vld [vmem:[#allocation319_spill] sm:$0xff]  ;;  %v21110_v63 = vld [vmem:[#allocation353_spill] sm:$0xff] }
 0x503   : > { %21098 = vst [vmem:[#allocation140_spill] sm:$0xff] %v16684_v37  ;;  %v10880_v0 = vrot.slane %v16379_v24, %v15461_v31  ;;  %v6433_v32 = vsel %vm20240_vm11, %v2951_v38, -inf  ;;  %v6478_v25 = vsel %vm20240_vm11, %v2816_v53, -inf  ;;  %v16702_v61 = vrot.slane %v3475_v34, %v13488_v19  ;;  %v21106_v37 = vld [vmem:[#allocation257_spill] sm:$0xff]  ;;  %v16715_v53 = vpop.xlane.xlu1 %6269  ;;  %v21131_v39 = vld [vmem:[#allocation367_spill] sm:$0xff] }
 0x504   : > { %v4908_v55 = vcombine.high %v21107_v43, %v21106_v37  ;;  %v3715_v1 = vcombine.low %v21109_v49, %v21108_v42  ;;  %v10876_v20 = vrot.slane %v16572_v28, %v21110_v63  ;;  %6434 = vmax.xlane.f32.xlu0 %v6433_v32  ;;  %6479 = vmax.xlane.f32.xlu1 %v6478_v25  ;;  %v16711_v57 = vsel %vm20240_vm11, %v4856_v36, -inf }
 0x505   : > { %21111 = vst [vmem:[#allocation127_spill] sm:$0xff] %v16711_v57  ;;  %v4019_v38 = vcombine.low %v15670_v8, %v15674_v58  ;;  %v16718_v34 = vrot.slane %v4923_v15, %v13488_v19  ;;  %v16721_v37 = vrot.slane %v4939_v23, %v13488_v19  ;;  %v16724_v43 = vsel %vm20240_vm11, %v4857_v59, -inf  ;;  %v21113_v8 = vld [vmem:[#allocation33_spill] sm:$0xff]  ;;  %v6237_v23 = vpop.xlane.xlu0 %6236 }
 0x506   : > { %21112 = vst [vmem:[#allocation125_spill] sm:$0xff] %v16724_v43  ;;  %v6988_v32 = vpack.c.bf16 %v16379_v24, %v16572_v28  ;;  %v10881_v36 = vsel %vm9301_vm12, %v10880_v0, %v10876_v20  ;;  %v16730_v25 = vrot.slane %v3747_v52, %v13488_v19  ;;  %v3987_v58 = vcombine.low %v21113_v8, %v15546_v30  ;;  %v21114_v15 = vld [vmem:[#allocation357_spill] sm:$0xff] }
 0x507   : > { %v10885_v42 = vrot.slane %v16623_v11, %v21114_v15  ;;  %v3495_v59 = vcombine.low %v16483_v27, %v16702_v61  ;;  %v16739_v49 = vrot.slane %v4940_v9, %v13488_v19  ;;  %v16742_v24 = vrot.slane %v4892_v35, %v13427_v47  ;;  %v16756_v9 = vpop.xlane.xlu1 %6275 }
 0x508   : > { %v16745_v28 = vrot.slane %v4908_v55, %v13427_v47  ;;  %6440 = vmax.xlane.f32.xlu0 %v16263_v46  ;;  %6485 = vmax.xlane.f32.xlu1 %v16176_v41  ;;  %v16750_v30 = vrot.slane %v3715_v1, %v13488_v19  ;;  %v16753_v52 = vsel %vm20240_vm11, %v4858_v26, -inf  ;;  %v3632_v35 = vcombine.high %v16480_v14, %v16462_v40  ;;  %v21117_v46 = vld [vmem:[#allocation359_spill] sm:$0xff]  ;;  %v21119_v1 = vld [vmem:[#allocation356_spill] sm:$0xff]  ;;  %v21121_v14 = vld [vmem:[#allocation261_spill] sm:$0xff] }
 0x509   : > { %21115 = vst [vmem:[#allocation233_spill] sm:$0xff] %v16739_v49  ;;  %21116 = vst [vmem:[#allocation234_spill] sm:$0xff] %v16753_v52  ;;  %v10886_v0 = vsel %vm9308_vm13, %v10885_v42, %v10881_v36  ;;  %v16761_v55 = vrot.slane %v4019_v38, %v13488_v19  ;;  %v10890_v20 = vrot.slane %v6231_v22, %v21117_v46  ;;  %v21118_v41 = vld [vmem:[#allocation351_spill] sm:$0xff]  ;;  %v21120_v42 = vld [vmem:[#allocation360_spill] sm:$0xff]  ;;  %v6445_v57 = vsel %vm20240_vm11, %v3495_v59, -inf }
 0x50a   : > { %v7250_v8 = vrot.slane %v6988_v32, %v21118_v41  ;;  %v7257_v43 = vrot.slane %v6988_v32, %v21119_v1  ;;  %v3767_v26 = vcombine.low %v16750_v30, %v16730_v25  ;;  %v6989_v36 = vpack.c.bf16 %v6231_v22, %v16623_v11  ;;  %v21122_v38 = vld [vmem:[#allocation260_spill] sm:$0xff]  ;;  %v6243_v22 = vpop.xlane.xlu0 %6242 }
 0x50b   : > { %v10895_v52 = vrot.slane %v16448_v29, %v21120_v42  ;;  %v16773_v40 = vrot.slane %v3987_v58, %v13488_v19  ;;  %v4955_v60 = vcombine.low %v21122_v38, %v21121_v14  ;;  %v4971_v33 = vcombine.low %v16742_v24, %v16745_v28  ;;  %v16783_v59 = vpop.xlane.xlu1 %6281 }
 0x50c   : > { %v10891_v32 = vsel %vm9315_vm14, %v10890_v20, %v10886_v0  ;;  %6446 = vmax.xlane.f32.xlu0 %v6445_v57  ;;  %6491 = vmax.xlane.f32.xlu1 %v16392_v54  ;;  %v4972_v11 = vcombine.high %v16742_v24, %v16745_v28  ;;  %v6496_v58 = vsel %vm20240_vm11, %v3632_v35, -inf  ;;  %v3904_v38 = vcombine.high %v16512_v10, %v16500_v56  ;;  %v21123_v0 = vld [vmem:[#allocation364_spill] sm:$0xff]  ;;  %v21124_v20 = vld [vmem:[#allocation363_spill] sm:$0xff]  ;;  %v21126_v10 = vld [vmem:[#allocation258_spill] sm:$0xff] }
 0x50d   : > { %v4039_v14 = vcombine.low %v16773_v40, %v16761_v55  ;;  %v9036_v18 = vunpack.c.l.b16 %v7250_v8  ;;  %v9037_v12 = vunpack.c.l.b16 %v7257_v43  ;;  %v6451_v57 = vsel %vm20240_vm11, %v3767_v26, -inf  ;;  %v21125_v56 = vld [vmem:[#allocation259_spill] sm:$0xff] }
 0x50e   : > { %v7264_v54 = vrot.slane %v6989_v36, %v21118_v41  ;;  %v6990_v24 = vpack.c.bf16 %v6237_v23, %v16448_v29  ;;  %v10896_v28 = vsel %vm9322_vm15, %v10895_v52, %v10891_v32  ;;  %v10905_v35 = vrot.slane %v16491_v2, %v21123_v0 }
 0x50f   : > { %v10900_v49 = vrot.slane %v6237_v23, %v21124_v20  ;;  %v21127_v43 = vcombine.low %v21125_v56, %v21126_v10  ;;  %v21128_v26 = vcombine.high %v21125_v56, %v21126_v10  ;;  %v16809_v52 = vpop.xlane.xlu1 %6287  ;;  %v6457_v23 = vsel %vm20240_vm11, %v4039_v14, -inf }
 0x510   : > { %6452 = vmax.xlane.f32.xlu0 %v6451_v57  ;;  %6497 = vmax.xlane.f32.xlu1 %v6496_v58  ;;  %21130 = vst [vmem:[#allocation153_spill] sm:$0xff] %v16809_v52  ;;  %v6502_v32 = vsel %vm20240_vm11, %v3904_v38, -inf  ;;  %v4963_v58 = vrot.slane %v4955_v60, %v13488_v19  ;;  %v7271_v57 = vrot.slane %v6989_v36, %v21119_v1  ;;  %v9038_v10 = vunpack.c.l.b16 %v7264_v54  ;;  %v21132_v38 = vld [vmem:[#allocation366_spill] sm:$0xff] }
 0x511   : > { %v16801_v8 = vsel %vm20240_vm11, %v21127_v43, -inf  ;;  %v16807_v29 = vsel %vm20240_vm11, %v21128_v26, -inf  ;;  %v9295_v43 = vrot.slane %v9036_v18, %v21110_v63  ;;  %v9300_v47 = vrot.slane %v9037_v12, %v15461_v31 }
 0x512   : > { %21129 = vst [vmem:[#allocation158_spill] sm:$0xff] %v16807_v29  ;;  %v10901_v56 = vsel %vm20229_vm0, %v10900_v49, %v10896_v28  ;;  %v7278_v26 = vrot.slane %v6990_v24, %v21118_v41  ;;  %v6249_v29 = vpop.xlane.xlu0 %6248  ;;  %v10915_v14 = vrot.slane %v16543_v4, %v21131_v39  ;;  %v10910_v52 = vrot.slane %v6243_v22, %v21132_v38 }
 0x513   : > { %v10906_v44 = vsel %vm9336_vm1, %v10905_v35, %v10901_v56  ;;  %v6991_v60 = vpack.c.bf16 %v6243_v22, %v16491_v2  ;;  %v16825_v12 = vrot.slane %v4971_v33, %v13488_v19  ;;  %v16827_v18 = vpop.xlane.xlu1 %6293  ;;  %v4987_v49 = vcombine.low %v16718_v34, %v4963_v58  ;;  %v21134_v56 = vld [vmem:[#allocation48_spill] sm:$0xff] }
 0x514   : > { %6458 = vmax.xlane.f32.xlu0 %v6457_v23  ;;  %6503 = vmax.xlane.f32.xlu1 %v6502_v32  ;;  %21133 = vst [vmem:[#allocation149_spill] sm:$0xff] %v16827_v18  ;;  %v4988_v36 = vcombine.high %v16718_v34, %v4963_v58  ;;  %v16832_v54 = vrot.slane %v4972_v11, %v13488_v19  ;;  %v9039_v28 = vunpack.c.l.b16 %v7271_v57  ;;  %v9040_v23 = vunpack.c.l.b16 %v7278_v26 }
 0x515   : > { %v9302_v35 = vsel %vm9301_vm12, %v9300_v47, %v9295_v43  ;;  %v7285_v2 = vrot.slane %v6990_v24, %v21119_v1  ;;  %v10911_v22 = vsel %vm9343_vm2, %v10910_v52, %v10906_v44  ;;  %v9307_v33 = vrot.slane %v9038_v10, %v21114_v15  ;;  %v21136_v47 = vld [vmem:[#allocation47_spill] sm:$0xff]  ;;  %v21139_v44 = vld [vmem:[#allocation42_spill] sm:$0xff] }
 0x516   : > { %v10916_v32 = vsel %vm9350_vm3, %v10915_v14, %v10911_v22  ;;  %v10925_v18 = vrot.slane %v16596_v17, %v21134_v56  ;;  %v10920_v34 = vrot.slane %v6249_v29, %v21135_v16  ;;  %v7292_v11 = vrot.slane %v6991_v60, %v21118_v41  ;;  %v6255_v52 = vpop.xlane.xlu0 %6254 }
 0x517   : > { %v9309_v24 = vsel %vm9308_vm13, %v9307_v33, %v9302_v35  ;;  %v6992_v58 = vpack.c.bf16 %v6249_v29, %v16543_v4  ;;  %v16849_v57 = vpop.xlane.xlu1 %6299  ;;  %v16852_v43 = vsel %vm20240_vm11, %v4987_v49, -inf  ;;  %v9041_v26 = vunpack.c.l.b16 %v7285_v2  ;;  %v21138_v29 = vld [vmem:[#allocation35_spill] sm:$0xff] }
 0x518   : > { %6464 = vmax.xlane.f32.xlu0 %v15853_v3  ;;  %6509 = vmax.xlane.f32.xlu1 %v21136_v47  ;;  %21137 = vst [vmem:[#allocation144_spill] sm:$0xff] %v16852_v43  ;;  %v9314_v3 = vrot.slane %v9039_v28, %v21117_v46  ;;  %v10921_v14 = vsel %vm9357_vm4, %v10920_v34, %v10916_v32  ;;  %v9042_v47 = vunpack.c.l.b16 %v7292_v11  ;;  %v21141_v32 = vld [vmem:[#allocation263_spill] sm:$0xff]  ;;  %v21142_v34 = vld [vmem:[#allocation264_spill] sm:$0xff]  ;;  %v21148_v43 = vld [vmem:[#allocation46_spill] sm:$0xff] }
 0x519   : > { %v9321_v22 = vrot.slane %v9040_v23, %v21120_v42  ;;  %v7299_v35 = vrot.slane %v6991_v60, %v21119_v1  ;;  %v10926_v4 = vsel %vm9364_vm5, %v10925_v18, %v10921_v14  ;;  %v10935_v33 = vrot.slane %v16639_v62, %v21138_v29 }
 0x51a   : > { %v9316_v49 = vsel %vm9315_vm14, %v9314_v3, %v9309_v24  ;;  %v10930_v10 = vrot.slane %v6255_v52, %v21139_v44  ;;  %v7306_v28 = vrot.slane %v6992_v58, %v21118_v41  ;;  %v16868_v2 = vpop.xlane.xlu0 %6260  ;;  %v2952_v18 = vcombine.high %v16642_v51, %v16626_v7 }
 0x51b   : > { %v16870_v60 = vpop.xlane.xlu1 %6305  ;;  %v16875_v23 = vsel %vm20240_vm11, %v4988_v36, -inf  ;;  %v21143_v11 = vcombine.low %v21141_v32, %v21142_v34  ;;  %v21145_v3 = vcombine.high %v21141_v32, %v21142_v34  ;;  %v9323_v7 = vsel %vm9322_vm15, %v9321_v22, %v9316_v49 }
 0x51c   : > { %6470 = vmax.xlane.f32.xlu0 %v16079_v48  ;;  %6515 = vmax.xlane.f32.xlu1 %v15980_v21  ;;  %21140 = vst [vmem:[#allocation278_spill] sm:$0xff] %v16875_v23  ;;  %v9328_v21 = vrot.slane %v9041_v26, %v21124_v20  ;;  %v10931_v48 = vsel %vm9371_vm6, %v10930_v10, %v10926_v4  ;;  %v9043_v51 = vunpack.c.l.b16 %v7299_v35  ;;  %v21147_v23 = vld [vmem:[#allocation41_spill] sm:$0xff]  ;;  %v9044_v4 = vunpack.c.l.b16 %v7306_v28 }
 0x51d   : > { %v16881_v24 = vsel %vm20240_vm11, %v21143_v11, -inf  ;;  %v16889_v14 = vsel %vm20240_vm11, %v21145_v3, -inf  ;;  %v10936_v36 = vsel %vm9378_vm7, %v10935_v33, %v10931_v48  ;;  %v10945_v11 = vrot.slane %v16691_v6, %v21147_v23  ;;  %v21150_v3 = vld [vmem:[#allocation268_spill] sm:$0xff] }
 0x51e   : > { %21144 = vst [vmem:[#allocation277_spill] sm:$0xff] %v16881_v24  ;;  %21146 = vst [vmem:[#allocation155_spill] sm:$0xff] %v16889_v14  ;;  %v9335_v24 = vrot.slane %v9042_v47, %v21123_v0  ;;  %v7313_v26 = vrot.slane %v6992_v58, %v21119_v1  ;;  %v10940_v10 = vrot.slane %v16868_v2, %v21148_v43  ;;  %v6267_v22 = vpop.xlane.xlu0 %6266  ;;  %v6481_v33 = vsel %vm20240_vm11, %v2952_v18, -inf }
 0x51f   : > { %v16901_v35 = vpop.xlane.xlu1 %6311  ;;  %v3496_v49 = vcombine.high %v16483_v27, %v16702_v61  ;;  %v6993_v58 = vpack.c.bf16 %v6255_v52, %v16596_v17  ;;  %v16909_v32 = vpack.c.bf16 %v6267_v22, %v16691_v6  ;;  %v9342_v28 = vrot.slane %v9043_v51, %v21132_v38  ;;  %v21151_v27 = vld [vmem:[#allocation262_spill] sm:$0xff] }
 0x520   : > { %6476 = vmax.xlane.f32.xlu0 %v16645_v13  ;;  %6521 = vmax.xlane.f32.xlu1 %v16570_v50  ;;  %v10941_v47 = vsel %vm9385_vm8, %v10940_v10, %v10936_v36  ;;  %v21149_v13 = vld [vmem:[#allocation40_spill] sm:$0xff]  ;;  %v9330_v50 = vsel %vm20229_vm0, %v9328_v21, %v9323_v7  ;;  %v3768_v18 = vcombine.high %v16750_v30, %v16730_v25  ;;  %v9045_v52 = vunpack.c.l.b16 %v7313_v26  ;;  %v21152_v25 = vld [vmem:[#allocation286_spill] sm:$0xff] }
 0x521   : > { %v10950_v34 = vrot.slane %v6267_v22, %v21149_v13  ;;  %v10946_v48 = vsel %vm9392_vm9, %v10945_v11, %v10941_v47  ;;  %v9337_v17 = vsel %vm9336_vm1, %v9335_v24, %v9330_v50  ;;  %v9349_v21 = vrot.slane %v9044_v4, %v21131_v39  ;;  %v21153_v30 = vld [vmem:[#allocation284_spill] sm:$0xff] }
 0x522   : > { %v6273_v7 = vpop.xlane.xlu0 %6272  ;;  %v6493_v36 = vsel %vm20240_vm11, %v3496_v49, -inf  ;;  %v21154_v11 = vcombine.low %v21152_v25, %v21153_v30  ;;  %v21155_v24 = vcombine.low %v16721_v37, %v16825_v12  ;;  %v21158_v49 = vld [vmem:[#allocation311_spill] sm:$0xff]  ;;  %v9344_v50 = vsel %vm9343_vm2, %v9342_v28, %v9337_v17  ;;  %v21160_v17 = vld [vmem:[#allocation358_spill] sm:$0xff] }
 0x523   : > { %v16921_v6 = vsel %vm20249_vm10, %v10950_v34, %v10946_v48  ;;  %v16925_v51 = vpop.xlane.xlu1 %6317  ;;  %v6996_v4 = vpack.c.bf16 %v6273_v7, %v16715_v53  ;;  %v10959_v22 = vrot.slane %v6273_v7, %v15461_v31  ;;  %v10955_v48 = vrot.slane %v16715_v53, %v21110_v63 }
 0x524   : > { %6482 = vmax.xlane.f32.xlu0 %v6481_v33  ;;  %6527 = vmax.xlane.f32.xlu1 %v16801_v8  ;;  %v16932_v10 = vsel %vm20240_vm11, %v21154_v11, -inf  ;;  %v16938_v26 = vsel %vm20240_vm11, %v21155_v24, -inf  ;;  %v7320_v8 = vrot.slane %v6993_v58, %v21118_v41  ;;  %v21157_v33 = vld [vmem:[#allocation312_spill] sm:$0xff]  ;;  %v6499_v11 = vsel %vm20240_vm11, %v3768_v18, -inf }
 0x525   : > { %21156 = vst [vmem:[#allocation154_spill] sm:$0xff] %v16938_v26  ;;  %v21159_v47 = vcombine.low %v21157_v33, %v21158_v49  ;;  %v4040_v24 = vcombine.high %v16773_v40, %v16761_v55  ;;  %v9356_v61 = vrot.slane %v9045_v52, %v21135_v16  ;;  %v7327_v26 = vrot.slane %v6993_v58, %v21119_v1  ;;  %v21161_v58 = vld [vmem:[#allocation355_spill] sm:$0xff] }
 0x526   : > { %v7362_v7 = vrot.slane %v6996_v4, %v21118_v41  ;;  %v7369_v14 = vrot.slane %v6996_v4, %v21119_v1  ;;  %v9351_v28 = vsel %vm9350_vm3, %v9349_v21, %v9344_v50  ;;  %v10964_v53 = vrot.slane %v16756_v9, %v21114_v15  ;;  %v6279_v55 = vpop.xlane.xlu0 %6278 }
 0x527   : > { %v6544_v34 = vsel %vm20240_vm11, %v21159_v47, -inf  ;;  %v10960_v18 = vsel %vm9301_vm12, %v10959_v22, %v10955_v48  ;;  %v16963_v40 = vpop.xlane.xlu1 %6323  ;;  %v21162_v52 = vcombine.low %v21160_v17, %v21161_v58  ;;  %v9046_v4 = vunpack.c.l.b16 %v7320_v8 }
 0x528   : > { %6488 = vmax.xlane.f32.xlu0 %v16270_v45  ;;  %6533 = vmax.xlane.f32.xlu1 %v16188_v5  ;;  %v9052_v30 = vunpack.c.l.b16 %v7362_v7  ;;  %v9053_v45 = vunpack.c.l.b16 %v7369_v14  ;;  %v6997_v21 = vpack.c.bf16 %v6279_v55, %v16756_v9  ;;  %v6994_v50 = vpack.c.bf16 %v16868_v2, %v16639_v62  ;;  %v21163_v7 = vld [vmem:[#allocation94_spill] sm:$0xff] }
 0x529   : > { %v6550_v47 = vsel %vm20240_vm11, %v21162_v52, -inf  ;;  %v10965_v22 = vsel %vm9308_vm13, %v10964_v53, %v10960_v18  ;;  %v10969_v5 = vrot.slane %v6279_v55, %v21117_v46  ;;  %v6505_v48 = vsel %vm20240_vm11, %v4040_v24, -inf }
 0x52a   : > { %v9358_v25 = vsel %vm9357_vm4, %v9356_v61, %v9351_v28  ;;  %v9047_v19 = vunpack.c.l.b16 %v7327_v26  ;;  %v7376_v58 = vrot.slane %v6997_v21, %v21118_v41  ;;  %v7383_v8 = vrot.slane %v6997_v21, %v21119_v1  ;;  %v6285_v24 = vpop.xlane.xlu0 %6284 }
 0x52b   : > { %v10974_v9 = vrot.slane %v16783_v59, %v21120_v42  ;;  %v9404_v14 = vrot.slane %v9052_v30, %v21110_v63  ;;  %v9408_v62 = vrot.slane %v9053_v45, %v15461_v31  ;;  %v10970_v2 = vsel %vm9315_vm14, %v10969_v5, %v10965_v22  ;;  %v16984_v53 = vpop.xlane.xlu1 %6329 }
 0x52c   : > { %6494 = vmax.xlane.f32.xlu0 %v6493_v36  ;;  %6539 = vmax.xlane.f32.xlu1 %v21163_v7  ;;  %v9363_v61 = vrot.slane %v9046_v4, %v21134_v56  ;;  %v9054_v26 = vunpack.c.l.b16 %v7376_v58  ;;  %v9055_v28 = vunpack.c.l.b16 %v7383_v8  ;;  %v6998_v36 = vpack.c.bf16 %v6285_v24, %v16783_v59  ;;  %v21164_v59 = vld [vmem:[#allocation153_spill] sm:$0xff] }
 0x52d   : > { %v7334_v18 = vrot.slane %v6994_v50, %v21118_v41  ;;  %v7341_v55 = vrot.slane %v6994_v50, %v21119_v1  ;;  %v10975_v30 = vsel %vm9322_vm15, %v10974_v9, %v10970_v2  ;;  %v10979_v52 = vrot.slane %v6285_v24, %v21124_v20 }
 0x52e   : > { %v9413_v45 = vrot.slane %v9054_v26, %v21114_v15  ;;  %v9418_v21 = vrot.slane %v9055_v28, %v21117_v46  ;;  %v7390_v22 = vrot.slane %v6998_v36, %v21118_v41  ;;  %v7397_v4 = vrot.slane %v6998_v36, %v21119_v1  ;;  %v6291_v9 = vpop.xlane.xlu0 %6290 }
 0x52f   : > { %v9370_v58 = vrot.slane %v9047_v19, %v21139_v44  ;;  %v10984_v5 = vrot.slane %v21164_v59, %v21123_v0  ;;  %v9409_v50 = vsel %vm9301_vm12, %v9408_v62, %v9404_v14  ;;  %v10980_v8 = vsel %vm20229_vm0, %v10979_v52, %v10975_v30  ;;  %v17001_v2 = vpop.xlane.xlu1 %6335 }
 0x530   : > { %6500 = vmax.xlane.f32.xlu0 %v6499_v11  ;;  %6545 = vmax.xlane.f32.xlu1 %v6544_v34  ;;  %v9414_v7 = vsel %vm9308_vm13, %v9413_v45, %v9409_v50  ;;  %v9056_v24 = vunpack.c.l.b16 %v7390_v22  ;;  %v9057_v26 = vunpack.c.l.b16 %v7397_v4  ;;  %v6999_v28 = vpack.c.bf16 %v6291_v9, %v21164_v59 }
 0x531   : > { %v9365_v11 = vsel %vm9364_vm5, %v9363_v61, %v9358_v25  ;;  %v9419_v19 = vsel %vm9315_vm14, %v9418_v21, %v9414_v7  ;;  %v10985_v36 = vsel %vm9336_vm1, %v10984_v5, %v10980_v8  ;;  %v10989_v14 = vrot.slane %v6291_v9, %v21132_v38  ;;  %v21165_v25 = vld [vmem:[#allocation149_spill] sm:$0xff] }
 0x532   : > { %v9423_v62 = vrot.slane %v9056_v24, %v21120_v42  ;;  %v9428_v34 = vrot.slane %v9057_v26, %v21124_v20  ;;  %v7404_v30 = vrot.slane %v6999_v28, %v21118_v41  ;;  %v7411_v52 = vrot.slane %v6999_v28, %v21119_v1  ;;  %v6297_v4 = vpop.xlane.xlu0 %6296 }
 0x533   : > { %v9048_v45 = vunpack.c.l.b16 %v7334_v18  ;;  %v17013_v22 = vunpack.c.l.b16 %v7341_v55  ;;  %v10994_v61 = vrot.slane %v21165_v25, %v21131_v39  ;;  %v10990_v21 = vsel %vm9343_vm2, %v10989_v14, %v10985_v36  ;;  %v17018_v59 = vpop.xlane.xlu1 %6341 }
 0x534   : > { %6506 = vmax.xlane.f32.xlu0 %v6505_v48  ;;  %6551 = vmax.xlane.f32.xlu1 %v6550_v47  ;;  %v9424_v5 = vsel %vm9322_vm15, %v9423_v62, %v9419_v19  ;;  %v9058_v50 = vunpack.c.l.b16 %v7404_v30  ;;  %v9059_v8 = vunpack.c.l.b16 %v7411_v52  ;;  %v7000_v9 = vpack.c.bf16 %v6297_v4, %v21165_v25  ;;  %v21166_v19 = vld [vmem:[#allocation55_spill] sm:$0xff]  ;;  %v21167_v62 = vld [vmem:[#allocation54_spill] sm:$0xff] }
 0x535   : > { %v9372_v48 = vsel %vm9371_vm6, %v9370_v58, %v9365_v11  ;;  %v9429_v18 = vsel %vm20229_vm0, %v9428_v34, %v9424_v5  ;;  %v10995_v55 = vsel %vm9350_vm3, %v10994_v61, %v10990_v21  ;;  %v10999_v7 = vrot.slane %v6297_v4, %v21135_v16 }
 0x536   : > { %v9433_v24 = vrot.slane %v9058_v50, %v21123_v0  ;;  %v9438_v47 = vrot.slane %v9059_v8, %v21132_v38  ;;  %v7418_v26 = vrot.slane %v7000_v9, %v21118_v41  ;;  %v7425_v28 = vrot.slane %v7000_v9, %v21119_v1  ;;  %v6303_v34 = vpop.xlane.xlu0 %6302 }
 0x537   : > { %v9377_v36 = vrot.slane %v9048_v45, %v21138_v29  ;;  %v11004_v58 = vrot.slane %v16849_v57, %v21134_v56  ;;  %v7348_v11 = vrot.slane %v16909_v32, %v21118_v41  ;;  %v11000_v14 = vsel %vm9357_vm4, %v10999_v7, %v10995_v55  ;;  %v17038_v30 = vpop.xlane.xlu1 %6347  ;;  %v21168_v7 = vld [vmem:[#allocation81_spill] sm:$0xff] }
 0x538   : > { %6512 = vmax.xlane.f32.xlu0 %v21166_v19  ;;  %6557 = vmax.xlane.f32.xlu1 %v21167_v62  ;;  %v9434_v52 = vsel %vm9336_vm1, %v9433_v24, %v9429_v18  ;;  %v9060_v25 = vunpack.c.l.b16 %v7418_v26  ;;  %v9061_v61 = vunpack.c.l.b16 %v7425_v28  ;;  %v7001_v21 = vpack.c.bf16 %v6303_v34, %v16849_v57  ;;  %v21169_v26 = vld [vmem:[#allocation78_spill] sm:$0xff] }
 0x539   : > { %v9384_v45 = vrot.slane %v17013_v22, %v21148_v43  ;;  %v9439_v4 = vsel %vm9343_vm2, %v9438_v47, %v9434_v52  ;;  %v11005_v5 = vsel %vm9364_vm5, %v11004_v58, %v11000_v14  ;;  %v11009_v50 = vrot.slane %v6303_v34, %v21139_v44 }
 0x53a   : > { %vm20230_vm0 = vcmask 1041409   ;;  %v9443_v8 = vrot.slane %v9060_v25, %v21131_v39  ;;  %v9448_v9 = vrot.slane %v9061_v61, %v21135_v16  ;;  %v7432_v18 = vrot.slane %v7001_v21, %v21118_v41  ;;  %v6309_v28 = vpop.xlane.xlu0 %6308 }
 0x53b   : > { %v7439_v55 = vrot.slane %v7001_v21, %v21119_v1  ;;  %v11014_v57 = vrot.slane %v16870_v60, %v21138_v29  ;;  %v7355_v22 = vrot.slane %v16909_v32, %v21119_v1  ;;  %v9050_v24 = vunpack.c.l.b16 %v7348_v11  ;;  %v17058_v19 = vpop.xlane.xlu1 %6353 }
 0x53c   : > { %6518 = vmax.xlane.f32.xlu0 %v21168_v7  ;;  %v11010_v47 = vsel %vm9371_vm6, %v11009_v50, %v11005_v5  ;;  %6563 = vmax.xlane.f32.xlu1 %v21169_v26  ;;  %v9444_v58 = vsel %vm9350_vm3, %v9443_v8, %v9439_v4  ;;  %v9062_v14 = vunpack.c.l.b16 %v7432_v18  ;;  %v7002_v34 = vpack.c.bf16 %v6309_v28, %v16870_v60  ;;  %v21170_v50 = vld [vmem:[#allocation130_spill] sm:$0xff] }
 0x53d   : > { %v9063_v62 = vunpack.c.l.b16 %v7439_v55  ;;  %v9379_v52 = vsel %vm9378_vm7, %v9377_v36, %v9372_v48  ;;  %v9449_v25 = vsel %vm9357_vm4, %v9448_v9, %v9444_v58  ;;  %v11015_v32 = vsel %vm9378_vm7, %v11014_v57, %v11010_v47  ;;  %v21171_v9 = vld [vmem:[#allocation123_spill] sm:$0xff] }
 0x53e   : > { %v11019_v11 = vrot.slane %v6309_v28, %v21148_v43  ;;  %v9453_v61 = vrot.slane %v9062_v14, %v21134_v56  ;;  %v7446_v5 = vrot.slane %v7002_v34, %v21118_v41  ;;  %v7453_v4 = vrot.slane %v7002_v34, %v21119_v1  ;;  %v6315_v18 = vpop.xlane.xlu0 %6314 }
 0x53f   : > { %v9458_v21 = vrot.slane %v9063_v62, %v21139_v44  ;;  %v9051_v8 = vunpack.c.l.b16 %v7355_v22  ;;  %v9391_v60 = vrot.slane %v9050_v24, %v21147_v23  ;;  %v11024_v48 = vrot.slane %v16901_v35, %v21147_v23  ;;  %v17076_v55 = vpop.xlane.xlu1 %6359 }
 0x540   : > { %6524 = vmax.xlane.f32.xlu0 %v21170_v50  ;;  %v11020_v36 = vsel %vm9385_vm8, %v11019_v11, %v11015_v32  ;;  %6569 = vmax.xlane.f32.xlu1 %v21171_v9  ;;  %v9454_v7 = vsel %vm9364_vm5, %v9453_v61, %v9449_v25  ;;  %v9064_v57 = vunpack.c.l.b16 %v7446_v5  ;;  %v9065_v47 = vunpack.c.l.b16 %v7453_v4  ;;  %v21172_v32 = vld [vmem:[#allocation158_spill] sm:$0xff] }
 0x541   : > { %v7003_v26 = vpack.c.bf16 %v6315_v18, %v16901_v35  ;;  %v9386_v22 = vsel %vm9385_vm8, %v9384_v45, %v9379_v52  ;;  %v9459_v24 = vsel %vm9371_vm6, %v9458_v21, %v9454_v7  ;;  %v11025_v28 = vsel %vm9392_vm9, %v11024_v48, %v11020_v36  ;;  %v21175_v7 = vld [vmem:[#allocation109_spill] sm:$0xff] }
 0x542   : > { %v11029_v58 = vrot.slane %v6315_v18, %v21149_v13  ;;  %v9463_v14 = vrot.slane %v9064_v57, %v21138_v29  ;;  %v9468_v62 = vrot.slane %v9065_v47, %v21148_v43  ;;  %v9393_v35 = vsel %vm9392_vm9, %v9391_v60, %v9386_v22  ;;  %v6321_v11 = vpop.xlane.xlu0 %6320  ;;  %v21177_v57 = vld [vmem:[#allocation295_spill] sm:$0xff] }
 0x543   : > { %v7460_v34 = vrot.slane %v7003_v26, %v21118_v41  ;;  %v7467_v25 = vrot.slane %v7003_v26, %v21119_v1  ;;  %v9398_v45 = vrot.slane %v9051_v8, %v21149_v13  ;;  %v17093_v61 = vpop.xlane.xlu1 %6365  ;;  %v21173_v21 = vcombine.high %v16721_v37, %v16825_v12 }
 0x544   : > { %6530 = vmax.xlane.f32.xlu0 %v16932_v10  ;;  %v11030_v52 = vsel %vm20249_vm10, %v11029_v58, %v11025_v28  ;;  %6575 = vmax.xlane.f32.xlu1 %v21172_v32  ;;  %v9464_v4 = vsel %vm9378_vm7, %v9463_v14, %v9459_v24  ;;  %v11034_v60 = vrot.slane %v16925_v51, %v21110_v63  ;;  %v21179_v58 = vld [vmem:[#allocation85_spill] sm:$0xff] }
 0x545   : > { %v17099_v5 = vsel %vm20240_vm11, %v21173_v21, -inf  ;;  %v9066_v10 = vunpack.c.l.b16 %v7460_v34  ;;  %v9067_v50 = vunpack.c.l.b16 %v7467_v25  ;;  %v17104_v8 = vsel %vm20230_vm0, %v11030_v52, %v16921_v6  ;;  %v21176_v6 = vld [vmem:[#allocation297_spill] sm:$0xff] }
 0x546   : > { %21174 = vst [vmem:[#allocation156_spill] sm:$0xff] %v17099_v5  ;;  %v9469_v48 = vsel %vm9385_vm8, %v9468_v62, %v9464_v4  ;;  %v7004_v36 = vpack.c.bf16 %v6321_v11, %v16925_v51  ;;  %v11038_v37 = vrot.slane %v6321_v11, %v15461_v31  ;;  %v11043_v12 = vrot.slane %v16963_v40, %v21114_v15  ;;  %v6327_v14 = vpop.xlane.xlu0 %6326 }
 0x547   : > { %v9473_v9 = vrot.slane %v9066_v10, %v21147_v23  ;;  %v9478_v18 = vrot.slane %v9067_v50, %v21149_v13  ;;  %v21178_v47 = vcombine.low %v21176_v6, %v21177_v57  ;;  %v9400_v22 = vsel %vm20249_vm10, %v9398_v45, %v9393_v35  ;;  %v17125_v62 = vpop.xlane.xlu1 %6371 }
 0x548   : > { %6536 = vmax.xlane.f32.xlu0 %v21175_v7  ;;  %v7474_v51 = vrot.slane %v7004_v36, %v21118_v41  ;;  %v7481_v24 = vrot.slane %v7004_v36, %v21119_v1  ;;  %v11039_v28 = vsel %vm9301_vm12, %v11038_v37, %v11034_v60  ;;  %6581 = vmax.xlane.f32.xlu1 %v21179_v58  ;;  %v21180_v60 = vld [vmem:[#allocation32_spill] sm:$0xff]  ;;  %v21186_v58 = vld [vmem:[#allocation337_spill] sm:$0xff] }
 0x549   : > { %v6541_v26 = vsel %vm20240_vm11, %v21178_v47, -inf  ;;  %v9474_v34 = vsel %vm9392_vm9, %v9473_v9, %v9469_v48  ;;  %v7005_v25 = vpack.c.bf16 %v6327_v14, %v16963_v40  ;;  %v11044_v52 = vsel %vm9308_vm13, %v11043_v12, %v11039_v28  ;;  %v21183_v9 = vld [vmem:[#allocation103_spill] sm:$0xff] }
 0x54a   : > { %v11048_v32 = vrot.slane %v6327_v14, %v21117_v46  ;;  %v11053_v35 = vrot.slane %v16984_v53, %v21120_v42  ;;  %v9479_v45 = vsel %vm20249_vm10, %v9478_v18, %v9474_v34  ;;  %v9068_v11 = vunpack.c.l.b16 %v7474_v51  ;;  %v6333_v18 = vpop.xlane.xlu0 %6332  ;;  %v21187_v14 = vld [vmem:[#allocation335_spill] sm:$0xff] }
 0x54b   : > { %v9069_v21 = vunpack.c.l.b16 %v7481_v24  ;;  %v17135_v4 = vsel %vm20230_vm0, %v9479_v45, %v9400_v22  ;;  %v7488_v10 = vrot.slane %v7005_v25, %v21118_v41  ;;  %v7495_v50 = vrot.slane %v7005_v25, %v21119_v1  ;;  %v17150_v47 = vpop.xlane.xlu1 %6377 }
 0x54c   : > { %v11049_v40 = vsel %vm9315_vm14, %v11048_v32, %v11044_v52  ;;  %6542 = vmax.xlane.f32.xlu0 %v6541_v26  ;;  %v21181_v48 = vcombine.high %v21151_v27, %v21150_v3  ;;  %v9483_v37 = vrot.slane %v9068_v11, %v21110_v63  ;;  %6587 = vmax.xlane.f32.xlu1 %v21183_v9  ;;  %v21184_v3 = vld [vmem:[#allocation271_spill] sm:$0xff]  ;;  %v21185_v27 = vld [vmem:[#allocation270_spill] sm:$0xff]  ;;  %vm21191_vm0 = vcmask 392512  }
 0x54d   : > { %v9487_v12 = vrot.slane %v9069_v21, %v15461_v31  ;;  %v11054_v7 = vsel %vm9322_vm15, %v11053_v35, %v11049_v40  ;;  %v9070_v22 = vunpack.c.l.b16 %v7488_v10  ;;  %v9071_v51 = vunpack.c.l.b16 %v7495_v50  ;;  %v21190_v35 = vld [vmem:[#allocation233_spill] sm:$0xff]  ;;  %v21192_v9 = vld [vmem:[#allocation355_spill] sm:$0xff] }
 0x54e   : > { %v17144_v36 = vrot.slane %v21181_v48, %v21180_v60  ;;  %v7006_v26 = vpack.c.bf16 %v6333_v18, %v16984_v53  ;;  %v11058_v24 = vrot.slane %v6333_v18, %v21124_v20  ;;  %v5059_v28 = vcombine.low %v21185_v27, %v21184_v3 }
 0x54f   : > { %v21188_v34 = vcombine.low %v21186_v58, %v21187_v14  ;;  %v21189_v52 = vcombine.high %v21157_v33, %v21158_v49  ;;  %v9492_v53 = vrot.slane %v9070_v22, %v21114_v15  ;;  %v9497_v11 = vrot.slane %v9071_v51, %v21117_v46  ;;  %v6339_v49 = vpop.xlane.xlu0 %6338  ;;  %v17174_v48 = vpop.xlane.xlu1 %6383 }
 0x550   : > { %21182 = vst [vmem:[#allocation152_spill] sm:$0xff] %v17144_v36  ;;  %v7502_v21 = vrot.slane %v7006_v26, %v21118_v41  ;;  %v7509_v10 = vrot.slane %v7006_v26, %v21119_v1  ;;  %v11063_v50 = vrot.slane %v17001_v2, %v21123_v0  ;;  %v9488_v40 = vsel %vm9301_vm12, %v9487_v12, %v9483_v37  ;;  %v21208_v36 = vld [vmem:[#allocation301_spill] sm:$0xff] }
 0x551   : > { %v6547_v25 = vsel %vm20240_vm11, %v21188_v34, -inf  ;;  %v6592_v32 = vsel %vm20240_vm11, %v21189_v52, -inf  ;;  %v11059_v33 = vsel %vm21191_vm0, %v11058_v24, %v11054_v7  ;;  %v21193_v18 = vcombine.high %v21160_v17, %v21192_v9  ;;  %v21194_v7 = vld [vmem:[#allocation61_spill] sm:$0xff]  ;;  %v21195_v24 = vld [vmem:[#allocation58_spill] sm:$0xff] }
 0x552   : > { %6548 = vmax.xlane.f32.xlu0 %v6547_v25  ;;  %6593 = vmax.xlane.f32.xlu1 %v6592_v32  ;;  %v9493_v51 = vsel %vm9308_vm13, %v9492_v53, %v9488_v40  ;;  %v9072_v26 = vunpack.c.l.b16 %v7502_v21  ;;  %v9073_v3 = vunpack.c.l.b16 %v7509_v10  ;;  %v7007_v27 = vpack.c.bf16 %v6339_v49, %v17001_v2 }
 0x553   : > { %v6598_v22 = vsel %vm20240_vm11, %v21193_v18, -inf  ;;  %v9498_v34 = vsel %vm9315_vm14, %v9497_v11, %v9493_v51  ;;  %v11064_v37 = vsel %vm9336_vm1, %v11063_v50, %v11059_v33  ;;  %v11068_v12 = vrot.slane %v6339_v49, %v21132_v38  ;;  %v6345_v33 = vpop.xlane.xlu0 %6344  ;;  %v17198_v49 = vpop.xlane.xlu1 %6389 }
 0x554   : > { %v21196_v25 = vcombine.low %v21194_v7, %v21195_v24  ;;  %v9502_v17 = vrot.slane %v9072_v26, %v21120_v42  ;;  %v9507_v32 = vrot.slane %v9073_v3, %v21124_v20  ;;  %v7516_v53 = vrot.slane %v7007_v27, %v21118_v41 }
 0x555   : > { %v7523_v21 = vrot.slane %v7007_v27, %v21119_v1  ;;  %v11073_v50 = vrot.slane %v17018_v59, %v21131_v39  ;;  %v11069_v40 = vsel %vm9343_vm2, %v11068_v12, %v11064_v37  ;;  %v7008_v3 = vpack.c.bf16 %v6345_v33, %v17018_v59  ;;  %v21199_v37 = vld [vmem:[#allocation43_spill] sm:$0xff] }
 0x556   : > { %v6553_v52 = vsel %vm20240_vm11, %v21196_v25, -inf  ;;  %6599 = vmax.xlane.f32.xlu1 %v6598_v22  ;;  %v9503_v18 = vsel %vm9322_vm15, %v9502_v17, %v9498_v34  ;;  %v9074_v51 = vunpack.c.l.b16 %v7516_v53  ;;  %v17208_v22 = vrot.slane %v5059_v28, %v21199_v37  ;;  %v21200_v17 = vld [vmem:[#allocation74_spill] sm:$0xff]  ;;  %v21201_v59 = vld [vmem:[#allocation283_spill] sm:$0xff] }
 0x557   : > { %6554 = vmax.xlane.f32.xlu0 %v6553_v52  ;;  %v9075_v26 = vunpack.c.l.b16 %v7523_v21  ;;  %v9508_v27 = vsel %vm21191_vm0, %v9507_v32, %v9503_v18  ;;  %v11074_v25 = vsel %vm9350_vm3, %v11073_v50, %v11069_v40  ;;  %v11078_v52 = vrot.slane %v6345_v33, %v21135_v16  ;;  %v21202_v53 = vld [vmem:[#allocation282_spill] sm:$0xff]  ;;  %v21203_v21 = vld [vmem:[#allocation291_spill] sm:$0xff] }
 0x558   : > { %v9512_v12 = vrot.slane %v9074_v51, %v21123_v0  ;;  %v7530_v9 = vrot.slane %v7008_v3, %v21118_v41  ;;  %v7537_v34 = vrot.slane %v7008_v3, %v21119_v1  ;;  %v21204_v50 = vld [vmem:[#allocation290_spill] sm:$0xff]  ;;  %v11083_v28 = vrot.slane %v17038_v30, %v21134_v56  ;;  %v6351_v51 = vpop.xlane.xlu0 %6350 }
 0x559   : > { %v9517_v10 = vrot.slane %v9075_v26, %v21132_v38  ;;  %v11079_v33 = vsel %vm9357_vm4, %v11078_v52, %v11074_v25  ;;  %v21205_v18 = vld [vmem:[#allocation50_spill] sm:$0xff]  ;;  %v17223_v26 = vpop.xlane.xlu1 %6395  ;;  %v7009_v5 = vpack.c.bf16 %v6351_v51, %v17038_v30  ;;  %v11088_v25 = vrot.slane %v6351_v51, %v21139_v44  ;;  %v21215_v51 = vld [vmem:[#allocation284_spill] sm:$0xff] }
 0x55a   : > { %6605 = vmax.xlane.f32.xlu1 %v21205_v18  ;;  %21206 = vst [vmem:[#allocation148_spill] sm:$0xff] %v17223_v26  ;;  %v9513_v3 = vsel %vm9336_vm1, %v9512_v12, %v9508_v27  ;;  %v9076_v45 = vunpack.c.l.b16 %v7530_v9  ;;  %v21207_v32 = vld [vmem:[#allocation302_spill] sm:$0xff]  ;;  %v11084_v11 = vsel %vm9364_vm5, %v11083_v28, %v11079_v33  ;;  %v21209_v27 = vld [vmem:[#allocation80_spill] sm:$0xff]  ;;  %v21211_v12 = vld [vmem:[#allocation313_spill] sm:$0xff]  ;;  %vm20234_vm0 = vcmask 1042434  }
 0x55b   : > { %6560 = vmax.xlane.f32.xlu0 %v21200_v17  ;;  %v9077_v17 = vunpack.c.l.b16 %v7537_v34  ;;  %v5739_v2 = vcombine.low %v21208_v36, %v21207_v32  ;;  %v9518_v40 = vsel %vm9343_vm2, %v9517_v10, %v9513_v3  ;;  %v7544_v26 = vrot.slane %v7009_v5, %v21118_v41  ;;  %v21210_v30 = vld [vmem:[#allocation314_spill] sm:$0xff]  ;;  %v21212_v32 = vld [vmem:[#allocation92_spill] sm:$0xff] }
 0x55c   : > { %v9522_v52 = vrot.slane %v9076_v45, %v21131_v39  ;;  %v7551_v9 = vrot.slane %v7009_v5, %v21119_v1  ;;  %v5771_v34 = vcombine.low %v21211_v12, %v21210_v30  ;;  %v11093_v36 = vrot.slane %v17058_v19, %v21138_v29  ;;  %v6357_v28 = vpop.xlane.xlu0 %6356  ;;  %v21214_v33 = vld [vmem:[#allocation286_spill] sm:$0xff] }
 0x55d   : > { %v9527_v18 = vrot.slane %v9077_v17, %v21135_v16  ;;  %v11089_v10 = vsel %vm9371_vm6, %v11088_v25, %v11084_v11  ;;  %v17243_v45 = vpop.xlane.xlu1 %6401  ;;  %v21216_v3 = vcombine.high %v21214_v33, %v21215_v51  ;;  %v7010_v30 = vpack.c.bf16 %v6357_v28, %v17058_v19  ;;  %v21218_v19 = vld [vmem:[#allocation346_spill] sm:$0xff] }
 0x55e   : > { %6611 = vmax.xlane.f32.xlu1 %v21212_v32  ;;  %21213 = vst [vmem:[#allocation141_spill] sm:$0xff] %v17243_v45  ;;  %v9523_v17 = vsel %vm9350_vm3, %v9522_v52, %v9518_v40  ;;  %v9079_v60 = vunpack.c.l.b16 %v7551_v9  ;;  %v11094_v11 = vsel %vm9378_vm7, %v11093_v36, %v11089_v10  ;;  %v11098_v25 = vrot.slane %v6357_v28, %v21148_v43  ;;  %v21219_v52 = vld [vmem:[#allocation345_spill] sm:$0xff] }
 0x55f   : > { %6566 = vmax.xlane.f32.xlu0 %v21209_v27  ;;  %v6577_v5 = vsel %vm20240_vm11, %v21216_v3, -inf  ;;  %v9078_v27 = vunpack.c.l.b16 %v7544_v26  ;;  %v9528_v12 = vsel %vm9357_vm4, %v9527_v18, %v9523_v17  ;;  %v17255_v32 = vrot.slane %v5739_v2, %v21199_v37  ;;  %v21217_v26 = vld [vmem:[#allocation121_spill] sm:$0xff]  ;;  %v21220_v2 = vld [vmem:[#allocation122_spill] sm:$0xff] }
 0x560   : > { %v9537_v33 = vrot.slane %v9079_v60, %v21139_v44  ;;  %v7558_v51 = vrot.slane %v7010_v30, %v21118_v41  ;;  %v7565_v40 = vrot.slane %v7010_v30, %v21119_v1  ;;  %v6011_v18 = vcombine.low %v21219_v52, %v21218_v19  ;;  %v6363_v10 = vpop.xlane.xlu0 %6362 }
 0x561   : > { %v9532_v45 = vrot.slane %v9078_v27, %v21134_v56  ;;  %v11103_v9 = vrot.slane %v17076_v55, %v21147_v23  ;;  %v11099_v36 = vsel %vm9385_vm8, %v11098_v25, %v11094_v11  ;;  %v17268_v28 = vpop.xlane.xlu1 %6407  ;;  %v17271_v60 = vrot.slane %v5771_v34, %v21199_v37 }
 0x562   : > { %6617 = vmax.xlane.f32.xlu1 %v21220_v2  ;;  %v9080_v17 = vunpack.c.l.b16 %v7558_v51  ;;  %v9081_v27 = vunpack.c.l.b16 %v7565_v40  ;;  %v7011_v30 = vpack.c.bf16 %v6363_v10, %v17076_v55  ;;  %v11108_v11 = vrot.slane %v6363_v10, %v21149_v13 }
 0x563   : > { %6572 = vmax.xlane.f32.xlu0 %v21217_v26  ;;  %v9533_v3 = vsel %vm9364_vm5, %v9532_v45, %v9528_v12  ;;  %v11104_v19 = vsel %vm9392_vm9, %v11103_v9, %v11099_v36  ;;  %v21221_v45 = vld [vmem:[#allocation362_spill] sm:$0xff]  ;;  %v21222_v12 = vld [vmem:[#allocation361_spill] sm:$0xff]  ;;  %v21224_v36 = vcombine.high %v21176_v6, %v21177_v57 }
 0x564   : > { %v9538_v26 = vsel %vm9371_vm6, %v9537_v33, %v9533_v3  ;;  %v9542_v25 = vrot.slane %v9080_v17, %v21138_v29  ;;  %v9547_v52 = vrot.slane %v9081_v27, %v21148_v43  ;;  %v7572_v34 = vrot.slane %v7011_v30, %v21118_v41  ;;  %v21223_v33 = vld [vmem:[#allocation144_spill] sm:$0xff]  ;;  %v6369_v40 = vpop.xlane.xlu0 %6368 }
 0x565   : > { %v7579_v2 = vrot.slane %v7011_v30, %v21119_v1  ;;  %v6043_v51 = vcombine.low %v21222_v12, %v21221_v45  ;;  %v11109_v55 = vsel %vm20249_vm10, %v11108_v11, %v11104_v19  ;;  %v17286_v9 = vpop.xlane.xlu1 %6413  ;;  %v6589_v10 = vsel %vm20240_vm11, %v21224_v36, -inf  ;;  %v21226_v12 = vld [vmem:[#allocation84_spill] sm:$0xff] }
 0x566   : > { %6623 = vmax.xlane.f32.xlu1 %v21223_v33  ;;  %v5803_v3 = vcombine.low %v17255_v32, %v17271_v60  ;;  %v9082_v17 = vunpack.c.l.b16 %v7572_v34  ;;  %v17297_v30 = vsel %vm20234_vm0, %v11109_v55, %v17104_v8  ;;  %v11113_v19 = vrot.slane %v17093_v61, %v21110_v63  ;;  %v21225_v34 = vld [vmem:[#allocation181_spill] sm:$0xff] }
 0x567   : > { %6578 = vmax.xlane.f32.xlu0 %v6577_v5  ;;  %v9543_v5 = vsel %vm9378_vm7, %v9542_v25, %v9538_v26  ;;  %v9083_v27 = vunpack.c.l.b16 %v7579_v2  ;;  %v7012_v6 = vpack.c.bf16 %v6369_v40, %v17093_v61  ;;  %v11117_v57 = vrot.slane %v6369_v40, %v15461_v31 }
 0x568   : > { %v9548_v11 = vsel %vm9385_vm8, %v9547_v52, %v9543_v5  ;;  %v11122_v45 = vrot.slane %v17125_v62, %v21114_v15  ;;  %v9552_v26 = vrot.slane %v9082_v17, %v21147_v23  ;;  %v17310_v8 = vrot.slane %v6011_v18, %v21199_v37  ;;  %v6375_v55 = vpop.xlane.xlu0 %6374 }
 0x569   : > { %v9557_v25 = vrot.slane %v9083_v27, %v21149_v13  ;;  %v7586_v2 = vrot.slane %v7012_v6, %v21118_v41  ;;  %v7593_v52 = vrot.slane %v7012_v6, %v21119_v1  ;;  %v11118_v61 = vsel %vm9301_vm12, %v11117_v57, %v11113_v19  ;;  %v17316_v33 = vpop.xlane.xlu1 %6419 }
 0x56a   : > { %6629 = vmax.xlane.f32.xlu1 %v21226_v12  ;;  %v17319_v40 = vrot.slane %v6043_v51, %v21199_v37  ;;  %v9553_v36 = vsel %vm9392_vm9, %v9552_v26, %v9548_v11  ;;  %v7013_v5 = vpack.c.bf16 %v6375_v55, %v17125_v62  ;;  %v11123_v18 = vsel %vm9308_vm13, %v11122_v45, %v11118_v61  ;;  %v21227_v61 = vld [vmem:[#allocation102_spill] sm:$0xff] }
 0x56b   : > { %6584 = vmax.xlane.f32.xlu0 %v21225_v34  ;;  %v11127_v17 = vrot.slane %v6375_v55, %v21117_v46  ;;  %v11132_v27 = vrot.slane %v17150_v47, %v21120_v42  ;;  %v9558_v19 = vsel %vm20249_vm10, %v9557_v25, %v9553_v36  ;;  %v9084_v6 = vunpack.c.l.b16 %v7586_v2 }
 0x56c   : > { %v9085_v57 = vunpack.c.l.b16 %v7593_v52  ;;  %v17330_v34 = vsel %vm20234_vm0, %v9558_v19, %v17135_v4  ;;  %v7600_v51 = vrot.slane %v7013_v5, %v21118_v41  ;;  %v7607_v11 = vrot.slane %v7013_v5, %v21119_v1  ;;  %v6381_v25 = vpop.xlane.xlu0 %6380 }
 0x56d   : > { %v11128_v62 = vsel %vm9315_vm14, %v11127_v17, %v11123_v18  ;;  %v9562_v45 = vrot.slane %v9084_v6, %v21110_v63  ;;  %v17339_v52 = vpop.xlane.xlu1 %6425  ;;  %v6075_v4 = vcombine.low %v17310_v8, %v17319_v40  ;;  %v7014_v36 = vpack.c.bf16 %v6381_v25, %v17150_v47 }
 0x56e   : > { %v9566_v26 = vrot.slane %v9085_v57, %v15461_v31  ;;  %6635 = vmax.xlane.f32.xlu1 %v21227_v61  ;;  %v11133_v2 = vsel %vm9322_vm15, %v11132_v27, %v11128_v62  ;;  %v9086_v12 = vunpack.c.l.b16 %v7600_v51  ;;  %v9087_v55 = vunpack.c.l.b16 %v7607_v11 }
 0x56f   : > { %6590 = vmax.xlane.f32.xlu0 %v6589_v10  ;;  %v11137_v10 = vrot.slane %v6381_v25, %v21124_v20  ;;  %v21228_v5 = vcombine.high %v21186_v58, %v21187_v14  ;;  %v6640_v17 = vsel %vm20240_vm11, %v5803_v3, -inf  ;;  %v21229_v27 = vcombine.low %v21202_v53, %v21201_v59 }
 0x570   : > { %v21230_v6 = vcombine.low %v21204_v50, %v21203_v21  ;;  %v9571_v57 = vrot.slane %v9086_v12, %v21114_v15  ;;  %v9576_v58 = vrot.slane %v9087_v55, %v21117_v46  ;;  %v7614_v14 = vrot.slane %v7014_v36, %v21118_v41  ;;  %v6387_v21 = vpop.xlane.xlu0 %6386 }
 0x571   : > { %v6595_v18 = vsel %vm20240_vm11, %v21228_v5, -inf  ;;  %v17354_v19 = vrot.slane %v21229_v27, %v21199_v37  ;;  %v7621_v3 = vrot.slane %v7014_v36, %v21119_v1  ;;  %v11142_v59 = vrot.slane %v17174_v48, %v21123_v0  ;;  %v17370_v50 = vpop.xlane.xlu1 %6431 }
 0x572   : > { %v17360_v47 = vrot.slane %v21230_v6, %v21199_v37  ;;  %v9567_v53 = vsel %vm9301_vm12, %v9566_v26, %v9562_v45  ;;  %vm21231_vm0 = vcmask 392512   ;;  %6641 = vmax.xlane.f32.xlu1 %v6640_v17  ;;  %v6646_v11 = vsel %vm20240_vm11, %v6075_v4, -inf }
 0x573   : > { %6596 = vmax.xlane.f32.xlu0 %v6595_v18  ;;  %v11138_v51 = vsel %vm21231_vm0, %v11137_v10, %v11133_v2  ;;  %v9572_v62 = vsel %vm9308_vm13, %v9571_v57, %v9567_v53  ;;  %v9088_v61 = vunpack.c.l.b16 %v7614_v14  ;;  %v9089_v25 = vunpack.c.l.b16 %v7621_v3 }
 0x574   : > { %v7015_v12 = vpack.c.bf16 %v6387_v21, %v17174_v48  ;;  %v9577_v55 = vsel %vm9315_vm14, %v9576_v58, %v9572_v62  ;;  %v11143_v36 = vsel %vm9336_vm1, %v11142_v59, %v11138_v51  ;;  %v11147_v45 = vrot.slane %v6387_v21, %v21132_v38  ;;  %v6393_v27 = vpop.xlane.xlu0 %6392 }
 0x575   : > { %v21232_v26 = vcombine.high %v21194_v7, %v21195_v24  ;;  %v9581_v10 = vrot.slane %v9088_v61, %v21120_v42  ;;  %v9586_v4 = vrot.slane %v9089_v25, %v21124_v20  ;;  %v11152_v48 = vrot.slane %v17198_v49, %v21131_v39  ;;  %v17389_v6 = vpop.xlane.xlu1 %6437 }
 0x576   : > { %v7628_v5 = vrot.slane %v7015_v12, %v21118_v41  ;;  %v7635_v18 = vrot.slane %v7015_v12, %v21119_v1  ;;  %v11148_v17 = vsel %vm9343_vm2, %v11147_v45, %v11143_v36  ;;  %6647 = vmax.xlane.f32.xlu1 %v6646_v11  ;;  %v5123_v7 = vcombine.low %v17208_v22, %v17354_v19  ;;  %v21235_v11 = vld [vmem:[#allocation116_spill] sm:$0xff]  ;;  %v21236_v36 = vld [vmem:[#allocation73_spill] sm:$0xff] }
 0x577   : > { %v6601_v2 = vsel %vm20240_vm11, %v21232_v26, -inf  ;;  %v21233_v24 = vcombine.low %v21190_v35, %v16832_v54  ;;  %v9582_v58 = vsel %vm9322_vm15, %v9581_v10, %v9577_v55  ;;  %v7016_v59 = vpack.c.bf16 %v6393_v27, %v17198_v49  ;;  %v21237_v49 = vld [vmem:[#allocation32_spill] sm:$0xff]  ;;  %v21238_v45 = vld [vmem:[#allocation265_spill] sm:$0xff] }
 0x578   : > { %6602 = vmax.xlane.f32.xlu0 %v6601_v2  ;;  %v9090_v14 = vunpack.c.l.b16 %v7628_v5  ;;  %v9091_v3 = vunpack.c.l.b16 %v7635_v18  ;;  %v9587_v53 = vsel %vm21231_vm0, %v9586_v4, %v9582_v58  ;;  %v11153_v51 = vsel %vm9350_vm3, %v11152_v48, %v11148_v17  ;;  %v21239_v26 = vld [vmem:[#allocation269_spill] sm:$0xff]  ;;  %v21241_v4 = vld [vmem:[#allocation148_spill] sm:$0xff]  ;;  %v6399_v17 = vpop.xlane.xlu0 %6398 }
 0x579   : > { %v17397_v57 = vsel %vm20240_vm11, %v21233_v24, -inf  ;;  %v11157_v21 = vrot.slane %v6393_v27, %v21135_v16  ;;  %v5667_v62 = vcombine.low %v21235_v11, %v17360_v47  ;;  %v7642_v12 = vrot.slane %v7016_v59, %v21118_v41  ;;  %v21242_v48 = vld [vmem:[#allocation369_spill] sm:$0xff]  ;;  %v17421_v27 = vpop.xlane.xlu1 %6443 }
 0x57a   : > { %21234 = vst [vmem:[#allocation147_spill] sm:$0xff] %v17397_v57  ;;  %v9591_v61 = vrot.slane %v9090_v14, %v21123_v0  ;;  %v9596_v25 = vrot.slane %v9091_v3, %v21132_v38  ;;  %v7649_v55 = vrot.slane %v7016_v59, %v21119_v1  ;;  %v21240_v2 = vcombine.high %v21238_v45, %v21239_v26 }
 0x57b   : > { %v11162_v5 = vrot.slane %v21241_v4, %v21134_v56  ;;  %v11158_v18 = vsel %vm9357_vm4, %v11157_v21, %v11153_v51  ;;  %6653 = vmax.xlane.f32.xlu1 %v21242_v48  ;;  %v6625_v24 = vsel %vm20240_vm11, %v5123_v7, -inf  ;;  %v9092_v14 = vunpack.c.l.b16 %v7642_v12  ;;  %v21244_v12 = vld [vmem:[#allocation324_spill] sm:$0xff]  ;;  %v21248_v48 = vld [vmem:[#allocation141_spill] sm:$0xff] }
 0x57c   : > { %6608 = vmax.xlane.f32.xlu0 %v21236_v36  ;;  %v17415_v10 = vrot.slane %v21240_v2, %v21237_v49  ;;  %v9592_v58 = vsel %vm9336_vm1, %v9591_v61, %v9587_v53  ;;  %v9093_v3 = vunpack.c.l.b16 %v7649_v55  ;;  %v7017_v59 = vpack.c.bf16 %v6399_v17, %v21241_v4  ;;  %v21243_v61 = vld [vmem:[#allocation90_spill] sm:$0xff]  ;;  %v21245_v55 = vld [vmem:[#allocation323_spill] sm:$0xff] }
 0x57d   : > { %v9597_v36 = vsel %vm9343_vm2, %v9596_v25, %v9592_v58  ;;  %v11163_v45 = vsel %vm9364_vm5, %v11162_v5, %v11158_v18  ;;  %v11167_v26 = vrot.slane %v6399_v17, %v21139_v44  ;;  %v17430_v51 = vsel %vm20240_vm11, %v5667_v62, -inf  ;;  %v21246_v4 = vld [vmem:[#allocation334_spill] sm:$0xff]  ;;  %v21247_v5 = vld [vmem:[#allocation333_spill] sm:$0xff]  ;;  %v21249_v58 = vld [vmem:[#allocation87_spill] sm:$0xff] }
 0x57e   : > { %v9601_v21 = vrot.slane %v9092_v14, %v21131_v39  ;;  %v9606_v2 = vrot.slane %v9093_v3, %v21135_v16  ;;  %v7656_v7 = vrot.slane %v7017_v59, %v21118_v41  ;;  %v7663_v53 = vrot.slane %v7017_v59, %v21119_v1  ;;  %v6405_v14 = vpop.xlane.xlu0 %6404  ;;  %v17445_v3 = vpop.xlane.xlu1 %6449 }
 0x57f   : > { %v5875_v25 = vcombine.low %v21245_v55, %v21244_v12  ;;  %v5907_v18 = vcombine.low %v21247_v5, %v21246_v4  ;;  %v11172_v62 = vrot.slane %v21248_v48, %v21138_v29  ;;  %v11168_v17 = vsel %vm9371_vm6, %v11167_v26, %v11163_v45  ;;  %6659 = vmax.xlane.f32.xlu1 %v21249_v58 }
 0x580   : > { %6614 = vmax.xlane.f32.xlu0 %v21243_v61  ;;  %v9602_v59 = vsel %vm9350_vm3, %v9601_v21, %v9597_v36  ;;  %v9094_v57 = vunpack.c.l.b16 %v7656_v7  ;;  %v9095_v61 = vunpack.c.l.b16 %v7663_v53  ;;  %v7018_v11 = vpack.c.bf16 %v6405_v14, %v21248_v48  ;;  %v21250_v21 = vld [vmem:[#allocation118_spill] sm:$0xff]  ;;  %v21251_v53 = vld [vmem:[#allocation136_spill] sm:$0xff] }
 0x581   : > { %v9607_v12 = vsel %vm9357_vm4, %v9606_v2, %v9602_v59  ;;  %v11173_v55 = vsel %vm9378_vm7, %v11172_v62, %v11168_v17  ;;  %v11177_v4 = vrot.slane %v6405_v14, %v21148_v43  ;;  %v11182_v2 = vrot.slane %v17268_v28, %v21147_v23 }
 0x582   : > { %v9611_v26 = vrot.slane %v9094_v57, %v21134_v56  ;;  %v9616_v5 = vrot.slane %v9095_v61, %v21139_v44  ;;  %v7670_v58 = vrot.slane %v7018_v11, %v21118_v41  ;;  %v7677_v36 = vrot.slane %v7018_v11, %v21119_v1  ;;  %v6411_v48 = vpop.xlane.xlu0 %6410  ;;  %v17463_v62 = vpop.xlane.xlu1 %6455 }
 0x583   : > { %v11178_v7 = vsel %vm9385_vm8, %v11177_v4, %v11173_v55  ;;  %6665 = vmax.xlane.f32.xlu1 %v21251_v53  ;;  %v17466_v57 = vrot.slane %v5875_v25, %v21199_v37  ;;  %v17469_v17 = vrot.slane %v5907_v18, %v21199_v37  ;;  %v7019_v61 = vpack.c.bf16 %v6411_v48, %v17268_v28 }
 0x584   : > { %6620 = vmax.xlane.f32.xlu0 %v21250_v21  ;;  %v9612_v11 = vsel %vm9364_vm5, %v9611_v26, %v9607_v12  ;;  %v9096_v14 = vunpack.c.l.b16 %v7670_v58  ;;  %v9097_v59 = vunpack.c.l.b16 %v7677_v36  ;;  %vm20235_vm0 = vcmask 1043459   ;;  %v21252_v12 = vld [vmem:[#allocation60_spill] sm:$0xff] }
 0x585   : > { %v9617_v21 = vsel %vm9371_vm6, %v9616_v5, %v9612_v11  ;;  %v11183_v55 = vsel %vm9392_vm9, %v11182_v2, %v11178_v7  ;;  %v11187_v4 = vrot.slane %v6411_v48, %v21149_v13  ;;  %v7684_v18 = vrot.slane %v7019_v61, %v21118_v41  ;;  %v21253_v26 = vld [vmem:[#allocation56_spill] sm:$0xff]  ;;  %v21254_v5 = vld [vmem:[#allocation278_spill] sm:$0xff] }
 0x586   : > { %v9621_v53 = vrot.slane %v9096_v14, %v21138_v29  ;;  %v9626_v25 = vrot.slane %v9097_v59, %v21148_v43  ;;  %v7691_v45 = vrot.slane %v7019_v61, %v21119_v1  ;;  %v6179_v58 = vcombine.low %v21253_v26, %v21252_v12  ;;  %v6417_v36 = vpop.xlane.xlu0 %6416  ;;  %v17484_v2 = vpop.xlane.xlu1 %6461  ;;  %v21255_v26 = vld [vmem:[#allocation51_spill] sm:$0xff] }
 0x587   : > { %v11188_v28 = vsel %vm20249_vm10, %v11187_v4, %v11183_v55  ;;  %6671 = vmax.xlane.f32.xlu1 %v21254_v5  ;;  %v5939_v7 = vcombine.low %v17466_v57, %v17469_v17  ;;  %v6076_v48 = vcombine.high %v17310_v8, %v17319_v40  ;;  %v9098_v14 = vunpack.c.l.b16 %v7684_v18  ;;  %v21256_v5 = vld [vmem:[#allocation52_spill] sm:$0xff]  ;;  %v21258_v18 = vld [vmem:[#allocation79_spill] sm:$0xff] }
 0x588   : > { %6626 = vmax.xlane.f32.xlu0 %v6625_v24  ;;  %v9622_v11 = vsel %vm9378_vm7, %v9621_v53, %v9617_v21  ;;  %v9099_v24 = vunpack.c.l.b16 %v7691_v45  ;;  %v17493_v59 = vsel %vm20235_vm0, %v11188_v28, %v17297_v30  ;;  %v11192_v61 = vrot.slane %v17286_v9, %v21110_v63  ;;  %v21257_v21 = vld [vmem:[#allocation179_spill] sm:$0xff] }
 0x589   : > { %v9627_v55 = vsel %vm9385_vm8, %v9626_v25, %v9622_v11  ;;  %v7020_v4 = vpack.c.bf16 %v6417_v36, %v17286_v9  ;;  %v11196_v12 = vrot.slane %v6417_v36, %v15461_v31  ;;  %v6147_v8 = vcombine.low %v21256_v5, %v21255_v26 }
 0x58a   : > { %v11201_v40 = vrot.slane %v17316_v33, %v21114_v15  ;;  %v9631_v45 = vrot.slane %v9098_v14, %v21147_v23  ;;  %v9636_v30 = vrot.slane %v9099_v24, %v21149_v13  ;;  %v6423_v28 = vpop.xlane.xlu0 %6422  ;;  %v17511_v36 = vpop.xlane.xlu1 %6467  ;;  %v17514_v11 = vrot.slane %v6179_v58, %v21199_v37 }
 0x58b   : > { %v7698_v53 = vrot.slane %v7020_v4, %v21118_v41  ;;  %v7705_v25 = vrot.slane %v7020_v4, %v21119_v1  ;;  %v11197_v9 = vsel %vm9301_vm12, %v11196_v12, %v11192_v61  ;;  %6677 = vmax.xlane.f32.xlu1 %v21258_v18  ;;  %v7021_v24 = vpack.c.bf16 %v6423_v28, %v17316_v33 }
 0x58c   : > { %6632 = vmax.xlane.f32.xlu0 %v21257_v21  ;;  %v9632_v14 = vsel %vm9392_vm9, %v9631_v45, %v9627_v55  ;;  %v11202_v26 = vsel %vm9308_vm13, %v11201_v40, %v11197_v9  ;;  %v11206_v5 = vrot.slane %v6423_v28, %v21117_v46  ;;  %v11211_v4 = vrot.slane %v17339_v52, %v21120_v42  ;;  %v21259_v9 = vld [vmem:[#allocation101_spill] sm:$0xff] }
 0x58d   : > { %v9637_v61 = vsel %vm20249_vm10, %v9636_v30, %v9632_v14  ;;  %v9100_v12 = vunpack.c.l.b16 %v7698_v53  ;;  %v9101_v21 = vunpack.c.l.b16 %v7705_v25  ;;  %v7712_v58 = vrot.slane %v7021_v24, %v21118_v41 }
 0x58e   : > { %v17525_v18 = vsel %vm20235_vm0, %v9637_v61, %v17330_v34  ;;  %v7719_v55 = vrot.slane %v7021_v24, %v21119_v1  ;;  %v11207_v33 = vsel %vm9315_vm14, %v11206_v5, %v11202_v26  ;;  %v6429_v30 = vpop.xlane.xlu0 %6428  ;;  %v17535_v25 = vpop.xlane.xlu1 %6473  ;;  %v17538_v34 = vrot.slane %v6147_v8, %v21199_v37  ;;  %v21261_v26 = vld [vmem:[#allocation152_spill] sm:$0xff] }
 0x58f   : > { %v9641_v40 = vrot.slane %v9100_v12, %v21110_v63  ;;  %v9645_v45 = vrot.slane %v9101_v21, %v15461_v31  ;;  %6683 = vmax.xlane.f32.xlu1 %v21259_v9  ;;  %v11212_v53 = vsel %vm9322_vm15, %v11211_v4, %v11207_v33  ;;  %v9102_v28 = vunpack.c.l.b16 %v7712_v58 }
 0x590   : > { %6638 = vmax.xlane.f32.xlu0 %v17430_v51  ;;  %21260 = vst [vmem:[#allocation146_spill] sm:$0xff] %v17538_v34  ;;  %v9103_v14 = vunpack.c.l.b16 %v7719_v55  ;;  %v7022_v24 = vpack.c.bf16 %v6429_v30, %v17339_v52  ;;  %v11216_v51 = vrot.slane %v6429_v30, %v21124_v20  ;;  %v5075_v5 = vcombine.low %v21261_v26, %v17415_v10 }
 0x591   : > { %v6643_v61 = vsel %vm20240_vm11, %v5939_v7, -inf  ;;  %v21262_v12 = vcombine.high %v17255_v32, %v17271_v60  ;;  %v6211_v8 = vcombine.low %v17538_v34, %v17514_v11  ;;  %v9650_v21 = vrot.slane %v9102_v28, %v21114_v15 }
 0x592   : > { %v9655_v58 = vrot.slane %v9103_v14, %v21117_v46  ;;  %v7726_v52 = vrot.slane %v7022_v24, %v21118_v41  ;;  %v7733_v55 = vrot.slane %v7022_v24, %v21119_v1  ;;  %v11221_v7 = vrot.slane %v17370_v50, %v21123_v0  ;;  %v6435_v60 = vpop.xlane.xlu0 %6434  ;;  %v17559_v9 = vpop.xlane.xlu1 %6479 }
 0x593   : > { %v6688_v4 = vsel %vm20240_vm11, %v21262_v12, -inf  ;;  %v9646_v33 = vsel %vm9301_vm12, %v9645_v45, %v9641_v40  ;;  %vm21263_vm0 = vcmask 392512   ;;  %v6694_v30 = vsel %vm20240_vm11, %v6076_v48, -inf }
 0x594   : > { %6644 = vmax.xlane.f32.xlu0 %v6643_v61  ;;  %v11217_v32 = vsel %vm21263_vm0, %v11216_v51, %v11212_v53  ;;  %6689 = vmax.xlane.f32.xlu1 %v6688_v4  ;;  %v9651_v28 = vsel %vm9308_vm13, %v9650_v21, %v9646_v33  ;;  %v9104_v14 = vunpack.c.l.b16 %v7726_v52  ;;  %v9105_v12 = vunpack.c.l.b16 %v7733_v55 }
 0x595   : > { %v7023_v24 = vpack.c.bf16 %v6435_v60, %v17370_v50  ;;  %v9656_v61 = vsel %vm9315_vm14, %v9655_v58, %v9651_v28  ;;  %v11222_v34 = vsel %vm9336_vm1, %v11221_v7, %v11217_v32  ;;  %v11226_v40 = vrot.slane %v6435_v60, %v21132_v38 }
 0x596   : > { %v6649_v45 = vsel %vm20240_vm11, %v6211_v8, -inf  ;;  %v9660_v53 = vrot.slane %v9104_v14, %v21120_v42  ;;  %v9665_v51 = vrot.slane %v9105_v12, %v21124_v20  ;;  %v5076_v50 = vcombine.high %v21261_v26, %v17415_v10  ;;  %v6441_v52 = vpop.xlane.xlu0 %6440  ;;  %v17577_v8 = vpop.xlane.xlu1 %6485 }
 0x597   : > { %v7740_v48 = vrot.slane %v7023_v24, %v21118_v41  ;;  %v7747_v4 = vrot.slane %v7023_v24, %v21119_v1  ;;  %v11231_v21 = vrot.slane %v17389_v6, %v21131_v39  ;;  %v11227_v58 = vsel %vm9343_vm2, %v11226_v40, %v11222_v34  ;;  %v21266_v24 = vld [vmem:[#allocation63_spill] sm:$0xff] }
 0x598   : > { %6650 = vmax.xlane.f32.xlu0 %v6649_v45  ;;  %6695 = vmax.xlane.f32.xlu1 %v6694_v30  ;;  %v21264_v55 = vcombine.high %v21190_v35, %v16832_v54  ;;  %v9661_v33 = vsel %vm9322_vm15, %v9660_v53, %v9656_v61  ;;  %v7024_v10 = vpack.c.bf16 %v6441_v52, %v17389_v6  ;;  %v21267_v6 = vld [vmem:[#allocation279_spill] sm:$0xff]  ;;  %v21268_v61 = vld [vmem:[#allocation273_spill] sm:$0xff] }
 0x599   : > { %v9106_v32 = vunpack.c.l.b16 %v7740_v48  ;;  %v9107_v60 = vunpack.c.l.b16 %v7747_v4  ;;  %v9666_v26 = vsel %vm21263_vm0, %v9665_v51, %v9661_v33  ;;  %v11232_v34 = vsel %vm9350_vm3, %v11231_v21, %v11227_v58  ;;  %v21270_v33 = vld [vmem:[#allocation276_spill] sm:$0xff] }
 0x59a   : > { %v17583_v7 = vsel %vm20240_vm11, %v21264_v55, -inf  ;;  %v11236_v30 = vrot.slane %v6441_v52, %v21135_v16  ;;  %v17591_v28 = vrot.slane %v5075_v5, %v21199_v37  ;;  %v7754_v14 = vrot.slane %v7024_v10, %v21118_v41  ;;  %v21269_v5 = vld [vmem:[#allocation53_spill] sm:$0xff]  ;;  %v6447_v51 = vpop.xlane.xlu0 %6446  ;;  %v17604_v48 = vpop.xlane.xlu1 %6491 }
 0x59b   : > { %21265 = vst [vmem:[#allocation159_spill] sm:$0xff] %v17583_v7  ;;  %v9670_v54 = vrot.slane %v9106_v32, %v21123_v0  ;;  %v9675_v35 = vrot.slane %v9107_v60, %v21132_v38  ;;  %v7761_v12 = vrot.slane %v7024_v10, %v21119_v1  ;;  %v5044_v40 = vcombine.high %v21268_v61, %v21267_v6  ;;  %v21271_v32 = vld [vmem:[#allocation272_spill] sm:$0xff] }
 0x59c   : > { %6656 = vmax.xlane.f32.xlu0 %v21266_v24  ;;  %v11241_v45 = vrot.slane %v17421_v27, %v21134_v56  ;;  %v11237_v53 = vsel %vm9357_vm4, %v11236_v30, %v11232_v34  ;;  %6701 = vmax.xlane.f32.xlu1 %v21269_v5  ;;  %v17607_v4 = vrot.slane %v5076_v50, %v21199_v37  ;;  %v9108_v58 = vunpack.c.l.b16 %v7754_v14 }
 0x59d   : > { %v9671_v21 = vsel %vm9336_vm1, %v9670_v54, %v9666_v26  ;;  %v9109_v52 = vunpack.c.l.b16 %v7761_v12  ;;  %v7025_v55 = vpack.c.bf16 %v6447_v51, %v17421_v27  ;;  %v5028_v60 = vcombine.high %v21271_v32, %v21270_v33  ;;  %v21272_v54 = vld [vmem:[#allocation86_spill] sm:$0xff] }
 0x59e   : > { %v9676_v10 = vsel %vm9343_vm2, %v9675_v35, %v9671_v21  ;;  %v11242_v34 = vsel %vm9364_vm5, %v11241_v45, %v11237_v53  ;;  %v11246_v30 = vrot.slane %v6447_v51, %v21139_v44  ;;  %v9680_v24 = vrot.slane %v9108_v58, %v21131_v39  ;;  %v21273_v12 = vld [vmem:[#allocation82_spill] sm:$0xff]  ;;  %v6453_v61 = vpop.xlane.xlu0 %6452  ;;  %v17628_v45 = vpop.xlane.xlu1 %6497 }
 0x59f   : > { %v9685_v50 = vrot.slane %v9109_v52, %v21135_v16  ;;  %v7768_v6 = vrot.slane %v7025_v55, %v21118_v41  ;;  %v7775_v26 = vrot.slane %v7025_v55, %v21119_v1  ;;  %v17622_v27 = vrot.slane %v5044_v40, %v21237_v49 }
 0x5a0   : > { %6662 = vmax.xlane.f32.xlu0 %v21272_v54  ;;  %v11251_v35 = vrot.slane %v17445_v3, %v21138_v29  ;;  %v11247_v14 = vsel %vm9371_vm6, %v11246_v30, %v11242_v34  ;;  %6707 = vmax.xlane.f32.xlu1 %v21273_v12  ;;  %v5124_v53 = vcombine.high %v17208_v22, %v17354_v19  ;;  %vm20237_vm0 = vcmask 1044484  }
 0x5a1   : > { %v9681_v5 = vsel %vm9350_vm3, %v9680_v24, %v9676_v10  ;;  %v9110_v51 = vunpack.c.l.b16 %v7768_v6  ;;  %v9111_v21 = vunpack.c.l.b16 %v7775_v26  ;;  %v7026_v40 = vpack.c.bf16 %v6453_v61, %v17445_v3  ;;  %v21274_v10 = vld [vmem:[#allocation129_spill] sm:$0xff]  ;;  %v21275_v24 = vld [vmem:[#allocation131_spill] sm:$0xff] }
 0x5a2   : > { %v17635_v58 = vrot.slane %v5028_v60, %v21237_v49  ;;  %v9686_v52 = vsel %vm9357_vm4, %v9685_v50, %v9681_v5  ;;  %v11252_v55 = vsel %vm9378_vm7, %v11251_v35, %v11247_v14  ;;  %v11256_v33 = vrot.slane %v6453_v61, %v21148_v43  ;;  %v6459_v50 = vpop.xlane.xlu0 %6458  ;;  %v17651_v6 = vpop.xlane.xlu1 %6503 }
 0x5a3   : > { %v9690_v32 = vrot.slane %v9110_v51, %v21134_v56  ;;  %v9695_v34 = vrot.slane %v9111_v21, %v21139_v44  ;;  %v7782_v22 = vrot.slane %v7026_v40, %v21118_v41  ;;  %v7789_v19 = vrot.slane %v7026_v40, %v21119_v1 }
 0x5a4   : > { %6668 = vmax.xlane.f32.xlu0 %v21274_v10  ;;  %v11261_v60 = vrot.slane %v17463_v62, %v21147_v23  ;;  %v11257_v30 = vsel %vm9385_vm8, %v11256_v33, %v11252_v55  ;;  %6713 = vmax.xlane.f32.xlu1 %v21275_v24  ;;  %v6673_v26 = vsel %vm20240_vm11, %v5124_v53, -inf  ;;  %v7027_v12 = vpack.c.bf16 %v6459_v50, %v17463_v62  ;;  %v21276_v62 = vld [vmem:[#allocation285_spill] sm:$0xff]  ;;  %v21277_v33 = vld [vmem:[#allocation196_spill] sm:$0xff] }
 0x5a5   : > { %v9691_v54 = vsel %vm9364_vm5, %v9690_v32, %v9686_v52  ;;  %v9112_v35 = vunpack.c.l.b16 %v7782_v22  ;;  %v9113_v14 = vunpack.c.l.b16 %v7789_v19  ;;  %v11266_v51 = vrot.slane %v6459_v50, %v21149_v13  ;;  %v21278_v22 = vld [vmem:[#allocation277_spill] sm:$0xff] }
 0x5a6   : > { %v9696_v61 = vsel %vm9371_vm6, %v9695_v34, %v9691_v54  ;;  %v11262_v5 = vsel %vm9392_vm9, %v11261_v60, %v11257_v30  ;;  %v7796_v55 = vrot.slane %v7027_v12, %v21118_v41  ;;  %v7803_v53 = vrot.slane %v7027_v12, %v21119_v1  ;;  %v6465_v19 = vpop.xlane.xlu0 %6464  ;;  %v17669_v10 = vpop.xlane.xlu1 %6509  ;;  %v21279_v60 = vld [vmem:[#allocation116_spill] sm:$0xff] }
 0x5a7   : > { %v9700_v21 = vrot.slane %v9112_v35, %v21138_v29  ;;  %v9705_v40 = vrot.slane %v9113_v14, %v21148_v43  ;;  %v5572_v32 = vcombine.high %v21277_v33, %v21276_v62  ;;  %v11267_v34 = vsel %vm20249_vm10, %v11266_v51, %v11262_v5 }
 0x5a8   : > { %6674 = vmax.xlane.f32.xlu0 %v6673_v26  ;;  %6719 = vmax.xlane.f32.xlu1 %v21278_v22  ;;  %v5668_v30 = vcombine.high %v21279_v60, %v17360_v47  ;;  %v9114_v50 = vunpack.c.l.b16 %v7796_v55  ;;  %v9115_v26 = vunpack.c.l.b16 %v7803_v53  ;;  %v7028_v54 = vpack.c.bf16 %v6465_v19, %v17484_v2  ;;  %v21280_v55 = vld [vmem:[#allocation104_spill] sm:$0xff] }
 0x5a9   : > { %v9701_v24 = vsel %vm9378_vm7, %v9700_v21, %v9696_v61  ;;  %v11271_v35 = vrot.slane %v17484_v2, %v21110_v63  ;;  %v11275_v12 = vrot.slane %v6465_v19, %v15461_v31  ;;  %v17681_v5 = vsel %vm20237_vm0, %v11267_v34, %v17493_v59  ;;  %v21281_v59 = vld [vmem:[#allocation77_spill] sm:$0xff] }
 0x5aa   : > { %v9706_v14 = vsel %vm9385_vm8, %v9705_v40, %v9701_v24  ;;  %v9710_v51 = vrot.slane %v9114_v50, %v21147_v23  ;;  %v9715_v47 = vrot.slane %v9115_v26, %v21149_v13  ;;  %v7810_v61 = vrot.slane %v7028_v54, %v21118_v41  ;;  %v6471_v62 = vpop.xlane.xlu0 %6470  ;;  %v17695_v33 = vpop.xlane.xlu1 %6515 }
 0x5ab   : > { %v7817_v21 = vrot.slane %v7028_v54, %v21119_v1  ;;  %v17689_v2 = vrot.slane %v5572_v32, %v21237_v49  ;;  %v11280_v40 = vrot.slane %v17511_v36, %v21114_v15  ;;  %v11276_v53 = vsel %vm9301_vm12, %v11275_v12, %v11271_v35  ;;  %v21282_v35 = vld [vmem:[#allocation288_spill] sm:$0xff]  ;;  %v21283_v12 = vld [vmem:[#allocation197_spill] sm:$0xff] }
 0x5ac   : > { %6680 = vmax.xlane.f32.xlu0 %v21280_v55  ;;  %6725 = vmax.xlane.f32.xlu1 %v21281_v59  ;;  %v6685_v34 = vsel %vm20240_vm11, %v5668_v30, -inf  ;;  %v9711_v22 = vsel %vm9392_vm9, %v9710_v51, %v9706_v14  ;;  %v9116_v19 = vunpack.c.l.b16 %v7810_v61  ;;  %v7029_v24 = vpack.c.bf16 %v6471_v62, %v17511_v36 }
 0x5ad   : > { %v9117_v60 = vunpack.c.l.b16 %v7817_v21  ;;  %v9716_v32 = vsel %vm20249_vm10, %v9715_v47, %v9711_v22  ;;  %v11281_v50 = vsel %vm9308_vm13, %v11280_v40, %v11276_v53  ;;  %v11285_v26 = vrot.slane %v6471_v62, %v21117_v46  ;;  %v21284_v21 = vld [vmem:[#allocation99_spill] sm:$0xff]  ;;  %v21286_v22 = vld [vmem:[#allocation317_spill] sm:$0xff] }
 0x5ae   : > { %v5940_v54 = vcombine.high %v17466_v57, %v17469_v17  ;;  %v5588_v55 = vcombine.high %v21283_v12, %v21282_v35  ;;  %v11290_v30 = vrot.slane %v17535_v25, %v21120_v42  ;;  %v7824_v14 = vrot.slane %v7029_v24, %v21118_v41  ;;  %v6477_v57 = vpop.xlane.xlu0 %6476  ;;  %v17715_v17 = vpop.xlane.xlu1 %6521  ;;  %v21288_v35 = vld [vmem:[#allocation146_spill] sm:$0xff] }
 0x5af   : > { %v7831_v51 = vrot.slane %v7029_v24, %v21119_v1  ;;  %v9720_v36 = vrot.slane %v9116_v19, %v21110_v63  ;;  %v9724_v47 = vrot.slane %v9117_v60, %v15461_v31  ;;  %v11286_v61 = vsel %vm9315_vm14, %v11285_v26, %v11281_v50 }
 0x5b0   : > { %6686 = vmax.xlane.f32.xlu0 %v6685_v34  ;;  %6731 = vmax.xlane.f32.xlu1 %v21284_v21  ;;  %v17719_v40 = vsel %vm20237_vm0, %v9716_v32, %v17525_v18  ;;  %v9118_v53 = vunpack.c.l.b16 %v7824_v14  ;;  %v7030_v62 = vpack.c.bf16 %v6477_v57, %v17535_v25  ;;  %v21285_v34 = vld [vmem:[#allocation316_spill] sm:$0xff]  ;;  %v11291_v24 = vsel %vm9322_vm15, %v11290_v30, %v11286_v61 }
 0x5b1   : > { %v9119_v59 = vunpack.c.l.b16 %v7831_v51  ;;  %v21287_v19 = vcombine.low %v21285_v34, %v21286_v22  ;;  %v11295_v50 = vrot.slane %v6477_v57, %v21124_v20  ;;  %v6691_v26 = vsel %vm20240_vm11, %v5940_v54, -inf }
 0x5b2   : > { %v6212_v12 = vcombine.high %v21288_v35, %v17514_v11  ;;  %v9729_v18 = vrot.slane %v9118_v53, %v21114_v15  ;;  %v7838_v25 = vrot.slane %v7030_v62, %v21118_v41  ;;  %v7845_v14 = vrot.slane %v7030_v62, %v21119_v1  ;;  %v6483_v11 = vpop.xlane.xlu0 %6482  ;;  %v17742_v21 = vpop.xlane.xlu1 %6527  ;;  %v21290_v35 = vld [vmem:[#allocation296_spill] sm:$0xff] }
 0x5b3   : > { %v6736_v60 = vsel %vm20240_vm11, %v21287_v19, -inf  ;;  %v9734_v32 = vrot.slane %v9119_v59, %v21117_v46  ;;  %v17736_v51 = vrot.slane %v5588_v55, %v21237_v49  ;;  %v11300_v30 = vrot.slane %v17559_v9, %v21123_v0 }
 0x5b4   : > { %6692 = vmax.xlane.f32.xlu0 %v6691_v26  ;;  %v9725_v54 = vsel %vm9301_vm12, %v9724_v47, %v9720_v36  ;;  %vm21289_vm0 = vcmask 392512   ;;  %6737 = vmax.xlane.f32.xlu1 %v6736_v60  ;;  %v9120_v53 = vunpack.c.l.b16 %v7838_v25  ;;  %v9121_v59 = vunpack.c.l.b16 %v7845_v14  ;;  %v21292_v25 = vld [vmem:[#allocation298_spill] sm:$0xff] }
 0x5b5   : > { %v11296_v61 = vsel %vm21289_vm0, %v11295_v50, %v11291_v24  ;;  %v9730_v57 = vsel %vm9308_vm13, %v9729_v18, %v9725_v54  ;;  %v7031_v62 = vpack.c.bf16 %v6483_v11, %v17559_v9  ;;  %v11305_v26 = vrot.slane %v6483_v11, %v21132_v38  ;;  %v21291_v18 = vld [vmem:[#allocation206_spill] sm:$0xff] }
 0x5b6   : > { %v9735_v55 = vsel %vm9315_vm14, %v9734_v32, %v9730_v57  ;;  %v11301_v19 = vsel %vm9336_vm1, %v11300_v30, %v11296_v61  ;;  %v6697_v36 = vsel %vm20240_vm11, %v6212_v12, -inf  ;;  %v9739_v47 = vrot.slane %v9120_v53, %v21120_v42  ;;  %v21293_v32 = vld [vmem:[#allocation292_spill] sm:$0xff]  ;;  %v21294_v54 = vld [vmem:[#allocation70_spill] sm:$0xff]  ;;  %v6489_v61 = vpop.xlane.xlu0 %6488 }
 0x5b7   : > { %v9744_v60 = vrot.slane %v9121_v59, %v21124_v20  ;;  %v7852_v24 = vrot.slane %v7031_v62, %v21118_v41  ;;  %v7859_v50 = vrot.slane %v7031_v62, %v21119_v1  ;;  %v5676_v9 = vcombine.high %v21291_v18, %v21290_v35  ;;  %v17764_v62 = vpop.xlane.xlu1 %6533 }
 0x5b8   : > { %6698 = vmax.xlane.f32.xlu0 %v6697_v36  ;;  %v5692_v14 = vcombine.high %v21293_v32, %v21292_v25  ;;  %v11310_v30 = vrot.slane %v17577_v8, %v21131_v39  ;;  %v11306_v12 = vsel %vm9343_vm2, %v11305_v26, %v11301_v19  ;;  %6749 = vmax.xlane.f32.xlu1 %v21294_v54  ;;  %v21299_v36 = vld [vmem:[#allocation299_spill] sm:$0xff] }
 0x5b9   : > { %v9740_v11 = vsel %vm9322_vm15, %v9739_v47, %v9735_v55  ;;  %v9122_v57 = vunpack.c.l.b16 %v7852_v24  ;;  %v9123_v53 = vunpack.c.l.b16 %v7859_v50  ;;  %v7032_v59 = vpack.c.bf16 %v6489_v61, %v17577_v8  ;;  %v21295_v8 = vld [vmem:[#allocation62_spill] sm:$0xff] }
 0x5ba   : > { %v9745_v35 = vsel %vm21289_vm0, %v9744_v60, %v9740_v11  ;;  %v11311_v18 = vsel %vm9350_vm3, %v11310_v30, %v11306_v12  ;;  %v11315_v19 = vrot.slane %v6489_v61, %v21135_v16  ;;  %v17777_v24 = vrot.slane %v5676_v9, %v21237_v49  ;;  %v21296_v30 = vld [vmem:[#allocation75_spill] sm:$0xff]  ;;  %v6495_v12 = vpop.xlane.xlu0 %6494 }
 0x5bb   : > { %v9749_v26 = vrot.slane %v9122_v57, %v21123_v0  ;;  %v9754_v25 = vrot.slane %v9123_v53, %v21132_v38  ;;  %v7866_v55 = vrot.slane %v7032_v59, %v21118_v41  ;;  %v7873_v47 = vrot.slane %v7032_v59, %v21119_v1  ;;  %v17788_v53 = vpop.xlane.xlu1 %6539 }
 0x5bc   : > { %6704 = vmax.xlane.f32.xlu0 %v21295_v8  ;;  %v17780_v50 = vrot.slane %v5692_v14, %v21237_v49  ;;  %v11320_v60 = vrot.slane %v17604_v48, %v21134_v56  ;;  %v11316_v32 = vsel %vm9357_vm4, %v11315_v19, %v11311_v18  ;;  %6755 = vmax.xlane.f32.xlu1 %v21296_v30  ;;  %v21298_v8 = vld [vmem:[#allocation300_spill] sm:$0xff]  ;;  %vm20239_vm0 = vcmask 1045509  }
 0x5bd   : > { %v9750_v54 = vsel %vm9336_vm1, %v9749_v26, %v9745_v35  ;;  %v9124_v61 = vunpack.c.l.b16 %v7866_v55  ;;  %v9125_v11 = vunpack.c.l.b16 %v7873_v47  ;;  %v7033_v57 = vpack.c.bf16 %v6495_v12, %v17604_v48  ;;  %21297 = vst [vmem:[#allocation157_spill] sm:$0xff] %v17788_v53  ;;  %v21301_v55 = vld [vmem:[#allocation76_spill] sm:$0xff]  ;;  %v21303_v47 = vld [vmem:[#allocation303_spill] sm:$0xff] }
 0x5be   : > { %v9755_v9 = vsel %vm9343_vm2, %v9754_v25, %v9750_v54  ;;  %v11321_v14 = vsel %vm9364_vm5, %v11320_v60, %v11316_v32  ;;  %v11325_v59 = vrot.slane %v6495_v12, %v21139_v44  ;;  %v21300_v18 = vcombine.low %v21298_v8, %v21299_v36  ;;  %v21302_v25 = vld [vmem:[#allocation309_spill] sm:$0xff]  ;;  %v21304_v32 = vld [vmem:[#allocation310_spill] sm:$0xff] }
 0x5bf   : > { %v9759_v30 = vrot.slane %v9124_v61, %v21131_v39  ;;  %v9764_v35 = vrot.slane %v9125_v11, %v21135_v16  ;;  %v7880_v26 = vrot.slane %v7033_v57, %v21118_v41  ;;  %v7887_v48 = vrot.slane %v7033_v57, %v21119_v1  ;;  %v21305_v12 = vld [vmem:[#allocation306_spill] sm:$0xff]  ;;  %v21306_v61 = vld [vmem:[#allocation93_spill] sm:$0xff]  ;;  %v6501_v11 = vpop.xlane.xlu0 %6500  ;;  %v17812_v53 = vpop.xlane.xlu1 %6545 }
 0x5c0   : > { %v6721_v19 = vsel %vm20240_vm11, %v21300_v18, -inf  ;;  %6710 = vmax.xlane.f32.xlu0 %v21301_v55  ;;  %v5708_v60 = vcombine.high %v21303_v47, %v21302_v25  ;;  %v5724_v54 = vcombine.high %v21305_v12, %v21304_v32  ;;  %v11330_v52 = vrot.slane %v17628_v45, %v21138_v29  ;;  %6800 = vmax.xlane.f32.xlu1 %v21306_v61 }
 0x5c1   : > { %v11326_v18 = vsel %vm9371_vm6, %v11325_v59, %v11321_v14  ;;  %v9760_v3 = vsel %vm9350_vm3, %v9759_v30, %v9755_v9  ;;  %v9126_v7 = vunpack.c.l.b16 %v7880_v26  ;;  %v9127_v57 = vunpack.c.l.b16 %v7887_v48  ;;  %v21308_v48 = vld [vmem:[#allocation128_spill] sm:$0xff] }
 0x5c2   : > { %v7034_v55 = vpack.c.bf16 %v6501_v11, %v17628_v45  ;;  %v9765_v25 = vsel %vm9357_vm4, %v9764_v35, %v9760_v3  ;;  %v11331_v47 = vsel %vm9378_vm7, %v11330_v52, %v11326_v18  ;;  %v11335_v32 = vrot.slane %v6501_v11, %v21148_v43 }
 0x5c3   : > { %v21307_v14 = vcombine.low %v17635_v58, %v17622_v27  ;;  %v9769_v9 = vrot.slane %v9126_v7, %v21134_v56  ;;  %v9774_v30 = vrot.slane %v9127_v57, %v21139_v44  ;;  %v17829_v3 = vrot.slane %v5708_v60, %v21237_v49  ;;  %v21309_v7 = vld [vmem:[#allocation89_spill] sm:$0xff]  ;;  %v6507_v18 = vpop.xlane.xlu0 %6506 }
 0x5c4   : > { %v7894_v45 = vrot.slane %v7034_v55, %v21118_v41  ;;  %v7901_v26 = vrot.slane %v7034_v55, %v21119_v1  ;;  %6716 = vmax.xlane.f32.xlu0 %v21308_v48  ;;  %v17832_v52 = vrot.slane %v5724_v54, %v21237_v49  ;;  %v11340_v35 = vrot.slane %v17651_v6, %v21147_v23 }
 0x5c5   : > { %v17821_v59 = vrot.slane %v21307_v14, %v21199_v37  ;;  %v11336_v12 = vsel %vm9385_vm8, %v11335_v32, %v11331_v47  ;;  %6803 = vmax.xlane.f32.xlu1 %v21309_v7  ;;  %v9770_v61 = vsel %vm9364_vm5, %v9769_v9, %v9765_v25  ;;  %v7035_v55 = vpack.c.bf16 %v6507_v18, %v17651_v6  ;;  %v17840_v14 = vpop.xlane.xlu1 %6551 }
 0x5c6   : > { %v9128_v11 = vunpack.c.l.b16 %v7894_v45  ;;  %v9129_v57 = vunpack.c.l.b16 %v7901_v26  ;;  %v9775_v60 = vsel %vm9371_vm6, %v9774_v30, %v9770_v61  ;;  %v11341_v54 = vsel %vm9392_vm9, %v11340_v35, %v11336_v12  ;;  %v21310_v45 = vld [vmem:[#allocation91_spill] sm:$0xff] }
 0x5c7   : > { %v11345_v48 = vrot.slane %v6507_v18, %v21149_v13  ;;  %v7908_v7 = vrot.slane %v7035_v55, %v21118_v41  ;;  %v7915_v25 = vrot.slane %v7035_v55, %v21119_v1  ;;  %v5755_v9 = vcombine.low %v17777_v24, %v17780_v50  ;;  %v6513_v26 = vpop.xlane.xlu0 %6512 }
 0x5c8   : > { %v9779_v47 = vrot.slane %v9128_v11, %v21138_v29  ;;  %v9784_v32 = vrot.slane %v9129_v57, %v21148_v43  ;;  %6722 = vmax.xlane.f32.xlu0 %v6721_v19  ;;  %v21311_v35 = vcombine.high %v17635_v58, %v17622_v27  ;;  %v5787_v18 = vcombine.low %v17829_v3, %v17832_v52 }
 0x5c9   : > { %v11346_v30 = vsel %vm20249_vm10, %v11345_v48, %v11341_v54  ;;  %6848 = vmax.xlane.f32.xlu1 %v21310_v45  ;;  %v9130_v61 = vunpack.c.l.b16 %v7908_v7  ;;  %v9131_v11 = vunpack.c.l.b16 %v7915_v25  ;;  %v17862_v57 = vpop.xlane.xlu1 %6557  ;;  %v11350_v55 = vrot.slane %v17669_v10, %v21110_v63 }
 0x5ca   : > { %v5122_v12 = vrot.slane %v21311_v35, %v21199_v37  ;;  %v9780_v19 = vsel %vm9378_vm7, %v9779_v47, %v9775_v60  ;;  %v11354_v48 = vrot.slane %v6513_v26, %v15461_v31  ;;  %v17870_v27 = vsel %vm20239_vm0, %v11346_v30, %v17681_v5  ;;  %v21313_v60 = vld [vmem:[#allocation97_spill] sm:$0xff]  ;;  %v21315_v35 = vld [vmem:[#allocation96_spill] sm:$0xff] }
 0x5cb   : > { %v9785_v54 = vsel %vm9385_vm8, %v9784_v32, %v9780_v19  ;;  %21312 = vst [vmem:[#allocation142_spill] sm:$0xff] %v17870_v27  ;;  %v9789_v58 = vrot.slane %v9130_v61, %v21147_v23  ;;  %v9794_v45 = vrot.slane %v9131_v11, %v21149_v13  ;;  %v5127_v47 = vcombine.low %v17591_v28, %v17821_v59  ;;  %v6519_v19 = vpop.xlane.xlu0 %6518  ;;  %v21323_v27 = vld [vmem:[#allocation66_spill] sm:$0xff] }
 0x5cc   : > { %6728 = vmax.xlane.f32.xlu0 %v21313_v60  ;;  %v21314_v7 = vcombine.low %v17689_v2, %v17736_v51  ;;  %v11359_v5 = vrot.slane %v17695_v33, %v21114_v15  ;;  %v11355_v30 = vsel %vm9301_vm12, %v11354_v48, %v11350_v55  ;;  %v21316_v61 = vcombine.high %v21298_v8, %v21299_v36  ;;  %v21318_v8 = vld [vmem:[#allocation304_spill] sm:$0xff] }
 0x5cd   : > { %6806 = vmax.xlane.f32.xlu1 %v21315_v35  ;;  %v9790_v60 = vsel %vm9392_vm9, %v9789_v58, %v9785_v54  ;;  %v5128_v6 = vcombine.high %v17591_v28, %v17821_v59  ;;  %v5129_v25 = vcombine.low %v17607_v4, %v5122_v12  ;;  %v17902_v55 = vrot.slane %v5787_v18, %v21199_v37  ;;  %v21322_v28 = vld [vmem:[#allocation126_spill] sm:$0xff] }
 0x5ce   : > { %v17881_v32 = vrot.slane %v21314_v7, %v21199_v37  ;;  %v17893_v11 = vsel %vm20240_vm11, %v21316_v61, -inf  ;;  %v17896_v7 = vpop.xlane.xlu1 %6563  ;;  %v9795_v48 = vsel %vm20249_vm10, %v9794_v45, %v9790_v60  ;;  %v11360_v35 = vsel %vm9308_vm13, %v11359_v5, %v11355_v30  ;;  %v21319_v61 = vld [vmem:[#allocation305_spill] sm:$0xff] }
 0x5cf   : > { %21317 = vst [vmem:[#allocation138_spill] sm:$0xff] %v17893_v11  ;;  %v11364_v36 = vrot.slane %v6519_v19, %v21117_v46  ;;  %v21320_v11 = vcombine.low %v21318_v8, %v21319_v61  ;;  %v17912_v58 = vsel %vm20240_vm11, %v5127_v47, -inf  ;;  %v5130_v18 = vcombine.high %v17607_v4, %v5122_v12  ;;  %v21327_v12 = vld [vmem:[#allocation315_spill] sm:$0xff] }
 0x5d0   : > { %21321 = vst [vmem:[#allocation162_spill] sm:$0xff] %v17912_v58  ;;  %v5672_v59 = vcombine.high %v21322_v28, %v17881_v32  ;;  %v5763_v45 = vrot.slane %v5755_v9, %v21199_v37  ;;  %v11369_v5 = vrot.slane %v17715_v17, %v21120_v42  ;;  %v7036_v30 = vpack.c.bf16 %v6513_v26, %v17669_v10  ;;  %v21326_v26 = vld [vmem:[#allocation321_spill] sm:$0xff] }
 0x5d1   : > { %v6733_v54 = vsel %vm20240_vm11, %v21320_v11, -inf  ;;  %v11365_v60 = vsel %vm9315_vm14, %v11364_v36, %v11360_v35  ;;  %6893 = vmax.xlane.f32.xlu1 %v21323_v27  ;;  %v6525_v11 = vpop.xlane.xlu0 %6524  ;;  %v17925_v47 = vsel %vm20239_vm0, %v9795_v48, %v17719_v40  ;;  %v17931_v4 = vsel %vm20240_vm11, %v5128_v6, -inf  ;;  %v21328_v48 = vld [vmem:[#allocation339_spill] sm:$0xff]  ;;  %v21329_v36 = vld [vmem:[#allocation340_spill] sm:$0xff] }
 0x5d2   : > { %6734 = vmax.xlane.f32.xlu0 %v6733_v54  ;;  %v7037_v54 = vpack.c.bf16 %v6519_v19, %v17695_v33  ;;  %v17928_v58 = vpop.xlane.xlu1 %6569  ;;  %21324 = vst [vmem:[#allocation161_spill] sm:$0xff] %v17931_v4  ;;  %v17934_v9 = vsel %vm20240_vm11, %v5129_v25, -inf  ;;  %v5808_v10 = vcombine.high %v5763_v45, %v17902_v55  ;;  %v5812_v27 = vcombine.high %v21327_v12, %v21326_v26 }
 0x5d3   : > { %21325 = vst [vmem:[#allocation151_spill] sm:$0xff] %v17934_v9  ;;  %v11370_v35 = vsel %vm9322_vm15, %v11369_v5, %v11365_v60  ;;  %v11374_v40 = vrot.slane %v6525_v11, %v21124_v20  ;;  %v21330_v33 = vcombine.low %v21328_v48, %v21329_v36  ;;  %v5788_v6 = vcombine.high %v17829_v3, %v17832_v52  ;;  %v21373_v36 = vld [vmem:[#allocation133_spill] sm:$0xff] }
 0x5d4   : > { %v17948_v25 = vsel %vm20240_vm11, %v5672_v59, -inf  ;;  %v21332_v9 = vcombine.high %v21318_v8, %v21319_v61  ;;  %v17957_v5 = vsel %vm20240_vm11, %v5130_v18, -inf  ;;  %v11379_v60 = vrot.slane %v17742_v21, %v21123_v0  ;;  %v21336_v59 = vld [vmem:[#allocation140_spill] sm:$0xff] }
 0x5d5   : > { %v6739_v19 = vsel %vm20240_vm11, %v21330_v33, -inf  ;;  %21331 = vst [vmem:[#allocation150_spill] sm:$0xff] %v17948_v25  ;;  %21334 = vst [vmem:[#allocation287_spill] sm:$0xff] %v17957_v5  ;;  %v7922_v12 = vrot.slane %v7036_v30, %v21118_v41  ;;  %v7929_v3 = vrot.slane %v7036_v30, %v21119_v1  ;;  %vm21335_vm0 = vcmask 392512   ;;  %6764 = vmax.xlane.f32.xlu1 %v21336_v59  ;;  %v6531_v33 = vpop.xlane.xlu0 %6530  ;;  %v21341_v59 = vld [vmem:[#allocation318_spill] sm:$0xff]  ;;  %v21343_v25 = vld [vmem:[#allocation95_spill] sm:$0xff] }
 0x5d6   : > { %6740 = vmax.xlane.f32.xlu0 %v6739_v19  ;;  %v17954_v26 = vsel %vm20240_vm11, %v21332_v9, -inf  ;;  %v11375_v52 = vsel %vm21335_vm0, %v11374_v40, %v11370_v35  ;;  %v7936_v8 = vrot.slane %v7037_v54, %v21118_v41  ;;  %v7038_v61 = vpack.c.bf16 %v6525_v11, %v17715_v17  ;;  %v17967_v9 = vpop.xlane.xlu1 %6575  ;;  %v21340_v11 = vld [vmem:[#allocation322_spill] sm:$0xff] }
 0x5d7   : > { %21333 = vst [vmem:[#allocation289_spill] sm:$0xff] %v17954_v26  ;;  %v21337_v18 = vcombine.high %v21285_v34, %v21286_v22  ;;  %v17976_v5 = vsel %vm20240_vm11, %v5808_v10, -inf  ;;  %v17979_v30 = vrot.slane %v5812_v27, %v21237_v49  ;;  %v11380_v35 = vsel %vm9336_vm1, %v11379_v60, %v11375_v52  ;;  %v21342_v22 = vld [vmem:[#allocation71_spill] sm:$0xff] }
 0x5d8   : > { %21339 = vst [vmem:[#allocation143_spill] sm:$0xff] %v17976_v5  ;;  %v11384_v40 = vrot.slane %v6531_v33, %v21132_v38  ;;  %v5671_v17 = vcombine.low %v21322_v28, %v17881_v32  ;;  %v5828_v26 = vcombine.high %v21341_v59, %v21340_v11  ;;  %v11389_v34 = vrot.slane %v17764_v62, %v21131_v39 }
 0x5d9   : > { %v17973_v19 = vsel %vm20240_vm11, %v21337_v18, -inf  ;;  %v5802_v10 = vrot.slane %v5788_v6, %v21199_v37  ;;  %v5807_v27 = vcombine.low %v5763_v45, %v17902_v55  ;;  %v9132_v18 = vunpack.c.l.b16 %v7922_v12  ;;  %6854 = vmax.xlane.f32.xlu1 %v21343_v25  ;;  %v6537_v32 = vpop.xlane.xlu0 %6536 }
 0x5da   : > { %21338 = vst [vmem:[#allocation145_spill] sm:$0xff] %v17973_v19  ;;  %6752 = vmax.xlane.f32.xlu0 %v21342_v22  ;;  %v9133_v5 = vunpack.c.l.b16 %v7929_v3  ;;  %v7943_v60 = vrot.slane %v7037_v54, %v21119_v1  ;;  %v11385_v52 = vsel %vm9343_vm2, %v11384_v40, %v11380_v35  ;;  %v9134_v28 = vunpack.c.l.b16 %v7936_v8  ;;  %v17996_v59 = vpop.xlane.xlu1 %6581  ;;  %v21347_v35 = vld [vmem:[#allocation157_spill] sm:$0xff]  ;;  %v21353_v19 = vld [vmem:[#allocation155_spill] sm:$0xff] }
 0x5db   : > { %v7950_v11 = vrot.slane %v7038_v61, %v21118_v41  ;;  %v21344_v6 = vcombine.high %v17777_v24, %v17780_v50  ;;  %v21345_v55 = vcombine.high %v17689_v2, %v17736_v51  ;;  %v7039_v54 = vpack.c.bf16 %v6531_v33, %v17742_v21  ;;  %v21348_v50 = vld [vmem:[#allocation68_spill] sm:$0xff] }
 0x5dc   : > { %v11390_v25 = vsel %vm9350_vm3, %v11389_v34, %v11385_v52  ;;  %v11394_v12 = vrot.slane %v6537_v32, %v21135_v16  ;;  %v18010_v3 = vsel %vm20240_vm11, %v5671_v17, -inf  ;;  %v5842_v8 = vrot.slane %v5828_v26, %v21237_v49  ;;  %v21350_v17 = vld [vmem:[#allocation64_spill] sm:$0xff] }
 0x5dd   : > { %v5770_v22 = vrot.slane %v21344_v6, %v21199_v37  ;;  %v5666_v45 = vrot.slane %v21345_v55, %v21199_v37  ;;  %21346 = vst [vmem:[#allocation331_spill] sm:$0xff] %v18010_v3  ;;  %v11399_v24 = vrot.slane %v21347_v35, %v21134_v56  ;;  %v18017_v2 = vsel %vm20240_vm11, %v5807_v27, -inf  ;;  %6941 = vmax.xlane.f32.xlu1 %v21350_v17  ;;  %v6543_v52 = vpop.xlane.xlu0 %6542  ;;  %v21351_v3 = vld [vmem:[#allocation120_spill] sm:$0xff] }
 0x5de   : > { %6797 = vmax.xlane.f32.xlu0 %v21348_v50  ;;  %21349 = vst [vmem:[#allocation330_spill] sm:$0xff] %v18017_v2  ;;  %v9799_v51 = vrot.slane %v9132_v18, %v21110_v63  ;;  %v9803_v21 = vrot.slane %v9133_v5, %v15461_v31  ;;  %v9135_v33 = vunpack.c.l.b16 %v7943_v60  ;;  %v11395_v34 = vsel %vm9357_vm4, %v11394_v12, %v11390_v25  ;;  %v18025_v50 = vpop.xlane.xlu1 %6587 }
 0x5df   : > { %v5809_v40 = vcombine.low %v5770_v22, %v5802_v10  ;;  %v9808_v26 = vrot.slane %v9134_v28, %v21114_v15  ;;  %v7957_v6 = vrot.slane %v7038_v61, %v21119_v1  ;;  %v9136_v55 = vunpack.c.l.b16 %v7950_v11  ;;  %v21352_v61 = vld [vmem:[#allocation72_spill] sm:$0xff] }
 0x5e0   : > { %v5673_v27 = vcombine.low %v21351_v3, %v5666_v45  ;;  %v7964_v2 = vrot.slane %v7039_v54, %v21118_v41  ;;  %v11400_v18 = vsel %vm9364_vm5, %v11399_v24, %v11395_v34  ;;  %v11404_v5 = vrot.slane %v6543_v52, %v21139_v44 }
 0x5e1   : > { %v5674_v60 = vcombine.high %v21351_v3, %v5666_v45  ;;  %v5891_v25 = vcombine.low %v17979_v30, %v5842_v8  ;;  %v5892_v12 = vcombine.high %v17979_v30, %v5842_v8  ;;  %v7040_v28 = vpack.c.bf16 %v6537_v32, %v17764_v62  ;;  %6767 = vmax.xlane.f32.xlu1 %v21353_v19  ;;  %v18042_v45 = vpop.xlane.xlu0 %6548 }
 0x5e2   : > { %6758 = vmax.xlane.f32.xlu0 %v21352_v61  ;;  %v5810_v11 = vcombine.high %v5770_v22, %v5802_v10  ;;  %v11409_v17 = vrot.slane %v17812_v53, %v21138_v29  ;;  %v9804_v4 = vsel %vm9301_vm12, %v9803_v21, %v9799_v51  ;;  %v9813_v24 = vrot.slane %v9135_v33, %v21117_v46  ;;  %v18047_v32 = vpop.xlane.xlu1 %6593  ;;  %v21355_v33 = vld [vmem:[#allocation57_spill] sm:$0xff] }
 0x5e3   : > { %v11405_v34 = vsel %vm9371_vm6, %v11404_v5, %v11400_v18  ;;  %v9809_v30 = vsel %vm9308_vm13, %v9808_v26, %v9804_v4  ;;  %v9137_v3 = vunpack.c.l.b16 %v7957_v6  ;;  %v9818_v62 = vrot.slane %v9136_v55, %v21120_v42  ;;  %v21359_v55 = vld [vmem:[#allocation115_spill] sm:$0xff] }
 0x5e4   : > { %v7971_v10 = vrot.slane %v7039_v54, %v21119_v1  ;;  %v9138_v22 = vunpack.c.l.b16 %v7964_v2  ;;  %v11410_v8 = vsel %vm9378_vm7, %v11409_v17, %v11405_v34  ;;  %v11414_v51 = vrot.slane %v18042_v45, %v21148_v43 }
 0x5e5   : > { %v18053_v21 = vsel %vm20240_vm11, %v5809_v40, -inf  ;;  %v7978_v19 = vrot.slane %v7040_v28, %v21118_v41  ;;  %v18058_v4 = vsel %vm20240_vm11, %v5673_v27, -inf  ;;  %v18061_v54 = vsel %vm20240_vm11, %v5674_v60, -inf  ;;  %6857 = vmax.xlane.f32.xlu1 %v21359_v55  ;;  %v18071_v18 = vpop.xlane.xlu0 %6554 }
 0x5e6   : > { %21354 = vst [vmem:[#allocation180_spill] sm:$0xff] %v18053_v21  ;;  %6845 = vmax.xlane.f32.xlu0 %v21355_v33  ;;  %21356 = vst [vmem:[#allocation175_spill] sm:$0xff] %v18058_v4  ;;  %v18064_v2 = vsel %vm20240_vm11, %v5810_v11, -inf  ;;  %v11419_v26 = vrot.slane %v17840_v14, %v21147_v23  ;;  %v9814_v6 = vsel %vm9315_vm14, %v9813_v24, %v9809_v30  ;;  %v9139_v61 = vunpack.c.l.b16 %v7971_v10  ;;  %v18078_v11 = vpop.xlane.xlu1 %6599  ;;  %v21364_v10 = vld [vmem:[#allocation113_spill] sm:$0xff] }
 0x5e7   : > { %21357 = vst [vmem:[#allocation164_spill] sm:$0xff] %v18061_v54  ;;  %21358 = vst [vmem:[#allocation160_spill] sm:$0xff] %v18064_v2  ;;  %v11415_v40 = vsel %vm9385_vm8, %v11414_v51, %v11410_v8  ;;  %v18074_v27 = vrot.slane %v5892_v12, %v21199_v37  ;;  %v9819_v5 = vsel %vm9322_vm15, %v9818_v62, %v9814_v6  ;;  %v21362_v8 = vld [vmem:[#allocation329_spill] sm:$0xff]  ;;  %v9140_v33 = vunpack.c.l.b16 %v7978_v19  ;;  %v21366_v6 = vld [vmem:[#allocation326_spill] sm:$0xff] }
 0x5e8   : > { %v9823_v60 = vrot.slane %v9137_v3, %v21124_v20  ;;  %v18081_v17 = vrot.slane %v5891_v25, %v21199_v37  ;;  %v9828_v24 = vrot.slane %v9138_v22, %v21123_v0  ;;  %v7985_v34 = vrot.slane %v7040_v28, %v21119_v1  ;;  %v21363_v51 = vld [vmem:[#allocation325_spill] sm:$0xff]  ;;  %v21365_v25 = vld [vmem:[#allocation332_spill] sm:$0xff] }
 0x5e9   : > { %21360 = vst [vmem:[#allocation171_spill] sm:$0xff] %v18074_v27  ;;  %v11424_v30 = vrot.slane %v18071_v18, %v21149_v13  ;;  %v11420_v12 = vsel %vm9392_vm9, %v11419_v26, %v11415_v40  ;;  %v7041_v3 = vpack.c.bf16 %v6543_v52, %v21347_v35  ;;  %vm20244_vm0 = vcmask 1046534   ;;  %v21367_v2 = vld [vmem:[#allocation88_spill] sm:$0xff]  ;;  %v6561_v26 = vpop.xlane.xlu0 %6560 }
 0x5ea   : > { %21361 = vst [vmem:[#allocation166_spill] sm:$0xff] %v18081_v17  ;;  %6761 = vmax.xlane.f32.xlu0 %v21364_v10  ;;  %v11429_v28 = vrot.slane %v17862_v57, %v21110_v63  ;;  %v11438_v22 = vrot.slane %v17896_v7, %v21114_v15  ;;  %6947 = vmax.xlane.f32.xlu1 %v21367_v2  ;;  %vm21368_vm11 = vcmask 392512   ;;  %v18105_v62 = vpop.xlane.xlu1 %6605  ;;  %v9141_v54 = vunpack.c.l.b16 %v7985_v34  ;;  %v21369_v2 = vld [vmem:[#allocation142_spill] sm:$0xff] }
 0x5eb   : > { %v11425_v40 = vsel %vm20249_vm10, %v11424_v30, %v11420_v12  ;;  %v9824_v19 = vsel %vm21368_vm11, %v9823_v60, %v9819_v5  ;;  %v11448_v35 = vrot.slane %v17928_v58, %v21120_v42  ;;  %v9833_v52 = vrot.slane %v9139_v61, %v21132_v38 }
 0x5ec   : > { %v7044_v10 = vpack.c.bf16 %v6561_v26, %v17862_v57  ;;  %v9829_v55 = vsel %vm9336_vm1, %v9828_v24, %v9824_v19  ;;  %v11433_v4 = vrot.slane %v6561_v26, %v15461_v31  ;;  %v18111_v21 = vsel %vm20244_vm0, %v11425_v40, %v21369_v2  ;;  %v21370_v57 = vld [vmem:[#allocation211_spill] sm:$0xff]  ;;  %v21371_v40 = vld [vmem:[#allocation154_spill] sm:$0xff] }
 0x5ed   : > { %v9838_v5 = vrot.slane %v9140_v33, %v21131_v39  ;;  %v7992_v60 = vrot.slane %v7041_v3, %v21118_v41  ;;  %v11458_v24 = vrot.slane %v17967_v9, %v21123_v0  ;;  %v7999_v12 = vrot.slane %v7041_v3, %v21119_v1  ;;  %v6567_v33 = vpop.xlane.xlu0 %6566 }
 0x5ee   : > { %v8034_v30 = vrot.slane %v7044_v10, %v21118_v41  ;;  %v8041_v61 = vrot.slane %v7044_v10, %v21119_v1  ;;  %6851 = vmax.xlane.f32.xlu0 %v21370_v57  ;;  %v11434_v26 = vsel %vm9301_vm12, %v11433_v4, %v11429_v28  ;;  %6815 = vmax.xlane.f32.xlu1 %v21371_v40  ;;  %v18127_v57 = vpop.xlane.xlu1 %6611 }
 0x5ef   : > { %v9834_v19 = vsel %vm9343_vm2, %v9833_v52, %v9829_v55  ;;  %v7045_v10 = vpack.c.bf16 %v6567_v33, %v17896_v7  ;;  %v9843_v27 = vrot.slane %v9141_v54, %v21135_v16  ;;  %v11439_v3 = vsel %vm9308_vm13, %v11438_v22, %v11434_v26 }
 0x5f0   : > { %v9148_v2 = vunpack.c.l.b16 %v8034_v30  ;;  %v9149_v17 = vunpack.c.l.b16 %v8041_v61  ;;  %v11443_v4 = vrot.slane %v6567_v33, %v21117_v46  ;;  %v9839_v28 = vsel %vm9350_vm3, %v9838_v5, %v9834_v19  ;;  %v21372_v30 = vld [vmem:[#allocation69_spill] sm:$0xff] }
 0x5f1   : > { %v9142_v40 = vunpack.c.l.b16 %v7992_v60  ;;  %v8048_v55 = vrot.slane %v7045_v10, %v21118_v41  ;;  %v8055_v52 = vrot.slane %v7045_v10, %v21119_v1  ;;  %v9143_v7 = vunpack.c.l.b16 %v7999_v12  ;;  %v6573_v22 = vpop.xlane.xlu0 %6572 }
 0x5f2   : > { %6896 = vmax.xlane.f32.xlu0 %v21372_v30  ;;  %v9878_v61 = vrot.slane %v9148_v2, %v21110_v63  ;;  %v9882_v54 = vrot.slane %v9149_v17, %v15461_v31  ;;  %v11444_v34 = vsel %vm9315_vm14, %v11443_v4, %v11439_v3  ;;  %6905 = vmax.xlane.f32.xlu1 %v21373_v36  ;;  %v18145_v19 = vpop.xlane.xlu1 %6617 }
 0x5f3   : > { %v7042_v5 = vpack.c.bf16 %v18042_v45, %v17812_v53  ;;  %v9150_v60 = vunpack.c.l.b16 %v8048_v55  ;;  %v9151_v26 = vunpack.c.l.b16 %v8055_v52  ;;  %v7046_v33 = vpack.c.bf16 %v6573_v22, %v17928_v58  ;;  %v21374_v58 = vld [vmem:[#allocation132_spill] sm:$0xff] }
 0x5f4   : > { %v9844_v12 = vsel %vm9357_vm4, %v9843_v27, %v9839_v28  ;;  %v11488_v2 = vrot.slane %v18047_v32, %v21138_v29  ;;  %v11449_v17 = vsel %vm9322_vm15, %v11448_v35, %v11444_v34  ;;  %v11453_v10 = vrot.slane %v6573_v22, %v21124_v20  ;;  %v21375_v34 = vld [vmem:[#allocation137_spill] sm:$0xff] }
 0x5f5   : > { %v9848_v36 = vrot.slane %v9142_v40, %v21134_v56  ;;  %v9887_v3 = vrot.slane %v9150_v60, %v21114_v15  ;;  %v8062_v53 = vrot.slane %v7046_v33, %v21118_v41  ;;  %v8069_v45 = vrot.slane %v7046_v33, %v21119_v1  ;;  %v6579_v55 = vpop.xlane.xlu0 %6578 }
 0x5f6   : > { %6809 = vmax.xlane.f32.xlu0 %v21374_v58  ;;  %v9853_v4 = vrot.slane %v9143_v7, %v21139_v44  ;;  %v9883_v27 = vsel %vm9301_vm12, %v9882_v54, %v9878_v61  ;;  %v9892_v28 = vrot.slane %v9151_v26, %v21117_v46  ;;  %v11454_v35 = vsel %vm21368_vm11, %v11453_v10, %v11449_v17  ;;  %v18164_v60 = vpop.xlane.xlu1 %6623  ;;  %v21377_v58 = vld [vmem:[#allocation156_spill] sm:$0xff] }
 0x5f7   : > { %6773 = vmax.xlane.f32.xlu1 %v21375_v34  ;;  %v9888_v40 = vsel %vm9308_vm13, %v9887_v3, %v9883_v27  ;;  %v9152_v52 = vunpack.c.l.b16 %v8062_v53  ;;  %v9153_v30 = vunpack.c.l.b16 %v8069_v45  ;;  %v7047_v22 = vpack.c.bf16 %v6579_v55, %v17967_v9  ;;  %v21376_v53 = vld [vmem:[#allocation212_spill] sm:$0xff] }
 0x5f8   : > { %v8006_v33 = vrot.slane %v7042_v5, %v21118_v41  ;;  %v8013_v7 = vrot.slane %v7042_v5, %v21119_v1  ;;  %v11459_v61 = vsel %vm9336_vm1, %v11458_v24, %v11454_v35  ;;  %v11463_v54 = vrot.slane %v6579_v55, %v21132_v38 }
 0x5f9   : > { %v9849_v26 = vsel %vm9364_vm5, %v9848_v36, %v9844_v12  ;;  %v9897_v17 = vrot.slane %v9152_v52, %v21120_v42  ;;  %v8076_v10 = vrot.slane %v7047_v22, %v21118_v41  ;;  %v8083_v3 = vrot.slane %v7047_v22, %v21119_v1  ;;  %v6585_v12 = vpop.xlane.xlu0 %6584 }
 0x5fa   : > { %6899 = vmax.xlane.f32.xlu0 %v21376_v53  ;;  %v7043_v9 = vpack.c.bf16 %v18071_v18, %v17840_v14  ;;  %v9893_v45 = vsel %vm9315_vm14, %v9892_v28, %v9888_v40  ;;  %v9902_v5 = vrot.slane %v9153_v30, %v21124_v20  ;;  %v11464_v24 = vsel %vm9343_vm2, %v11463_v54, %v11459_v61  ;;  %v18183_v55 = vpop.xlane.xlu1 %6629 }
 0x5fb   : > { %6863 = vmax.xlane.f32.xlu1 %v21377_v58  ;;  %v9898_v36 = vsel %vm9322_vm15, %v9897_v17, %v9893_v45  ;;  %v9154_v27 = vunpack.c.l.b16 %v8076_v10  ;;  %v9155_v35 = vunpack.c.l.b16 %v8083_v3  ;;  %v7048_v34 = vpack.c.bf16 %v6585_v12, %v17996_v59  ;;  %v21379_v17 = vld [vmem:[#allocation83_spill] sm:$0xff]  ;;  %v21380_v3 = vld [vmem:[#allocation134_spill] sm:$0xff] }
 0x5fc   : > { %v9144_v52 = vunpack.c.l.b16 %v8006_v33  ;;  %v9145_v22 = vunpack.c.l.b16 %v8013_v7  ;;  %v21378_v14 = vrot.slane %v17996_v59, %v21131_v39  ;;  %v11473_v28 = vrot.slane %v6585_v12, %v21135_v16 }
 0x5fd   : > { %v9854_v40 = vsel %vm9371_vm6, %v9853_v4, %v9849_v26  ;;  %v9907_v30 = vrot.slane %v9154_v27, %v21123_v0  ;;  %v8090_v61 = vrot.slane %v7048_v34, %v21118_v41  ;;  %v8097_v54 = vrot.slane %v7048_v34, %v21119_v1  ;;  %v6591_v53 = vpop.xlane.xlu0 %6590 }
 0x5fe   : > { %v11469_v18 = vsel %vm9350_vm3, %v21378_v14, %v11464_v24  ;;  %6944 = vmax.xlane.f32.xlu0 %v21379_v17  ;;  %v8020_v33 = vrot.slane %v7043_v9, %v21118_v41  ;;  %v9903_v7 = vsel %vm21368_vm11, %v9902_v5, %v9898_v36  ;;  %v9912_v59 = vrot.slane %v9155_v35, %v21132_v38  ;;  %v18202_v58 = vpop.xlane.xlu1 %6635  ;;  %v21383_v17 = vld [vmem:[#allocation135_spill] sm:$0xff] }
 0x5ff   : > { %v11474_v10 = vsel %vm9357_vm4, %v11473_v28, %v11469_v18  ;;  %6953 = vmax.xlane.f32.xlu1 %v21380_v3  ;;  %v9908_v4 = vsel %vm9336_vm1, %v9907_v30, %v9903_v7  ;;  %v9156_v26 = vunpack.c.l.b16 %v8090_v61  ;;  %v9157_v45 = vunpack.c.l.b16 %v8097_v54  ;;  %v21382_v30 = vld [vmem:[#allocation139_spill] sm:$0xff] }
 0x600   : > { %v7049_v24 = vpack.c.bf16 %v6591_v53, %v18025_v50  ;;  %v9858_v12 = vrot.slane %v9144_v52, %v21138_v29  ;;  %v11498_v5 = vrot.slane %v18078_v11, %v21147_v23  ;;  %v21381_v36 = vrot.slane %v18025_v50, %v21134_v56 }
 0x601   : > { %v11483_v35 = vrot.slane %v6591_v53, %v21139_v44  ;;  %v8027_v34 = vrot.slane %v7043_v9, %v21119_v1  ;;  %v9917_v14 = vrot.slane %v9156_v26, %v21131_v39  ;;  %v9146_v52 = vunpack.c.l.b16 %v8020_v33  ;;  %v6597_v7 = vpop.xlane.xlu0 %6596 }
 0x602   : > { %v11479_v27 = vsel %vm9364_vm5, %v21381_v36, %v11474_v10  ;;  %v8104_v18 = vrot.slane %v7049_v24, %v21118_v41  ;;  %v8111_v28 = vrot.slane %v7049_v24, %v21119_v1  ;;  %6812 = vmax.xlane.f32.xlu0 %v21382_v30  ;;  %v9913_v61 = vsel %vm9343_vm2, %v9912_v59, %v9908_v4  ;;  %v18223_v26 = vpop.xlane.xlu1 %6641 }
 0x603   : > { %v9922_v54 = vrot.slane %v9157_v45, %v21135_v16  ;;  %v11484_v50 = vsel %vm9371_vm6, %v11483_v35, %v11479_v27  ;;  %6821 = vmax.xlane.f32.xlu1 %v21383_v17  ;;  %v9918_v9 = vsel %vm9350_vm3, %v9917_v14, %v9913_v61  ;;  %v7050_v53 = vpack.c.bf16 %v6597_v7, %v18047_v32  ;;  %v21384_v14 = vld [vmem:[#allocation255_spill] sm:$0xff] }
 0x604   : > { %v9158_v10 = vunpack.c.l.b16 %v8104_v18  ;;  %v9159_v3 = vunpack.c.l.b16 %v8111_v28  ;;  %v9859_v24 = vsel %vm9378_vm7, %v9858_v12, %v9854_v40  ;;  %v9863_v33 = vrot.slane %v9145_v22, %v21148_v43 }
 0x605   : > { %v11489_v59 = vsel %vm9378_vm7, %v11488_v2, %v11484_v50  ;;  %v11493_v4 = vrot.slane %v6597_v7, %v21148_v43  ;;  %v9147_v45 = vunpack.c.l.b16 %v8027_v34  ;;  %v8118_v27 = vrot.slane %v7050_v53, %v21118_v41  ;;  %v21385_v2 = vld [vmem:[#allocation147_spill] sm:$0xff]  ;;  %v6603_v18 = vpop.xlane.xlu0 %6602 }
 0x606   : > { %v9927_v36 = vrot.slane %v9158_v10, %v21134_v56  ;;  %v8125_v35 = vrot.slane %v7050_v53, %v21119_v1  ;;  %6902 = vmax.xlane.f32.xlu0 %v21384_v14  ;;  %v9868_v40 = vrot.slane %v9146_v52, %v21147_v23  ;;  %v9923_v22 = vsel %vm9357_vm4, %v9922_v54, %v9918_v9  ;;  %v18243_v50 = vpop.xlane.xlu1 %6647  ;;  %v21386_v53 = vld [vmem:[#allocation138_spill] sm:$0xff] }
 0x607   : > { %v9932_v12 = vrot.slane %v9159_v3, %v21139_v44  ;;  %v11494_v32 = vsel %vm9385_vm8, %v11493_v4, %v11489_v59  ;;  %6911 = vmax.xlane.f32.xlu1 %v21385_v2  ;;  %v9160_v28 = vunpack.c.l.b16 %v8118_v27  ;;  %v7051_v61 = vpack.c.bf16 %v6603_v18, %v18078_v11 }
 0x608   : > { %v9928_v34 = vsel %vm9364_vm5, %v9927_v36, %v9923_v22  ;;  %v9161_v30 = vunpack.c.l.b16 %v8125_v35  ;;  %v9864_v17 = vsel %vm9385_vm8, %v9863_v33, %v9859_v24  ;;  %v11503_v52 = vrot.slane %v6603_v18, %v21149_v13  ;;  %v21387_v33 = vld [vmem:[#allocation107_spill] sm:$0xff] }
 0x609   : > { %vm20243_vm11 = vcmask 1047559   ;;  %v11499_v54 = vsel %vm9392_vm9, %v11498_v5, %v11494_v32  ;;  %v9873_v7 = vrot.slane %v9147_v45, %v21149_v13  ;;  %v9937_v9 = vrot.slane %v9160_v28, %v21138_v29  ;;  %v6609_v4 = vpop.xlane.xlu0 %6608 }
 0x60a   : > { %v8132_v10 = vrot.slane %v7051_v61, %v21118_v41  ;;  %v8139_v3 = vrot.slane %v7051_v61, %v21119_v1  ;;  %6770 = vmax.xlane.f32.xlu0 %v21386_v53  ;;  %v9869_v11 = vsel %vm9392_vm9, %v9868_v40, %v9864_v17  ;;  %v9933_v59 = vsel %vm9371_vm6, %v9932_v12, %v9928_v34  ;;  %v18260_v14 = vpop.xlane.xlu1 %6653  ;;  %v21392_v17 = vld [vmem:[#allocation105_spill] sm:$0xff] }
 0x60b   : > { %v9942_v24 = vrot.slane %v9161_v30, %v21148_v43  ;;  %6779 = vmax.xlane.f32.xlu1 %v21387_v33  ;;  %v11504_v5 = vsel %vm20249_vm10, %v11503_v52, %v11499_v54  ;;  %v9938_v45 = vsel %vm9378_vm7, %v9937_v9, %v9933_v59  ;;  %v7052_v35 = vpack.c.bf16 %v6609_v4, %v18105_v62 }
 0x60c   : > { %v9162_v36 = vunpack.c.l.b16 %v8132_v10  ;;  %v9163_v27 = vunpack.c.l.b16 %v8139_v3  ;;  %v21389_v40 = vcombine.high %v21366_v6, %v21365_v25  ;;  %v11508_v12 = vrot.slane %v18105_v62, %v21110_v63  ;;  %v21391_v25 = vld [vmem:[#allocation127_spill] sm:$0xff] }
 0x60d   : > { %v11512_v32 = vrot.slane %v6609_v4, %v15461_v31  ;;  %v18273_v2 = vsel %vm20243_vm11, %v11504_v5, %v18111_v21  ;;  %v8146_v28 = vrot.slane %v7052_v35, %v21118_v41  ;;  %v8153_v30 = vrot.slane %v7052_v35, %v21119_v1  ;;  %v6615_v52 = vpop.xlane.xlu0 %6614  ;;  %v21395_v35 = vld [vmem:[#allocation159_spill] sm:$0xff] }
 0x60e   : > { %v18266_v22 = vrot.slane %v21389_v40, %v21237_v49  ;;  %21390 = vst [vmem:[#allocation177_spill] sm:$0xff] %v18273_v2  ;;  %v9947_v18 = vrot.slane %v9162_v36, %v21147_v23  ;;  %v9952_v34 = vrot.slane %v9163_v27, %v21149_v13  ;;  %6860 = vmax.xlane.f32.xlu0 %v21391_v25  ;;  %v18291_v53 = vpop.xlane.xlu1 %6659  ;;  %v21436_v2 = vld [vmem:[#allocation38_spill] sm:$0xff] }
 0x60f   : > { %v9874_v62 = vsel %vm20249_vm10, %v9873_v7, %v9869_v11  ;;  %v11517_v6 = vrot.slane %v18127_v57, %v21114_v15  ;;  %v9943_v21 = vsel %vm9385_vm8, %v9942_v24, %v9938_v45  ;;  %v11513_v61 = vsel %vm9301_vm12, %v11512_v32, %v11508_v12  ;;  %6869 = vmax.xlane.f32.xlu1 %v21392_v17  ;;  %v21394_v45 = vld [vmem:[#allocation256_spill] sm:$0xff] }
 0x610   : > { %v9948_v54 = vsel %vm9392_vm9, %v9947_v18, %v9943_v21  ;;  %v9164_v9 = vunpack.c.l.b16 %v8146_v28  ;;  %v9165_v10 = vunpack.c.l.b16 %v8153_v30  ;;  %v7053_v3 = vpack.c.bf16 %v6615_v52, %v18127_v57 }
 0x611   : > { %v21393_v7 = vcombine.high %v21363_v51, %v21362_v8  ;;  %v9953_v59 = vsel %vm20249_vm10, %v9952_v34, %v9948_v54  ;;  %v11518_v24 = vsel %vm9308_vm13, %v11517_v6, %v11513_v61  ;;  %v11522_v33 = vrot.slane %v6615_v52, %v21117_v46  ;;  %v6621_v40 = vpop.xlane.xlu0 %6620  ;;  %v21397_v54 = vld [vmem:[#allocation343_spill] sm:$0xff] }
 0x612   : > { %v11527_v4 = vrot.slane %v18145_v19, %v21120_v42  ;;  %v8160_v57 = vrot.slane %v7053_v3, %v21118_v41  ;;  %v8167_v5 = vrot.slane %v7053_v3, %v21119_v1  ;;  %6950 = vmax.xlane.f32.xlu0 %v21394_v45  ;;  %v10597_v8 = vsel %vm20244_vm0, %v9874_v62, %v17925_v47  ;;  %v18318_v30 = vpop.xlane.xlu1 %6665 }
 0x613   : > { %v18297_v11 = vrot.slane %v21393_v7, %v21237_v49  ;;  %v9957_v51 = vrot.slane %v9164_v9, %v21110_v63  ;;  %v9961_v36 = vrot.slane %v9165_v10, %v15461_v31  ;;  %v11523_v27 = vsel %vm9315_vm14, %v11522_v33, %v11518_v24  ;;  %6959 = vmax.xlane.f32.xlu1 %v21395_v35  ;;  %v21398_v9 = vld [vmem:[#allocation336_spill] sm:$0xff] }
 0x614   : > { %v10599_v12 = vsel %vm20243_vm11, %v9953_v59, %v10597_v8  ;;  %v9166_v18 = vunpack.c.l.b16 %v8160_v57  ;;  %v9167_v34 = vunpack.c.l.b16 %v8167_v5  ;;  %v7054_v28 = vpack.c.bf16 %v6621_v40, %v18145_v19  ;;  %v21396_v19 = vld [vmem:[#allocation162_spill] sm:$0xff] }
 0x615   : > { %v5923_v32 = vcombine.low %v18297_v11, %v18266_v22  ;;  %v5924_v47 = vcombine.high %v18297_v11, %v18266_v22  ;;  %v11528_v25 = vsel %vm9322_vm15, %v11527_v4, %v11523_v27  ;;  %v11532_v62 = vrot.slane %v6621_v40, %v21124_v20  ;;  %v21400_v11 = vld [vmem:[#allocation106_spill] sm:$0xff]  ;;  %v6627_v59 = vpop.xlane.xlu0 %6626 }
 0x616   : > { %v10607_v6 = vpack.c.b16 %v10599_v12, %v10599_v12  ;;  %v9966_v21 = vrot.slane %v9166_v18, %v21114_v15  ;;  %v9971_v61 = vrot.slane %v9167_v34, %v21117_v46  ;;  %v8174_v17 = vrot.slane %v7054_v28, %v21118_v41  ;;  %6818 = vmax.xlane.f32.xlu0 %v21396_v19  ;;  %v18343_v5 = vpop.xlane.xlu1 %6671 }
 0x617   : > { %v8181_v52 = vrot.slane %v7054_v28, %v21119_v1  ;;  %v5948_v10 = vcombine.high %v21398_v9, %v21397_v54  ;;  %v11537_v22 = vrot.slane %v18164_v60, %v21123_v0  ;;  %v9962_v3 = vsel %vm9301_vm12, %v9961_v36, %v9957_v51  ;;  %6827 = vmax.xlane.f32.xlu1 %v21400_v11 }
 0x618   : > { %vm21399_vm11 = vcmask 392512   ;;  %10611 = vst [vmem:[%s18338_s5] sm:$0xf] %v10607_v6  ;;  %v9967_v24 = vsel %vm9308_vm13, %v9966_v21, %v9962_v3  ;;  %v9168_v33 = vunpack.c.l.b16 %v8174_v17  ;;  %v7055_v57 = vpack.c.bf16 %v6627_v59, %v18164_v60  ;;  %v21402_v60 = vld [vmem:[#allocation125_spill] sm:$0xff]  ;;  %v21408_v3 = vld [vmem:[#allocation171_spill] sm:$0xff] }
 0x619   : > { %v11533_v7 = vsel %vm21399_vm11, %v11532_v62, %v11528_v25  ;;  %v9169_v4 = vunpack.c.l.b16 %v8181_v52  ;;  %v9972_v45 = vsel %vm9315_vm14, %v9971_v61, %v9967_v24  ;;  %v11542_v51 = vrot.slane %v6627_v59, %v21132_v38  ;;  %v6633_v25 = vpop.xlane.xlu0 %6632  ;;  %v21404_v62 = vld [vmem:[#allocation340_spill] sm:$0xff] }
 0x61a   : > { %v11538_v8 = vsel %vm9336_vm1, %v11537_v22, %v11533_v7  ;;  %v18349_v36 = vrot.slane %v5924_v47, %v21199_v37  ;;  %v9976_v27 = vrot.slane %v9168_v33, %v21120_v42  ;;  %v8188_v40 = vrot.slane %v7055_v57, %v21118_v41  ;;  %6908 = vmax.xlane.f32.xlu0 %v21402_v60  ;;  %v21403_v47 = vld [vmem:[#allocation100_spill] sm:$0xff]  ;;  %v18371_v54 = vpop.xlane.xlu1 %6677 }
 0x61b   : > { %v9981_v35 = vrot.slane %v9169_v4, %v21124_v20  ;;  %v8195_v12 = vrot.slane %v7055_v57, %v21119_v1  ;;  %v18357_v18 = vrot.slane %v5948_v10, %v21237_v49  ;;  %v11547_v34 = vrot.slane %v18183_v55, %v21131_v39  ;;  %6917 = vmax.xlane.f32.xlu1 %v21403_v47  ;;  %v21410_v57 = vld [vmem:[#allocation145_spill] sm:$0xff] }
 0x61c   : > { %21401 = vst [vmem:[#allocation176_spill] sm:$0xff] %v18349_v36  ;;  %v11543_v28 = vsel %vm9343_vm2, %v11542_v51, %v11538_v8  ;;  %v21405_v6 = vcombine.high %v21328_v48, %v21404_v62  ;;  %vm21406_vm11 = vcmask 31744   ;;  %v9977_v61 = vsel %vm9322_vm15, %v9976_v27, %v9972_v45 }
 0x61d   : > { %v9170_v17 = vunpack.c.l.b16 %v8188_v40  ;;  %v9171_v52 = vunpack.c.l.b16 %v8195_v12  ;;  %v7056_v19 = vpack.c.bf16 %v6633_v25, %v18183_v55  ;;  %vm21407_vm0 = vcmask 392512   ;;  %v21409_v55 = vld [vmem:[#allocation111_spill] sm:$0xff]  ;;  %v6639_v45 = vpop.xlane.xlu0 %6638 }
 0x61e   : > { %v18367_v21 = vsel %vm21406_vm11, %v21405_v6, -inf  ;;  %v9982_v9 = vsel %vm21407_vm0, %v9981_v35, %v9977_v61  ;;  %v11548_v10 = vsel %vm9350_vm3, %v11547_v34, %v11543_v28  ;;  %v11552_v22 = vrot.slane %v6633_v25, %v21135_v16  ;;  %6776 = vmax.xlane.f32.xlu0 %v21409_v55  ;;  %v18394_v60 = vpop.xlane.xlu1 %6683  ;;  %v21412_v34 = vld [vmem:[#allocation354_spill] sm:$0xff]  ;;  %v21413_v28 = vld [vmem:[#allocation348_spill] sm:$0xff]  ;;  %v21419_v55 = vld [vmem:[#allocation117_spill] sm:$0xff] }
 0x61f   : > { %v5945_v48 = vcombine.low %v21408_v3, %v18349_v36  ;;  %v9986_v7 = vrot.slane %v9170_v17, %v21123_v0  ;;  %v9991_v11 = vrot.slane %v9171_v52, %v21132_v38  ;;  %v8202_v59 = vrot.slane %v7056_v19, %v21118_v41  ;;  %6785 = vmax.xlane.f32.xlu1 %v21410_v57  ;;  %vm21423_vm0 = vmmov %vm21406_vm11  ;;  %v21438_v3 = vld [vmem:[#allocation49_spill] sm:$0xff] }
 0x620   : > { %v8209_v24 = vrot.slane %v7056_v19, %v21119_v1  ;;  %v11557_v33 = vrot.slane %v18202_v58, %v21134_v56  ;;  %v11553_v4 = vsel %vm9357_vm4, %v11552_v22, %v11548_v10  ;;  %v18388_v8 = vrot.slane %v5923_v32, %v21199_v37  ;;  %v21415_v19 = vld [vmem:[#allocation344_spill] sm:$0xff]  ;;  %vm21433_vm11 = vmmov %vm21423_vm0 }
 0x621   : > { %v9987_v27 = vsel %vm9336_vm1, %v9986_v7, %v9982_v9  ;;  %v9172_v35 = vunpack.c.l.b16 %v8202_v59  ;;  %v7057_v12 = vpack.c.bf16 %v6639_v45, %v18202_v58  ;;  %v5996_v47 = vcombine.high %v21413_v28, %v21412_v34  ;;  %v21414_v58 = vld [vmem:[#allocation161_spill] sm:$0xff]  ;;  %v21416_v9 = vld [vmem:[#allocation338_spill] sm:$0xff]  ;;  %v21417_v22 = vld [vmem:[#allocation352_spill] sm:$0xff] }
 0x622   : > { %21411 = vst [vmem:[#allocation178_spill] sm:$0xff] %v18388_v8  ;;  %v9173_v40 = vunpack.c.l.b16 %v8209_v24  ;;  %v9992_v25 = vsel %vm9343_vm2, %v9991_v11, %v9987_v27  ;;  %v11558_v62 = vsel %vm9364_vm5, %v11557_v33, %v11553_v4  ;;  %v11562_v32 = vrot.slane %v6639_v45, %v21139_v44  ;;  %6866 = vmax.xlane.f32.xlu0 %v21414_v58  ;;  %v21418_v7 = vld [vmem:[#allocation347_spill] sm:$0xff]  ;;  %v6645_v33 = vpop.xlane.xlu0 %6644  ;;  %v21421_v58 = vld [vmem:[#allocation114_spill] sm:$0xff]  ;;  %v21440_v8 = vld [vmem:[#allocation368_spill] sm:$0xff] }
 0x623   : > { %v9996_v6 = vrot.slane %v9172_v35, %v21131_v39  ;;  %v8216_v17 = vrot.slane %v7057_v12, %v21118_v41  ;;  %v8223_v52 = vrot.slane %v7057_v12, %v21119_v1  ;;  %v5964_v10 = vcombine.high %v21416_v9, %v21415_v19  ;;  %6875 = vmax.xlane.f32.xlu1 %v21419_v55  ;;  %v18416_v35 = vpop.xlane.xlu1 %6689 }
 0x624   : > { %v10001_v61 = vrot.slane %v9173_v40, %v21135_v16  ;;  %v5980_v11 = vcombine.high %v21418_v7, %v21417_v22  ;;  %v11567_v59 = vrot.slane %v18223_v26, %v21138_v29  ;;  %v11563_v24 = vsel %vm9371_vm6, %v11562_v32, %v11558_v62 }
 0x625   : > { %v9997_v4 = vsel %vm9350_vm3, %v9996_v6, %v9992_v25  ;;  %v9174_v57 = vunpack.c.l.b16 %v8216_v17  ;;  %v9175_v45 = vunpack.c.l.b16 %v8223_v52  ;;  %v7058_v27 = vpack.c.bf16 %v6645_v33, %v18223_v26  ;;  %v21420_v26 = vld [vmem:[#allocation234_spill] sm:$0xff] }
 0x626   : > { %v18419_v40 = vrot.slane %v5996_v47, %v21237_v49  ;;  %v10002_v12 = vsel %vm9357_vm4, %v10001_v61, %v9997_v4  ;;  %v11568_v34 = vsel %vm9378_vm7, %v11567_v59, %v11563_v24  ;;  %v11572_v28 = vrot.slane %v6645_v33, %v21148_v43  ;;  %6956 = vmax.xlane.f32.xlu0 %v21420_v26  ;;  %v6651_v19 = vpop.xlane.xlu0 %6650 }
 0x627   : > { %v10006_v62 = vrot.slane %v9174_v57, %v21134_v56  ;;  %v10011_v32 = vrot.slane %v9175_v45, %v21139_v44  ;;  %v8230_v25 = vrot.slane %v7058_v27, %v21118_v41  ;;  %v8237_v6 = vrot.slane %v7058_v27, %v21119_v1  ;;  %6965 = vmax.xlane.f32.xlu1 %v21421_v58  ;;  %v18441_v24 = vpop.xlane.xlu1 %6695 }
 0x628   : > { %v18430_v17 = vrot.slane %v5964_v10, %v21237_v49  ;;  %v18433_v47 = vrot.slane %v5980_v11, %v21237_v49  ;;  %v11577_v61 = vrot.slane %v18243_v50, %v21147_v23  ;;  %v11573_v52 = vsel %vm9385_vm8, %v11572_v28, %v11568_v34 }
 0x629   : > { %v10007_v9 = vsel %vm9364_vm5, %v10006_v62, %v10002_v12  ;;  %v9176_v22 = vunpack.c.l.b16 %v8230_v25  ;;  %v9177_v7 = vunpack.c.l.b16 %v8237_v6  ;;  %v7059_v59 = vpack.c.bf16 %v6651_v19, %v18243_v50  ;;  %v21422_v50 = vld [vmem:[#allocation110_spill] sm:$0xff] }
 0x62a   : > { %v6059_v10 = vcombine.low %v18433_v47, %v18419_v40  ;;  %v10012_v11 = vsel %vm9371_vm6, %v10011_v32, %v10007_v9  ;;  %v11578_v55 = vsel %vm9392_vm9, %v11577_v61, %v11573_v52  ;;  %v11582_v33 = vrot.slane %v6651_v19, %v21149_v13  ;;  %6824 = vmax.xlane.f32.xlu0 %v21422_v50  ;;  %v6657_v28 = vpop.xlane.xlu0 %6656  ;;  %v21441_v32 = vld [vmem:[#allocation39_spill] sm:$0xff] }
 0x62b   : > { %v10016_v4 = vrot.slane %v9176_v22, %v21138_v29  ;;  %v10021_v57 = vrot.slane %v9177_v7, %v21148_v43  ;;  %v8244_v45 = vrot.slane %v7059_v59, %v21118_v41  ;;  %v8251_v27 = vrot.slane %v7059_v59, %v21119_v1  ;;  %6788 = vmax.xlane.f32.xlu1 %v18367_v21  ;;  %v18469_v58 = vpop.xlane.xlu1 %6701 }
 0x62c   : > { %v6027_v12 = vcombine.low %v18357_v18, %v18430_v17  ;;  %v18456_v34 = vsel %vm20249_vm10, %v11582_v33, %v11578_v55  ;;  %v18463_v62 = vsel %vm21423_vm0, %v5945_v48, -inf  ;;  %v7060_v52 = vpack.c.bf16 %v6657_v28, %v18260_v14  ;;  %v21425_v55 = vld [vmem:[#allocation151_spill] sm:$0xff]  ;;  %v21426_v33 = vld [vmem:[#allocation45_spill] sm:$0xff] }
 0x62d   : > { %v10017_v6 = vsel %vm9378_vm7, %v10016_v4, %v10012_v11  ;;  %v9178_v26 = vunpack.c.l.b16 %v8244_v45  ;;  %v9179_v61 = vunpack.c.l.b16 %v8251_v27  ;;  %v11587_v21 = vrot.slane %v18260_v14, %v21110_v63  ;;  %v21427_v4 = vld [vmem:[#allocation365_spill] sm:$0xff] }
 0x62e   : > { %v10022_v19 = vsel %vm9385_vm8, %v10021_v57, %v10017_v6  ;;  %v11591_v9 = vrot.slane %v6657_v28, %v15461_v31  ;;  %v18476_v48 = vrot.slane %v6059_v10, %v21199_v37  ;;  %v8258_v59 = vrot.slane %v7060_v52, %v21118_v41  ;;  %6914 = vmax.xlane.f32.xlu0 %v21425_v55  ;;  %v21428_v10 = vld [vmem:[#allocation150_spill] sm:$0xff]  ;;  %v6663_v27 = vpop.xlane.xlu0 %6662 }
 0x62f   : > { %v10026_v22 = vrot.slane %v9178_v26, %v21147_v23  ;;  %v10031_v7 = vrot.slane %v9179_v61, %v21149_v13  ;;  %v8265_v11 = vrot.slane %v7060_v52, %v21119_v1  ;;  %v6084_v14 = vcombine.high %v21427_v4, %v21426_v33  ;;  %6878 = vmax.xlane.f32.xlu1 %v21428_v10  ;;  %v18494_v52 = vpop.xlane.xlu1 %6707  ;;  %v21435_v10 = vld [vmem:[#allocation34_spill] sm:$0xff] }
 0x630   : > { %v11596_v57 = vrot.slane %v18291_v53, %v21114_v15  ;;  %v11592_v45 = vsel %vm9301_vm12, %v11591_v9, %v11587_v21  ;;  %v18490_v50 = vrot.slane %v6027_v12, %v21199_v37  ;;  %v9180_v6 = vunpack.c.l.b16 %v8258_v59  ;;  %v21430_v59 = vld [vmem:[#allocation36_spill] sm:$0xff] }
 0x631   : > { %v10027_v28 = vsel %vm9392_vm9, %v10026_v22, %v10022_v19  ;;  %v9181_v26 = vunpack.c.l.b16 %v8265_v11  ;;  %v7061_v61 = vpack.c.bf16 %v6663_v27, %v18291_v53  ;;  %v11601_v9 = vrot.slane %v6663_v27, %v21117_v46  ;;  %v21429_v22 = vld [vmem:[#allocation289_spill] sm:$0xff]  ;;  %v21431_v53 = vld [vmem:[#allocation31_spill] sm:$0xff] }
 0x632   : > { %v18499_v33 = vsel %vm20249_vm10, %v10031_v7, %v10027_v28  ;;  %v11597_v21 = vsel %vm9308_vm13, %v11596_v57, %v11592_v45  ;;  %6782 = vmax.xlane.f32.xlu0 %v21429_v22  ;;  %v21432_v11 = vcombine.high %v21430_v59, %v21431_v53  ;;  %v11606_v7 = vrot.slane %v18318_v30, %v21120_v42  ;;  %v21434_v28 = vld [vmem:[#allocation112_spill] sm:$0xff] }
 0x633   : > { %v8272_v12 = vrot.slane %v7061_v61, %v21118_v41  ;;  %v8279_v19 = vrot.slane %v7061_v61, %v21119_v1  ;;  %v10036_v57 = vrot.slane %v9180_v6, %v21110_v63  ;;  %v10040_v45 = vrot.slane %v9181_v26, %v15461_v31  ;;  %6968 = vmax.xlane.f32.xlu1 %v21434_v28  ;;  %v6669_v61 = vpop.xlane.xlu0 %6668  ;;  %v18522_v55 = vpop.xlane.xlu1 %6713  ;;  %v21437_v6 = vld [vmem:[#allocation59_spill] sm:$0xff] }
 0x634   : > { %v6790_v4 = vsel %vm21433_vm11, %v21432_v11, -inf  ;;  %v11602_v27 = vsel %vm9315_vm14, %v11601_v9, %v11597_v21  ;;  %v18519_v22 = vrot.slane %v6084_v14, %v21237_v49  ;;  %v7062_v25 = vpack.c.bf16 %v6669_v61, %v18318_v30 }
 0x635   : > { %v9182_v51 = vunpack.c.l.b16 %v8272_v12  ;;  %v9183_v11 = vunpack.c.l.b16 %v8279_v19  ;;  %v6100_v36 = vcombine.high %v21436_v2, %v21435_v10  ;;  %v6132_v26 = vcombine.high %v21438_v3, %v21437_v6  ;;  %v21439_v19 = vld [vmem:[#allocation108_spill] sm:$0xff] }
 0x636   : > { %v11607_v21 = vsel %vm9322_vm15, %v11606_v7, %v11602_v27  ;;  %v11611_v9 = vrot.slane %v6669_v61, %v21124_v20  ;;  %v8286_v12 = vrot.slane %v7062_v25, %v21118_v41  ;;  %v8293_v30 = vrot.slane %v7062_v25, %v21119_v1  ;;  %6872 = vmax.xlane.f32.xlu0 %v21439_v19 }
 0x637   : > { %v10045_v28 = vrot.slane %v9182_v51, %v21114_v15  ;;  %v10050_v14 = vrot.slane %v9183_v11, %v21117_v46  ;;  %v6116_v2 = vcombine.high %v21441_v32, %v21440_v8  ;;  %v11616_v3 = vrot.slane %v18343_v5, %v21123_v0  ;;  %6791 = vmax.xlane.f32.xlu1 %v6790_v4  ;;  %v6675_v51 = vpop.xlane.xlu0 %6674  ;;  %v18543_v6 = vpop.xlane.xlu1 %6719 }
 0x638   : > { %v10041_v10 = vsel %vm9301_vm12, %v10040_v45, %v10036_v57  ;;  %vm21442_vm0 = vcmask 392512   ;;  %v9184_v61 = vunpack.c.l.b16 %v8286_v12  ;;  %v9185_v11 = vunpack.c.l.b16 %v8293_v30  ;;  %v21444_v30 = vld [vmem:[#allocation143_spill] sm:$0xff] }
 0x639   : > { %v11612_v7 = vsel %vm21442_vm0, %v11611_v9, %v11607_v21  ;;  %v10046_v27 = vsel %vm9308_vm13, %v10045_v28, %v10041_v10  ;;  %v7063_v25 = vpack.c.bf16 %v6675_v51, %v18343_v5  ;;  %v18546_v19 = vrot.slane %v6132_v26, %v21237_v49  ;;  %v21443_v5 = vld [vmem:[#allocation287_spill] sm:$0xff]  ;;  %vm21445_vm11 = vmmov %vm21442_vm0 }
 0x63a   : > { %v10051_v8 = vsel %vm9315_vm14, %v10050_v14, %v10046_v27  ;;  %v11617_v32 = vsel %vm9336_vm1, %v11616_v3, %v11612_v7  ;;  %v11621_v57 = vrot.slane %v6675_v51, %v21132_v38  ;;  %v10055_v4 = vrot.slane %v9184_v61, %v21120_v42  ;;  %6962 = vmax.xlane.f32.xlu0 %v21443_v5 }
 0x63b   : > { %v10060_v45 = vrot.slane %v9185_v11, %v21124_v20  ;;  %v8300_v21 = vrot.slane %v7063_v25, %v21118_v41  ;;  %v8307_v9 = vrot.slane %v7063_v25, %v21119_v1  ;;  %v18557_v28 = vrot.slane %v6100_v36, %v21237_v49  ;;  %6881 = vmax.xlane.f32.xlu1 %v21444_v30  ;;  %v6681_v3 = vpop.xlane.xlu0 %6680  ;;  %v18568_v61 = vpop.xlane.xlu1 %6725 }
 0x63c   : > { %v18560_v26 = vrot.slane %v6116_v2, %v21237_v49  ;;  %v11626_v14 = vrot.slane %v18371_v54, %v21131_v39  ;;  %v11622_v12 = vsel %vm9343_vm2, %v11621_v57, %v11617_v32  ;;  %v10056_v10 = vsel %vm9322_vm15, %v10055_v4, %v10051_v8 }
 0x63d   : > { %v9186_v7 = vunpack.c.l.b16 %v8300_v21  ;;  %v9187_v51 = vunpack.c.l.b16 %v8307_v9  ;;  %v7064_v27 = vpack.c.bf16 %v6681_v3, %v18371_v54  ;;  %v10061_v36 = vsel %vm21445_vm11, %v10060_v45, %v10056_v10  ;;  %v21446_v54 = vld [vmem:[#allocation331_spill] sm:$0xff]  ;;  %v21447_v9 = vld [vmem:[#allocation124_spill] sm:$0xff] }
 0x63e   : > { %v6195_v49 = vcombine.low %v18560_v26, %v18546_v19  ;;  %v11627_v2 = vsel %vm9350_vm3, %v11626_v14, %v11622_v12  ;;  %v11631_v11 = vrot.slane %v6681_v3, %v21135_v16  ;;  %6830 = vmax.xlane.f32.xlu0 %v21446_v54  ;;  %v6163_v4 = vcombine.low %v18519_v22, %v18557_v28 }
 0x63f   : > { %v10065_v25 = vrot.slane %v9186_v7, %v21123_v0  ;;  %v10070_v32 = vrot.slane %v9187_v51, %v21132_v38  ;;  %v8314_v8 = vrot.slane %v7064_v27, %v21118_v41  ;;  %v8321_v57 = vrot.slane %v7064_v27, %v21119_v1  ;;  %6971 = vmax.xlane.f32.xlu1 %v21447_v9  ;;  %v6687_v5 = vpop.xlane.xlu0 %6686  ;;  %v18592_v51 = vpop.xlane.xlu1 %6731 }
 0x640   : > { %v11636_v45 = vrot.slane %v18394_v60, %v21134_v56  ;;  %v11632_v21 = vsel %vm9357_vm4, %v11631_v11, %v11627_v2  ;;  %v21448_v14 = vcombine.low %v18490_v50, %v18476_v48  ;;  %vm21449_vm0 = vcmask 31744  }
 0x641   : > { %v10066_v30 = vsel %vm9336_vm1, %v10065_v25, %v10061_v36  ;;  %v9188_v3 = vunpack.c.l.b16 %v8314_v8  ;;  %v9189_v10 = vunpack.c.l.b16 %v8321_v57  ;;  %v7065_v7 = vpack.c.bf16 %v6687_v5, %v18394_v60  ;;  %v21450_v60 = vld [vmem:[#allocation98_spill] sm:$0xff]  ;;  %vm21452_vm11 = vmmov %vm21449_vm0 }
 0x642   : > { %v6838_v12 = vsel %vm21449_vm0, %v21448_v14, -inf  ;;  %v10071_v27 = vsel %vm9343_vm2, %v10070_v32, %v10066_v30  ;;  %v11637_v2 = vsel %vm9364_vm5, %v11636_v45, %v11632_v21  ;;  %v11641_v11 = vrot.slane %v6687_v5, %v21139_v44  ;;  %6920 = vmax.xlane.f32.xlu0 %v21450_v60 }
 0x643   : > { %v18598_v54 = vrot.slane %v6195_v49, %v21199_v37  ;;  %v10075_v9 = vrot.slane %v9188_v3, %v21131_v39  ;;  %v10080_v14 = vrot.slane %v9189_v10, %v21135_v16  ;;  %v8328_v36 = vrot.slane %v7065_v7, %v21118_v41  ;;  %6839 = vmax.xlane.f32.xlu1 %v6838_v12  ;;  %v6693_v57 = vpop.xlane.xlu0 %6692 }
 0x644   : > { %v8335_v25 = vrot.slane %v7065_v7, %v21119_v1  ;;  %v11646_v32 = vrot.slane %v18416_v35, %v21138_v29  ;;  %v11642_v8 = vsel %vm9371_vm6, %v11641_v11, %v11637_v2  ;;  %v21451_v49 = vcombine.low %v21430_v59, %v21431_v53  ;;  %v18615_v7 = vpop.xlane.xlu1 %6737 }
 0x645   : > { %v6171_v21 = vrot.slane %v6163_v4, %v21199_v37  ;;  %v10076_v5 = vsel %vm9350_vm3, %v10075_v9, %v10071_v27  ;;  %v9190_v30 = vunpack.c.l.b16 %v8328_v36  ;;  %v7066_v10 = vpack.c.bf16 %v6693_v57, %v18416_v35  ;;  %v21453_v36 = vld [vmem:[#allocation180_spill] sm:$0xff] }
 0x646   : > { %v6742_v45 = vsel %vm21452_vm11, %v21451_v49, -inf  ;;  %v9191_v3 = vunpack.c.l.b16 %v8335_v25  ;;  %v10081_v60 = vsel %vm9357_vm4, %v10080_v14, %v10076_v5  ;;  %v11647_v12 = vsel %vm9378_vm7, %v11646_v32, %v11642_v8  ;;  %vm21459_vm11 = vmmov %vm21449_vm0 }
 0x647   : > { %v11651_v2 = vrot.slane %v6693_v57, %v21148_v43  ;;  %v6215_v59 = vcombine.low %v6171_v21, %v18598_v54  ;;  %v10085_v53 = vrot.slane %v9190_v30, %v21134_v56  ;;  %v8342_v27 = vrot.slane %v7066_v10, %v21118_v41  ;;  %6743 = vmax.xlane.f32.xlu0 %v6742_v45  ;;  %v6699_v25 = vpop.xlane.xlu0 %6698 }
 0x648   : > { %v10090_v4 = vrot.slane %v9191_v3, %v21139_v44  ;;  %v8349_v11 = vrot.slane %v7066_v10, %v21119_v1  ;;  %v6060_v35 = vcombine.high %v18433_v47, %v18419_v40  ;;  %v11656_v9 = vrot.slane %v18441_v24, %v21147_v23  ;;  %6929 = vmax.xlane.f32.xlu1 %v21453_v36  ;;  %v18634_v45 = vpop.xlane.xlu1 %6749 }
 0x649   : > { %v11652_v14 = vsel %vm9385_vm8, %v11651_v2, %v11647_v12  ;;  %v6216_v32 = vcombine.high %v6171_v21, %v18598_v54  ;;  %v10086_v8 = vsel %vm9364_vm5, %v10085_v53, %v10081_v60  ;;  %v9192_v57 = vunpack.c.l.b16 %v8342_v27  ;;  %v21456_v53 = vld [vmem:[#allocation65_spill] sm:$0xff] }
 0x64a   : > { %v9193_v49 = vunpack.c.l.b16 %v8349_v11  ;;  %v7067_v5 = vpack.c.bf16 %v6699_v25, %v18441_v24  ;;  %v10091_v40 = vsel %vm9371_vm6, %v10090_v4, %v10086_v8  ;;  %v11657_v47 = vsel %vm9392_vm9, %v11656_v9, %v11652_v14  ;;  %v21455_v24 = vld [vmem:[#allocation330_spill] sm:$0xff]  ;;  %v21457_v4 = vld [vmem:[#allocation67_spill] sm:$0xff] }
 0x64b   : > { %v11661_v30 = vrot.slane %v6699_v25, %v21149_v13  ;;  %v6841_v3 = vsel %vm21449_vm0, %v6215_v59, -inf  ;;  %v10095_v10 = vrot.slane %v9192_v57, %v21138_v29  ;;  %6833 = vmax.xlane.f32.xlu0 %v21455_v24  ;;  %v6705_v2 = vpop.xlane.xlu0 %6704  ;;  %v21458_v27 = vcombine.low %v21456_v53, %v21457_v4 }
 0x64c   : > { %v10100_v54 = vrot.slane %v9193_v49, %v21148_v43  ;;  %v8356_v21 = vrot.slane %v7067_v5, %v21118_v41  ;;  %v8363_v60 = vrot.slane %v7067_v5, %v21119_v1  ;;  %6842 = vmax.xlane.f32.xlu1 %v6841_v3  ;;  %v21460_v11 = vcombine.high %v18357_v18, %v18430_v17  ;;  %v18664_v49 = vpop.xlane.xlu1 %6755 }
 0x64d   : > { %v11662_v12 = vsel %vm20249_vm10, %v11661_v30, %v11657_v47  ;;  %v6745_v59 = vsel %vm21459_vm11, %v21458_v27, -inf  ;;  %v18657_v14 = vrot.slane %v6060_v35, %v21199_v37  ;;  %v10096_v36 = vsel %vm9378_vm7, %v10095_v10, %v10091_v40  ;;  %v21462_v30 = vld [vmem:[#allocation37_spill] sm:$0xff] }
 0x64e   : > { %v18654_v9 = vrot.slane %v21460_v11, %v21199_v37  ;;  %v9194_v25 = vunpack.c.l.b16 %v8356_v21  ;;  %v9195_v8 = vunpack.c.l.b16 %v8363_v60  ;;  %vm21461_vm0 = vcmask 1041409  }
 0x64f   : > { %v18662_v57 = vsel %vm21461_vm0, %v11662_v12, %v18456_v34  ;;  %v11666_v5 = vrot.slane %v18469_v58, %v21110_v63  ;;  %v10101_v18 = vsel %vm9385_vm8, %v10100_v54, %v10096_v36  ;;  %v7068_v17 = vpack.c.bf16 %v6705_v2, %v18469_v58  ;;  %6923 = vmax.xlane.f32.xlu0 %v21462_v30  ;;  %v6711_v58 = vpop.xlane.xlu0 %6710 }
 0x650   : > { %v11670_v35 = vrot.slane %v6705_v2, %v15461_v31  ;;  %v11675_v40 = vrot.slane %v18494_v52, %v21114_v15  ;;  %v10105_v47 = vrot.slane %v9194_v25, %v21147_v23  ;;  %v10110_v34 = vrot.slane %v9195_v8, %v21149_v13  ;;  %6932 = vmax.xlane.f32.xlu1 %v18463_v62  ;;  %v18686_v11 = vpop.xlane.xlu1 %6800 }
 0x651   : > { %v6889_v3 = vsel %vm21459_vm11, %v6216_v32, -inf  ;;  %v8370_v10 = vrot.slane %v7068_v17, %v21118_v41  ;;  %v8377_v21 = vrot.slane %v7068_v17, %v21119_v1  ;;  %v10614_v60 = vstv %s12440_s21 }
 0x652   : > { %v11671_v54 = vsel %vm9301_vm12, %v11670_v35, %v11666_v5  ;;  %v10106_v24 = vsel %vm9392_vm9, %v10105_v47, %v10101_v18  ;;  %v7069_v12 = vpack.c.bf16 %v6711_v58, %v18494_v52  ;;  %v11680_v27 = vrot.slane %v6711_v58, %v21117_v46 }
 0x653   : > { %v11676_v2 = vsel %vm9308_vm13, %v11675_v40, %v11671_v54  ;;  %v11685_v32 = vrot.slane %v18522_v55, %v21120_v42  ;;  %v10111_v36 = vsel %vm20249_vm10, %v10110_v34, %v10106_v24  ;;  %v9196_v25 = vunpack.c.l.b16 %v8370_v10  ;;  %6746 = vmax.xlane.f32.xlu0 %v6745_v59  ;;  %v6717_v40 = vpop.xlane.xlu0 %6716  ;;  %v21463_v34 = vld [vmem:[#allocation30_spill] sm:$0xff] }
 0x654   : > { %v9197_v8 = vunpack.c.l.b16 %v8377_v21  ;;  %v18693_v62 = vsel %vm21461_vm0, %v10111_v36, %v18499_v33  ;;  %v8384_v5 = vrot.slane %v7069_v12, %v21118_v41  ;;  %v8391_v52 = vrot.slane %v7069_v12, %v21119_v1  ;;  %6890 = vmax.xlane.f32.xlu1 %v6889_v3  ;;  %v18706_v58 = vpop.xlane.xlu1 %6803  ;;  %v21464_v59 = vld [vmem:[#allocation166_spill] sm:$0xff]  ;;  %v21467_v3 = vld [vmem:[#allocation171_spill] sm:$0xff]  ;;  %vm21470_vm0 = vmmov %vm21459_vm11 }
 0x655   : > { %v11681_v18 = vsel %vm9315_vm14, %v11680_v27, %v11676_v2  ;;  %v10115_v17 = vrot.slane %v9196_v25, %v21110_v63  ;;  %v18702_v30 = vadd.s32 %v10614_v60, %v21463_v34  ;;  %v7070_v21 = vpack.c.bf16 %v6717_v40, %v18522_v55  ;;  %v21465_v24 = vld [vmem:[#allocation178_spill] sm:$0xff]  ;;  %v21468_v27 = vld [vmem:[#allocation176_spill] sm:$0xff] }
 0x656   : > { %v10119_v35 = vrot.slane %v9197_v8, %v15461_v31  ;;  %v11686_v47 = vsel %vm9322_vm15, %v11685_v32, %v11681_v18  ;;  %v9198_v33 = vunpack.c.l.b16 %v8384_v5  ;;  %v9199_v10 = vunpack.c.l.b16 %v8391_v52 }
 0x657   : > { %v11690_v54 = vrot.slane %v6717_v40, %v21124_v20  ;;  %v21466_v12 = vcombine.low %v21464_v59, %v21465_v24  ;;  %v21469_v36 = vcombine.high %v21467_v3, %v21468_v27  ;;  %v6082_v60 = vcombine.high %v18654_v9, %v18657_v14 }
 0x658   : > { %v5944_v55 = vcombine.high %v21464_v59, %v21465_v24  ;;  %v10124_v25 = vrot.slane %v9198_v33, %v21114_v15  ;;  %v10129_v8 = vrot.slane %v9199_v10, %v21117_v46  ;;  %v8398_v5 = vrot.slane %v7070_v21, %v21118_v41  ;;  %v18731_v3 = vpop.xlane.xlu1 %6848 }
 0x659   : > { %v6835_v2 = vsel %vm21459_vm11, %v21466_v12, -inf  ;;  %v6979_v32 = vsel %vm21470_vm0, %v21469_v36, -inf  ;;  %v8405_v52 = vrot.slane %v7070_v21, %v21119_v1  ;;  %v11695_v18 = vrot.slane %v18543_v6, %v21123_v0  ;;  %v6723_v12 = vpop.xlane.xlu0 %6722 }
 0x65a   : > { %6836 = vmax.xlane.f32.xlu0 %v6835_v2  ;;  %v10120_v40 = vsel %vm9301_vm12, %v10119_v35, %v10115_v17  ;;  %vm21471_vm11 = vcmask 392512   ;;  %6980 = vmax.xlane.f32.xlu1 %v6979_v32  ;;  %vm10616_vm0 = vcmp.lt.s32.totalorder %v18702_v30, 256  ;;  %v9200_v59 = vunpack.c.l.b16 %v8398_v5  ;;  %v21473_v32 = vld [vmem:[#allocation175_spill] sm:$0xff] }
 0x65b   : > { %v11691_v34 = vsel %vm21471_vm11, %v11690_v54, %v11686_v47  ;;  %v10125_v33 = vsel %vm9308_vm13, %v10124_v25, %v10120_v40  ;;  %v9201_v10 = vunpack.c.l.b16 %v8405_v52  ;;  %v7071_v24 = vpack.c.bf16 %v6723_v12, %v18543_v6  ;;  %v21475_v52 = vld [vmem:[#allocation177_spill] sm:$0xff] }
 0x65c   : > { %v10130_v21 = vsel %vm9315_vm14, %v10129_v8, %v10125_v33  ;;  %v11696_v2 = vsel %vm9336_vm1, %v11695_v18, %v11691_v34  ;;  %v11700_v17 = vrot.slane %v6723_v12, %v21132_v38  ;;  %vm21472_vm10 = vcmask 31744  }
 0x65d   : > { %v6982_v35 = vsel %vm21472_vm10, %v6082_v60, -inf  ;;  %v10134_v47 = vrot.slane %v9200_v59, %v21120_v42  ;;  %v10139_v54 = vrot.slane %v9201_v10, %v21124_v20  ;;  %v8412_v27 = vrot.slane %v7071_v24, %v21118_v41  ;;  %v6729_v8 = vpop.xlane.xlu0 %6728  ;;  %v18754_v59 = vpop.xlane.xlu1 %6806 }
 0x65e   : > { %v8419_v36 = vrot.slane %v7071_v24, %v21119_v1  ;;  %6926 = vmax.xlane.f32.xlu0 %v21473_v32  ;;  %v11705_v6 = vrot.slane %v18568_v61, %v21131_v39  ;;  %v11701_v25 = vsel %vm9343_vm2, %v11700_v17, %v11696_v2  ;;  %6983 = vmax.xlane.f32.xlu1 %v6982_v35  ;;  %v12153_v18 = vsel %vm10616_vm0, %v21475_v52, 0.0 }
 0x65f   : > { %v21474_v60 = vcombine.high %v21456_v53, %v21457_v4  ;;  %v10135_v40 = vsel %vm9322_vm15, %v10134_v47, %v10130_v21  ;;  %v9202_v34 = vunpack.c.l.b16 %v8412_v27  ;;  %v7072_v33 = vpack.c.bf16 %v6729_v8, %v18568_v61 }
 0x660   : > { %v9203_v12 = vunpack.c.l.b16 %v8419_v36  ;;  %v10140_v10 = vsel %vm21471_vm11, %v10139_v54, %v10135_v40  ;;  %v11706_v24 = vsel %vm9350_vm3, %v11705_v6, %v11701_v25  ;;  %v11710_v53 = vrot.slane %v6729_v8, %v21135_v16  ;;  %vm21476_vm11 = vmmov %vm21472_vm10 }
 0x661   : > { %v6793_v5 = vsel %vm21472_vm10, %v21474_v60, -inf  ;;  %v18761_v4 = vpack.c.bf16 %v18754_v59, %v18706_v58  ;;  %v10144_v2 = vrot.slane %v9202_v34, %v21123_v0  ;;  %v8426_v17 = vrot.slane %v7072_v33, %v21118_v41  ;;  %v6735_v54 = vpop.xlane.xlu0 %6734  ;;  %v18775_v60 = vpop.xlane.xlu1 %6893 }
 0x662   : > { %v10149_v21 = vrot.slane %v9203_v12, %v21132_v38  ;;  %v8433_v61 = vrot.slane %v7072_v33, %v21119_v1  ;;  %6794 = vmax.xlane.f32.xlu0 %v6793_v5  ;;  %v11715_v35 = vrot.slane %v18592_v51, %v21134_v56  ;;  %v11711_v47 = vsel %vm9357_vm4, %v11710_v53, %v11706_v24 }
 0x663   : > { %12155 = vadd.xlane.f32.xlu1 %v12153_v18  ;;  %v6883_v27 = vsel %vm21472_vm10, %v5944_v55, -inf  ;;  %v6080_v36 = vcombine.high %v18490_v50, %v18476_v48  ;;  %v10145_v32 = vsel %vm9336_vm1, %v10144_v2, %v10140_v10  ;;  %v9204_v6 = vunpack.c.l.b16 %v8426_v17 }
 0x664   : > { %v9205_v25 = vunpack.c.l.b16 %v8433_v61  ;;  %v7073_v8 = vpack.c.bf16 %v6735_v54, %v18592_v51  ;;  %v10150_v5 = vsel %vm9343_vm2, %v10149_v21, %v10145_v32  ;;  %v12173_v52 = vmul.f32 %v12153_v18, %v12153_v18 }
 0x665   : > { %v11716_v40 = vsel %vm9364_vm5, %v11715_v35, %v11711_v47  ;;  %v6081_v34 = vcombine.low %v18654_v9, %v18657_v14  ;;  %v10154_v55 = vrot.slane %v9204_v6, %v21131_v39  ;;  %v6164_v51 = vcombine.high %v18519_v22, %v18557_v28  ;;  %v6741_v10 = vpop.xlane.xlu0 %6740  ;;  %v18793_v21 = vpop.xlane.xlu1 %6764 }
 0x666   : > { %v10159_v48 = vrot.slane %v9205_v25, %v21135_v16  ;;  %v8440_v50 = vrot.slane %v7073_v8, %v21118_v41  ;;  %v8447_v12 = vrot.slane %v7073_v8, %v21119_v1  ;;  %6884 = vmax.xlane.f32.xlu0 %v6883_v27  ;;  %v6196_v18 = vcombine.high %v18560_v26, %v18546_v19 }
 0x667   : > { %v11720_v33 = vrot.slane %v6735_v54, %v21139_v44  ;;  %12175 = vadd.xlane.f32.xlu1 %v12173_v52  ;;  %v6886_v9 = vsel %vm21476_vm11, %v6080_v36, -inf  ;;  %v10155_v14 = vsel %vm9350_vm3, %v10154_v55, %v10150_v5  ;;  %v7074_v2 = vpack.c.bf16 %v6741_v10, %v18615_v7  ;;  %v21477_v54 = vld [vmem:[#allocation164_spill] sm:$0xff]  ;;  %vm21479_vm11 = vmmov %vm21472_vm10 }
 0x668   : > { %v9206_v24 = vunpack.c.l.b16 %v8440_v50  ;;  %v9207_v53 = vunpack.c.l.b16 %v8447_v12  ;;  %v11725_v22 = vrot.slane %v18615_v7, %v21138_v29  ;;  %v10160_v28 = vsel %vm9357_vm4, %v10159_v48, %v10155_v14 }
 0x669   : > { %v11721_v19 = vsel %vm9371_vm6, %v11720_v33, %v11716_v40  ;;  %v11730_v26 = vrot.slane %v6741_v10, %v21148_v43  ;;  %v8454_v35 = vrot.slane %v7074_v2, %v21118_v41  ;;  %v8461_v47 = vrot.slane %v7074_v2, %v21119_v1  ;;  %v6753_v36 = vpop.xlane.xlu0 %6752  ;;  %v18817_v40 = vpop.xlane.xlu1 %6854 }
 0x66a   : > { %v10164_v17 = vrot.slane %v9206_v24, %v21134_v56  ;;  %v10169_v61 = vrot.slane %v9207_v53, %v21139_v44  ;;  %6974 = vmax.xlane.f32.xlu0 %v21477_v54  ;;  %v11726_v27 = vsel %vm9378_vm7, %v11725_v22, %v11721_v19  ;;  %v6934_v7 = vsel %vm21472_vm10, %v6081_v34, -inf }
 0x66b   : > { %v18808_v32 = vrot.slane %v6164_v51, %v21199_v37  ;;  %v18811_v6 = vrot.slane %v6196_v18, %v21199_v37  ;;  %v9208_v8 = vunpack.c.l.b16 %v8454_v35  ;;  %v9209_v5 = vunpack.c.l.b16 %v8461_v47 }
 0x66c   : > { %v10165_v25 = vsel %vm9364_vm5, %v10164_v17, %v10160_v28  ;;  %v18815_v52 = vsel %vm9385_vm8, %v11730_v26, %v11726_v27  ;;  %v11745_v55 = vrot.slane %v18634_v45, %v21110_v63  ;;  %v7076_v48 = vpack.c.bf16 %v6753_v36, %v18634_v45  ;;  %v21478_v27 = vld [vmem:[#allocation160_spill] sm:$0xff] }
 0x66d   : > { %v10170_v34 = vsel %vm9371_vm6, %v10169_v61, %v10165_v25  ;;  %v11749_v50 = vrot.slane %v6753_v36, %v15461_v31  ;;  %v11754_v37 = vrot.slane %v18664_v49, %v21114_v15  ;;  %v11828_v12 = vrot.slane %v18686_v11, %v15461_v31  ;;  %v6798_v24 = vpop.xlane.xlu0 %6797  ;;  %v18838_v28 = vpop.xlane.xlu1 %6941 }
 0x66e   : > { %v10174_v51 = vrot.slane %v9208_v8, %v21138_v29  ;;  %v10179_v18 = vrot.slane %v9209_v5, %v21148_v43  ;;  %6887 = vmax.xlane.f32.xlu0 %v6886_v9  ;;  %v8608_v33 = vrot.slane %v18761_v4, %v21118_v41  ;;  %v8482_v10 = vrot.slane %v7076_v48, %v21118_v41 }
 0x66f   : > { %v8489_v45 = vrot.slane %v7076_v48, %v21119_v1  ;;  %v11750_v14 = vsel %vm9301_vm12, %v11749_v50, %v11745_v55  ;;  %v7084_v2 = vpack.c.bf16 %v18686_v11, %v6798_v24  ;;  %v11824_v22 = vrot.slane %v6798_v24, %v21110_v63 }
 0x670   : > { %v10175_v53 = vsel %vm9378_vm7, %v10174_v51, %v10170_v34  ;;  %v11755_v9 = vsel %vm9308_vm13, %v11754_v37, %v11750_v14  ;;  %v11833_v19 = vrot.slane %v18706_v58, %v21114_v15  ;;  %v8615_v26 = vrot.slane %v18761_v4, %v21119_v1 }
 0x671   : > { %v18846_v17 = vsel %vm9385_vm8, %v10179_v18, %v10175_v53  ;;  %v6217_v61 = vcombine.low %v18808_v32, %v18811_v6  ;;  %v11838_v11 = vrot.slane %v18754_v59, %v21117_v46  ;;  %v8594_v35 = vrot.slane %v7084_v2, %v21118_v41  ;;  %v6759_v8 = vpop.xlane.xlu0 %6758  ;;  %v18859_v48 = vpop.xlane.xlu1 %6767 }
 0x672   : > { %v8601_v47 = vrot.slane %v7084_v2, %v21119_v1  ;;  %v11829_v54 = vsel %vm9301_vm12, %v11828_v12, %v11824_v22  ;;  %6977 = vmax.xlane.f32.xlu0 %v21478_v27  ;;  %v9230_v58 = vunpack.c.l.b16 %v8608_v33  ;;  %v9212_v36 = vunpack.c.l.b16 %v8482_v10 }
 0x673   : > { %v9213_v4 = vunpack.c.l.b16 %v8489_v45  ;;  %v11834_v25 = vsel %vm9308_vm13, %v11833_v19, %v11829_v54  ;;  %v9228_v5 = vunpack.c.l.b16 %v8594_v35  ;;  %v7077_v34 = vpack.c.bf16 %v6759_v8, %v18664_v49 }
 0x674   : > { %v9229_v55 = vunpack.c.l.b16 %v8601_v47  ;;  %v11759_v59 = vrot.slane %v6759_v8, %v21117_v46  ;;  %v9231_v50 = vunpack.c.l.b16 %v8615_v26  ;;  %v6937_v37 = vsel %vm21479_vm11, %v6217_v61, -inf }
 0x675   : > { %v6218_v12 = vcombine.high %v18808_v32, %v18811_v6  ;;  %v18865_v51 = vsel %vm9315_vm14, %v11838_v11, %v11834_v25  ;;  %v10273_v18 = vrot.slane %v9228_v5, %v21110_v63  ;;  %v8496_v10 = vrot.slane %v7077_v34, %v21118_v41  ;;  %v6846_v6 = vpop.xlane.xlu0 %6845  ;;  %v18877_v26 = vpop.xlane.xlu1 %6857 }
 0x676   : > { %v10277_v33 = vrot.slane %v9229_v55, %v15461_v31  ;;  %v8503_v49 = vrot.slane %v7077_v34, %v21119_v1  ;;  %6935 = vmax.xlane.f32.xlu0 %v6934_v7  ;;  %v10282_v45 = vrot.slane %v9230_v58, %v21114_v15  ;;  %v10194_v14 = vrot.slane %v9212_v36, %v21110_v63 }
 0x677   : > { %v10198_v24 = vrot.slane %v9213_v4, %v15461_v31  ;;  %v11760_v32 = vsel %vm9315_vm14, %v11759_v59, %v11755_v9  ;;  %v9214_v2 = vunpack.c.l.b16 %v8496_v10  ;;  %v7092_v19 = vpack.c.bf16 %v18731_v3, %v6846_v6 }
 0x678   : > { %v10278_v53 = vsel %vm9301_vm12, %v10277_v33, %v10273_v18  ;;  %v9215_v22 = vunpack.c.l.b16 %v8503_v49  ;;  %v11907_v7 = vrot.slane %v18731_v3, %v15461_v31  ;;  %v10287_v61 = vrot.slane %v9231_v50, %v21117_v46 }
 0x679   : > { %v10283_v11 = vsel %vm9308_vm13, %v10282_v45, %v10278_v53  ;;  %v11903_v35 = vrot.slane %v6846_v6, %v21110_v63  ;;  %v10203_v9 = vrot.slane %v9214_v2, %v21114_v15  ;;  %v8706_v54 = vrot.slane %v7092_v19, %v21118_v41  ;;  %v6762_v3 = vpop.xlane.xlu0 %6761  ;;  %v18895_v5 = vpop.xlane.xlu1 %6947 }
 0x67a   : > { %v10208_v47 = vrot.slane %v9215_v22, %v21117_v46  ;;  %6938 = vmax.xlane.f32.xlu0 %v6937_v37  ;;  %v10199_v27 = vsel %vm9301_vm12, %v10198_v24, %v10194_v14  ;;  %v8713_v58 = vrot.slane %v7092_v19, %v21119_v1  ;;  %v18891_v4 = vsel %vm9315_vm14, %v10287_v61, %v10283_v11 }
 0x67b   : > { %v11908_v36 = vsel %vm9301_vm12, %v11907_v7, %v11903_v35  ;;  %v10204_v25 = vsel %vm9308_vm13, %v10203_v9, %v10199_v27  ;;  %v7078_v8 = vpack.c.bf16 %v18793_v21, %v6762_v3  ;;  %v11764_v34 = vrot.slane %v6762_v3, %v21120_v42 }
 0x67c   : > { %v10209_v55 = vsel %vm9315_vm14, %v10208_v47, %v10204_v25  ;;  %v6985_v59 = vsel %vm21472_vm10, %v6218_v12, -inf  ;;  %v11769_v50 = vrot.slane %v18793_v21, %v21124_v20  ;;  %v9244_v37 = vunpack.c.l.b16 %v8706_v54 }
 0x67d   : > { %v8510_v18 = vrot.slane %v7078_v8, %v21118_v41  ;;  %v8517_v33 = vrot.slane %v7078_v8, %v21119_v1  ;;  %v11774_v10 = vrot.slane %v18859_v48, %v21123_v0  ;;  %v9245_v49 = vunpack.c.l.b16 %v8713_v58  ;;  %v6852_v14 = vpop.xlane.xlu0 %6851  ;;  %v18910_v53 = vpop.xlane.xlu1 %6815 }
 0x67e   : > { %6986 = vmax.xlane.f32.xlu0 %v6985_v59  ;;  %v11765_v45 = vsel %vm9322_vm15, %v11764_v34, %v11760_v32  ;;  %v11982_v24 = vrot.slane %v18775_v60, %v21110_v63  ;;  %vm21480_vm11 = vcmask 392512   ;;  %v11917_v2 = vrot.slane %v18817_v40, %v21117_v46 }
 0x67f   : > { %v9216_v12 = vunpack.c.l.b16 %v8510_v18  ;;  %v9217_v6 = vunpack.c.l.b16 %v8517_v33  ;;  %v11770_v21 = vsel %vm21480_vm11, %v11769_v50, %v11765_v45  ;;  %v7093_v22 = vpack.c.bf16 %v18817_v40, %v6852_v14  ;;  %vm21481_vm10 = vmmov %vm21480_vm11 }
 0x680   : > { %v11912_v19 = vrot.slane %v6852_v14, %v21114_v15  ;;  %v18917_v7 = vsel %vm9336_vm1, %v11774_v10, %v11770_v21  ;;  %v10352_v32 = vrot.slane %v9244_v37, %v21110_v63  ;;  %v11922_v61 = vrot.slane %v18877_v26, %v21120_v42  ;;  %vm21482_vm11 = vmmov %vm21481_vm10 }
 0x681   : > { %v10213_v11 = vrot.slane %v9216_v12, %v21120_v42  ;;  %v10218_v35 = vrot.slane %v9217_v6, %v21124_v20  ;;  %v10356_v9 = vrot.slane %v9245_v49, %v15461_v31  ;;  %v8720_v47 = vrot.slane %v7093_v22, %v21118_v41  ;;  %v6897_v27 = vpop.xlane.xlu0 %6896  ;;  %v18932_v34 = vpop.xlane.xlu1 %6905 }
 0x682   : > { %v8727_v40 = vrot.slane %v7093_v22, %v21119_v1  ;;  %v11913_v54 = vsel %vm9308_vm13, %v11912_v19, %v11908_v36  ;;  %v7100_v25 = vpack.c.bf16 %v6897_v27, %v18775_v60  ;;  %v11986_v8 = vrot.slane %v6897_v27, %v15461_v31 }
 0x683   : > { %v10214_v58 = vsel %vm9322_vm15, %v10213_v11, %v10209_v55  ;;  %v11918_v3 = vsel %vm9315_vm14, %v11917_v2, %v11913_v54  ;;  %v9246_v50 = vunpack.c.l.b16 %v8720_v47  ;;  %v10357_v60 = vsel %vm9301_vm12, %v10356_v9, %v10352_v32 }
 0x684   : > { %v18935_v59 = vsel %vm21481_vm10, %v10218_v35, %v10214_v58  ;;  %v9247_v37 = vunpack.c.l.b16 %v8727_v40  ;;  %v11987_v18 = vsel %vm9301_vm12, %v11986_v8, %v11982_v24  ;;  %v18939_v36 = vsel %vm9322_vm15, %v11922_v61, %v11918_v3 }
 0x685   : > { %v10361_v55 = vrot.slane %v9246_v50, %v21114_v15  ;;  %v6810_v10 = vpop.xlane.xlu0 %6809  ;;  %v18945_v45 = vpop.xlane.xlu1 %6773  ;;  %v12061_v32 = vrot.slane %v18838_v28, %v21110_v63  ;;  %v8818_v47 = vrot.slane %v7100_v25, %v21118_v41  ;;  %v8825_v40 = vrot.slane %v7100_v25, %v21119_v1 }
 0x686   : > { %v10366_v33 = vrot.slane %v9247_v37, %v21117_v46  ;;  %v11843_v49 = vrot.slane %v6810_v10, %v21120_v42  ;;  %v11853_v37 = vrot.slane %v18910_v53, %v21123_v0 }
 0x687   : > { %v10362_v14 = vsel %vm9308_vm13, %v10361_v55, %v10357_v60  ;;  %v9261_v55 = vunpack.c.l.b16 %v8825_v40 }
 0x688   : > { %v18949_v12 = vsel %vm9315_vm14, %v10366_v33, %v10362_v14  ;;  %v11844_v24 = vsel %vm9322_vm15, %v11843_v49, %v18865_v51  ;;  %v12070_v51 = vrot.slane %v18895_v5, %v21114_v15 }
 0x689   : > { %v6900_v6 = vpop.xlane.xlu0 %6899  ;;  %v18954_v2 = vpop.xlane.xlu1 %6863 }
 0x68a   : > { %v11991_v21 = vrot.slane %v6900_v6, %v21114_v15 }
 0x68c   : > { %v11992_v22 = vsel %vm9308_vm13, %v11991_v21, %v11987_v18  ;;  %v9260_v18 = vunpack.c.l.b16 %v8818_v47  ;;  %v10435_v47 = vrot.slane %v9261_v55, %v15461_v31 }
 0x68d   : > { %v6945_v19 = vpop.xlane.xlu0 %6944  ;;  %v18963_v35 = vpop.xlane.xlu1 %6953 }
 0x68e   : > { %v18960_v61 = vpack.c.bf16 %v6945_v19, %v18838_v28  ;;  %v12065_v11 = vrot.slane %v6945_v19, %v15461_v31 }
 0x690   : > { %v12066_v9 = vsel %vm9301_vm12, %v12065_v11, %v12061_v32 }
 0x691   : > { %v6813_v54 = vpop.xlane.xlu0 %6812  ;;  %v18971_v27 = vsel %vm9308_vm13, %v12070_v51, %v12066_v9  ;;  %v18974_v3 = vpop.xlane.xlu1 %6821 }
 0x692   : > { %v7086_v58 = vpack.c.bf16 %v6813_v54, %v6810_v10  ;;  %v11848_v28 = vrot.slane %v6813_v54, %v21124_v20 }
 0x694   : > { %v8622_v8 = vrot.slane %v7086_v58, %v21118_v41  ;;  %v8629_v50 = vrot.slane %v7086_v58, %v21119_v1  ;;  %v11849_v25 = vsel %vm21482_vm11, %v11848_v28, %v11844_v24  ;;  %v10431_v24 = vrot.slane %v9260_v18, %v21110_v63  ;;  %vm21483_vm11 = vmmov %vm21481_vm10 }
 0x695   : > { %v6903_v33 = vpop.xlane.xlu0 %6902  ;;  %v18981_v10 = vpop.xlane.xlu1 %6911  ;;  %v18985_v19 = vsel %vm9336_vm1, %v11853_v37, %v11849_v25  ;;  %v11784_v18 = vrot.slane %v18945_v45, %v21131_v39 }
 0x696   : > { %v9232_v60 = vunpack.c.l.b16 %v8622_v8  ;;  %v9233_v49 = vunpack.c.l.b16 %v8629_v50  ;;  %v7101_v14 = vpack.c.bf16 %v6903_v33, %v6900_v6  ;;  %v11996_v21 = vrot.slane %v6903_v33, %v21117_v46 }
 0x697   : > { %v12001_v6 = vrot.slane %v18932_v34, %v21120_v42 }
 0x698   : > { %v10292_v32 = vrot.slane %v9232_v60, %v21120_v42  ;;  %v10297_v11 = vrot.slane %v9233_v49, %v21124_v20  ;;  %v8832_v51 = vrot.slane %v7101_v14, %v21118_v41  ;;  %v8839_v9 = vrot.slane %v7101_v14, %v21119_v1 }
 0x699   : > { %v11997_v40 = vsel %vm9315_vm14, %v11996_v21, %v11992_v22  ;;  %v6771_v54 = vpop.xlane.xlu0 %6770  ;;  %v18999_v37 = vpop.xlane.xlu1 %6779  ;;  %v10436_v49 = vsel %vm9301_vm12, %v10435_v47, %v10431_v24  ;;  %v8930_v14 = vrot.slane %v18960_v61, %v21118_v41  ;;  %v8937_v21 = vrot.slane %v18960_v61, %v21119_v1 }
 0x69a   : > { %v10293_v58 = vsel %vm9322_vm15, %v10292_v32, %v18891_v4  ;;  %v9262_v28 = vunpack.c.l.b16 %v8832_v51  ;;  %v9263_v8 = vunpack.c.l.b16 %v8839_v9  ;;  %v7079_v50 = vpack.c.bf16 %v6771_v54, %v18859_v48 }
 0x69b   : > { %v19004_v55 = vsel %vm21481_vm10, %v10297_v11, %v10293_v58  ;;  %v11779_v25 = vrot.slane %v6771_v54, %v21132_v38  ;;  %v19008_v22 = vsel %vm9322_vm15, %v12001_v6, %v11997_v40 }
 0x69c   : > { %v10440_v33 = vrot.slane %v9262_v28, %v21114_v15  ;;  %v10445_v4 = vrot.slane %v9263_v8, %v21117_v46  ;;  %v8524_v60 = vrot.slane %v7079_v50, %v21118_v41  ;;  %v8531_v48 = vrot.slane %v7079_v50, %v21119_v1 }
 0x69d   : > { %v11780_v32 = vsel %vm9343_vm2, %v11779_v25, %v18917_v7  ;;  %v6861_v11 = vpop.xlane.xlu0 %6860  ;;  %v19023_v54 = vpop.xlane.xlu1 %6869  ;;  %v9276_v50 = vunpack.c.l.b16 %v8930_v14  ;;  %v9277_v25 = vunpack.c.l.b16 %v8937_v21 }
 0x69e   : > { %v10441_v51 = vsel %vm9308_vm13, %v10440_v33, %v10436_v49  ;;  %v9218_v9 = vunpack.c.l.b16 %v8524_v60  ;;  %v9219_v6 = vunpack.c.l.b16 %v8531_v48  ;;  %v7094_v40 = vpack.c.bf16 %v6861_v11, %v18877_v26 }
 0x69f   : > { %v19026_v24 = vsel %vm9315_vm14, %v10445_v4, %v10441_v51  ;;  %v11927_v47 = vrot.slane %v6861_v11, %v21124_v20  ;;  %v19030_v58 = vsel %vm9350_vm3, %v11784_v18, %v11780_v32  ;;  %v11932_v26 = vrot.slane %v18954_v2, %v21123_v0 }
 0x6a0   : > { %v10223_v61 = vrot.slane %v9218_v9, %v21123_v0  ;;  %v10228_v7 = vrot.slane %v9219_v6, %v21132_v38  ;;  %v8734_v28 = vrot.slane %v7094_v40, %v21118_v41  ;;  %v8741_v8 = vrot.slane %v7094_v40, %v21119_v1 }
 0x6a1   : > { %v11928_v33 = vsel %vm21483_vm11, %v11927_v47, %v18939_v36  ;;  %v6951_v4 = vpop.xlane.xlu0 %6950  ;;  %v19043_v32 = vpop.xlane.xlu1 %6959  ;;  %v10514_v6 = vrot.slane %v9277_v25, %v15461_v31  ;;  %v12080_v40 = vrot.slane %v18963_v35, %v21120_v42  ;;  %vm21487_vm11 = vmmov %vm21481_vm10 }
 0x6a2   : > { %v10224_v18 = vsel %vm9336_vm1, %v10223_v61, %v18935_v59  ;;  %v9248_v60 = vunpack.c.l.b16 %v8734_v28  ;;  %v9249_v48 = vunpack.c.l.b16 %v8741_v8  ;;  %v7109_v49 = vpack.c.bf16 %v6951_v4, %v18895_v5 }
 0x6a3   : > { %v19046_v11 = vsel %vm9343_vm2, %v10228_v7, %v10224_v18  ;;  %v12075_v51 = vrot.slane %v6951_v4, %v21117_v46  ;;  %v19050_v14 = vsel %vm9336_vm1, %v11932_v26, %v11928_v33  ;;  %v10510_v5 = vrot.slane %v9276_v50, %v21110_v63 }
 0x6a4   : > { %v10371_v36 = vrot.slane %v9248_v60, %v21120_v42  ;;  %v10376_v21 = vrot.slane %v9249_v48, %v21124_v20  ;;  %v8944_v59 = vrot.slane %v7109_v49, %v21118_v41  ;;  %v8951_v9 = vrot.slane %v7109_v49, %v21119_v1 }
 0x6a5   : > { %v12076_v47 = vsel %vm9315_vm14, %v12075_v51, %v18971_v27  ;;  %v6819_v61 = vpop.xlane.xlu0 %6818  ;;  %v19065_v33 = vpop.xlane.xlu1 %6827  ;;  %v11863_v60 = vrot.slane %v18974_v3, %v21131_v39 }
 0x6a6   : > { %v10372_v7 = vsel %vm9322_vm15, %v10371_v36, %v18949_v12  ;;  %v9278_v28 = vunpack.c.l.b16 %v8944_v59  ;;  %v9279_v8 = vunpack.c.l.b16 %v8951_v9  ;;  %v7087_v26 = vpack.c.bf16 %v6819_v61, %v18910_v53 }
 0x6a7   : > { %v19068_v50 = vsel %vm21481_vm10, %v10376_v21, %v10372_v7  ;;  %v11858_v31 = vrot.slane %v6819_v61, %v21132_v38  ;;  %v19072_v25 = vsel %vm9322_vm15, %v12080_v40, %v12076_v47  ;;  %v10515_v53 = vsel %vm9301_vm12, %v10514_v6, %v10510_v5  ;;  %vm21484_vm12 = vmmov %vm21481_vm10 }
 0x6a8   : > { %v10519_v27 = vrot.slane %v9278_v28, %v21114_v15  ;;  %v10524_v4 = vrot.slane %v9279_v8, %v21117_v46  ;;  %v8636_v12 = vrot.slane %v7087_v26, %v21118_v41  ;;  %v8643_v18 = vrot.slane %v7087_v26, %v21119_v1 }
 0x6a9   : > { %v11859_v48 = vsel %vm9343_vm2, %v11858_v31, %v18985_v19  ;;  %v6909_v49 = vpop.xlane.xlu0 %6908  ;;  %v19085_v46 = vpop.xlane.xlu1 %6917 }
 0x6aa   : > { %v10520_v51 = vsel %vm9308_vm13, %v10519_v27, %v10515_v53  ;;  %v9234_v36 = vunpack.c.l.b16 %v8636_v12  ;;  %v9235_v21 = vunpack.c.l.b16 %v8643_v18  ;;  %v7102_v15 = vpack.c.bf16 %v6909_v49, %v18932_v34  ;;  %vm21485_vm13 = vmmov %vm21481_vm10 }
 0x6ab   : > { %v19088_v59 = vsel %vm9315_vm14, %v10524_v4, %v10520_v51  ;;  %v12006_v9 = vrot.slane %v6909_v49, %v21124_v20  ;;  %v19092_v5 = vsel %vm9350_vm3, %v11863_v60, %v11859_v48  ;;  %v12011_v34 = vrot.slane %v18981_v10, %v21123_v0  ;;  %vm21486_vm14 = vmmov %vm21481_vm10 }
 0x6ac   : > { %v10302_v6 = vrot.slane %v9234_v36, %v21123_v0  ;;  %v10307_v19 = vrot.slane %v9235_v21, %v21132_v38  ;;  %v8846_v40 = vrot.slane %v7102_v15, %v21118_v41  ;;  %v8853_v47 = vrot.slane %v7102_v15, %v21119_v1 }
 0x6ad   : > { %v12007_v61 = vsel %vm21484_vm12, %v12006_v9, %v19008_v22  ;;  %v6777_v7 = vpop.xlane.xlu0 %6776  ;;  %v19105_v27 = vpop.xlane.xlu1 %6785 }
 0x6ae   : > { %v10303_v28 = vsel %vm9336_vm1, %v10302_v6, %v19004_v55  ;;  %v9264_v8 = vunpack.c.l.b16 %v8846_v40  ;;  %v9265_v26 = vunpack.c.l.b16 %v8853_v47  ;;  %v7080_v31 = vpack.c.bf16 %v6777_v7, %v18945_v45 }
 0x6af   : > { %v19108_v4 = vsel %vm9343_vm2, %v10307_v19, %v10303_v28  ;;  %v11789_v12 = vrot.slane %v6777_v7, %v21135_v16  ;;  %v19112_v18 = vsel %vm9336_vm1, %v12011_v34, %v12007_v61  ;;  %v11794_v45 = vrot.slane %v18999_v37, %v21134_v56 }
 0x6b0   : > { %v10450_v22 = vrot.slane %v9264_v8, %v21120_v42  ;;  %v10455_v53 = vrot.slane %v9265_v26, %v21124_v20  ;;  %v8538_v55 = vrot.slane %v7080_v31, %v21118_v41  ;;  %v8545_v60 = vrot.slane %v7080_v31, %v21119_v1 }
 0x6b1   : > { %v11790_v48 = vsel %vm9357_vm4, %v11789_v12, %v19030_v58  ;;  %v6867_v49 = vpop.xlane.xlu0 %6866  ;;  %v19125_v9 = vpop.xlane.xlu1 %6875 }
 0x6b2   : > { %v10451_v51 = vsel %vm9322_vm15, %v10450_v22, %v19026_v24  ;;  %v9220_v36 = vunpack.c.l.b16 %v8538_v55  ;;  %v9221_v21 = vunpack.c.l.b16 %v8545_v60  ;;  %v7095_v15 = vpack.c.bf16 %v6867_v49, %v18954_v2 }
 0x6b3   : > { %v19128_v6 = vsel %vm21485_vm13, %v10455_v53, %v10451_v51  ;;  %v11937_v19 = vrot.slane %v6867_v49, %v21132_v38  ;;  %v19132_v40 = vsel %vm9364_vm5, %v11794_v45, %v11790_v48  ;;  %v11942_v2 = vrot.slane %v19023_v54, %v21131_v39 }
 0x6b4   : > { %v10233_v58 = vrot.slane %v9220_v36, %v21131_v39  ;;  %v10238_v47 = vrot.slane %v9221_v21, %v21135_v16  ;;  %v8748_v24 = vrot.slane %v7095_v15, %v21118_v41  ;;  %v8755_v34 = vrot.slane %v7095_v15, %v21119_v1 }
 0x6b5   : > { %v11938_v61 = vsel %vm9343_vm2, %v11937_v19, %v19050_v14  ;;  %v6957_v7 = vpop.xlane.xlu0 %6956  ;;  %v19145_v12 = vpop.xlane.xlu1 %6965  ;;  %v12090_v19 = vrot.slane %v19043_v32, %v21123_v0 }
 0x6b6   : > { %v10234_v28 = vsel %vm9350_vm3, %v10233_v58, %v19046_v11  ;;  %v9250_v8 = vunpack.c.l.b16 %v8748_v24  ;;  %v9251_v26 = vunpack.c.l.b16 %v8755_v34  ;;  %v7110_v31 = vpack.c.bf16 %v6957_v7, %v18963_v35 }
 0x6b7   : > { %v10239_v22 = vsel %vm9357_vm4, %v10238_v47, %v10234_v28  ;;  %v12085_v53 = vrot.slane %v6957_v7, %v21124_v20  ;;  %v19150_v55 = vsel %vm9350_vm3, %v11942_v2, %v11938_v61 }
 0x6b8   : > { %v10381_v60 = vrot.slane %v9250_v8, %v21123_v0  ;;  %v10386_v14 = vrot.slane %v9251_v26, %v21132_v38  ;;  %v8958_v45 = vrot.slane %v7110_v31, %v21118_v41  ;;  %v8965_v11 = vrot.slane %v7110_v31, %v21119_v1 }
 0x6b9   : > { %v12086_v35 = vsel %vm21486_vm14, %v12085_v53, %v19072_v25  ;;  %v6825_v48 = vpop.xlane.xlu0 %6824  ;;  %v19161_v15 = vpop.xlane.xlu1 %6788  ;;  %vm21494_vm14 = vcmask 1043459  }
 0x6ba   : > { %v10382_v49 = vsel %vm9336_vm1, %v10381_v60, %v19068_v50  ;;  %v9280_v51 = vunpack.c.l.b16 %v8958_v45  ;;  %v9281_v36 = vunpack.c.l.b16 %v8965_v11  ;;  %v7088_v21 = vpack.c.bf16 %v6825_v48, %v18974_v3 }
 0x6bb   : > { %v10387_v58 = vsel %vm9343_vm2, %v10386_v14, %v10382_v49  ;;  %v11868_v47 = vrot.slane %v6825_v48, %v21135_v16  ;;  %v19176_v61 = vsel %vm9336_vm1, %v12090_v19, %v12086_v35 }
 0x6bc   : > { %v10529_v24 = vrot.slane %v9280_v51, %v21120_v42  ;;  %v10534_v25 = vrot.slane %v9281_v36, %v21124_v20  ;;  %v8650_v34 = vrot.slane %v7088_v21, %v21118_v41  ;;  %v8657_v50 = vrot.slane %v7088_v21, %v21119_v1 }
 0x6bd   : > { %v19173_v3 = vsel %vm9357_vm4, %v11868_v47, %v19092_v5  ;;  %v6915_v2 = vpop.xlane.xlu0 %6914  ;;  %v19181_v20 = vpop.xlane.xlu1 %6878 }
 0x6be   : > { %v10530_v7 = vsel %vm9322_vm15, %v10529_v24, %v19088_v59  ;;  %v9236_v28 = vunpack.c.l.b16 %v8650_v34  ;;  %v9237_v8 = vunpack.c.l.b16 %v8657_v50  ;;  %v7103_v42 = vpack.c.bf16 %v6915_v2, %v18981_v10 }
 0x6bf   : > { %v10535_v26 = vsel %vm21487_vm11, %v10534_v25, %v10530_v7  ;;  %v12016_v31 = vrot.slane %v6915_v2, %v21132_v38  ;;  %vm21488_vm15 = vcmask 1048512   ;;  %vm21495_vm11 = vcmask 1044484  }
 0x6c0   : > { %v10312_v5 = vrot.slane %v9236_v28, %v21131_v39  ;;  %v10317_v53 = vrot.slane %v9237_v8, %v21135_v16  ;;  %v8860_v60 = vrot.slane %v7103_v42, %v21118_v41  ;;  %v8867_v14 = vrot.slane %v7103_v42, %v21119_v1 }
 0x6c1   : > { %v19191_v59 = vsel %vm9343_vm2, %v12016_v31, %v19112_v18  ;;  %v6783_v45 = vpop.xlane.xlu0 %6782  ;;  %v19195_v48 = vpop.xlane.xlu1 %6968 }
 0x6c2   : > { %v10313_v10 = vsel %vm9350_vm3, %v10312_v5, %v19108_v4  ;;  %v9266_v11 = vunpack.c.l.b16 %v8860_v60  ;;  %v9267_v35 = vunpack.c.l.b16 %v8867_v14  ;;  %v7081_v51 = vpack.c.bf16 %v6783_v45, %v18999_v37 }
 0x6c3   : > { %v19198_v49 = vsel %vm9357_vm4, %v10317_v53, %v10313_v10  ;;  %v11799_v18 = vrot.slane %v6783_v45, %v21139_v44 }
 0x6c4   : > { %v10460_v36 = vrot.slane %v9266_v11, %v21123_v0  ;;  %v10465_v21 = vrot.slane %v9267_v35, %v21132_v38  ;;  %v8552_v19 = vrot.slane %v7081_v51, %v21118_v41  ;;  %v8559_v47 = vrot.slane %v7081_v51, %v21119_v1 }
 0x6c5   : > { %v6873_v4 = vpop.xlane.xlu0 %6872  ;;  %v11800_v25 = vsel %vm9371_vm6, %v11799_v18, %v19132_v40  ;;  %v19210_v34 = vpop.xlane.xlu1 %6791  ;;  %v7082_v51 = vpack.c.bf16 %v19161_v15, %v19105_v27 }
 0x6c6   : > { %v10461_v24 = vsel %vm9336_vm1, %v10460_v36, %v19128_v6  ;;  %v9222_v50 = vunpack.c.l.b16 %v8552_v19  ;;  %v9223_v2 = vunpack.c.l.b16 %v8559_v47  ;;  %v7096_v28 = vpack.c.bf16 %v6873_v4, %v19023_v54 }
 0x6c7   : > { %v19213_v37 = vsel %vm9343_vm2, %v10465_v21, %v10461_v24  ;;  %v7097_v19 = vpack.c.bf16 %v19181_v20, %v19125_v9 }
 0x6c8   : > { %v10243_v7 = vrot.slane %v9222_v50, %v21134_v56  ;;  %v10248_v42 = vrot.slane %v9223_v2, %v21139_v44  ;;  %v8762_v6 = vrot.slane %v7096_v28, %v21118_v41  ;;  %v8769_v40 = vrot.slane %v7096_v28, %v21119_v1 }
 0x6c9   : > { %v6963_v8 = vpop.xlane.xlu0 %6962  ;;  %v19225_v60 = vpop.xlane.xlu1 %6881  ;;  %v8566_v28 = vrot.slane %v7082_v51, %v21118_v41 }
 0x6ca   : > { %v10244_v31 = vsel %vm9364_vm5, %v10243_v7, %v10239_v22  ;;  %v7111_v53 = vpack.c.bf16 %v6963_v8, %v19043_v32  ;;  %v9252_v14 = vunpack.c.l.b16 %v8762_v6  ;;  %v9253_v45 = vunpack.c.l.b16 %v8769_v40 }
 0x6cb   : > { %v19222_v5 = vsel %vm9371_vm6, %v10248_v42, %v10244_v31  ;;  %v7112_v7 = vpack.c.bf16 %v19195_v48, %v19145_v12  ;;  %v11947_v42 = vrot.slane %v6873_v4, %v21135_v16 }
 0x6cc   : > { %v8972_v54 = vrot.slane %v7111_v53, %v21118_v41  ;;  %v8979_v11 = vrot.slane %v7111_v53, %v21119_v1  ;;  %v10391_v22 = vrot.slane %v9252_v14, %v21131_v39  ;;  %v10396_v35 = vrot.slane %v9253_v45, %v21135_v16 }
 0x6cd   : > { %v19227_v10 = vpop.xlane.xlu0 %6830  ;;  %v19243_v2 = vpop.xlane.xlu1 %6971  ;;  %v11873_v53 = vrot.slane %v19065_v33, %v21134_v56  ;;  %v8783_v14 = vrot.slane %v7097_v19, %v21119_v1  ;;  %v8986_v45 = vrot.slane %v7112_v7, %v21118_v41  ;;  %v8993_v4 = vrot.slane %v7112_v7, %v21119_v1 }
 0x6ce   : > { %v9282_v36 = vunpack.c.l.b16 %v8972_v54  ;;  %v9283_v21 = vunpack.c.l.b16 %v8979_v11  ;;  %v10392_v32 = vsel %vm9350_vm3, %v10391_v22, %v10387_v58  ;;  %v8573_v58 = vrot.slane %v7082_v51, %v21119_v1 }
 0x6cf   : > { %v10397_v47 = vsel %vm9357_vm4, %v10396_v35, %v10392_v32  ;;  %v9224_v54 = vunpack.c.l.b16 %v8566_v28  ;;  %v11804_v35 = vrot.slane %v19105_v27, %v21138_v29  ;;  %v11952_v51 = vrot.slane %v19125_v9, %v21134_v56 }
 0x6d0   : > { %v10539_v24 = vrot.slane %v9282_v36, %v21123_v0  ;;  %v10544_v50 = vrot.slane %v9283_v21, %v21132_v38  ;;  %v8776_v0 = vrot.slane %v7097_v19, %v21118_v41  ;;  %v19259_v11 = vunpack.c.l.b16 %v8573_v58 }
 0x6d1   : > { %v19236_v18 = vpop.xlane.xlu0 %6920  ;;  %v19264_v22 = vpop.xlane.xlu1 %6839  ;;  %v12095_v36 = vrot.slane %v6963_v8, %v21132_v38  ;;  %v7089_v21 = vpack.c.bf16 %v19227_v10, %v19065_v33  ;;  %v12021_v19 = vrot.slane %v19085_v46, %v21131_v39  ;;  %v11805_v9 = vsel %vm9378_vm7, %v11804_v35, %v11800_v25 }
 0x6d2   : > { %v10540_v31 = vsel %vm9336_vm1, %v10539_v24, %v10535_v26  ;;  %v11948_v26 = vsel %vm9357_vm4, %v11947_v42, %v19150_v55  ;;  %v12100_v55 = vrot.slane %v19145_v12, %v21131_v39  ;;  %v11809_v24 = vrot.slane %v19161_v15, %v21148_v43 }
 0x6d3   : > { %v19252_v6 = vsel %vm9343_vm2, %v10544_v50, %v10540_v31  ;;  %v9254_v27 = vunpack.c.l.b16 %v8776_v0  ;;  %v19281_v50 = vunpack.c.l.b16 %v8783_v14  ;;  %v9284_v38 = vunpack.c.l.b16 %v8986_v45 }
 0x6d4   : > { %v11953_v8 = vsel %vm9364_vm5, %v11952_v51, %v11948_v26  ;;  %v10253_v33 = vrot.slane %v9224_v54, %v21138_v29  ;;  %v10258_v7 = vrot.slane %v19259_v11, %v21148_v43  ;;  %v11957_v28 = vrot.slane %v19181_v20, %v21139_v44 }
 0x6d5   : > { %v6744_v40 = vpop.xlane.xlu0 %6743  ;;  %v19290_v12 = vunpack.c.l.b16 %v8993_v4  ;;  %v11814_v15 = vrot.slane %v19210_v34, %v21147_v23  ;;  %v12096_v58 = vsel %vm9343_vm2, %v12095_v36, %v19176_v61  ;;  %v11962_v25 = vrot.slane %v19225_v60, %v21138_v29  ;;  %v19306_v54 = vpop.xlane.xlu1 %6929  ;;  %vm21490_vm2 = vmmov %vm21488_vm15 }
 0x6d6   : > { %v8664_v42 = vrot.slane %v7089_v21, %v21118_v41  ;;  %v10401_v0 = vrot.slane %v9254_v27, %v21134_v56  ;;  %v11810_v14 = vsel %vm9385_vm8, %v11809_v24, %v11805_v9  ;;  %v11958_v20 = vsel %vm9371_vm6, %v11957_v28, %v11953_v8  ;;  %vm21492_vm12 = vmmov %vm21490_vm2 }
 0x6d7   : > { %v11878_v45 = vrot.slane %v19227_v10, %v21139_v44  ;;  %v10406_v61 = vrot.slane %v19281_v50, %v21139_v44  ;;  %v10549_v4 = vrot.slane %v9284_v38, %v21131_v39  ;;  %v12105_v26 = vrot.slane %v19195_v48, %v21135_v16  ;;  %vm21493_vm13 = vmmov %vm21490_vm2 }
 0x6d8   : > { %v11735_v35 = vrot.slane %v6744_v40, %v21147_v23  ;;  %v19316_v51 = vsel %vm9378_vm7, %v10253_v33, %v19222_v5  ;;  %v10554_v36 = vrot.slane %v19290_v12, %v21135_v16  ;;  %v12101_v10 = vsel %vm9350_vm3, %v12100_v55, %v12096_v58 }
 0x6d9   : > { %v19273_v32 = vpop.xlane.xlu0 %6833  ;;  %v8671_v24 = vrot.slane %v7089_v21, %v21119_v1  ;;  %v19323_v27 = vsel %vm9392_vm9, %v11814_v15, %v11810_v14  ;;  %v19326_v9 = vsel %vm9378_vm7, %v11962_v25, %v11958_v20  ;;  %v9238_v48 = vunpack.c.l.b16 %v8664_v42  ;;  %v6843_v25 = vpop.xlane.xlu1 %6842 }
 0x6da   : > { %v11874_v38 = vsel %vm9364_vm5, %v11873_v53, %v19173_v3  ;;  %v19331_v5 = vsel %vm9364_vm5, %v10401_v0, %v10397_v47  ;;  %v12106_v21 = vsel %vm9357_vm4, %v12105_v26, %v12101_v10  ;;  %v12110_v15 = vrot.slane %v19243_v2, %v21134_v56 }
 0x6db   : > { %v11879_v33 = vsel %vm9371_vm6, %v11878_v45, %v11874_v38  ;;  %v7104_v58 = vpack.c.bf16 %v19236_v18, %v19085_v46  ;;  %v11736_v3 = vsel %vm9392_vm9, %v11735_v35, %v18815_v52  ;;  %v9239_v53 = vunpack.c.l.b16 %v8671_v24 }
 0x6dc   : > { %v10322_v0 = vrot.slane %v9238_v48, %v21134_v56  ;;  %v12022_v14 = vsel %vm9350_vm3, %v12021_v19, %v19191_v59  ;;  %v12026_v20 = vrot.slane %v19236_v18, %v21135_v16  ;;  %vm21489_vm1 = vcmask 1042434  }
 0x6dd   : > { %v19299_v31 = vpop.xlane.xlu0 %6923  ;;  %v11883_v45 = vrot.slane %v19273_v32, %v21138_v29  ;;  %v19357_v24 = vsel %vm9350_vm3, %v10549_v4, %v19252_v6  ;;  %v8874_v59 = vrot.slane %v7104_v58, %v21118_v41  ;;  %v7091_v19 = vpack.c.bf16 %v6843_v25, %v19264_v22  ;;  %vm21491_vm10 = vmmov %vm21489_vm1 }
 0x6de   : > { %v10327_v6 = vrot.slane %v9239_v53, %v21139_v44  ;;  %v19370_v4 = vsel %vm9364_vm5, %v12110_v15, %v12106_v21 }
 0x6df   : > { %v9268_v15 = vunpack.c.l.b16 %v8874_v59 }
 0x6e1   : > { %v6747_v8 = vpop.xlane.xlu0 %6746 }
 0x6e2   : > { %v7075_v28 = vpack.c.bf16 %v6747_v8, %v6744_v40  ;;  %v11740_v55 = vrot.slane %v6747_v8, %v21149_v13 }
 0x6e4   : > { %v8468_v47 = vrot.slane %v7075_v28, %v21118_v41  ;;  %v8475_v42 = vrot.slane %v7075_v28, %v21119_v1  ;;  %v11741_v40 = vsel %vm21488_vm15, %v11740_v55, %v11736_v3  ;;  %v8881_v28 = vrot.slane %v7104_v58, %v21119_v1  ;;  %vm21497_vm15 = vmmov %vm21490_vm2 }
 0x6e5   : > { %v12145_v46 = vsel %vm21489_vm1, %v11741_v40, %v18662_v57  ;;  %v11884_v3 = vsel %vm9378_vm7, %v11883_v45, %v11879_v33  ;;  %v11893_v58 = vrot.slane %v19264_v22, %v21147_v23  ;;  %vm21498_vm1 = vmmov %vm21494_vm14 }
 0x6e6   : > { %v9210_v26 = vunpack.c.l.b16 %v8468_v47  ;;  %v9211_v35 = vunpack.c.l.b16 %v8475_v42  ;;  %v9269_v45 = vunpack.c.l.b16 %v8881_v28 }
 0x6e7   : > { %v6837_v52 = vpop.xlane.xlu0 %6836 }
 0x6e8   : > { %v7090_v10 = vpack.c.bf16 %v6837_v52, %v19273_v32  ;;  %v11888_v18 = vrot.slane %v6837_v52, %v21148_v43  ;;  %v10184_v57 = vrot.slane %v9210_v26, %v21147_v23  ;;  %v10189_v48 = vrot.slane %v9211_v35, %v21149_v13 }
 0x6e9   : > { %v10323_v32 = vsel %vm9364_vm5, %v10322_v0, %v19198_v49  ;;  %v19379_v52 = vsel %vm9357_vm4, %v12026_v20, %v12022_v14  ;;  %v8692_v49 = vrot.slane %v7091_v19, %v21118_v41  ;;  %v12041_v14 = vrot.slane %v19306_v54, %v21138_v29 }
 0x6ea   : > { %v8678_v38 = vrot.slane %v7090_v10, %v21118_v41  ;;  %v8685_v8 = vrot.slane %v7090_v10, %v21119_v1  ;;  %v10185_v47 = vsel %vm9392_vm9, %v10184_v57, %v18846_v17  ;;  %v11889_v21 = vsel %vm9385_vm8, %v11888_v18, %v11884_v3  ;;  %v19413_v3 = vpop.xlane.xlu1 %6932 }
 0x6eb   : > { %v19373_v55 = vpop.xlane.xlu0 %6926  ;;  %v10190_v53 = vsel %vm21490_vm2, %v10189_v48, %v10185_v47  ;;  %v10328_v0 = vsel %vm9371_vm6, %v10327_v6, %v10323_v32  ;;  %v8699_v20 = vrot.slane %v7091_v19, %v21119_v1  ;;  %v11894_v10 = vsel %vm9392_vm9, %v11893_v58, %v11889_v21 }
 0x6ec   : > { %v9240_v42 = vunpack.c.l.b16 %v8678_v38  ;;  %v9241_v40 = vunpack.c.l.b16 %v8685_v8  ;;  %v10601_v33 = vsel %vm21491_vm10, %v10190_v53, %v18693_v62  ;;  %v9242_v62 = vunpack.c.l.b16 %v8692_v49 }
 0x6ed   : > { %v11898_v18 = vrot.slane %v6843_v25, %v21149_v13  ;;  %v10259_v19 = vsel %vm9385_vm8, %v10258_v7, %v19316_v51  ;;  %v10470_v48 = vrot.slane %v9268_v15, %v21131_v39  ;;  %v9243_v32 = vunpack.c.l.b16 %v8699_v20 }
 0x6ee   : > { %v10332_v17 = vrot.slane %v9240_v42, %v21138_v29  ;;  %v10337_v35 = vrot.slane %v9241_v40, %v21148_v43  ;;  %v7105_v6 = vpack.c.bf16 %v19373_v55, %v19299_v31  ;;  %v10475_v42 = vrot.slane %v9269_v45, %v21135_v16 }
 0x6ef   : > { %v6795_v26 = vpop.xlane.xlu0 %6794  ;;  %v11899_v25 = vsel %vm21493_vm13, %v11898_v18, %v11894_v10  ;;  %v10407_v40 = vsel %vm9371_vm6, %v10406_v61, %v19331_v5  ;;  %v10471_v49 = vsel %vm9350_vm3, %v10470_v48, %v19213_v37  ;;  %v12031_v15 = vrot.slane %v19299_v31, %v21134_v56  ;;  %vm21496_vm3 = vmmov %vm21490_vm2  ;;  %v6891_v10 = vpop.xlane.xlu1 %6890 }
 0x6f0   : > { %v7083_v22 = vpack.c.bf16 %v6795_v26, %v19210_v34  ;;  %v11819_v59 = vrot.slane %v6795_v26, %v21149_v13  ;;  %v10333_v57 = vsel %vm9378_vm7, %v10332_v17, %v10328_v0  ;;  %v8888_v50 = vrot.slane %v7105_v6, %v21118_v41  ;;  %vm21499_vm2 = vmmov %vm21495_vm11 }
 0x6f1   : > { %v10338_v39 = vsel %vm9385_vm8, %v10337_v35, %v10333_v57  ;;  %v10347_v17 = vrot.slane %v9243_v32, %v21149_v13  ;;  %v7106_v37 = vpack.c.bf16 %v19413_v3, %v19306_v54  ;;  %v10476_v20 = vsel %vm9357_vm4, %v10475_v42, %v10471_v49 }
 0x6f2   : > { %v8580_v38 = vrot.slane %v7083_v22, %v21118_v41  ;;  %v8587_v8 = vrot.slane %v7083_v22, %v21119_v1  ;;  %v11820_v34 = vsel %vm21492_vm12, %v11819_v59, %v19323_v27  ;;  %v10342_v27 = vrot.slane %v9242_v62, %v21147_v23  ;;  %vm21502_vm12 = vmmov %vm21496_vm3 }
 0x6f3   : > { %v12146_v28 = vsel %vm21494_vm14, %v11820_v34, %v12145_v46  ;;  %v6885_v11 = vpop.xlane.xlu0 %6884  ;;  %v19450_v35 = vsel %vm9357_vm4, %v10554_v36, %v19357_v24  ;;  %v12036_v59 = vrot.slane %v19373_v55, %v21139_v44  ;;  %v8895_v57 = vrot.slane %v7105_v6, %v21119_v1  ;;  %vm21500_vm4 = vmmov %vm21496_vm3 }
 0x6f4   : > { %v9226_v7 = vunpack.c.l.b16 %v8580_v38  ;;  %v9227_v51 = vunpack.c.l.b16 %v8587_v8  ;;  %v7098_v47 = vpack.c.bf16 %v6885_v11, %v19225_v60  ;;  %v12147_v46 = vsel %vm21495_vm11, %v11899_v25, %v12146_v28  ;;  %vm21504_vm14 = vmmov %vm21496_vm3 }
 0x6f5   : > { %v10343_v58 = vsel %vm9392_vm9, %v10342_v27, %v10338_v39  ;;  %v11967_v18 = vrot.slane %v6885_v11, %v21148_v43  ;;  %v12032_v12 = vsel %vm9364_vm5, %v12031_v15, %v19379_v52  ;;  %v8902_v36 = vrot.slane %v7106_v37, %v21118_v41 }
 0x6f6   : > { %v10263_v53 = vrot.slane %v9226_v7, %v21147_v23  ;;  %v10268_v21 = vrot.slane %v9227_v51, %v21149_v13  ;;  %v8790_v60 = vrot.slane %v7098_v47, %v21118_v41  ;;  %v8797_v61 = vrot.slane %v7098_v47, %v21119_v1  ;;  %v6981_v47 = vpop.xlane.xlu1 %6980 }
 0x6f7   : > { %v19435_v5 = vpop.xlane.xlu0 %6974  ;;  %v10348_v22 = vsel %vm21497_vm15, %v10347_v17, %v10343_v58  ;;  %v8909_v55 = vrot.slane %v7106_v37, %v21119_v1  ;;  %v12037_v32 = vsel %vm9371_vm6, %v12036_v59, %v12032_v12  ;;  %v11968_v25 = vsel %vm9385_vm8, %v11967_v18, %v19326_v9  ;;  %vm21510_vm15 = vmmov %vm21496_vm3 }
 0x6f8   : > { %v10264_v0 = vsel %vm9392_vm9, %v10263_v53, %v10259_v19  ;;  %v9256_v45 = vunpack.c.l.b16 %v8790_v60  ;;  %v7113_v26 = vpack.c.bf16 %v19435_v5, %v19243_v2  ;;  %v9270_v2 = vunpack.c.l.b16 %v8888_v50 }
 0x6f9   : > { %v10269_v31 = vsel %vm21496_vm3, %v10268_v21, %v10264_v0  ;;  %v9257_v19 = vunpack.c.l.b16 %v8797_v61  ;;  %v9271_v28 = vunpack.c.l.b16 %v8895_v57  ;;  %vm21501_vm10 = vcmask 1045509  }
 0x6fa   : > { %v10602_v62 = vsel %vm21498_vm1, %v10269_v31, %v10601_v33  ;;  %v10411_v24 = vrot.slane %v9256_v45, %v21138_v29  ;;  %v11977_v33 = vrot.slane %v6891_v10, %v21149_v13  ;;  %v9000_v8 = vrot.slane %v7113_v26, %v21118_v41  ;;  %vm21503_vm13 = vmmov %vm21501_vm10 }
 0x6fb   : > { %v6888_v48 = vpop.xlane.xlu0 %6887  ;;  %v10603_v16 = vsel %vm21499_vm2, %v10348_v22, %v10602_v62  ;;  %v10480_v11 = vrot.slane %v9270_v2, %v21134_v56  ;;  %v10416_v39 = vrot.slane %v9257_v19, %v21148_v43  ;;  %v9007_v9 = vrot.slane %v7113_v26, %v21119_v1 }
 0x6fc   : > { %v7099_v38 = vpack.c.bf16 %v6891_v10, %v6888_v48  ;;  %v11972_v34 = vrot.slane %v6888_v48, %v21147_v23  ;;  %v10412_v42 = vsel %vm9378_vm7, %v10411_v24, %v10407_v40  ;;  %v9286_v21 = vunpack.c.l.b16 %v9000_v8 }
 0x6fd   : > { %v9272_v58 = vunpack.c.l.b16 %v8902_v36  ;;  %v12115_v50 = vrot.slane %v19435_v5, %v21139_v44  ;;  %v12046_v40 = vrot.slane %v19413_v3, %v21148_v43  ;;  %v10417_v37 = vsel %vm9385_vm8, %v10416_v39, %v10412_v42 }
 0x6fe   : > { %v8804_v52 = vrot.slane %v7099_v38, %v21118_v41  ;;  %v8811_v6 = vrot.slane %v7099_v38, %v21119_v1  ;;  %v11973_v7 = vsel %vm9392_vm9, %v11972_v34, %v11968_v25  ;;  %v10485_v26 = vrot.slane %v9271_v28, %v21139_v44 }
 0x6ff   : > { %v6978_v51 = vpop.xlane.xlu0 %6977  ;;  %v11978_v53 = vsel %vm21500_vm4, %v11977_v33, %v11973_v7  ;;  %v12042_v5 = vsel %vm9378_vm7, %v12041_v14, %v12037_v32  ;;  %v9287_v22 = vunpack.c.l.b16 %v9007_v9  ;;  %v10559_v3 = vrot.slane %v9286_v21, %v21134_v56 }
 0x700   : > { %v9258_v27 = vunpack.c.l.b16 %v8804_v52  ;;  %v9259_v49 = vunpack.c.l.b16 %v8811_v6  ;;  %v7114_v60 = vpack.c.bf16 %v6981_v47, %v6978_v51  ;;  %v12148_v15 = vsel %vm21501_vm10, %v11978_v53, %v12147_v46 }
 0x701   : > { %v12120_v45 = vrot.slane %v6978_v51, %v21138_v29  ;;  %v10481_v46 = vsel %vm9364_vm5, %v10480_v11, %v10476_v20  ;;  %v9273_v18 = vunpack.c.l.b16 %v8909_v55  ;;  %v10490_v57 = vrot.slane %v9272_v58, %v21138_v29  ;;  %v6984_v20 = vpop.xlane.xlu1 %6983 }
 0x702   : > { %v10421_v61 = vrot.slane %v9258_v27, %v21147_v23  ;;  %v10426_v17 = vrot.slane %v9259_v49, %v21149_v13  ;;  %v9014_v0 = vrot.slane %v7114_v60, %v21118_v41  ;;  %v12116_v2 = vsel %vm9371_vm6, %v12115_v50, %v19370_v4 }
 0x703   : > { %v6936_v31 = vpop.xlane.xlu0 %6935  ;;  %v12125_v14 = vrot.slane %v6981_v47, %v21148_v43  ;;  %v9021_v19 = vrot.slane %v7114_v60, %v21119_v1  ;;  %v12121_v56 = vsel %vm9378_vm7, %v12120_v45, %v12116_v2  ;;  %v10486_v36 = vsel %vm9371_vm6, %v10485_v26, %v10481_v46 }
 0x704   : > { %v10422_v10 = vsel %vm9392_vm9, %v10421_v61, %v10417_v37  ;;  %v12051_v62 = vrot.slane %v6936_v31, %v21147_v23  ;;  %v9288_v48 = vunpack.c.l.b16 %v9014_v0  ;;  %v12047_v24 = vsel %vm9385_vm8, %v12046_v40, %v12042_v5 }
 0x705   : > { %v10427_v59 = vsel %vm21502_vm12, %v10426_v17, %v10422_v10  ;;  %v12130_v33 = vrot.slane %v6984_v20, %v21147_v23  ;;  %v10560_v4 = vsel %vm9364_vm5, %v10559_v3, %v19450_v35  ;;  %v12126_v34 = vsel %vm9385_vm8, %v12125_v14, %v12121_v56  ;;  %vm21506_vm5 = vmmov %vm21496_vm3 }
 0x706   : > { %v10604_v54 = vsel %vm21503_vm13, %v10427_v59, %v10603_v16  ;;  %v10564_v16 = vrot.slane %v9287_v22, %v21139_v44  ;;  %v12052_v8 = vsel %vm9392_vm9, %v12051_v62, %v12047_v24  ;;  %v10491_v6 = vsel %vm9378_vm7, %v10490_v57, %v10486_v36 }
 0x707   : > { %v6939_v12 = vpop.xlane.xlu0 %6938  ;;  %v9289_v28 = vunpack.c.l.b16 %v9021_v19  ;;  %v10569_v11 = vrot.slane %v9288_v48, %v21138_v29  ;;  %vm21505_vm11 = vcmask 1046534   ;;  %v10495_v42 = vrot.slane %v9273_v18, %v21148_v43 }
 0x708   : > { %v7107_v38 = vpack.c.bf16 %v6939_v12, %v6936_v31  ;;  %v12056_v55 = vrot.slane %v6939_v12, %v21149_v13  ;;  %v10565_v27 = vsel %vm9371_vm6, %v10564_v16, %v10560_v4  ;;  %v12131_v49 = vsel %vm9392_vm9, %v12130_v33, %v12126_v34 }
 0x709   : > { %v10570_v60 = vsel %vm9378_vm7, %v10569_v11, %v10565_v27  ;;  %v10496_v58 = vsel %vm9385_vm8, %v10495_v42, %v10491_v6  ;;  %vm21507_vm6 = vcmask 1047559   ;;  %vm21508_vm7 = vmmov %vm21505_vm11 }
 0x70a   : > { %v8916_v32 = vrot.slane %v7107_v38, %v21118_v41  ;;  %v8923_v25 = vrot.slane %v7107_v38, %v21119_v1  ;;  %v12057_v52 = vsel %vm21504_vm14, %v12056_v55, %v12052_v8  ;;  %vm21511_vm1 = vmmov %vm21507_vm6 }
 0x70b   : > { %v6987_v39 = vpop.xlane.xlu0 %6986  ;;  %v12149_v35 = vsel %vm21505_vm11, %v12057_v52, %v12148_v15  ;;  %v10574_v15 = vrot.slane %v9289_v28, %v21148_v43 }
 0x70c   : > { %v9274_v7 = vunpack.c.l.b16 %v8916_v32  ;;  %v9275_v44 = vunpack.c.l.b16 %v8923_v25  ;;  %v7115_v51 = vpack.c.bf16 %v6987_v39, %v6984_v20  ;;  %v12135_v47 = vrot.slane %v6987_v39, %v21149_v13 }
 0x70d   : > { %v10575_v31 = vsel %vm9385_vm8, %v10574_v15, %v10570_v60 }
 0x70e   : > { %v10500_v53 = vrot.slane %v9274_v7, %v21147_v23  ;;  %v10505_v9 = vrot.slane %v9275_v44, %v21149_v13  ;;  %v9028_v29 = vrot.slane %v7115_v51, %v21118_v41  ;;  %v9035_v21 = vrot.slane %v7115_v51, %v21119_v1 }
 0x70f   : > { %v12136_v50 = vsel %vm21506_vm5, %v12135_v47, %v12131_v49 }
 0x710   : > { %v10501_v61 = vsel %vm9392_vm9, %v10500_v53, %v10496_v58  ;;  %v9290_v17 = vunpack.c.l.b16 %v9028_v29  ;;  %v9291_v40 = vunpack.c.l.b16 %v9035_v21  ;;  %v12150_v37 = vsel %vm21507_vm6, %v12136_v50, %v12149_v35 }
 0x711   : > { %v10506_v41 = vsel %vm21496_vm3, %v10505_v9, %v10501_v61  ;;  %v12154_v1 = vsel %vm10616_vm0, %v12150_v37, 0.0 }
 0x712   : > { %v10605_v43 = vsel %vm21508_vm7, %v10506_v41, %v10604_v54  ;;  %v10579_v0 = vrot.slane %v9290_v17, %v21147_v23  ;;  %v10584_v45 = vrot.slane %v9291_v40, %v21149_v13  ;;  %12157 = vadd.xlane.f32.xlu0 %v12154_v1  ;;  %v12174_v26 = vmul.f32 %v12154_v1, %v12154_v1 }
 0x714   : > { %v10580_v46 = vsel %vm9392_vm9, %v10579_v0, %v10575_v31 }
 0x715   : > { %v10585_v5 = vsel %vm21510_vm15, %v10584_v45, %v10580_v46 }
 0x716   : > { %v10606_v30 = vsel %vm21511_vm1, %v10585_v5, %v10605_v43  ;;  %12177 = vadd.xlane.f32.xlu0 %v12174_v26 }
 0x717   : > { %v10608_v10 = vpack.c.b16 %v10606_v30, %v10606_v30 }
 0x719   : > { %10612 = vst [vmem:[%s18338_s5 + $0x4] sm:$0xf] %v10608_v10 }
 0x71a   : > { %12731 = shalt.err (!%p12728_p12)
}
 0x71b   : > { %s12732_s19 = scalar_lea.hbm %s19551_s10, 128  ;;  %s12736_s15 = scalar_lea.hbm %s21513_s7, 256 }
 0x71c   : > { %p12733_p11 = scmp.ne.s32.totalorder %s19551_s10, %s12732_s19  ;;  %p12737_p8 = scmp.lt.u32.totalorder %s19551_s10, %s21513_s7 }
 0x71d   : > { %p12738_p1 = scmp.lt.u32.totalorder %s12736_s15, %s12732_s19  ;;  %p12740_p7 = scmp.lt.u32.totalorder %s12732_s19, %s19551_s10 }
 0x71e   : > { %p12734_p13 = pnand %p12733_p11, %p21514_p10 }
 0x71f   : > { %p12739_p6 = por %p12738_p1, %p12737_p8 }
 0x720   : > { %p12735_p4 = pneg %p12734_p13 }
 0x721   : > { %p12741_p5 = por %p12740_p7, %p12739_p6 }
 0x723   : > { %p12742_p2 = pnand %p12741_p5, %p12735_p4 }
 0x725   : > { %12745 = shalt.err (!%p12742_p2)
}
 0x726   : > { %s12913_s24 = smov 128   ;;  %v12156_v23 = vpop.xlane.xlu1 %12155  ;;  %s12387_s8 = sshll.u32 %s18281_s3, 2  ;;  %vm12171_vm8 = vcmask 58368   ;;  %vm21515_vm9 = vcmask 1041409  }
 0x727   : > { %12498 = dma.vmem_to_hbm [thread:$0]  (%p21514_p10), %s19554_s13, 128, %s19551_s10, %s12194_s27, %s20346_s18, %s12913_s24, %s20491_s22   ;;  %v12164_v22 = vrot.slane %v12156_v23, %v21110_v63  ;;  %vm21517_vm0 = vmmov %vm21515_vm9 }
 0x728   : > { %s354_s11 = scalar_lea.vmem [#allocation9], %s12387_s8  ;;  %s21516_s4 = sld [smem:[#allocation376_spill]] }
 0x729   : > { %s12227_s0 = sshll.u32 %s354_s11, 4  ;;  %s12199_s21 = scalar_lea.sflag [#allocation10], %s18281_s3  ;;  %s19595_s0 = int_to_ptr.vmem [resolvable:$true] %s12227_s0 }
 0x72a   : > { %v12176_v59 = vpop.xlane.xlu1 %12175  ;;  %s12746_s28 = scalar_lea.vmem %s19595_s0, 64  ;;  %s12914_s6 = smov [#allocation9]  }
 0x72b   : > { %v12184_v57 = vrot.slane %v12176_v59, %v21110_v63  ;;  %p12747_p3 = scmp.ne.s32.totalorder %s19595_s0, %s12746_s28  ;;  %s12750_s29 = sshll.u32 %s12914_s6, 4  ;;  %s12751_s29 = int_to_ptr.vmem [resolvable:$false] %s12750_s29 }
 0x72c   : > { %s12752_s30 = scalar_lea.vmem %s12751_s29, 128  ;;  %p12753_p12 = scmp.lt.s32.totalorder %s19595_s0, %s12751_s29 }
 0x72d   : > { %p12748_p0 = pnand %p12747_p3, %p21514_p10  ;;  %p12754_p11 = scmp.lt.s32.totalorder %s12752_s30, %s12746_s28 }
 0x72e   : > { %s19593_s5 = scalar_lea.hbm %s21516_s4, %s12444_s26 }
 0x72f   : > { %p12749_p9 = pneg %p12748_p0  ;;  %p12755_p13 = por %p12754_p11, %p12753_p12 }
 0x731   : > { %p12756_p4 = pnand %p12755_p13, %p12749_p9 }
 0x79f   : > { %v12158_v13 = vpop.xlane.xlu0 %12157 }
 0x7a0   : > { %v12168_v3 = vrot.slane %v12158_v13, %v21110_v63 }
 0x7a2   : > { %v12169_v62 = vsel %vm21515_vm9, %v12168_v3, %v12164_v22 }
 0x7a3   : > { %12172 = vst.msk [vmem:[%s354_s11] sm:$0x3] %vm12171_vm8, %v12169_v62  ;;  %v12178_v18 = vpop.xlane.xlu0 %12177 }
 0x7a4   : > { %v12188_v20 = vrot.slane %v12178_v18, %v21110_v63 }
 0x7a6   : > { %v12189_v2 = vsel %vm21517_vm0, %v12188_v20, %v12184_v57 }
 0x7a7   : > { %12441 = vst.msk [vmem:[%s354_s11 + $0x2] sm:$0x3] %vm12171_vm8, %v12189_v2 }
 0x7a8   : > { %12759 = shalt.err (!%p12756_p4)
}
 0x7a9   : > { %s12760_s26 = scalar_lea.hbm %s19593_s5, 64  ;;  %s12764_s27 = scalar_lea.hbm %s21516_s4, 128 }
 0x7aa   : > { %p12761_p8 = scmp.ne.s32.totalorder %s19593_s5, %s12760_s26  ;;  %p12765_p7 = scmp.lt.u32.totalorder %s19593_s5, %s21516_s4 }
 0x7ab   : > { %p12766_p5 = scmp.lt.u32.totalorder %s12764_s27, %s12760_s26  ;;  %p12768_p3 = scmp.lt.u32.totalorder %s12760_s26, %s19593_s5 }
 0x7ac   : > { %p12762_p1 = pnand %p12761_p8, %p21514_p10 }
 0x7ad   : > { %p12767_p2 = por %p12766_p5, %p12765_p7 }
 0x7ae   : > { %p12763_p6 = pneg %p12762_p1 }
 0x7af   : > { %p12769_p0 = por %p12768_p3, %p12767_p2 }
 0x7b1   : > { %p12770_p9 = pnand %p12769_p0, %p12763_p6 }
 0x7b3   : > { %12773 = shalt.err (!%p12770_p9)
}
 0x7b4   : > { %s21518_s9 = smov 2  }
 0x7b5   : > { %12499 = dma.vmem_to_hbm [thread:$0]  (%p21514_p10), %s19595_s0, 64, %s19593_s5, %s12199_s21, %s20376_s2, %s20376_s2, %s21518_s9  }
 0x7b6 PF: > { %s21519_s12 = sld [smem:[#allocation15_spill]]  ;;  %s21520_s19 = sld [smem:[#allocation28_spill]] }
 0x7b7   : > { %s21521_s23 = sld [smem:[#allocation22_spill]] }
 0x7bc   : > { %s12242_s14 = sand.u32 1, %s21519_s12   ;;  %p21522_p12 = scmp.ne.s32.totalorder %s21520_s19, 0 }
 0x7bd   : > { %p21523_p11 = scmp.ge.s32.totalorder %s21521_s23, 2  ;;  %s12243_s15 = scalar_lea.sflag [#allocation5], %s12242_s14 }
 0x7bf   : > { %p12510_p13 = pnand %p21523_p11, %p21522_p12 }
 0x7c1   : > { %12823 = dma.done.wait (!%p12510_p13), %s12243_s15, 128  }
 0x7c2   : > { %12825 = vsyncadd (!%p12510_p13), %s12243_s15, 4294967168  ;;  %s12252_s25 = scalar_lea.sflag [#allocation10], %s12242_s14 }
 0x7c3   : > { %12827 = dma.done.wait (!%p12510_p13), %s12252_s25, 64  }
 0x7c4   : > { %12829 = vsyncadd (!%p12510_p13), %s12252_s25, 4294967232  ;;  %s21524_s30 = sld [smem:[#allocation24_spill]]  ;;  %s21525_s21 = sld [smem:[#allocation16_spill]] }
 0x7c5   : > { %s21526_s22 = sld [smem:[#allocation17_spill]]  ;;  %s21527_s23 = sld [smem:[#allocation26_spill]] }
 0x7c6   : > { %s21528_s24 = sld [smem:[#allocation18_spill]]  ;;  %s21529_s25 = sld [smem:[#allocation19_spill]] }
 0x7c7   : > { %s21530_s26 = sld [smem:[#allocation29_spill]]  ;;  %s21531_s27 = sld [smem:[#allocation20_spill]] }
 0x7c8   : > { %s21532_s28 = sld [smem:[#allocation21_spill]]  ;;  %s21533_s29 = sld [smem:[#allocation25_spill]] }
 0x7ca   : > { %p26_p10 = scmp.ge.s32.totalorder %s21524_s30, 4  }
 0x7cc   :  { %28 = sbr.rel (!%p26_p10) target bundleno = 20 (0x14), region = 123 }
 0x7d3   :  { %12257 = vsyncpa [#allocation4], 1 }
 0x7d4   :  { %12259 = vsyncpa [#allocation4 + $0x1], 1 }
 0x7d5   :  { %12260 = vsyncpa [#allocation7], 1 }
 0x7d6   :  { %12262 = vsyncpa [#allocation7 + $0x1], 1 }
 0x7d7   :  { %12263 = vsyncpa [#allocation5], 1 }
 0x7d8   :  { %12265 = vsyncpa [#allocation5 + $0x1], 1 }
 0x7d9   :  { %12266 = vsyncpa [#allocation10], 1 }
 0x7da   :  { %12268 = vsyncpa [#allocation10 + $0x1], 1 }

</bundles_post_ra>
